<compile_context>
chip_gen: v7x
topology: tpu7x:2x2x1
jax: 0.10.0
libtpu: 0.0.40
codegen_flags: <defaults>
</compile_context>

<pallas_src>
import jax
import jax.numpy as jnp
from jax import lax
from jax.experimental import pallas as pl
from jax.experimental.pallas import tpu as pltpu


# ---------------------------------------------------------------------------
# Layout constants
# ---------------------------------------------------------------------------
CPAD = 128                  # all channel dims zero-padded to one full lane width
C1, C2, NCLS = 20, 50, 10   # real channel widths (conv1, conv2, classes)
K = 5                       # conv kernel size
COLS1 = K * K               # conv1 im2col width (Cin = 1)
B_TILE = 8                  # images per grid step == sublane width of all tiles


# ---------------------------------------------------------------------------
# Fused forward kernel (B_TILE images per grid step)
# ---------------------------------------------------------------------------
def _fused_forward_kernel(a1_ref, w1_ref, b1_ref, w2_ref, b2_ref,
                          wfc_ref, bfc_ref, o_ref, p1_scr, acc_scr):
    B = p1_scr.shape[2]

    # ---- conv1 + maxpool(2,2) + bias + ReLU ---------------------------------
    # a1 rows are ordered (pool-window pos rs, pool-row i, pool-col j, image b):
    # ONE matmul covers all 4 window positions, 12x12 positions and B images.
    a1 = a1_ref[0]                                              # (4*144*B, 25) bf16
    h1 = jnp.dot(a1, w1_ref[...],
                 preferred_element_type=jnp.float32)            # (4*144*B, 128) f32
    h1 = h1.reshape(4, 12, 12, B, CPAD)                         # free split (b stays on sublanes)
    p1 = jnp.maximum(jnp.maximum(h1[0], h1[1]),
                     jnp.maximum(h1[2], h1[3]))                 # pool1 max over leading axis
    # relu(max(x) + b) == max(relu(x + b)) since bias is per-channel and relu is monotone.
    p1_scr[...] = jnp.maximum(p1 + b1_ref[...], 0.0)            # (12, 12, B, 128)

    # ---- conv2: 25 taps, each LHS a pure leading-dim slab select ------------
    # (batch on sublanes, channels on lanes -> no (8,128) tile-boundary crossing).
    # f32 accumulation lives in a VMEM scratch so the unrolled loop has bounded
    # live ranges; LHS is cast to bf16 just before the MXU.
    for t in range(K * K):
        kh, kw = t // K, t % K
        lhs = p1_scr[kh:kh + 8, kw:kw + 8].reshape(64 * B, CPAD).astype(jnp.bfloat16)
        contrib = jnp.dot(lhs, w2_ref[t], preferred_element_type=jnp.float32)
        if t == 0:
            acc_scr[...] = contrib
        else:
            acc_scr[...] += contrib

    # ---- conv2 bias + ReLU, maxpool2(2,2), avgpool(4x4) ---------------------
    # Rows are ordered (i, j, b); all pooling axes are leading dims -> slab
    # selects + VPU max/add only, no XLU shuffles and no h2 scratch.
    h2 = jnp.maximum(acc_scr[...] + b2_ref[...], 0.0)           # (64*B, 128)
    h2 = h2.reshape(4, 2, 8, B, CPAD)                           # (i2, di, j, b, c)
    h2 = jnp.max(h2, axis=1)                                    # (4, 8, B, c)
    h2 = h2.reshape(4, 4, 2, B, CPAD)                           # (i2, j2, dj, b, c)
    p2 = jnp.max(h2, axis=2)                                    # (4, 4, B, c)
    feat = jnp.sum(p2.reshape(16, B, CPAD), axis=0) * (1.0 / 16.0)   # (B, 128)

    # ---- fc (50->10, padded to 128) + exact softmax -------------------------
    logits = jnp.dot(feat.astype(jnp.bfloat16), wfc_ref[...],
                     preferred_element_type=jnp.float32) + bfc_ref[...]   # (B, 128)
    lane = jax.lax.broadcasted_iota(jnp.int32, (1, CPAD), 1)
    valid = lane < NCLS
    logits = jnp.where(valid, logits, -1e30)
    m = jnp.max(logits, axis=-1, keepdims=True)
    e = jnp.where(valid, jnp.exp(logits - m), 0.0)
    s = jnp.sum(e, axis=-1, keepdims=True)
    o_ref[...] = e / s                                          # lane-dense (B, 128) store


# ---------------------------------------------------------------------------
# Wrapper-side glue: conv1 im2col (batch-interleaved), weight packing, call
# ---------------------------------------------------------------------------
def _build_a1(x, b_tile):
    """(n,1,28,28) f32 -> (n/b_tile, 4*144*b_tile, 25) bf16 conv1 im2col.

    Row order within a tile: (pool-window pos rs=2r+s, pool-row i, pool-col j,
    image b); column order: (kh, kw).  Batch innermost => batch lands on the
    sublane axis inside the kernel."""
    n = x.shape[0]
    img = x[:, 0]                                               # (n, 28, 28)
    cols = jnp.stack([img[:, kh:kh + 24, kw:kw + 24]
                      for kh in range(K) for kw in range(K)], axis=-1)   # (n,24,24,25)
    c = cols.reshape(n, 12, 2, 12, 2, COLS1)                    # (n, i, r, j, s, col)
    c = c.transpose(2, 4, 1, 3, 0, 5)                           # (r, s, i, j, n, col)
    c = c.reshape(4 * 144, n // b_tile, b_tile, COLS1)          # (576, T, B, col)
    a1 = c.transpose(1, 0, 2, 3).reshape(n // b_tile, 4 * 144 * b_tile, COLS1)
    return a1.astype(jnp.bfloat16)


def _pack_params(p):
    """PyTorch-layout params -> lane-padded (to 128) kernel operands.
    Padding is mathematically inert (padded weights/biases are zero)."""
    w1 = p["conv1_w"].reshape(C1, COLS1).T                      # (25, 20), row = kh*5+kw
    w2 = p["conv2_w"].transpose(2, 3, 1, 0).reshape(K * K, C1, C2)  # (25, 20, 50)
    wfc = p["fc_w"].T                                           # (50, 10)

    w1p = jnp.zeros((COLS1, CPAD), jnp.float32).at[:, :C1].set(w1).astype(jnp.bfloat16)
    b1p = jnp.zeros((1, CPAD), jnp.float32).at[0, :C1].set(p["conv1_b"])
    w2p = jnp.zeros((K * K, CPAD, CPAD), jnp.float32).at[:, :C1, :C2].set(w2).astype(jnp.bfloat16)
    b2p = jnp.zeros((1, CPAD), jnp.float32).at[0, :C2].set(p["conv2_b"])
    wfcp = jnp.zeros((CPAD, CPAD), jnp.float32).at[:C2, :NCLS].set(wfc).astype(jnp.bfloat16)
    bfcp = jnp.zeros((1, CPAD), jnp.float32).at[0, :NCLS].set(p["fc_b"])
    return w1p, b1p, w2p, b2p, wfcp, bfcp


def simplenet_v2_forward(x_nchw, params):
    n = x_nchw.shape[0]
    t = pl.cdiv(n, B_TILE)
    n_pad = t * B_TILE
    x = x_nchw.astype(jnp.float32)
    if n_pad != n:
        x = jnp.pad(x, ((0, n_pad - n), (0, 0), (0, 0), (0, 0)))

    a1 = _build_a1(x, B_TILE)                                   # (T, 4608, 25) bf16
    w1p, b1p, w2p, b2p, wfcp, bfcp = _pack_params(params)

    out = pl.pallas_call(
        _fused_forward_kernel,
        out_shape=jax.ShapeDtypeStruct((n_pad, CPAD), jnp.float32),
        grid_spec=pltpu.PrefetchScalarGridSpec(
            num_scalar_prefetch=0,
            grid=(t,),
            in_specs=[
                pl.BlockSpec((1, 4 * 144 * B_TILE, COLS1), lambda i: (i, 0, 0)),
                pl.BlockSpec((COLS1, CPAD), lambda i: (0, 0)),
                pl.BlockSpec((1, CPAD), lambda i: (0, 0)),
                pl.BlockSpec((K * K, CPAD, CPAD), lambda i: (0, 0, 0)),
                pl.BlockSpec((1, CPAD), lambda i: (0, 0)),
                pl.BlockSpec((CPAD, CPAD), lambda i: (0, 0)),
                pl.BlockSpec((1, CPAD), lambda i: (0, 0)),
            ],
            out_specs=pl.BlockSpec((B_TILE, CPAD), lambda i: (i, 0)),
            scratch_shapes=[
                pltpu.VMEM((12, 12, B_TILE, CPAD), jnp.float32),   # pool1 map (batch on sublanes)
                pltpu.VMEM((64 * B_TILE, CPAD), jnp.float32),      # conv2 accumulator
            ],
        ),
        compiler_params=pltpu.CompilerParams(
            dimension_semantics=("parallel",)),
    )(a1, w1p, b1p, w2p, b2p, wfcp, bfcp)
    return out[:n, :NCLS]


# ---------------------------------------------------------------------------
# Pure-JAX reference (mirrors the PyTorch module exactly)
# ---------------------------------------------------------------------------
def simplenet_v2_reference(x, p):
    x = x.astype(jnp.float32)
    dn = ("NCHW", "OIHW", "NCHW")
    y = lax.conv_general_dilated(x, p["conv1_w"], (1, 1), "VALID",
                                 dimension_numbers=dn) + p["conv1_b"][None, :, None, None]
    y = jax.nn.relu(y)
    y = lax.reduce_window(y, -jnp.inf, lax.max, (1, 1, 2, 2), (1, 1, 2, 2), "VALID")
    y = lax.conv_general_dilated(y, p["conv2_w"], (1, 1), "VALID",
                                 dimension_numbers=dn) + p["conv2_b"][None, :, None, None]
    y = jax.nn.relu(y)
    y = lax.reduce_window(y, -jnp.inf, lax.max, (1, 1, 2, 2), (1, 1, 2, 2), "VALID")
    feat = jnp.mean(y, axis=(2, 3))                              # AvgPool2d(4) -> view(N, 50)
    logits = feat @ p["fc_w"].T + p["fc_b"]
    return jax.nn.softmax(logits, axis=1)


# ---------------------------------------------------------------------------
# Synthetic parameters (PyTorch-default-style uniform init, PyTorch layouts)
# ---------------------------------------------------------------------------
def init_params(key):
    ks = jax.random.split(key, 6)

    def u(k, shape, fan_in):
        bound = 1.0 / (fan_in ** 0.5)
        return jax.random.uniform(k, shape, jnp.float32, -bound, bound)

    return dict(
        conv1_w=u(ks[0], (C1, 1, K, K), 25), conv1_b=u(ks[1], (C1,), 25),
        conv2_w=u(ks[2], (C2, C1, K, K), 500), conv2_b=u(ks[3], (C2,), 500),
        fc_w=u(ks[4], (NCLS, C2), 50), fc_b=u(ks[5], (NCLS,), 50),
    )


if __name__ == "__main__":
    key = jax.random.PRNGKey(0)
    kx, kp = jax.random.split(key)
    # MNIST-sized input; batch=16 -> 2 balanced grid steps of B_TILE=8 (v7x megacore).
    x = jax.random.normal(kx, (16, 1, 28, 28), jnp.float32)
    params = init_params(kp)

    out = jax.block_until_ready(jax.jit(simplenet_v2_forward)(x, params))
    assert out.shape == (16, NCLS)
    assert bool(jnp.all(jnp.isfinite(out)))
    # exact softmax division -> rows sum to 1 within f32 rounding
    assert bool(jnp.allclose(jnp.sum(out, axis=1), 1.0, atol=1e-3))

    ref = jax.block_until_ready(jax.jit(simplenet_v2_reference)(x, params))
    assert bool(jnp.allclose(out, ref, atol=2e-2)), float(jnp.max(jnp.abs(out - ref)))
    print("KERNEL_OK")
</pallas_src>

<mosaic_0001>
module attributes {stable_mosaic.version = 11 : i64} {
  func.func @_fused_forward_kernel(%arg0: i32, %arg1: memref<1x4608x25xbf16, #tpu.memory_space<vmem>>, %arg2: memref<25x128xbf16, #tpu.memory_space<vmem>>, %arg3: memref<1x128xf32, #tpu.memory_space<vmem>>, %arg4: memref<25x128x128xbf16, #tpu.memory_space<vmem>>, %arg5: memref<1x128xf32, #tpu.memory_space<vmem>>, %arg6: memref<128x128xbf16, #tpu.memory_space<vmem>>, %arg7: memref<1x128xf32, #tpu.memory_space<vmem>>, %arg8: memref<8x128xf32, #tpu.memory_space<vmem>>, %arg9: memref<12x12x8x128xf32, #tpu.memory_space<vmem>>, %arg10: memref<512x128xf32, #tpu.memory_space<vmem>>) attributes {dimension_semantics = [#tpu.dimension_semantics<parallel>], iteration_bounds = array<i64: 2>, scalar_prefetch = 0 : i64, scratch_operands = 2 : i64, tpu.core_type = #tpu.core_type<tc>, window_params = [{transform_indices = @transform_0, window_bounds = array<i64: 1, 4608, 25>}, {pipeline_mode = #tpu.pipeline_mode<synchronous>, transform_indices = @transform_1, window_bounds = array<i64: 25, 128>}, {pipeline_mode = #tpu.pipeline_mode<synchronous>, transform_indices = @transform_2, window_bounds = array<i64: 1, 128>}, {pipeline_mode = #tpu.pipeline_mode<synchronous>, transform_indices = @transform_3, window_bounds = array<i64: 25, 128, 128>}, {pipeline_mode = #tpu.pipeline_mode<synchronous>, transform_indices = @transform_4, window_bounds = array<i64: 1, 128>}, {pipeline_mode = #tpu.pipeline_mode<synchronous>, transform_indices = @transform_5, window_bounds = array<i64: 128, 128>}, {pipeline_mode = #tpu.pipeline_mode<synchronous>, transform_indices = @transform_6, window_bounds = array<i64: 1, 128>}, {transform_indices = @transform_7, window_bounds = array<i64: 8, 128>}]} {
    %c0 = arith.constant 0 : index
    %c0_0 = arith.constant 0 : index
    %c0_1 = arith.constant 0 : index
    %0 = vector.load %arg1[%c0, %c0_0, %c0_1] : memref<1x4608x25xbf16, #tpu.memory_space<vmem>>, vector<1x4608x25xbf16>
    %1 = vector.shape_cast %0 : vector<1x4608x25xbf16> to vector<4608x25xbf16>
    %c0_2 = arith.constant 0 : index
    %c0_3 = arith.constant 0 : index
    %2 = vector.load %arg2[%c0_2, %c0_3] : memref<25x128xbf16, #tpu.memory_space<vmem>>, vector<25x128xbf16>
    %cst = arith.constant dense<0.000000e+00> : vector<4608x128xf32>
    %3 = tpu.matmul %1, %2, %cst {dimension_numbers = #tpu.dot_dimension_numbers<[1], [0], [0], [1], [0, 0, 1, 1], [], []>} : vector<4608x25xbf16>, vector<25x128xbf16>, vector<4608x128xf32> -> vector<4608x128xf32>
    %4 = vector.shape_cast %3 : vector<4608x128xf32> to vector<4x12x12x8x128xf32>
    %5 = vector.extract_strided_slice %4 {offsets = [0, 0, 0, 0, 0], sizes = [1, 12, 12, 8, 128], strides = [1, 1, 1, 1, 1]} : vector<4x12x12x8x128xf32> to vector<1x12x12x8x128xf32>
    %6 = vector.shape_cast %5 : vector<1x12x12x8x128xf32> to vector<12x12x8x128xf32>
    %7 = vector.extract_strided_slice %4 {offsets = [1, 0, 0, 0, 0], sizes = [1, 12, 12, 8, 128], strides = [1, 1, 1, 1, 1]} : vector<4x12x12x8x128xf32> to vector<1x12x12x8x128xf32>
    %8 = vector.shape_cast %7 : vector<1x12x12x8x128xf32> to vector<12x12x8x128xf32>
    %9 = arith.maximumf %6, %8 : vector<12x12x8x128xf32>
    %10 = vector.extract_strided_slice %4 {offsets = [2, 0, 0, 0, 0], sizes = [1, 12, 12, 8, 128], strides = [1, 1, 1, 1, 1]} : vector<4x12x12x8x128xf32> to vector<1x12x12x8x128xf32>
    %11 = vector.shape_cast %10 : vector<1x12x12x8x128xf32> to vector<12x12x8x128xf32>
    %12 = vector.extract_strided_slice %4 {offsets = [3, 0, 0, 0, 0], sizes = [1, 12, 12, 8, 128], strides = [1, 1, 1, 1, 1]} : vector<4x12x12x8x128xf32> to vector<1x12x12x8x128xf32>
    %13 = vector.shape_cast %12 : vector<1x12x12x8x128xf32> to vector<12x12x8x128xf32>
    %14 = arith.maximumf %11, %13 : vector<12x12x8x128xf32>
    %15 = arith.maximumf %9, %14 : vector<12x12x8x128xf32>
    %c0_4 = arith.constant 0 : index
    %c0_5 = arith.constant 0 : index
    %16 = vector.load %arg3[%c0_4, %c0_5] : memref<1x128xf32, #tpu.memory_space<vmem>>, vector<1x128xf32>
    %17 = vector.shape_cast %16 : vector<1x128xf32> to vector<1x1x1x128xf32>
    %18 = vector.broadcast %17 : vector<1x1x1x128xf32> to vector<12x12x8x128xf32>
    %19 = arith.addf %15, %18 : vector<12x12x8x128xf32>
    %cst_6 = arith.constant 0.000000e+00 : f32
    %20 = vector.broadcast %cst_6 : f32 to vector<12x12x8x128xf32>
    %21 = arith.maximumf %19, %20 : vector<12x12x8x128xf32>
    %c0_7 = arith.constant 0 : index
    %c0_8 = arith.constant 0 : index
    %c0_9 = arith.constant 0 : index
    %c0_10 = arith.constant 0 : index
    %22 = vector.load %arg9[%c0_7, %c0_8, %c0_9, %c0_10] : memref<12x12x8x128xf32, #tpu.memory_space<vmem>>, vector<12x12x8x128xf32>
    tpu.vector_store %arg9[%c0_7, %c0_8, %c0_9, %c0_10], %21 {strides = array<i32>} : memref<12x12x8x128xf32, #tpu.memory_space<vmem>>, vector<12x12x8x128xf32>,
    %c0_11 = arith.constant 0 : index
    %c0_12 = arith.constant 0 : index
    %c0_13 = arith.constant 0 : index
    %c0_14 = arith.constant 0 : index
    %23 = vector.load %arg9[%c0_11, %c0_12, %c0_13, %c0_14] : memref<12x12x8x128xf32, #tpu.memory_space<vmem>>, vector<8x8x8x128xf32>
    %24 = vector.shape_cast %23 : vector<8x8x8x128xf32> to vector<512x128xf32>
    %25 = arith.truncf %24 : vector<512x128xf32> to vector<512x128xbf16>
    %c0_15 = arith.constant 0 : index
    %c0_16 = arith.constant 0 : index
    %c0_17 = arith.constant 0 : index
    %26 = vector.load %arg4[%c0_15, %c0_16, %c0_17] : memref<25x128x128xbf16, #tpu.memory_space<vmem>>, vector<1x128x128xbf16>
    %27 = vector.shape_cast %26 : vector<1x128x128xbf16> to vector<128x128xbf16>
    %cst_18 = arith.constant dense<0.000000e+00> : vector<512x128xf32>
    %28 = tpu.matmul %25, %27, %cst_18 {dimension_numbers = #tpu.dot_dimension_numbers<[1], [0], [0], [1], [0, 0, 1, 1], [], []>} : vector<512x128xbf16>, vector<128x128xbf16>, vector<512x128xf32> -> vector<512x128xf32>
    %c0_19 = arith.constant 0 : index
    %c0_20 = arith.constant 0 : index
    %29 = vector.load %arg10[%c0_19, %c0_20] : memref<512x128xf32, #tpu.memory_space<vmem>>, vector<512x128xf32>
    tpu.vector_store %arg10[%c0_19, %c0_20], %28 {strides = array<i32>} : memref<512x128xf32, #tpu.memory_space<vmem>>, vector<512x128xf32>,
    %c0_21 = arith.constant 0 : index
    %c1 = arith.constant 1 : index
    %c0_22 = arith.constant 0 : index
    %c0_23 = arith.constant 0 : index
    %30 = vector.load %arg9[%c0_21, %c1, %c0_22, %c0_23] : memref<12x12x8x128xf32, #tpu.memory_space<vmem>>, vector<8x8x8x128xf32>
    %31 = vector.shape_cast %30 : vector<8x8x8x128xf32> to vector<512x128xf32>
    %32 = arith.truncf %31 : vector<512x128xf32> to vector<512x128xbf16>
    %c1_24 = arith.constant 1 : index
    %c0_25 = arith.constant 0 : index
    %c0_26 = arith.constant 0 : index
    %33 = vector.load %arg4[%c1_24, %c0_25, %c0_26] : memref<25x128x128xbf16, #tpu.memory_space<vmem>>, vector<1x128x128xbf16>
    %34 = vector.shape_cast %33 : vector<1x128x128xbf16> to vector<128x128xbf16>
    %cst_27 = arith.constant dense<0.000000e+00> : vector<512x128xf32>
    %35 = tpu.matmul %32, %34, %cst_27 {dimension_numbers = #tpu.dot_dimension_numbers<[1], [0], [0], [1], [0, 0, 1, 1], [], []>} : vector<512x128xbf16>, vector<128x128xbf16>, vector<512x128xf32> -> vector<512x128xf32>
    %c0_28 = arith.constant 0 : index
    %c0_29 = arith.constant 0 : index
    %36 = vector.load %arg10[%c0_28, %c0_29] : memref<512x128xf32, #tpu.memory_space<vmem>>, vector<512x128xf32>
    %37 = arith.addf %36, %35 : vector<512x128xf32>
    %c0_30 = arith.constant 0 : index
    %c0_31 = arith.constant 0 : index
    %38 = vector.load %arg10[%c0_30, %c0_31] : memref<512x128xf32, #tpu.memory_space<vmem>>, vector<512x128xf32>
    tpu.vector_store %arg10[%c0_30, %c0_31], %37 {strides = array<i32>} : memref<512x128xf32, #tpu.memory_space<vmem>>, vector<512x128xf32>,
    %c0_32 = arith.constant 0 : index
    %c2 = arith.constant 2 : index
    %c0_33 = arith.constant 0 : index
    %c0_34 = arith.constant 0 : index
    %39 = vector.load %arg9[%c0_32, %c2, %c0_33, %c0_34] : memref<12x12x8x128xf32, #tpu.memory_space<vmem>>, vector<8x8x8x128xf32>
    %40 = vector.shape_cast %39 : vector<8x8x8x128xf32> to vector<512x128xf32>
    %41 = arith.truncf %40 : vector<512x128xf32> to vector<512x128xbf16>
    %c2_35 = arith.constant 2 : index
    %c0_36 = arith.constant 0 : index
    %c0_37 = arith.constant 0 : index
    %42 = vector.load %arg4[%c2_35, %c0_36, %c0_37] : memref<25x128x128xbf16, #tpu.memory_space<vmem>>, vector<1x128x128xbf16>
    %43 = vector.shape_cast %42 : vector<1x128x128xbf16> to vector<128x128xbf16>
    %cst_38 = arith.constant dense<0.000000e+00> : vector<512x128xf32>
    %44 = tpu.matmul %41, %43, %cst_38 {dimension_numbers = #tpu.dot_dimension_numbers<[1], [0], [0], [1], [0, 0, 1, 1], [], []>} : vector<512x128xbf16>, vector<128x128xbf16>, vector<512x128xf32> -> vector<512x128xf32>
    %c0_39 = arith.constant 0 : index
    %c0_40 = arith.constant 0 : index
    %45 = vector.load %arg10[%c0_39, %c0_40] : memref<512x128xf32, #tpu.memory_space<vmem>>, vector<512x128xf32>
    %46 = arith.addf %45, %44 : vector<512x128xf32>
    %c0_41 = arith.constant 0 : index
    %c0_42 = arith.constant 0 : index
    %47 = vector.load %arg10[%c0_41, %c0_42] : memref<512x128xf32, #tpu.memory_space<vmem>>, vector<512x128xf32>
    tpu.vector_store %arg10[%c0_41, %c0_42], %46 {strides = array<i32>} : memref<512x128xf32, #tpu.memory_space<vmem>>, vector<512x128xf32>,
    %c0_43 = arith.constant 0 : index
    %c3 = arith.constant 3 : index
    %c0_44 = arith.constant 0 : index
    %c0_45 = arith.constant 0 : index
    %48 = vector.load %arg9[%c0_43, %c3, %c0_44, %c0_45] : memref<12x12x8x128xf32, #tpu.memory_space<vmem>>, vector<8x8x8x128xf32>
    %49 = vector.shape_cast %48 : vector<8x8x8x128xf32> to vector<512x128xf32>
    %50 = arith.truncf %49 : vector<512x128xf32> to vector<512x128xbf16>
    %c3_46 = arith.constant 3 : index
    %c0_47 = arith.constant 0 : index
    %c0_48 = arith.constant 0 : index
    %51 = vector.load %arg4[%c3_46, %c0_47, %c0_48] : memref<25x128x128xbf16, #tpu.memory_space<vmem>>, vector<1x128x128xbf16>
    %52 = vector.shape_cast %51 : vector<1x128x128xbf16> to vector<128x128xbf16>
    %cst_49 = arith.constant dense<0.000000e+00> : vector<512x128xf32>
    %53 = tpu.matmul %50, %52, %cst_49 {dimension_numbers = #tpu.dot_dimension_numbers<[1], [0], [0], [1], [0, 0, 1, 1], [], []>} : vector<512x128xbf16>, vector<128x128xbf16>, vector<512x128xf32> -> vector<512x128xf32>
    %c0_50 = arith.constant 0 : index
    %c0_51 = arith.constant 0 : index
    %54 = vector.load %arg10[%c0_50, %c0_51] : memref<512x128xf32, #tpu.memory_space<vmem>>, vector<512x128xf32>
    %55 = arith.addf %54, %53 : vector<512x128xf32>
    %c0_52 = arith.constant 0 : index
    %c0_53 = arith.constant 0 : index
    %56 = vector.load %arg10[%c0_52, %c0_53] : memref<512x128xf32, #tpu.memory_space<vmem>>, vector<512x128xf32>
    tpu.vector_store %arg10[%c0_52, %c0_53], %55 {strides = array<i32>} : memref<512x128xf32, #tpu.memory_space<vmem>>, vector<512x128xf32>,
    %c0_54 = arith.constant 0 : index
    %c4 = arith.constant 4 : index
    %c0_55 = arith.constant 0 : index
    %c0_56 = arith.constant 0 : index
    %57 = vector.load %arg9[%c0_54, %c4, %c0_55, %c0_56] : memref<12x12x8x128xf32, #tpu.memory_space<vmem>>, vector<8x8x8x128xf32>
    %58 = vector.shape_cast %57 : vector<8x8x8x128xf32> to vector<512x128xf32>
    %59 = arith.truncf %58 : vector<512x128xf32> to vector<512x128xbf16>
    %c4_57 = arith.constant 4 : index
    %c0_58 = arith.constant 0 : index
    %c0_59 = arith.constant 0 : index
    %60 = vector.load %arg4[%c4_57, %c0_58, %c0_59] : memref<25x128x128xbf16, #tpu.memory_space<vmem>>, vector<1x128x128xbf16>
    %61 = vector.shape_cast %60 : vector<1x128x128xbf16> to vector<128x128xbf16>
    %cst_60 = arith.constant dense<0.000000e+00> : vector<512x128xf32>
    %62 = tpu.matmul %59, %61, %cst_60 {dimension_numbers = #tpu.dot_dimension_numbers<[1], [0], [0], [1], [0, 0, 1, 1], [], []>} : vector<512x128xbf16>, vector<128x128xbf16>, vector<512x128xf32> -> vector<512x128xf32>
    %c0_61 = arith.constant 0 : index
    %c0_62 = arith.constant 0 : index
    %63 = vector.load %arg10[%c0_61, %c0_62] : memref<512x128xf32, #tpu.memory_space<vmem>>, vector<512x128xf32>
    %64 = arith.addf %63, %62 : vector<512x128xf32>
    %c0_63 = arith.constant 0 : index
    %c0_64 = arith.constant 0 : index
    %65 = vector.load %arg10[%c0_63, %c0_64] : memref<512x128xf32, #tpu.memory_space<vmem>>, vector<512x128xf32>
    tpu.vector_store %arg10[%c0_63, %c0_64], %64 {strides = array<i32>} : memref<512x128xf32, #tpu.memory_space<vmem>>, vector<512x128xf32>,
    %c1_65 = arith.constant 1 : index
    %c0_66 = arith.constant 0 : index
    %c0_67 = arith.constant 0 : index
    %c0_68 = arith.constant 0 : index
    %66 = vector.load %arg9[%c1_65, %c0_66, %c0_67, %c0_68] : memref<12x12x8x128xf32, #tpu.memory_space<vmem>>, vector<8x8x8x128xf32>
    %67 = vector.shape_cast %66 : vector<8x8x8x128xf32> to vector<512x128xf32>
    %68 = arith.truncf %67 : vector<512x128xf32> to vector<512x128xbf16>
    %c5 = arith.constant 5 : index
    %c0_69 = arith.constant 0 : index
    %c0_70 = arith.constant 0 : index
    %69 = vector.load %arg4[%c5, %c0_69, %c0_70] : memref<25x128x128xbf16, #tpu.memory_space<vmem>>, vector<1x128x128xbf16>
    %70 = vector.shape_cast %69 : vector<1x128x128xbf16> to vector<128x128xbf16>
    %cst_71 = arith.constant dense<0.000000e+00> : vector<512x128xf32>
    %71 = tpu.matmul %68, %70, %cst_71 {dimension_numbers = #tpu.dot_dimension_numbers<[1], [0], [0], [1], [0, 0, 1, 1], [], []>} : vector<512x128xbf16>, vector<128x128xbf16>, vector<512x128xf32> -> vector<512x128xf32>
    %c0_72 = arith.constant 0 : index
    %c0_73 = arith.constant 0 : index
    %72 = vector.load %arg10[%c0_72, %c0_73] : memref<512x128xf32, #tpu.memory_space<vmem>>, vector<512x128xf32>
    %73 = arith.addf %72, %71 : vector<512x128xf32>
    %c0_74 = arith.constant 0 : index
    %c0_75 = arith.constant 0 : index
    %74 = vector.load %arg10[%c0_74, %c0_75] : memref<512x128xf32, #tpu.memory_space<vmem>>, vector<512x128xf32>
    tpu.vector_store %arg10[%c0_74, %c0_75], %73 {strides = array<i32>} : memref<512x128xf32, #tpu.memory_space<vmem>>, vector<512x128xf32>,
    %c1_76 = arith.constant 1 : index
    %c1_77 = arith.constant 1 : index
    %c0_78 = arith.constant 0 : index
    %c0_79 = arith.constant 0 : index
    %75 = vector.load %arg9[%c1_76, %c1_77, %c0_78, %c0_79] : memref<12x12x8x128xf32, #tpu.memory_space<vmem>>, vector<8x8x8x128xf32>
    %76 = vector.shape_cast %75 : vector<8x8x8x128xf32> to vector<512x128xf32>
    %77 = arith.truncf %76 : vector<512x128xf32> to vector<512x128xbf16>
    %c6 = arith.constant 6 : index
    %c0_80 = arith.constant 0 : index
    %c0_81 = arith.constant 0 : index
    %78 = vector.load %arg4[%c6, %c0_80, %c0_81] : memref<25x128x128xbf16, #tpu.memory_space<vmem>>, vector<1x128x128xbf16>
    %79 = vector.shape_cast %78 : vector<1x128x128xbf16> to vector<128x128xbf16>
    %cst_82 = arith.constant dense<0.000000e+00> : vector<512x128xf32>
    %80 = tpu.matmul %77, %79, %cst_82 {dimension_numbers = #tpu.dot_dimension_numbers<[1], [0], [0], [1], [0, 0, 1, 1], [], []>} : vector<512x128xbf16>, vector<128x128xbf16>, vector<512x128xf32> -> vector<512x128xf32>
    %c0_83 = arith.constant 0 : index
    %c0_84 = arith.constant 0 : index
    %81 = vector.load %arg10[%c0_83, %c0_84] : memref<512x128xf32, #tpu.memory_space<vmem>>, vector<512x128xf32>
    %82 = arith.addf %81, %80 : vector<512x128xf32>
    %c0_85 = arith.constant 0 : index
    %c0_86 = arith.constant 0 : index
    %83 = vector.load %arg10[%c0_85, %c0_86] : memref<512x128xf32, #tpu.memory_space<vmem>>, vector<512x128xf32>
    tpu.vector_store %arg10[%c0_85, %c0_86], %82 {strides = array<i32>} : memref<512x128xf32, #tpu.memory_space<vmem>>, vector<512x128xf32>,
    %c1_87 = arith.constant 1 : index
    %c2_88 = arith.constant 2 : index
    %c0_89 = arith.constant 0 : index
    %c0_90 = arith.constant 0 : index
    %84 = vector.load %arg9[%c1_87, %c2_88, %c0_89, %c0_90] : memref<12x12x8x128xf32, #tpu.memory_space<vmem>>, vector<8x8x8x128xf32>
    %85 = vector.shape_cast %84 : vector<8x8x8x128xf32> to vector<512x128xf32>
    %86 = arith.truncf %85 : vector<512x128xf32> to vector<512x128xbf16>
    %c7 = arith.constant 7 : index
    %c0_91 = arith.constant 0 : index
    %c0_92 = arith.constant 0 : index
    %87 = vector.load %arg4[%c7, %c0_91, %c0_92] : memref<25x128x128xbf16, #tpu.memory_space<vmem>>, vector<1x128x128xbf16>
    %88 = vector.shape_cast %87 : vector<1x128x128xbf16> to vector<128x128xbf16>
    %cst_93 = arith.constant dense<0.000000e+00> : vector<512x128xf32>
    %89 = tpu.matmul %86, %88, %cst_93 {dimension_numbers = #tpu.dot_dimension_numbers<[1], [0], [0], [1], [0, 0, 1, 1], [], []>} : vector<512x128xbf16>, vector<128x128xbf16>, vector<512x128xf32> -> vector<512x128xf32>
    %c0_94 = arith.constant 0 : index
    %c0_95 = arith.constant 0 : index
    %90 = vector.load %arg10[%c0_94, %c0_95] : memref<512x128xf32, #tpu.memory_space<vmem>>, vector<512x128xf32>
    %91 = arith.addf %90, %89 : vector<512x128xf32>
    %c0_96 = arith.constant 0 : index
    %c0_97 = arith.constant 0 : index
    %92 = vector.load %arg10[%c0_96, %c0_97] : memref<512x128xf32, #tpu.memory_space<vmem>>, vector<512x128xf32>
    tpu.vector_store %arg10[%c0_96, %c0_97], %91 {strides = array<i32>} : memref<512x128xf32, #tpu.memory_space<vmem>>, vector<512x128xf32>,
    %c1_98 = arith.constant 1 : index
    %c3_99 = arith.constant 3 : index
    %c0_100 = arith.constant 0 : index
    %c0_101 = arith.constant 0 : index
    %93 = vector.load %arg9[%c1_98, %c3_99, %c0_100, %c0_101] : memref<12x12x8x128xf32, #tpu.memory_space<vmem>>, vector<8x8x8x128xf32>
    %94 = vector.shape_cast %93 : vector<8x8x8x128xf32> to vector<512x128xf32>
    %95 = arith.truncf %94 : vector<512x128xf32> to vector<512x128xbf16>
    %c8 = arith.constant 8 : index
    %c0_102 = arith.constant 0 : index
    %c0_103 = arith.constant 0 : index
    %96 = vector.load %arg4[%c8, %c0_102, %c0_103] : memref<25x128x128xbf16, #tpu.memory_space<vmem>>, vector<1x128x128xbf16>
    %97 = vector.shape_cast %96 : vector<1x128x128xbf16> to vector<128x128xbf16>
    %cst_104 = arith.constant dense<0.000000e+00> : vector<512x128xf32>
    %98 = tpu.matmul %95, %97, %cst_104 {dimension_numbers = #tpu.dot_dimension_numbers<[1], [0], [0], [1], [0, 0, 1, 1], [], []>} : vector<512x128xbf16>, vector<128x128xbf16>, vector<512x128xf32> -> vector<512x128xf32>
    %c0_105 = arith.constant 0 : index
    %c0_106 = arith.constant 0 : index
    %99 = vector.load %arg10[%c0_105, %c0_106] : memref<512x128xf32, #tpu.memory_space<vmem>>, vector<512x128xf32>
    %100 = arith.addf %99, %98 : vector<512x128xf32>
    %c0_107 = arith.constant 0 : index
    %c0_108 = arith.constant 0 : index
    %101 = vector.load %arg10[%c0_107, %c0_108] : memref<512x128xf32, #tpu.memory_space<vmem>>, vector<512x128xf32>
    tpu.vector_store %arg10[%c0_107, %c0_108], %100 {strides = array<i32>} : memref<512x128xf32, #tpu.memory_space<vmem>>, vector<512x128xf32>,
    %c1_109 = arith.constant 1 : index
    %c4_110 = arith.constant 4 : index
    %c0_111 = arith.constant 0 : index
    %c0_112 = arith.constant 0 : index
    %102 = vector.load %arg9[%c1_109, %c4_110, %c0_111, %c0_112] : memref<12x12x8x128xf32, #tpu.memory_space<vmem>>, vector<8x8x8x128xf32>
    %103 = vector.shape_cast %102 : vector<8x8x8x128xf32> to vector<512x128xf32>
    %104 = arith.truncf %103 : vector<512x128xf32> to vector<512x128xbf16>
    %c9 = arith.constant 9 : index
    %c0_113 = arith.constant 0 : index
    %c0_114 = arith.constant 0 : index
    %105 = vector.load %arg4[%c9, %c0_113, %c0_114] : memref<25x128x128xbf16, #tpu.memory_space<vmem>>, vector<1x128x128xbf16>
    %106 = vector.shape_cast %105 : vector<1x128x128xbf16> to vector<128x128xbf16>
    %cst_115 = arith.constant dense<0.000000e+00> : vector<512x128xf32>
    %107 = tpu.matmul %104, %106, %cst_115 {dimension_numbers = #tpu.dot_dimension_numbers<[1], [0], [0], [1], [0, 0, 1, 1], [], []>} : vector<512x128xbf16>, vector<128x128xbf16>, vector<512x128xf32> -> vector<512x128xf32>
    %c0_116 = arith.constant 0 : index
    %c0_117 = arith.constant 0 : index
    %108 = vector.load %arg10[%c0_116, %c0_117] : memref<512x128xf32, #tpu.memory_space<vmem>>, vector<512x128xf32>
    %109 = arith.addf %108, %107 : vector<512x128xf32>
    %c0_118 = arith.constant 0 : index
    %c0_119 = arith.constant 0 : index
    %110 = vector.load %arg10[%c0_118, %c0_119] : memref<512x128xf32, #tpu.memory_space<vmem>>, vector<512x128xf32>
    tpu.vector_store %arg10[%c0_118, %c0_119], %109 {strides = array<i32>} : memref<512x128xf32, #tpu.memory_space<vmem>>, vector<512x128xf32>,
    %c2_120 = arith.constant 2 : index
    %c0_121 = arith.constant 0 : index
    %c0_122 = arith.constant 0 : index
    %c0_123 = arith.constant 0 : index
    %111 = vector.load %arg9[%c2_120, %c0_121, %c0_122, %c0_123] : memref<12x12x8x128xf32, #tpu.memory_space<vmem>>, vector<8x8x8x128xf32>
    %112 = vector.shape_cast %111 : vector<8x8x8x128xf32> to vector<512x128xf32>
    %113 = arith.truncf %112 : vector<512x128xf32> to vector<512x128xbf16>
    %c10 = arith.constant 10 : index
    %c0_124 = arith.constant 0 : index
    %c0_125 = arith.constant 0 : index
    %114 = vector.load %arg4[%c10, %c0_124, %c0_125] : memref<25x128x128xbf16, #tpu.memory_space<vmem>>, vector<1x128x128xbf16>
    %115 = vector.shape_cast %114 : vector<1x128x128xbf16> to vector<128x128xbf16>
    %cst_126 = arith.constant dense<0.000000e+00> : vector<512x128xf32>
    %116 = tpu.matmul %113, %115, %cst_126 {dimension_numbers = #tpu.dot_dimension_numbers<[1], [0], [0], [1], [0, 0, 1, 1], [], []>} : vector<512x128xbf16>, vector<128x128xbf16>, vector<512x128xf32> -> vector<512x128xf32>
    %c0_127 = arith.constant 0 : index
    %c0_128 = arith.constant 0 : index
    %117 = vector.load %arg10[%c0_127, %c0_128] : memref<512x128xf32, #tpu.memory_space<vmem>>, vector<512x128xf32>
    %118 = arith.addf %117, %116 : vector<512x128xf32>
    %c0_129 = arith.constant 0 : index
    %c0_130 = arith.constant 0 : index
    %119 = vector.load %arg10[%c0_129, %c0_130] : memref<512x128xf32, #tpu.memory_space<vmem>>, vector<512x128xf32>
    tpu.vector_store %arg10[%c0_129, %c0_130], %118 {strides = array<i32>} : memref<512x128xf32, #tpu.memory_space<vmem>>, vector<512x128xf32>,
    %c2_131 = arith.constant 2 : index
    %c1_132 = arith.constant 1 : index
    %c0_133 = arith.constant 0 : index
    %c0_134 = arith.constant 0 : index
    %120 = vector.load %arg9[%c2_131, %c1_132, %c0_133, %c0_134] : memref<12x12x8x128xf32, #tpu.memory_space<vmem>>, vector<8x8x8x128xf32>
    %121 = vector.shape_cast %120 : vector<8x8x8x128xf32> to vector<512x128xf32>
    %122 = arith.truncf %121 : vector<512x128xf32> to vector<512x128xbf16>
    %c11 = arith.constant 11 : index
    %c0_135 = arith.constant 0 : index
    %c0_136 = arith.constant 0 : index
    %123 = vector.load %arg4[%c11, %c0_135, %c0_136] : memref<25x128x128xbf16, #tpu.memory_space<vmem>>, vector<1x128x128xbf16>
    %124 = vector.shape_cast %123 : vector<1x128x128xbf16> to vector<128x128xbf16>
    %cst_137 = arith.constant dense<0.000000e+00> : vector<512x128xf32>
    %125 = tpu.matmul %122, %124, %cst_137 {dimension_numbers = #tpu.dot_dimension_numbers<[1], [0], [0], [1], [0, 0, 1, 1], [], []>} : vector<512x128xbf16>, vector<128x128xbf16>, vector<512x128xf32> -> vector<512x128xf32>
    %c0_138 = arith.constant 0 : index
    %c0_139 = arith.constant 0 : index
    %126 = vector.load %arg10[%c0_138, %c0_139] : memref<512x128xf32, #tpu.memory_space<vmem>>, vector<512x128xf32>
    %127 = arith.addf %126, %125 : vector<512x128xf32>
    %c0_140 = arith.constant 0 : index
    %c0_141 = arith.constant 0 : index
    %128 = vector.load %arg10[%c0_140, %c0_141] : memref<512x128xf32, #tpu.memory_space<vmem>>, vector<512x128xf32>
    tpu.vector_store %arg10[%c0_140, %c0_141], %127 {strides = array<i32>} : memref<512x128xf32, #tpu.memory_space<vmem>>, vector<512x128xf32>,
    %c2_142 = arith.constant 2 : index
    %c2_143 = arith.constant 2 : index
    %c0_144 = arith.constant 0 : index
    %c0_145 = arith.constant 0 : index
    %129 = vector.load %arg9[%c2_142, %c2_143, %c0_144, %c0_145] : memref<12x12x8x128xf32, #tpu.memory_space<vmem>>, vector<8x8x8x128xf32>
    %130 = vector.shape_cast %129 : vector<8x8x8x128xf32> to vector<512x128xf32>
    %131 = arith.truncf %130 : vector<512x128xf32> to vector<512x128xbf16>
    %c12 = arith.constant 12 : index
    %c0_146 = arith.constant 0 : index
    %c0_147 = arith.constant 0 : index
    %132 = vector.load %arg4[%c12, %c0_146, %c0_147] : memref<25x128x128xbf16, #tpu.memory_space<vmem>>, vector<1x128x128xbf16>
    %133 = vector.shape_cast %132 : vector<1x128x128xbf16> to vector<128x128xbf16>
    %cst_148 = arith.constant dense<0.000000e+00> : vector<512x128xf32>
    %134 = tpu.matmul %131, %133, %cst_148 {dimension_numbers = #tpu.dot_dimension_numbers<[1], [0], [0], [1], [0, 0, 1, 1], [], []>} : vector<512x128xbf16>, vector<128x128xbf16>, vector<512x128xf32> -> vector<512x128xf32>
    %c0_149 = arith.constant 0 : index
    %c0_150 = arith.constant 0 : index
    %135 = vector.load %arg10[%c0_149, %c0_150] : memref<512x128xf32, #tpu.memory_space<vmem>>, vector<512x128xf32>
    %136 = arith.addf %135, %134 : vector<512x128xf32>
    %c0_151 = arith.constant 0 : index
    %c0_152 = arith.constant 0 : index
    %137 = vector.load %arg10[%c0_151, %c0_152] : memref<512x128xf32, #tpu.memory_space<vmem>>, vector<512x128xf32>
    tpu.vector_store %arg10[%c0_151, %c0_152], %136 {strides = array<i32>} : memref<512x128xf32, #tpu.memory_space<vmem>>, vector<512x128xf32>,
    %c2_153 = arith.constant 2 : index
    %c3_154 = arith.constant 3 : index
    %c0_155 = arith.constant 0 : index
    %c0_156 = arith.constant 0 : index
    %138 = vector.load %arg9[%c2_153, %c3_154, %c0_155, %c0_156] : memref<12x12x8x128xf32, #tpu.memory_space<vmem>>, vector<8x8x8x128xf32>
    %139 = vector.shape_cast %138 : vector<8x8x8x128xf32> to vector<512x128xf32>
    %140 = arith.truncf %139 : vector<512x128xf32> to vector<512x128xbf16>
    %c13 = arith.constant 13 : index
    %c0_157 = arith.constant 0 : index
    %c0_158 = arith.constant 0 : index
    %141 = vector.load %arg4[%c13, %c0_157, %c0_158] : memref<25x128x128xbf16, #tpu.memory_space<vmem>>, vector<1x128x128xbf16>
    %142 = vector.shape_cast %141 : vector<1x128x128xbf16> to vector<128x128xbf16>
    %cst_159 = arith.constant dense<0.000000e+00> : vector<512x128xf32>
    %143 = tpu.matmul %140, %142, %cst_159 {dimension_numbers = #tpu.dot_dimension_numbers<[1], [0], [0], [1], [0, 0, 1, 1], [], []>} : vector<512x128xbf16>, vector<128x128xbf16>, vector<512x128xf32> -> vector<512x128xf32>
    %c0_160 = arith.constant 0 : index
    %c0_161 = arith.constant 0 : index
    %144 = vector.load %arg10[%c0_160, %c0_161] : memref<512x128xf32, #tpu.memory_space<vmem>>, vector<512x128xf32>
    %145 = arith.addf %144, %143 : vector<512x128xf32>
    %c0_162 = arith.constant 0 : index
    %c0_163 = arith.constant 0 : index
    %146 = vector.load %arg10[%c0_162, %c0_163] : memref<512x128xf32, #tpu.memory_space<vmem>>, vector<512x128xf32>
    tpu.vector_store %arg10[%c0_162, %c0_163], %145 {strides = array<i32>} : memref<512x128xf32, #tpu.memory_space<vmem>>, vector<512x128xf32>,
    %c2_164 = arith.constant 2 : index
    %c4_165 = arith.constant 4 : index
    %c0_166 = arith.constant 0 : index
    %c0_167 = arith.constant 0 : index
    %147 = vector.load %arg9[%c2_164, %c4_165, %c0_166, %c0_167] : memref<12x12x8x128xf32, #tpu.memory_space<vmem>>, vector<8x8x8x128xf32>
    %148 = vector.shape_cast %147 : vector<8x8x8x128xf32> to vector<512x128xf32>
    %149 = arith.truncf %148 : vector<512x128xf32> to vector<512x128xbf16>
    %c14 = arith.constant 14 : index
    %c0_168 = arith.constant 0 : index
    %c0_169 = arith.constant 0 : index
    %150 = vector.load %arg4[%c14, %c0_168, %c0_169] : memref<25x128x128xbf16, #tpu.memory_space<vmem>>, vector<1x128x128xbf16>
    %151 = vector.shape_cast %150 : vector<1x128x128xbf16> to vector<128x128xbf16>
    %cst_170 = arith.constant dense<0.000000e+00> : vector<512x128xf32>
    %152 = tpu.matmul %149, %151, %cst_170 {dimension_numbers = #tpu.dot_dimension_numbers<[1], [0], [0], [1], [0, 0, 1, 1], [], []>} : vector<512x128xbf16>, vector<128x128xbf16>, vector<512x128xf32> -> vector<512x128xf32>
    %c0_171 = arith.constant 0 : index
    %c0_172 = arith.constant 0 : index
    %153 = vector.load %arg10[%c0_171, %c0_172] : memref<512x128xf32, #tpu.memory_space<vmem>>, vector<512x128xf32>
    %154 = arith.addf %153, %152 : vector<512x128xf32>
    %c0_173 = arith.constant 0 : index
    %c0_174 = arith.constant 0 : index
    %155 = vector.load %arg10[%c0_173, %c0_174] : memref<512x128xf32, #tpu.memory_space<vmem>>, vector<512x128xf32>
    tpu.vector_store %arg10[%c0_173, %c0_174], %154 {strides = array<i32>} : memref<512x128xf32, #tpu.memory_space<vmem>>, vector<512x128xf32>,
    %c3_175 = arith.constant 3 : index
    %c0_176 = arith.constant 0 : index
    %c0_177 = arith.constant 0 : index
    %c0_178 = arith.constant 0 : index
    %156 = vector.load %arg9[%c3_175, %c0_176, %c0_177, %c0_178] : memref<12x12x8x128xf32, #tpu.memory_space<vmem>>, vector<8x8x8x128xf32>
    %157 = vector.shape_cast %156 : vector<8x8x8x128xf32> to vector<512x128xf32>
    %158 = arith.truncf %157 : vector<512x128xf32> to vector<512x128xbf16>
    %c15 = arith.constant 15 : index
    %c0_179 = arith.constant 0 : index
    %c0_180 = arith.constant 0 : index
    %159 = vector.load %arg4[%c15, %c0_179, %c0_180] : memref<25x128x128xbf16, #tpu.memory_space<vmem>>, vector<1x128x128xbf16>
    %160 = vector.shape_cast %159 : vector<1x128x128xbf16> to vector<128x128xbf16>
    %cst_181 = arith.constant dense<0.000000e+00> : vector<512x128xf32>
    %161 = tpu.matmul %158, %160, %cst_181 {dimension_numbers = #tpu.dot_dimension_numbers<[1], [0], [0], [1], [0, 0, 1, 1], [], []>} : vector<512x128xbf16>, vector<128x128xbf16>, vector<512x128xf32> -> vector<512x128xf32>
    %c0_182 = arith.constant 0 : index
    %c0_183 = arith.constant 0 : index
    %162 = vector.load %arg10[%c0_182, %c0_183] : memref<512x128xf32, #tpu.memory_space<vmem>>, vector<512x128xf32>
    %163 = arith.addf %162, %161 : vector<512x128xf32>
    %c0_184 = arith.constant 0 : index
    %c0_185 = arith.constant 0 : index
    %164 = vector.load %arg10[%c0_184, %c0_185] : memref<512x128xf32, #tpu.memory_space<vmem>>, vector<512x128xf32>
    tpu.vector_store %arg10[%c0_184, %c0_185], %163 {strides = array<i32>} : memref<512x128xf32, #tpu.memory_space<vmem>>, vector<512x128xf32>,
    %c3_186 = arith.constant 3 : index
    %c1_187 = arith.constant 1 : index
    %c0_188 = arith.constant 0 : index
    %c0_189 = arith.constant 0 : index
    %165 = vector.load %arg9[%c3_186, %c1_187, %c0_188, %c0_189] : memref<12x12x8x128xf32, #tpu.memory_space<vmem>>, vector<8x8x8x128xf32>
    %166 = vector.shape_cast %165 : vector<8x8x8x128xf32> to vector<512x128xf32>
    %167 = arith.truncf %166 : vector<512x128xf32> to vector<512x128xbf16>
    %c16 = arith.constant 16 : index
    %c0_190 = arith.constant 0 : index
    %c0_191 = arith.constant 0 : index
    %168 = vector.load %arg4[%c16, %c0_190, %c0_191] : memref<25x128x128xbf16, #tpu.memory_space<vmem>>, vector<1x128x128xbf16>
    %169 = vector.shape_cast %168 : vector<1x128x128xbf16> to vector<128x128xbf16>
    %cst_192 = arith.constant dense<0.000000e+00> : vector<512x128xf32>
    %170 = tpu.matmul %167, %169, %cst_192 {dimension_numbers = #tpu.dot_dimension_numbers<[1], [0], [0], [1], [0, 0, 1, 1], [], []>} : vector<512x128xbf16>, vector<128x128xbf16>, vector<512x128xf32> -> vector<512x128xf32>
    %c0_193 = arith.constant 0 : index
    %c0_194 = arith.constant 0 : index
    %171 = vector.load %arg10[%c0_193, %c0_194] : memref<512x128xf32, #tpu.memory_space<vmem>>, vector<512x128xf32>
    %172 = arith.addf %171, %170 : vector<512x128xf32>
    %c0_195 = arith.constant 0 : index
    %c0_196 = arith.constant 0 : index
    %173 = vector.load %arg10[%c0_195, %c0_196] : memref<512x128xf32, #tpu.memory_space<vmem>>, vector<512x128xf32>
    tpu.vector_store %arg10[%c0_195, %c0_196], %172 {strides = array<i32>} : memref<512x128xf32, #tpu.memory_space<vmem>>, vector<512x128xf32>,
    %c3_197 = arith.constant 3 : index
    %c2_198 = arith.constant 2 : index
    %c0_199 = arith.constant 0 : index
    %c0_200 = arith.constant 0 : index
    %174 = vector.load %arg9[%c3_197, %c2_198, %c0_199, %c0_200] : memref<12x12x8x128xf32, #tpu.memory_space<vmem>>, vector<8x8x8x128xf32>
    %175 = vector.shape_cast %174 : vector<8x8x8x128xf32> to vector<512x128xf32>
    %176 = arith.truncf %175 : vector<512x128xf32> to vector<512x128xbf16>
    %c17 = arith.constant 17 : index
    %c0_201 = arith.constant 0 : index
    %c0_202 = arith.constant 0 : index
    %177 = vector.load %arg4[%c17, %c0_201, %c0_202] : memref<25x128x128xbf16, #tpu.memory_space<vmem>>, vector<1x128x128xbf16>
    %178 = vector.shape_cast %177 : vector<1x128x128xbf16> to vector<128x128xbf16>
    %cst_203 = arith.constant dense<0.000000e+00> : vector<512x128xf32>
    %179 = tpu.matmul %176, %178, %cst_203 {dimension_numbers = #tpu.dot_dimension_numbers<[1], [0], [0], [1], [0, 0, 1, 1], [], []>} : vector<512x128xbf16>, vector<128x128xbf16>, vector<512x128xf32> -> vector<512x128xf32>
    %c0_204 = arith.constant 0 : index
    %c0_205 = arith.constant 0 : index
    %180 = vector.load %arg10[%c0_204, %c0_205] : memref<512x128xf32, #tpu.memory_space<vmem>>, vector<512x128xf32>
    %181 = arith.addf %180, %179 : vector<512x128xf32>
    %c0_206 = arith.constant 0 : index
    %c0_207 = arith.constant 0 : index
    %182 = vector.load %arg10[%c0_206, %c0_207] : memref<512x128xf32, #tpu.memory_space<vmem>>, vector<512x128xf32>
    tpu.vector_store %arg10[%c0_206, %c0_207], %181 {strides = array<i32>} : memref<512x128xf32, #tpu.memory_space<vmem>>, vector<512x128xf32>,
    %c3_208 = arith.constant 3 : index
    %c3_209 = arith.constant 3 : index
    %c0_210 = arith.constant 0 : index
    %c0_211 = arith.constant 0 : index
    %183 = vector.load %arg9[%c3_208, %c3_209, %c0_210, %c0_211] : memref<12x12x8x128xf32, #tpu.memory_space<vmem>>, vector<8x8x8x128xf32>
    %184 = vector.shape_cast %183 : vector<8x8x8x128xf32> to vector<512x128xf32>
    %185 = arith.truncf %184 : vector<512x128xf32> to vector<512x128xbf16>
    %c18 = arith.constant 18 : index
    %c0_212 = arith.constant 0 : index
    %c0_213 = arith.constant 0 : index
    %186 = vector.load %arg4[%c18, %c0_212, %c0_213] : memref<25x128x128xbf16, #tpu.memory_space<vmem>>, vector<1x128x128xbf16>
    %187 = vector.shape_cast %186 : vector<1x128x128xbf16> to vector<128x128xbf16>
    %cst_214 = arith.constant dense<0.000000e+00> : vector<512x128xf32>
    %188 = tpu.matmul %185, %187, %cst_214 {dimension_numbers = #tpu.dot_dimension_numbers<[1], [0], [0], [1], [0, 0, 1, 1], [], []>} : vector<512x128xbf16>, vector<128x128xbf16>, vector<512x128xf32> -> vector<512x128xf32>
    %c0_215 = arith.constant 0 : index
    %c0_216 = arith.constant 0 : index
    %189 = vector.load %arg10[%c0_215, %c0_216] : memref<512x128xf32, #tpu.memory_space<vmem>>, vector<512x128xf32>
    %190 = arith.addf %189, %188 : vector<512x128xf32>
    %c0_217 = arith.constant 0 : index
    %c0_218 = arith.constant 0 : index
    %191 = vector.load %arg10[%c0_217, %c0_218] : memref<512x128xf32, #tpu.memory_space<vmem>>, vector<512x128xf32>
    tpu.vector_store %arg10[%c0_217, %c0_218], %190 {strides = array<i32>} : memref<512x128xf32, #tpu.memory_space<vmem>>, vector<512x128xf32>,
    %c3_219 = arith.constant 3 : index
    %c4_220 = arith.constant 4 : index
    %c0_221 = arith.constant 0 : index
    %c0_222 = arith.constant 0 : index
    %192 = vector.load %arg9[%c3_219, %c4_220, %c0_221, %c0_222] : memref<12x12x8x128xf32, #tpu.memory_space<vmem>>, vector<8x8x8x128xf32>
    %193 = vector.shape_cast %192 : vector<8x8x8x128xf32> to vector<512x128xf32>
    %194 = arith.truncf %193 : vector<512x128xf32> to vector<512x128xbf16>
    %c19 = arith.constant 19 : index
    %c0_223 = arith.constant 0 : index
    %c0_224 = arith.constant 0 : index
    %195 = vector.load %arg4[%c19, %c0_223, %c0_224] : memref<25x128x128xbf16, #tpu.memory_space<vmem>>, vector<1x128x128xbf16>
    %196 = vector.shape_cast %195 : vector<1x128x128xbf16> to vector<128x128xbf16>
    %cst_225 = arith.constant dense<0.000000e+00> : vector<512x128xf32>
    %197 = tpu.matmul %194, %196, %cst_225 {dimension_numbers = #tpu.dot_dimension_numbers<[1], [0], [0], [1], [0, 0, 1, 1], [], []>} : vector<512x128xbf16>, vector<128x128xbf16>, vector<512x128xf32> -> vector<512x128xf32>
    %c0_226 = arith.constant 0 : index
    %c0_227 = arith.constant 0 : index
    %198 = vector.load %arg10[%c0_226, %c0_227] : memref<512x128xf32, #tpu.memory_space<vmem>>, vector<512x128xf32>
    %199 = arith.addf %198, %197 : vector<512x128xf32>
    %c0_228 = arith.constant 0 : index
    %c0_229 = arith.constant 0 : index
    %200 = vector.load %arg10[%c0_228, %c0_229] : memref<512x128xf32, #tpu.memory_space<vmem>>, vector<512x128xf32>
    tpu.vector_store %arg10[%c0_228, %c0_229], %199 {strides = array<i32>} : memref<512x128xf32, #tpu.memory_space<vmem>>, vector<512x128xf32>,
    %c4_230 = arith.constant 4 : index
    %c0_231 = arith.constant 0 : index
    %c0_232 = arith.constant 0 : index
    %c0_233 = arith.constant 0 : index
    %201 = vector.load %arg9[%c4_230, %c0_231, %c0_232, %c0_233] : memref<12x12x8x128xf32, #tpu.memory_space<vmem>>, vector<8x8x8x128xf32>
    %202 = vector.shape_cast %201 : vector<8x8x8x128xf32> to vector<512x128xf32>
    %203 = arith.truncf %202 : vector<512x128xf32> to vector<512x128xbf16>
    %c20 = arith.constant 20 : index
    %c0_234 = arith.constant 0 : index
    %c0_235 = arith.constant 0 : index
    %204 = vector.load %arg4[%c20, %c0_234, %c0_235] : memref<25x128x128xbf16, #tpu.memory_space<vmem>>, vector<1x128x128xbf16>
    %205 = vector.shape_cast %204 : vector<1x128x128xbf16> to vector<128x128xbf16>
    %cst_236 = arith.constant dense<0.000000e+00> : vector<512x128xf32>
    %206 = tpu.matmul %203, %205, %cst_236 {dimension_numbers = #tpu.dot_dimension_numbers<[1], [0], [0], [1], [0, 0, 1, 1], [], []>} : vector<512x128xbf16>, vector<128x128xbf16>, vector<512x128xf32> -> vector<512x128xf32>
    %c0_237 = arith.constant 0 : index
    %c0_238 = arith.constant 0 : index
    %207 = vector.load %arg10[%c0_237, %c0_238] : memref<512x128xf32, #tpu.memory_space<vmem>>, vector<512x128xf32>
    %208 = arith.addf %207, %206 : vector<512x128xf32>
    %c0_239 = arith.constant 0 : index
    %c0_240 = arith.constant 0 : index
    %209 = vector.load %arg10[%c0_239, %c0_240] : memref<512x128xf32, #tpu.memory_space<vmem>>, vector<512x128xf32>
    tpu.vector_store %arg10[%c0_239, %c0_240], %208 {strides = array<i32>} : memref<512x128xf32, #tpu.memory_space<vmem>>, vector<512x128xf32>,
    %c4_241 = arith.constant 4 : index
    %c1_242 = arith.constant 1 : index
    %c0_243 = arith.constant 0 : index
    %c0_244 = arith.constant 0 : index
    %210 = vector.load %arg9[%c4_241, %c1_242, %c0_243, %c0_244] : memref<12x12x8x128xf32, #tpu.memory_space<vmem>>, vector<8x8x8x128xf32>
    %211 = vector.shape_cast %210 : vector<8x8x8x128xf32> to vector<512x128xf32>
    %212 = arith.truncf %211 : vector<512x128xf32> to vector<512x128xbf16>
    %c21 = arith.constant 21 : index
    %c0_245 = arith.constant 0 : index
    %c0_246 = arith.constant 0 : index
    %213 = vector.load %arg4[%c21, %c0_245, %c0_246] : memref<25x128x128xbf16, #tpu.memory_space<vmem>>, vector<1x128x128xbf16>
    %214 = vector.shape_cast %213 : vector<1x128x128xbf16> to vector<128x128xbf16>
    %cst_247 = arith.constant dense<0.000000e+00> : vector<512x128xf32>
    %215 = tpu.matmul %212, %214, %cst_247 {dimension_numbers = #tpu.dot_dimension_numbers<[1], [0], [0], [1], [0, 0, 1, 1], [], []>} : vector<512x128xbf16>, vector<128x128xbf16>, vector<512x128xf32> -> vector<512x128xf32>
    %c0_248 = arith.constant 0 : index
    %c0_249 = arith.constant 0 : index
    %216 = vector.load %arg10[%c0_248, %c0_249] : memref<512x128xf32, #tpu.memory_space<vmem>>, vector<512x128xf32>
    %217 = arith.addf %216, %215 : vector<512x128xf32>
    %c0_250 = arith.constant 0 : index
    %c0_251 = arith.constant 0 : index
    %218 = vector.load %arg10[%c0_250, %c0_251] : memref<512x128xf32, #tpu.memory_space<vmem>>, vector<512x128xf32>
    tpu.vector_store %arg10[%c0_250, %c0_251], %217 {strides = array<i32>} : memref<512x128xf32, #tpu.memory_space<vmem>>, vector<512x128xf32>,
    %c4_252 = arith.constant 4 : index
    %c2_253 = arith.constant 2 : index
    %c0_254 = arith.constant 0 : index
    %c0_255 = arith.constant 0 : index
    %219 = vector.load %arg9[%c4_252, %c2_253, %c0_254, %c0_255] : memref<12x12x8x128xf32, #tpu.memory_space<vmem>>, vector<8x8x8x128xf32>
    %220 = vector.shape_cast %219 : vector<8x8x8x128xf32> to vector<512x128xf32>
    %221 = arith.truncf %220 : vector<512x128xf32> to vector<512x128xbf16>
    %c22 = arith.constant 22 : index
    %c0_256 = arith.constant 0 : index
    %c0_257 = arith.constant 0 : index
    %222 = vector.load %arg4[%c22, %c0_256, %c0_257] : memref<25x128x128xbf16, #tpu.memory_space<vmem>>, vector<1x128x128xbf16>
    %223 = vector.shape_cast %222 : vector<1x128x128xbf16> to vector<128x128xbf16>
    %cst_258 = arith.constant dense<0.000000e+00> : vector<512x128xf32>
    %224 = tpu.matmul %221, %223, %cst_258 {dimension_numbers = #tpu.dot_dimension_numbers<[1], [0], [0], [1], [0, 0, 1, 1], [], []>} : vector<512x128xbf16>, vector<128x128xbf16>, vector<512x128xf32> -> vector<512x128xf32>
    %c0_259 = arith.constant 0 : index
    %c0_260 = arith.constant 0 : index
    %225 = vector.load %arg10[%c0_259, %c0_260] : memref<512x128xf32, #tpu.memory_space<vmem>>, vector<512x128xf32>
    %226 = arith.addf %225, %224 : vector<512x128xf32>
    %c0_261 = arith.constant 0 : index
    %c0_262 = arith.constant 0 : index
    %227 = vector.load %arg10[%c0_261, %c0_262] : memref<512x128xf32, #tpu.memory_space<vmem>>, vector<512x128xf32>
    tpu.vector_store %arg10[%c0_261, %c0_262], %226 {strides = array<i32>} : memref<512x128xf32, #tpu.memory_space<vmem>>, vector<512x128xf32>,
    %c4_263 = arith.constant 4 : index
    %c3_264 = arith.constant 3 : index
    %c0_265 = arith.constant 0 : index
    %c0_266 = arith.constant 0 : index
    %228 = vector.load %arg9[%c4_263, %c3_264, %c0_265, %c0_266] : memref<12x12x8x128xf32, #tpu.memory_space<vmem>>, vector<8x8x8x128xf32>
    %229 = vector.shape_cast %228 : vector<8x8x8x128xf32> to vector<512x128xf32>
    %230 = arith.truncf %229 : vector<512x128xf32> to vector<512x128xbf16>
    %c23 = arith.constant 23 : index
    %c0_267 = arith.constant 0 : index
    %c0_268 = arith.constant 0 : index
    %231 = vector.load %arg4[%c23, %c0_267, %c0_268] : memref<25x128x128xbf16, #tpu.memory_space<vmem>>, vector<1x128x128xbf16>
    %232 = vector.shape_cast %231 : vector<1x128x128xbf16> to vector<128x128xbf16>
    %cst_269 = arith.constant dense<0.000000e+00> : vector<512x128xf32>
    %233 = tpu.matmul %230, %232, %cst_269 {dimension_numbers = #tpu.dot_dimension_numbers<[1], [0], [0], [1], [0, 0, 1, 1], [], []>} : vector<512x128xbf16>, vector<128x128xbf16>, vector<512x128xf32> -> vector<512x128xf32>
    %c0_270 = arith.constant 0 : index
    %c0_271 = arith.constant 0 : index
    %234 = vector.load %arg10[%c0_270, %c0_271] : memref<512x128xf32, #tpu.memory_space<vmem>>, vector<512x128xf32>
    %235 = arith.addf %234, %233 : vector<512x128xf32>
    %c0_272 = arith.constant 0 : index
    %c0_273 = arith.constant 0 : index
    %236 = vector.load %arg10[%c0_272, %c0_273] : memref<512x128xf32, #tpu.memory_space<vmem>>, vector<512x128xf32>
    tpu.vector_store %arg10[%c0_272, %c0_273], %235 {strides = array<i32>} : memref<512x128xf32, #tpu.memory_space<vmem>>, vector<512x128xf32>,
    %c4_274 = arith.constant 4 : index
    %c4_275 = arith.constant 4 : index
    %c0_276 = arith.constant 0 : index
    %c0_277 = arith.constant 0 : index
    %237 = vector.load %arg9[%c4_274, %c4_275, %c0_276, %c0_277] : memref<12x12x8x128xf32, #tpu.memory_space<vmem>>, vector<8x8x8x128xf32>
    %238 = vector.shape_cast %237 : vector<8x8x8x128xf32> to vector<512x128xf32>
    %239 = arith.truncf %238 : vector<512x128xf32> to vector<512x128xbf16>
    %c24 = arith.constant 24 : index
    %c0_278 = arith.constant 0 : index
    %c0_279 = arith.constant 0 : index
    %240 = vector.load %arg4[%c24, %c0_278, %c0_279] : memref<25x128x128xbf16, #tpu.memory_space<vmem>>, vector<1x128x128xbf16>
    %241 = vector.shape_cast %240 : vector<1x128x128xbf16> to vector<128x128xbf16>
    %cst_280 = arith.constant dense<0.000000e+00> : vector<512x128xf32>
    %242 = tpu.matmul %239, %241, %cst_280 {dimension_numbers = #tpu.dot_dimension_numbers<[1], [0], [0], [1], [0, 0, 1, 1], [], []>} : vector<512x128xbf16>, vector<128x128xbf16>, vector<512x128xf32> -> vector<512x128xf32>
    %c0_281 = arith.constant 0 : index
    %c0_282 = arith.constant 0 : index
    %243 = vector.load %arg10[%c0_281, %c0_282] : memref<512x128xf32, #tpu.memory_space<vmem>>, vector<512x128xf32>
    %244 = arith.addf %243, %242 : vector<512x128xf32>
    %c0_283 = arith.constant 0 : index
    %c0_284 = arith.constant 0 : index
    %245 = vector.load %arg10[%c0_283, %c0_284] : memref<512x128xf32, #tpu.memory_space<vmem>>, vector<512x128xf32>
    tpu.vector_store %arg10[%c0_283, %c0_284], %244 {strides = array<i32>} : memref<512x128xf32, #tpu.memory_space<vmem>>, vector<512x128xf32>,
    %c0_285 = arith.constant 0 : index
    %c0_286 = arith.constant 0 : index
    %246 = vector.load %arg10[%c0_285, %c0_286] : memref<512x128xf32, #tpu.memory_space<vmem>>, vector<512x128xf32>
    %c0_287 = arith.constant 0 : index
    %c0_288 = arith.constant 0 : index
    %247 = vector.load %arg5[%c0_287, %c0_288] : memref<1x128xf32, #tpu.memory_space<vmem>>, vector<1x128xf32>
    %248 = vector.broadcast %247 : vector<1x128xf32> to vector<512x128xf32>
    %249 = arith.addf %246, %248 : vector<512x128xf32>
    %cst_289 = arith.constant 0.000000e+00 : f32
    %250 = vector.broadcast %cst_289 : f32 to vector<512x128xf32>
    %251 = arith.maximumf %249, %250 : vector<512x128xf32>
    %252 = vector.shape_cast %251 : vector<512x128xf32> to vector<4x2x8x8x128xf32>
    %cst_290 = arith.constant dense<0xFF800000> : vector<4x8x8x128xf32>
    %253 = vector.multi_reduction <maximumf>, %252, %cst_290 [1] : vector<4x2x8x8x128xf32> to vector<4x8x8x128xf32>
    %254 = vector.shape_cast %253 : vector<4x8x8x128xf32> to vector<4x4x2x8x128xf32>
    %cst_291 = arith.constant dense<0xFF800000> : vector<4x4x8x128xf32>
    %255 = vector.multi_reduction <maximumf>, %254, %cst_291 [2] : vector<4x4x2x8x128xf32> to vector<4x4x8x128xf32>
    %256 = vector.shape_cast %255 : vector<4x4x8x128xf32> to vector<16x8x128xf32>
    %cst_292 = arith.constant dense<0.000000e+00> : vector<8x128xf32>
    %257 = vector.multi_reduction <add>, %256, %cst_292 [0] : vector<16x8x128xf32> to vector<8x128xf32>
    %cst_293 = arith.constant 6.250000e-02 : f32
    %258 = vector.broadcast %cst_293 : f32 to vector<8x128xf32>
    %259 = arith.mulf %257, %258 : vector<8x128xf32>
    %260 = arith.truncf %259 : vector<8x128xf32> to vector<8x128xbf16>
    %c0_294 = arith.constant 0 : index
    %c0_295 = arith.constant 0 : index
    %261 = vector.load %arg6[%c0_294, %c0_295] : memref<128x128xbf16, #tpu.memory_space<vmem>>, vector<128x128xbf16>
    %cst_296 = arith.constant dense<0.000000e+00> : vector<8x128xf32>
    %262 = tpu.matmul %260, %261, %cst_296 {dimension_numbers = #tpu.dot_dimension_numbers<[1], [0], [0], [1], [0, 0, 1, 1], [], []>} : vector<8x128xbf16>, vector<128x128xbf16>, vector<8x128xf32> -> vector<8x128xf32>
    %c0_297 = arith.constant 0 : index
    %c0_298 = arith.constant 0 : index
    %263 = vector.load %arg7[%c0_297, %c0_298] : memref<1x128xf32, #tpu.memory_space<vmem>>, vector<1x128xf32>
    %264 = vector.broadcast %263 : vector<1x128xf32> to vector<8x128xf32>
    %265 = arith.addf %262, %264 : vector<8x128xf32>
    %266 = tpu.iota {dimensions = array<i32: 1>} : vector<1x128xi32>
    %c10_i32 = arith.constant 10 : i32
    %267 = vector.broadcast %c10_i32 : i32 to vector<1x128xi32>
    %268 = arith.cmpi slt, %266, %267 : vector<1x128xi32>
    %cst_299 = arith.constant -1.000000e+30 : f32
    %269 = vector.shape_cast %268 : vector<1x128xi1> to vector<1x128xi1>
    %270 = vector.broadcast %269 : vector<1x128xi1> to vector<8x128xi1>
    %271 = vector.broadcast %cst_299 : f32 to vector<8x128xf32>
    %272 = arith.select %270, %265, %271 : vector<8x128xi1>, vector<8x128xf32>
    %cst_300 = arith.constant dense<0xFF800000> : vector<8xf32>
    %273 = vector.multi_reduction <maximumf>, %272, %cst_300 [1] : vector<8x128xf32> to vector<8xf32>
    %274 = vector.shape_cast %273 : vector<8xf32> to vector<8x1xf32>
    %275 = vector.broadcast %274 : vector<8x1xf32> to vector<8x128xf32>
    %276 = arith.subf %272, %275 : vector<8x128xf32>
    %277 = math.exp %276 : vector<8x128xf32>
    %cst_301 = arith.constant 0.000000e+00 : f32
    %278 = vector.shape_cast %268 : vector<1x128xi1> to vector<1x128xi1>
    %279 = vector.broadcast %278 : vector<1x128xi1> to vector<8x128xi1>
    %280 = vector.broadcast %cst_301 : f32 to vector<8x128xf32>
    %281 = arith.select %279, %277, %280 : vector<8x128xi1>, vector<8x128xf32>
    %cst_302 = arith.constant dense<0.000000e+00> : vector<8xf32>
    %282 = vector.multi_reduction <add>, %281, %cst_302 [1] : vector<8x128xf32> to vector<8xf32>
    %283 = vector.shape_cast %282 : vector<8xf32> to vector<8x1xf32>
    %284 = vector.broadcast %283 : vector<8x1xf32> to vector<8x128xf32>
    %285 = arith.divf %281, %284 : vector<8x128xf32>
    %c0_303 = arith.constant 0 : index
    %c0_304 = arith.constant 0 : index
    %286 = vector.load %arg8[%c0_303, %c0_304] : memref<8x128xf32, #tpu.memory_space<vmem>>, vector<8x128xf32>
    tpu.vector_store %arg8[%c0_303, %c0_304], %285 {strides = array<i32>} : memref<8x128xf32, #tpu.memory_space<vmem>>, vector<8x128xf32>,
    return
  }
  func.func @transform_0(%arg0: i32) -> (i32, i32, i32) {
    %c0_i32 = arith.constant 0 : i32
    %c0_i32_0 = arith.constant 0 : i32
    %c0_i32_1 = arith.constant 0 : i32
    return %arg0, %c0_i32, %c0_i32_0 : i32, i32, i32
  }
  func.func @transform_1(%arg0: i32) -> (i32, i32) {
    %c0_i32 = arith.constant 0 : i32
    %c0_i32_0 = arith.constant 0 : i32
    %c0_i32_1 = arith.constant 0 : i32
    return %c0_i32, %c0_i32_0 : i32, i32
  }
  func.func @transform_2(%arg0: i32) -> (i32, i32) {
    %c0_i32 = arith.constant 0 : i32
    %c0_i32_0 = arith.constant 0 : i32
    %c0_i32_1 = arith.constant 0 : i32
    return %c0_i32, %c0_i32_0 : i32, i32
  }
  func.func @transform_3(%arg0: i32) -> (i32, i32, i32) {
    %c0_i32 = arith.constant 0 : i32
    %c0_i32_0 = arith.constant 0 : i32
    %c0_i32_1 = arith.constant 0 : i32
    %c0_i32_2 = arith.constant 0 : i32
    return %c0_i32, %c0_i32_0, %c0_i32_1 : i32, i32, i32
  }
  func.func @transform_4(%arg0: i32) -> (i32, i32) {
    %c0_i32 = arith.constant 0 : i32
    %c0_i32_0 = arith.constant 0 : i32
    %c0_i32_1 = arith.constant 0 : i32
    return %c0_i32, %c0_i32_0 : i32, i32
  }
  func.func @transform_5(%arg0: i32) -> (i32, i32) {
    %c0_i32 = arith.constant 0 : i32
    %c0_i32_0 = arith.constant 0 : i32
    %c0_i32_1 = arith.constant 0 : i32
    return %c0_i32, %c0_i32_0 : i32, i32
  }
  func.func @transform_6(%arg0: i32) -> (i32, i32) {
    %c0_i32 = arith.constant 0 : i32
    %c0_i32_0 = arith.constant 0 : i32
    %c0_i32_1 = arith.constant 0 : i32
    return %c0_i32, %c0_i32_0 : i32, i32
  }
  func.func @transform_7(%arg0: i32) -> (i32, i32) {
    %c0_i32 = arith.constant 0 : i32
    %c0_i32_0 = arith.constant 0 : i32
    return %arg0, %c0_i32 : i32, i32
  }
}

</mosaic_0001>

<bundles_post_ra>
// kernel: simplenet_v2_forward.1
= control target key start
LH: loop header
LB: loop body
LE: loop exit
PB: predicated region body
PF: predicated region fallthrough
CT: control target
= control target key end

     0   :  { %12 = vsyncpa [#allocation5], 0  ;;  %s34625_s0 = inlined_call_operand.vmem [shape: bf16[2,4608,25], index: 0, kind: input, shape index: {}]   ;;  %s34626_s1 = inlined_call_operand.vmem [shape: bf16[25,128], index: 1, kind: input, shape index: {}]   ;;  %s34627_s2 = inlined_call_operand.vmem [shape: f32[1,128], index: 2, kind: input, shape index: {}]   ;;  %s34628_s3 = inlined_call_operand.vmem [shape: bf16[25,128,128], index: 3, kind: input, shape index: {}]   ;;  %s34629_s4 = inlined_call_operand.vmem [shape: f32[1,128], index: 4, kind: input, shape index: {}]   ;;  %s34630_s5 = inlined_call_operand.vmem [shape: bf16[128,128], index: 5, kind: input, shape index: {}]   ;;  %s34631_s6 = inlined_call_operand.vmem [shape: f32[1,128], index: 6, kind: input, shape index: {}]   ;;  %s34632_s7 = inlined_call_operand.hbm [shape: f32[16,128], index: 7, kind: output, shape index: {}]  }
   0x1   :  { %14 = vsyncpa [#allocation5 + $0x1], 0  ;;  %s30072_s24 = smov 0   ;;  %s30074_s25 = smov 0  }
   0x2   :  { %s30076_s26 = smov 0   ;;  %s30078_s27 = smov 0  }
   0x3 LB: > { %s30093_s28 = sadd.s32 4294967295, %s30026_s27   ;;  %s22799_s29 = sadd.s32 4294967294, %s30026_s27   ;;  %s30026_s27 = sphi %s30078_s27, %s36516_s27   ;;  %s30022_s26 = sphi %s30076_s26, %s36515_s26   ;;  %s30018_s25 = sphi %s30074_s25, %s36514_s25   ;;  %s30014_s24 = sphi %s30072_s24, %s36513_s24  }
   0x4   : > { %s30097_s30 = sadd.s32 1, %s30026_s27   ;;  %s179_s8 = sadd.s32 1, %s30022_s26 }
   0x5   : > { %s176_s9 = ssub.s32 %s30026_s27, %s30097_s30  ;;  %p189_p0 = scmp.ne.s32.totalorder %s30022_s26, %s30018_s25 }
   0x6   : > { %p177_p1 = scmp.eq.s32.totalorder %s176_s9, 0  ;;  %p190_p2 = scmp.eq.s32.totalorder %s30093_s28, 1 }
   0x7   : > { %p195_p3 = scmp.ne.s32.totalorder %s30018_s25, %s30014_s24  ;;  %p196_p4 = scmp.eq.s32.totalorder %s22799_s29, 1 }
   0x8   : > { %s30108_s10 = scalar_select %p177_p1, %s30022_s26, %s179_s8  }
   0x9   : > { %p30110_p5 = por %p190_p2, %p189_p0  ;;  %p30114_p6 = por %p196_p4, %p195_p3 }
   0xa   : > { %p22802_p7 = scmp.ge.s32.totalorder %s30026_s27, 1  ;;  %p240_p8 = scmp.lt.s32.totalorder %s30026_s27, 3 }
   0xc   : > { %p241_p9 = pnand %p22802_p7, %p240_p8 }
   0xe   : > { %244 = sbr.rel (%p241_p9) target bundleno = 4179 (0x1053), region = 48 }
  0x15   : > { %v29460_v0 = vld [vmem:[%s34626_s1] sm:$0xff]   ;;  %vm3174_vm0 = vcmask 1043456   ;;  %v29461_v1 = vld [vmem:[%s34626_s1 + $0x8] sm:$0x1f]   ;;  %vm3175_vm1 = vcmask 1044480   ;;  %p272_p10 = scmp.lt.s32.totalorder %s30093_s28, 1 }
  0x16   : > { %25281 = vmatprep.subr.bf16.mxu0 %v29460_v0  ;;  %v30028_v2 = vmov 65535   ;;  %vm2309_vm2 = vcmask 203776   ;;  %vm30030_vm3 = vmmov 0  }
  0x17   : > { %25282 = vmatpush3.bf16.msra.mxu0 %v29460_v0  ;;  %v3176_v3 = vsel %vm3174_vm0, 4294967295, %v30028_v2  ;;  %s273_s17 = scalar_select %p272_p10, %s30093_s28, 1 }
  0x18   : > { %v3177_v4 = vsel %vm3175_vm1, %v3176_v3, 0 }
  0x19   : > { %v3179_v5 = vand.u32 %v29461_v1, %v3177_v4  ;;  %s29417_s18 = smul.u32 2304, %s273_s17 }
  0x1b   : > { %25283 = vmatprep.subr.bf16.mxu0 %v3179_v5  ;;  %s30131_s21 = scalar_lea.vmem %s34625_s0, %s29417_s18  ;;  %s23979_s18 = sshll.u32 %s30093_s28, 7 }
  0x1c   : > { %25284 = vmatpush3.bf16.msra.mxu0 %v3179_v5  ;;  %v29462_v6 = vld [vmem:[%s30131_s21] sm:$0xff]   ;;  %v29463_v7 = vld [vmem:[%s30131_s21 + $0x8] sm:$0xff]   ;;  %v29464_v8 = vld [vmem:[%s30131_s21 + $0x10] sm:$0xff]   ;;  %s34583_s29 = scalar_lea.hbm %s34632_s7, %s23979_s18  ;;  %s30031_s28 = smov [#allocation4]  }
  0x1d   : > { %25285 = vmatprep.mubr.msk.bf16.mxu0 %vm2309_vm2, %v29462_v6  ;;  %v29465_v9 = vld [vmem:[%s30131_s21 + $0x18] sm:$0xff]   ;;  %v29466_v10 = vld [vmem:[%s30131_s21 + $0x20] sm:$0xff]   ;;  %v29467_v11 = vld [vmem:[%s30131_s21 + $0x28] sm:$0xff]   ;;  %s29968_s13 = sshll.u32 %s30031_s28, 4  ;;  %s29969_s13 = int_to_ptr.vmem [resolvable:$false] %s29968_s13 }
  0x1e   : > { %v29468_v12 = vld [vmem:[%s30131_s21 + $0x30] sm:$0xff]   ;;  %v29469_v13 = vld [vmem:[%s30131_s21 + $0x38] sm:$0xff]   ;;  %v29470_v14 = vld [vmem:[%s30131_s21 + $0x40] sm:$0xff]   ;;  %s29970_s14 = scalar_lea.vmem %s29969_s13, 256 }
  0x1f   : > { %25286 = vmatmul.mubr.msk.bf16.vlgmr.msra.gmra.mrb[0].mxu0 %vm2309_vm2, %v29463_v7  ;;  %v29471_v15 = vld [vmem:[%s30131_s21 + $0x48] sm:$0xff]   ;;  %v29472_v16 = vld [vmem:[%s30131_s21 + $0x50] sm:$0xff]   ;;  %v29473_v17 = vld [vmem:[%s30131_s21 + $0x58] sm:$0xff]  }
  0x20   : > { %25289 = vmatprep.mubr.msk.bf16.mxu0 %vm2309_vm2, %v29464_v8  ;;  %v29474_v18 = vld [vmem:[%s30131_s21 + $0x60] sm:$0xff]   ;;  %v29475_v19 = vld [vmem:[%s30131_s21 + $0x68] sm:$0xff]   ;;  %v29476_v20 = vld [vmem:[%s30131_s21 + $0x70] sm:$0xff]  }
  0x21   : > { %v29477_v21 = vld [vmem:[%s30131_s21 + $0x78] sm:$0xff]   ;;  %v29478_v22 = vld [vmem:[%s30131_s21 + $0x80] sm:$0xff]   ;;  %v29479_v23 = vld [vmem:[%s30131_s21 + $0x88] sm:$0xff]  }
  0x22   : > { %v29480_v24 = vld [vmem:[%s30131_s21 + $0x90] sm:$0xff]   ;;  %v29481_v25 = vld [vmem:[%s30131_s21 + $0x98] sm:$0xff]   ;;  %v29482_v26 = vld [vmem:[%s30131_s21 + $0xa0] sm:$0xff]  }
  0x23   : > { %v29483_v27 = vld [vmem:[%s30131_s21 + $0xa8] sm:$0xff]   ;;  %v29484_v28 = vld [vmem:[%s30131_s21 + $0xb0] sm:$0xff]   ;;  %v29485_v29 = vld [vmem:[%s30131_s21 + $0xb8] sm:$0xff]  }
  0x24   : > { %v29486_v30 = vld [vmem:[%s30131_s21 + $0xc0] sm:$0xff]   ;;  %v29487_v31 = vld [vmem:[%s30131_s21 + $0xc8] sm:$0xff]   ;;  %v29488_v32 = vld [vmem:[%s30131_s21 + $0xd0] sm:$0xff]  }
  0x25   : > { %v29489_v33 = vld [vmem:[%s30131_s21 + $0xd8] sm:$0xff]   ;;  %v29490_v34 = vld [vmem:[%s30131_s21 + $0xe0] sm:$0xff]   ;;  %v29491_v35 = vld [vmem:[%s30131_s21 + $0xe8] sm:$0xff]  }
  0x26   : > { %v29492_v36 = vld [vmem:[%s30131_s21 + $0xf0] sm:$0xff]   ;;  %v29493_v37 = vld [vmem:[%s30131_s21 + $0xf8] sm:$0xff]   ;;  %v29494_v38 = vld [vmem:[%s30131_s21 + $0x100] sm:$0xff]  }
  0x27   : > { %25290 = vmatmul.mubr.msk.bf16.gmra.mrb[4].mxu0 %vm2309_vm2, %v29465_v9  ;;  %v29495_v39 = vld [vmem:[%s30131_s21 + $0x108] sm:$0xff]   ;;  %v29496_v40 = vld [vmem:[%s30131_s21 + $0x110] sm:$0xff]   ;;  %v29497_v41 = vld [vmem:[%s30131_s21 + $0x118] sm:$0xff]  }
  0x28   : > { %25293 = vmatprep.mubr.msk.bf16.mxu0 %vm2309_vm2, %v29466_v10  ;;  %v29498_v42 = vld [vmem:[%s30131_s21 + $0x120] sm:$0xff]   ;;  %v29499_v43 = vld [vmem:[%s30131_s21 + $0x128] sm:$0xff]   ;;  %v29500_v44 = vld [vmem:[%s30131_s21 + $0x130] sm:$0xff]  }
  0x29   : > { %v29501_v45 = vld [vmem:[%s30131_s21 + $0x138] sm:$0xff]   ;;  %v29502_v46 = vld [vmem:[%s30131_s21 + $0x140] sm:$0xff]   ;;  %v29503_v47 = vld [vmem:[%s30131_s21 + $0x148] sm:$0xff]  }
  0x2a   : > { %v29504_v48 = vld [vmem:[%s30131_s21 + $0x150] sm:$0xff]   ;;  %v29505_v49 = vld [vmem:[%s30131_s21 + $0x158] sm:$0xff]   ;;  %v29506_v50 = vld [vmem:[%s30131_s21 + $0x160] sm:$0xff]  }
  0x2b   : > { %v29507_v51 = vld [vmem:[%s30131_s21 + $0x168] sm:$0xff]   ;;  %v29508_v52 = vld [vmem:[%s30131_s21 + $0x170] sm:$0xff]   ;;  %v29509_v53 = vld [vmem:[%s30131_s21 + $0x178] sm:$0xff]  }
  0x2c   : > { %v29510_v54 = vld [vmem:[%s30131_s21 + $0x180] sm:$0xff]   ;;  %v29511_v55 = vld [vmem:[%s30131_s21 + $0x188] sm:$0xff]   ;;  %v29512_v56 = vld [vmem:[%s30131_s21 + $0x190] sm:$0xff]  }
  0x2d   : > { %v29513_v57 = vld [vmem:[%s30131_s21 + $0x198] sm:$0xff]   ;;  %v29514_v58 = vld [vmem:[%s30131_s21 + $0x1a0] sm:$0xff]   ;;  %v29515_v59 = vld [vmem:[%s30131_s21 + $0x1a8] sm:$0xff]  }
  0x2e   : > { %v29516_v60 = vld [vmem:[%s30131_s21 + $0x1b0] sm:$0xff]   ;;  %v29517_v63 = vld [vmem:[%s30131_s21 + $0x1b8] sm:$0xff]   ;;  %v29518_v1 = vld [vmem:[%s30131_s21 + $0x1c0] sm:$0xff]  }
  0x2f   : > { %25294 = vmatmul.mubr.msk.bf16.gmra.mrb[8].mxu0 %vm2309_vm2, %v29467_v11  ;;  %v29519_v5 = vld [vmem:[%s30131_s21 + $0x1c8] sm:$0xff]   ;;  %v29520_v7 = vld [vmem:[%s30131_s21 + $0x1d0] sm:$0xff]   ;;  %v29521_v11 = vld [vmem:[%s30131_s21 + $0x1d8] sm:$0xff]  }
  0x30   : > { %25297 = vmatprep.mubr.msk.bf16.mxu0 %vm2309_vm2, %v29468_v12 }
  0x37   : > { %25298 = vmatmul.mubr.msk.bf16.gmra.mrb[12].mxu0 %vm2309_vm2, %v29469_v13  ;;  %v29522_v13 = vld [vmem:[%s30131_s21 + $0x1e0] sm:$0xff]  }
  0x38   : > { %25301 = vmatprep.mubr.msk.bf16.mxu0 %vm2309_vm2, %v29470_v14 }
  0x3f   : > { %25302 = vmatmul.mubr.msk.bf16.gmra.mrb[16].mxu0 %vm2309_vm2, %v29471_v15 }
  0x40   : > { %25305 = vmatprep.mubr.msk.bf16.mxu0 %vm2309_vm2, %v29472_v16 }
  0x47   : > { %25306 = vmatmul.mubr.msk.bf16.gmra.mrb[20].mxu0 %vm2309_vm2, %v29473_v17  ;;  %v29523_v17 = vld [vmem:[%s30131_s21 + $0x1e8] sm:$0xff]  }
  0x48   : > { %25309 = vmatprep.mubr.msk.bf16.mxu0 %vm2309_vm2, %v29474_v18 }
  0x4f   : > { %25310 = vmatmul.mubr.msk.bf16.gmra.mrb[24].mxu0 %vm2309_vm2, %v29475_v19  ;;  %v29524_v19 = vld [vmem:[%s30131_s21 + $0x1f0] sm:$0xff]  }
  0x50   : > { %25313 = vmatprep.mubr.msk.bf16.mxu0 %vm2309_vm2, %v29476_v20 }
  0x57   : > { %25314 = vmatmul.mubr.msk.bf16.gmra.mrb[28].mxu0 %vm2309_vm2, %v29477_v21 }
  0x58   : > { %25317 = vmatprep.mubr.msk.bf16.mxu0 %vm2309_vm2, %v29478_v22 }
  0x5f   : > { %25318 = vmatmul.mubr.msk.bf16.gmra.mrb[32].mxu0 %vm2309_vm2, %v29479_v23  ;;  %v29525_v23 = vld [vmem:[%s30131_s21 + $0x1f8] sm:$0xff]  }
  0x60   : > { %25321 = vmatprep.mubr.msk.bf16.mxu0 %vm2309_vm2, %v29480_v24 }
  0x67   : > { %25322 = vmatmul.mubr.msk.bf16.gmra.mrb[36].mxu0 %vm2309_vm2, %v29481_v25  ;;  %v29526_v25 = vld [vmem:[%s30131_s21 + $0x200] sm:$0xff]  }
  0x68   : > { %25325 = vmatprep.mubr.msk.bf16.mxu0 %vm2309_vm2, %v29482_v26 }
  0x6f   : > { %25326 = vmatmul.mubr.msk.bf16.gmra.mrb[40].mxu0 %vm2309_vm2, %v29483_v27 }
  0x70   : > { %25329 = vmatprep.mubr.msk.bf16.mxu0 %vm2309_vm2, %v29484_v28 }
  0x77   : > { %25330 = vmatmul.mubr.msk.bf16.gmra.mrb[44].mxu0 %vm2309_vm2, %v29485_v29  ;;  %v29527_v29 = vld [vmem:[%s30131_s21 + $0x208] sm:$0xff]  }
  0x78   : > { %25333 = vmatprep.mubr.msk.bf16.mxu0 %vm2309_vm2, %v29486_v30 }
  0x7f   : > { %25334 = vmatmul.mubr.msk.bf16.gmra.mrb[48].mxu0 %vm2309_vm2, %v29487_v31  ;;  %v29528_v31 = vld [vmem:[%s30131_s21 + $0x210] sm:$0xff]  }
  0x80   : > { %25337 = vmatprep.mubr.msk.bf16.mxu0 %vm2309_vm2, %v29488_v32 }
  0x87   : > { %25338 = vmatmul.mubr.msk.bf16.gmra.mrb[52].mxu0 %vm2309_vm2, %v29489_v33 }
  0x88   : > { %25341 = vmatprep.mubr.msk.bf16.mxu0 %vm2309_vm2, %v29490_v34 }
  0x8f   : > { %25342 = vmatmul.mubr.msk.bf16.gmra.mrb[56].mxu0 %vm2309_vm2, %v29491_v35  ;;  %v29529_v35 = vld [vmem:[%s30131_s21 + $0x218] sm:$0xff]  }
  0x90   : > { %25345 = vmatprep.mubr.msk.bf16.mxu0 %vm2309_vm2, %v29492_v36 }
  0x97   : > { %25346 = vmatmul.mubr.msk.bf16.gmra.mrb[60].mxu0 %vm2309_vm2, %v29493_v37  ;;  %v29530_v37 = vld [vmem:[%s30131_s21 + $0x220] sm:$0xff]  }
  0x98   : > { %25349 = vmatprep.mubr.msk.bf16.mxu0 %vm2309_vm2, %v29494_v38 }
  0x9f   : > { %25350 = vmatmul.mubr.msk.bf16.gmra.mrb[64].mxu0 %vm2309_vm2, %v29495_v39 }
  0xa0   : > { %25353 = vmatprep.mubr.msk.bf16.mxu0 %vm2309_vm2, %v29496_v40 }
  0xa7   : > { %25354 = vmatmul.mubr.msk.bf16.gmra.mrb[68].mxu0 %vm2309_vm2, %v29497_v41  ;;  %v29531_v41 = vld [vmem:[%s30131_s21 + $0x228] sm:$0xff]  }
  0xa8   : > { %25357 = vmatprep.mubr.msk.bf16.mxu0 %vm2309_vm2, %v29498_v42 }
  0xaf   : > { %25358 = vmatmul.mubr.msk.bf16.gmra.mrb[72].mxu0 %vm2309_vm2, %v29499_v43  ;;  %v29532_v43 = vld [vmem:[%s30131_s21 + $0x230] sm:$0xff]  }
  0xb0   : > { %25361 = vmatprep.mubr.msk.bf16.mxu0 %vm2309_vm2, %v29500_v44 }
  0xb7   : > { %25362 = vmatmul.mubr.msk.bf16.gmra.mrb[76].mxu0 %vm2309_vm2, %v29501_v45 }
  0xb8   : > { %25365 = vmatprep.mubr.msk.bf16.mxu0 %vm2309_vm2, %v29502_v46 }
  0xbf   : > { %25366 = vmatmul.mubr.msk.bf16.gmra.mrb[80].mxu0 %vm2309_vm2, %v29503_v47  ;;  %v29533_v47 = vld [vmem:[%s30131_s21 + $0x238] sm:$0xff]  }
  0xc0   : > { %25369 = vmatprep.mubr.msk.bf16.mxu0 %vm2309_vm2, %v29504_v48 }
  0xc7   : > { %25370 = vmatmul.mubr.msk.bf16.gmra.mrb[84].mxu0 %vm2309_vm2, %v29505_v49  ;;  %v29534_v49 = vld [vmem:[%s30131_s21 + $0x240] sm:$0xff]  }
  0xc8   : > { %25373 = vmatprep.mubr.msk.bf16.mxu0 %vm2309_vm2, %v29506_v50 }
  0xcf   : > { %25374 = vmatmul.mubr.msk.bf16.gmra.mrb[88].mxu0 %vm2309_vm2, %v29507_v51 }
  0xd0   : > { %25377 = vmatprep.mubr.msk.bf16.mxu0 %vm2309_vm2, %v29508_v52 }
  0xd7   : > { %25378 = vmatmul.mubr.msk.bf16.gmra.mrb[92].mxu0 %vm2309_vm2, %v29509_v53  ;;  %v29535_v53 = vld [vmem:[%s30131_s21 + $0x248] sm:$0xff]  }
  0xd8   : > { %25381 = vmatprep.mubr.msk.bf16.mxu0 %vm2309_vm2, %v29510_v54 }
  0xdf   : > { %25382 = vmatmul.mubr.msk.bf16.gmra.mrb[96].mxu0 %vm2309_vm2, %v29511_v55  ;;  %v29536_v55 = vld [vmem:[%s30131_s21 + $0x250] sm:$0xff]  }
  0xe0   : > { %25385 = vmatprep.mubr.msk.bf16.mxu0 %vm2309_vm2, %v29512_v56 }
  0xe7   : > { %25386 = vmatmul.mubr.msk.bf16.gmra.mrb[100].mxu0 %vm2309_vm2, %v29513_v57 }
  0xe8   : > { %25389 = vmatprep.mubr.msk.bf16.mxu0 %vm2309_vm2, %v29514_v58 }
  0xef   : > { %25390 = vmatmul.mubr.msk.bf16.gmra.mrb[104].mxu0 %vm2309_vm2, %v29515_v59  ;;  %v29537_v59 = vld [vmem:[%s30131_s21 + $0x258] sm:$0xff]  }
  0xf0   : > { %25393 = vmatprep.mubr.msk.bf16.mxu0 %vm2309_vm2, %v29516_v60 }
  0xf2   : > { %v30243_v61 = vpop.f32.mrb[0].mxu0 }
  0xf3   : > { %v30245_v62 = vpop.f32.mrb[1].mxu0 }
  0xf4   : > { %35086 = vst [vmem:[#allocation7_spill] sm:$0xff] %v30245_v62  ;;  %v30248_v0 = vpop.f32.mrb[2].mxu0  ;;  %v29591_v62 = vld [vmem:[%s30131_s21 + $0x408] sm:$0xff]  }
  0xf5   : > { %v30251_v2 = vpop.f32.mrb[3].mxu0 }
  0xf7   : > { %25394 = vmatmul.mubr.msk.bf16.gmra.mrb[108].mxu0 %vm2309_vm2, %v29517_v63  ;;  %v29538_v63 = vld [vmem:[%s30131_s21 + $0x260] sm:$0xff]  }
  0xf8   : > { %25397 = vmatprep.mubr.msk.bf16.mxu0 %vm2309_vm2, %v29518_v1 }
  0xfa   : > { %v30255_v3 = vpop.f32.mrb[4].mxu0 }
  0xfb   : > { %v30257_v4 = vpop.f32.mrb[5].mxu0 }
  0xfc   : > { %35087 = vst [vmem:[#allocation8_spill] sm:$0xff] %v30257_v4  ;;  %v30260_v6 = vpop.f32.mrb[6].mxu0  ;;  %v29593_v4 = vld [vmem:[%s30131_s21 + $0x418] sm:$0xff]  }
  0xfd   : > { %v30263_v8 = vpop.f32.mrb[7].mxu0 }
  0xff   : > { %25398 = vmatmul.mubr.msk.bf16.gmra.mrb[112].mxu0 %vm2309_vm2, %v29519_v5 }
 0x100   : > { %25401 = vmatprep.mubr.msk.bf16.mxu0 %vm2309_vm2, %v29520_v7 }
 0x102   : > { %v30267_v9 = vpop.f32.mrb[8].mxu0 }
 0x103   : > { %v30269_v10 = vpop.f32.mrb[9].mxu0 }
 0x104   : > { %35088 = vst [vmem:[#allocation9_spill] sm:$0xff] %v30269_v10  ;;  %v30272_v12 = vpop.f32.mrb[10].mxu0  ;;  %v29595_v10 = vld [vmem:[%s30131_s21 + $0x428] sm:$0xff]  }
 0x105   : > { %v30275_v14 = vpop.f32.mrb[11].mxu0 }
 0x107   : > { %25402 = vmatmul.mubr.msk.bf16.gmra.mrb[116].mxu0 %vm2309_vm2, %v29521_v11  ;;  %v29539_v11 = vld [vmem:[%s30131_s21 + $0x268] sm:$0xff]  }
 0x108   : > { %25405 = vmatprep.mubr.msk.bf16.mxu0 %vm2309_vm2, %v29522_v13 }
 0x10a   : > { %v30279_v15 = vpop.f32.mrb[12].mxu0 }
 0x10b   : > { %v30281_v16 = vpop.f32.mrb[13].mxu0 }
 0x10c   : > { %35089 = vst [vmem:[#allocation10_spill] sm:$0xff] %v30281_v16  ;;  %v30284_v18 = vpop.f32.mrb[14].mxu0  ;;  %v29597_v16 = vld [vmem:[%s30131_s21 + $0x438] sm:$0xff]  }
 0x10d   : > { %v30287_v20 = vpop.f32.mrb[15].mxu0 }
 0x10f   : > { %25406 = vmatmul.mubr.msk.bf16.gmra.mrb[120].mxu0 %vm2309_vm2, %v29523_v17  ;;  %v29540_v17 = vld [vmem:[%s30131_s21 + $0x270] sm:$0xff]  }
 0x110   : > { %25409 = vmatprep.mubr.msk.bf16.mxu0 %vm2309_vm2, %v29524_v19 }
 0x112   : > { %v30291_v21 = vpop.f32.mrb[16].mxu0 }
 0x113   : > { %v30293_v22 = vpop.f32.mrb[17].mxu0 }
 0x114   : > { %35090 = vst [vmem:[#allocation11_spill] sm:$0xff] %v30293_v22  ;;  %v30296_v24 = vpop.f32.mrb[18].mxu0  ;;  %v29599_v22 = vld [vmem:[%s30131_s21 + $0x448] sm:$0xff]  }
 0x115   : > { %v30299_v26 = vpop.f32.mrb[19].mxu0 }
 0x117   : > { %25410 = vmatmul.mubr.msk.bf16.gmra.mrb[124].mxu0 %vm2309_vm2, %v29525_v23 }
 0x118   : > { %25413 = vmatprep.mubr.msk.bf16.mxu0 %vm2309_vm2, %v29526_v25 }
 0x11a   : > { %v30303_v27 = vpop.f32.mrb[20].mxu0 }
 0x11b   : > { %v30305_v28 = vpop.f32.mrb[21].mxu0 }
 0x11c   : > { %35091 = vst [vmem:[#allocation12_spill] sm:$0xff] %v30305_v28  ;;  %v30308_v30 = vpop.f32.mrb[22].mxu0  ;;  %v29601_v28 = vld [vmem:[%s30131_s21 + $0x458] sm:$0xff]  }
 0x11d   : > { %v30311_v32 = vpop.f32.mrb[23].mxu0 }
 0x11e   : > { %35092 = vst [vmem:[#allocation13_spill] sm:$0xff] %v30311_v32 }
 0x11f   : > { %25414 = vmatmul.mubr.msk.bf16.gmra.mrb[128].mxu0 %vm2309_vm2, %v29527_v29  ;;  %v29541_v29 = vld [vmem:[%s30131_s21 + $0x278] sm:$0xff]  }
 0x120   : > { %25417 = vmatprep.mubr.msk.bf16.mxu0 %vm2309_vm2, %v29528_v31 }
 0x122   : > { %v30315_v33 = vpop.f32.mrb[24].mxu0 }
 0x123   : > { %35093 = vst [vmem:[#allocation14_spill] sm:$0xff] %v30315_v33  ;;  %v30317_v34 = vpop.f32.mrb[25].mxu0  ;;  %v35563_v33 = vld [vmem:[#allocation7_spill] sm:$0xff] }
 0x124   : > { %35094 = vst [vmem:[#allocation15_spill] sm:$0xff] %v30317_v34  ;;  %v30320_v36 = vpop.f32.mrb[26].mxu0  ;;  %v29603_v34 = vld [vmem:[%s30131_s21 + $0x468] sm:$0xff]  }
 0x125   : > { %35095 = vst [vmem:[#allocation16_spill] sm:$0xff] %v30320_v36  ;;  %v30323_v38 = vpop.f32.mrb[27].mxu0 }
 0x126   : > { %35096 = vst [vmem:[#allocation17_spill] sm:$0xff] %v30323_v38 }
 0x127   : > { %25418 = vmatmul.mubr.msk.bf16.gmra.mrb[132].mxu0 %vm2309_vm2, %v29529_v35  ;;  %v29542_v35 = vld [vmem:[%s30131_s21 + $0x280] sm:$0xff]  }
 0x128   : > { %25421 = vmatprep.mubr.msk.bf16.mxu0 %vm2309_vm2, %v29530_v37 }
 0x12a   : > { %v30327_v39 = vpop.f32.mrb[28].mxu0 }
 0x12b   : > { %35097 = vst [vmem:[#allocation18_spill] sm:$0xff] %v30327_v39  ;;  %v30329_v40 = vpop.f32.mrb[29].mxu0 }
 0x12c   : > { %35098 = vst [vmem:[#allocation19_spill] sm:$0xff] %v30329_v40  ;;  %v30332_v42 = vpop.f32.mrb[30].mxu0  ;;  %v29605_v40 = vld [vmem:[%s30131_s21 + $0x478] sm:$0xff]  }
 0x12d   : > { %35099 = vst [vmem:[#allocation20_spill] sm:$0xff] %v30332_v42  ;;  %v30335_v44 = vpop.f32.mrb[31].mxu0 }
 0x12e   : > { %35100 = vst [vmem:[#allocation21_spill] sm:$0xff] %v30335_v44 }
 0x12f   : > { %25422 = vmatmul.mubr.msk.bf16.gmra.mrb[136].mxu0 %vm2309_vm2, %v29531_v41 }
 0x130   : > { %25425 = vmatprep.mubr.msk.bf16.mxu0 %vm2309_vm2, %v29532_v43 }
 0x132   : > { %v30339_v45 = vpop.f32.mrb[32].mxu0 }
 0x133   : > { %35101 = vst [vmem:[#allocation22_spill] sm:$0xff] %v30339_v45  ;;  %v30341_v46 = vpop.f32.mrb[33].mxu0 }
 0x134   : > { %35102 = vst [vmem:[#allocation23_spill] sm:$0xff] %v30341_v46  ;;  %v30344_v48 = vpop.f32.mrb[34].mxu0  ;;  %v29607_v46 = vld [vmem:[%s30131_s21 + $0x488] sm:$0xff]  }
 0x135   : > { %35103 = vst [vmem:[#allocation24_spill] sm:$0xff] %v30344_v48  ;;  %v30347_v50 = vpop.f32.mrb[35].mxu0 }
 0x136   : > { %35104 = vst [vmem:[#allocation25_spill] sm:$0xff] %v30347_v50 }
 0x137   : > { %25426 = vmatmul.mubr.msk.bf16.gmra.mrb[140].mxu0 %vm2309_vm2, %v29533_v47  ;;  %v29543_v47 = vld [vmem:[%s30131_s21 + $0x288] sm:$0xff]  }
 0x138   : > { %25429 = vmatprep.mubr.msk.bf16.mxu0 %vm2309_vm2, %v29534_v49 }
 0x13a   : > { %v30351_v51 = vpop.f32.mrb[36].mxu0 }
 0x13b   : > { %35105 = vst [vmem:[#allocation26_spill] sm:$0xff] %v30351_v51  ;;  %v30353_v52 = vpop.f32.mrb[37].mxu0 }
 0x13c   : > { %35106 = vst [vmem:[#allocation27_spill] sm:$0xff] %v30353_v52  ;;  %v30356_v54 = vpop.f32.mrb[38].mxu0  ;;  %v29609_v52 = vld [vmem:[%s30131_s21 + $0x498] sm:$0xff]  }
 0x13d   : > { %35107 = vst [vmem:[#allocation28_spill] sm:$0xff] %v30356_v54  ;;  %v30359_v56 = vpop.f32.mrb[39].mxu0 }
 0x13e   : > { %35108 = vst [vmem:[#allocation29_spill] sm:$0xff] %v30359_v56 }
 0x13f   : > { %25430 = vmatmul.mubr.msk.bf16.gmra.mrb[144].mxu0 %vm2309_vm2, %v29535_v53  ;;  %v29544_v53 = vld [vmem:[%s30131_s21 + $0x290] sm:$0xff]  }
 0x140   : > { %25433 = vmatprep.mubr.msk.bf16.mxu0 %vm2309_vm2, %v29536_v55 }
 0x142   : > { %v30363_v57 = vpop.f32.mrb[40].mxu0 }
 0x143   : > { %35109 = vst [vmem:[#allocation30_spill] sm:$0xff] %v30363_v57  ;;  %v30365_v58 = vpop.f32.mrb[41].mxu0 }
 0x144   : > { %35110 = vst [vmem:[#allocation31_spill] sm:$0xff] %v30365_v58  ;;  %v30368_v60 = vpop.f32.mrb[42].mxu0  ;;  %v29611_v58 = vld [vmem:[%s30131_s21 + $0x4a8] sm:$0xff]  }
 0x145   : > { %35111 = vst [vmem:[#allocation32_spill] sm:$0xff] %v30368_v60  ;;  %v30371_v1 = vpop.f32.mrb[43].mxu0 }
 0x146   : > { %35112 = vst [vmem:[#allocation33_spill] sm:$0xff] %v30371_v1 }
 0x147   : > { %25434 = vmatmul.mubr.msk.bf16.gmra.mrb[148].mxu0 %vm2309_vm2, %v29537_v59 }
 0x148   : > { %25437 = vmatprep.mubr.msk.bf16.mxu0 %vm2309_vm2, %v29538_v63 }
 0x14a   : > { %v30375_v5 = vpop.f32.mrb[44].mxu0 }
 0x14b   : > { %35113 = vst [vmem:[#allocation34_spill] sm:$0xff] %v30375_v5  ;;  %v30377_v7 = vpop.f32.mrb[45].mxu0 }
 0x14c   : > { %35114 = vst [vmem:[#allocation35_spill] sm:$0xff] %v30377_v7  ;;  %v30380_v13 = vpop.f32.mrb[46].mxu0  ;;  %v29613_v7 = vld [vmem:[%s30131_s21 + $0x4b8] sm:$0xff]  }
 0x14d   : > { %35115 = vst [vmem:[#allocation36_spill] sm:$0xff] %v30380_v13  ;;  %v30383_v19 = vpop.f32.mrb[47].mxu0 }
 0x14e   : > { %35116 = vst [vmem:[#allocation37_spill] sm:$0xff] %v30383_v19 }
 0x14f   : > { %25438 = vmatmul.mubr.msk.bf16.gmra.mrb[152].mxu0 %vm2309_vm2, %v29539_v11  ;;  %v29545_v11 = vld [vmem:[%s30131_s21 + $0x298] sm:$0xff]  }
 0x150   : > { %25441 = vmatprep.mubr.msk.bf16.mxu0 %vm2309_vm2, %v29540_v17 }
 0x152   : > { %v30387_v23 = vpop.f32.mrb[48].mxu0 }
 0x153   : > { %35117 = vst [vmem:[#allocation38_spill] sm:$0xff] %v30387_v23  ;;  %v30389_v25 = vpop.f32.mrb[49].mxu0 }
 0x154   : > { %35118 = vst [vmem:[#allocation39_spill] sm:$0xff] %v30389_v25  ;;  %v30392_v31 = vpop.f32.mrb[50].mxu0  ;;  %v29615_v25 = vld [vmem:[%s30131_s21 + $0x4c8] sm:$0xff]  }
 0x155   : > { %35119 = vst [vmem:[#allocation40_spill] sm:$0xff] %v30392_v31  ;;  %v30395_v37 = vpop.f32.mrb[51].mxu0  ;;  %v29618_v31 = vld [vmem:[%s30131_s21 + $0x4e0] sm:$0xff]  }
 0x156   : > { %35120 = vst [vmem:[#allocation41_spill] sm:$0xff] %v30395_v37  ;;  %v29664_v37 = vld [vmem:[%s30131_s21 + $0x650] sm:$0xff]  }
 0x157   : > { %25442 = vmatmul.mubr.msk.bf16.gmra.mrb[156].mxu0 %vm2309_vm2, %v29541_v29  ;;  %v29546_v29 = vld [vmem:[%s30131_s21 + $0x2a0] sm:$0xff]  }
 0x158   : > { %25445 = vmatprep.mubr.msk.bf16.mxu0 %vm2309_vm2, %v29542_v35 }
 0x15a   : > { %v30399_v41 = vpop.f32.mrb[52].mxu0 }
 0x15b   : > { %35121 = vst [vmem:[#allocation42_spill] sm:$0xff] %v30399_v41  ;;  %v30401_v43 = vpop.f32.mrb[53].mxu0  ;;  %v29620_v41 = vld [vmem:[%s30131_s21 + $0x4f0] sm:$0xff]  }
 0x15c   : > { %35122 = vst [vmem:[#allocation43_spill] sm:$0xff] %v30401_v43  ;;  %v30404_v49 = vpop.f32.mrb[54].mxu0 }
 0x15d   : > { %35123 = vst [vmem:[#allocation44_spill] sm:$0xff] %v30404_v49  ;;  %v30407_v55 = vpop.f32.mrb[55].mxu0 }
 0x15e   : > { %35124 = vst [vmem:[#allocation45_spill] sm:$0xff] %v30407_v55 }
 0x15f   : > { %25446 = vmatmul.mubr.msk.bf16.gmra.mrb[160].mxu0 %vm2309_vm2, %v29543_v47 }
 0x160   : > { %25449 = vmatprep.mubr.msk.bf16.mxu0 %vm2309_vm2, %v29544_v53  ;;  %v29547_v53 = vld [vmem:[%s30131_s21 + $0x2a8] sm:$0xff]  }
 0x162   : > { %v30411_v59 = vpop.f32.mrb[56].mxu0 }
 0x163   : > { %35125 = vst [vmem:[#allocation46_spill] sm:$0xff] %v30411_v59  ;;  %v30413_v63 = vpop.f32.mrb[57].mxu0 }
 0x164   : > { %35126 = vst [vmem:[#allocation47_spill] sm:$0xff] %v30413_v63  ;;  %v30416_v17 = vpop.f32.mrb[58].mxu0  ;;  %v29548_v63 = vld [vmem:[%s30131_s21 + $0x2b0] sm:$0xff]  }
 0x165   : > { %35127 = vst [vmem:[#allocation48_spill] sm:$0xff] %v30416_v17  ;;  %v30419_v35 = vpop.f32.mrb[59].mxu0 }
 0x166   : > { %35128 = vst [vmem:[#allocation49_spill] sm:$0xff] %v30419_v35 }
 0x167   : > { %25450 = vmatmul.mubr.msk.bf16.gmra.mrb[164].mxu0 %vm2309_vm2, %v29545_v11 }
 0x168   : > { %25453 = vmatprep.mubr.msk.bf16.mxu0 %vm2309_vm2, %v29546_v29  ;;  %v29549_v29 = vld [vmem:[%s30131_s21 + $0x2b8] sm:$0xff]  }
 0x16a   : > { %v30423_v55 = vpop.f32.mrb[60].mxu0 }
 0x16b   : > { %35129 = vst [vmem:[#allocation50_spill] sm:$0xff] %v30423_v55  ;;  %v30425_v47 = vpop.f32.mrb[61].mxu0 }
 0x16c   : > { %35130 = vst [vmem:[#allocation51_spill] sm:$0xff] %v30425_v47  ;;  %v30428_v59 = vpop.f32.mrb[62].mxu0  ;;  %v29550_v47 = vld [vmem:[%s30131_s21 + $0x2c0] sm:$0xff]  }
 0x16d   : > { %35131 = vst [vmem:[#allocation52_spill] sm:$0xff] %v30428_v59  ;;  %v30431_v49 = vpop.f32.mrb[63].mxu0 }
 0x16e   : > { %35132 = vst [vmem:[#allocation53_spill] sm:$0xff] %v30431_v49 }
 0x16f   : > { %25454 = vmatmul.mubr.msk.bf16.gmra.mrb[168].mxu0 %vm2309_vm2, %v29547_v53 }
 0x170   : > { %25457 = vmatprep.mubr.msk.bf16.mxu0 %vm2309_vm2, %v29548_v63  ;;  %v29551_v63 = vld [vmem:[%s30131_s21 + $0x2c8] sm:$0xff]  }
 0x172   : > { %v30435_v35 = vpop.f32.mrb[64].mxu0 }
 0x173   : > { %35133 = vst [vmem:[#allocation54_spill] sm:$0xff] %v30435_v35  ;;  %v30437_v11 = vpop.f32.mrb[65].mxu0 }
 0x174   : > { %35134 = vst [vmem:[#allocation55_spill] sm:$0xff] %v30437_v11  ;;  %v30440_v55 = vpop.f32.mrb[66].mxu0  ;;  %v29552_v11 = vld [vmem:[%s30131_s21 + $0x2d0] sm:$0xff]  }
 0x175   : > { %35135 = vst [vmem:[#allocation56_spill] sm:$0xff] %v30440_v55  ;;  %v30443_v17 = vpop.f32.mrb[67].mxu0 }
 0x176   : > { %35136 = vst [vmem:[#allocation57_spill] sm:$0xff] %v30443_v17 }
 0x177   : > { %25458 = vmatmul.mubr.msk.bf16.gmra.mrb[172].mxu0 %vm2309_vm2, %v29549_v29 }
 0x178   : > { %25461 = vmatprep.mubr.msk.bf16.mxu0 %vm2309_vm2, %v29550_v47  ;;  %v29553_v47 = vld [vmem:[%s30131_s21 + $0x2d8] sm:$0xff]  }
 0x17a   : > { %v30447_v49 = vpop.f32.mrb[68].mxu0 }
 0x17b   : > { %35137 = vst [vmem:[#allocation58_spill] sm:$0xff] %v30447_v49  ;;  %v30449_v53 = vpop.f32.mrb[69].mxu0 }
 0x17c   : > { %35138 = vst [vmem:[#allocation59_spill] sm:$0xff] %v30449_v53  ;;  %v30452_v35 = vpop.f32.mrb[70].mxu0  ;;  %v29554_v53 = vld [vmem:[%s30131_s21 + $0x2e0] sm:$0xff]  }
 0x17d   : > { %35139 = vst [vmem:[#allocation60_spill] sm:$0xff] %v30452_v35  ;;  %v30455_v59 = vpop.f32.mrb[71].mxu0 }
 0x17e   : > { %35140 = vst [vmem:[#allocation61_spill] sm:$0xff] %v30455_v59 }
 0x17f   : > { %25462 = vmatmul.mubr.msk.bf16.gmra.mrb[176].mxu0 %vm2309_vm2, %v29551_v63 }
 0x180   : > { %25465 = vmatprep.mubr.msk.bf16.mxu0 %vm2309_vm2, %v29552_v11  ;;  %v29555_v11 = vld [vmem:[%s30131_s21 + $0x2e8] sm:$0xff]  }
 0x182   : > { %v30459_v17 = vpop.f32.mrb[72].mxu0 }
 0x183   : > { %35141 = vst [vmem:[#allocation62_spill] sm:$0xff] %v30459_v17  ;;  %v30461_v29 = vpop.f32.mrb[73].mxu0 }
 0x184   : > { %35142 = vst [vmem:[#allocation63_spill] sm:$0xff] %v30461_v29  ;;  %v30464_v49 = vpop.f32.mrb[74].mxu0  ;;  %v29556_v29 = vld [vmem:[%s30131_s21 + $0x2f0] sm:$0xff]  }
 0x185   : > { %35143 = vst [vmem:[#allocation64_spill] sm:$0xff] %v30464_v49  ;;  %v30467_v55 = vpop.f32.mrb[75].mxu0 }
 0x186   : > { %35144 = vst [vmem:[#allocation65_spill] sm:$0xff] %v30467_v55 }
 0x187   : > { %25466 = vmatmul.mubr.msk.bf16.gmra.mrb[180].mxu0 %vm2309_vm2, %v29553_v47 }
 0x188   : > { %25469 = vmatprep.mubr.msk.bf16.mxu0 %vm2309_vm2, %v29554_v53  ;;  %v29557_v53 = vld [vmem:[%s30131_s21 + $0x2f8] sm:$0xff]  }
 0x18a   : > { %v30471_v59 = vpop.f32.mrb[76].mxu0 }
 0x18b   : > { %35145 = vst [vmem:[#allocation66_spill] sm:$0xff] %v30471_v59  ;;  %v30473_v63 = vpop.f32.mrb[77].mxu0 }
 0x18c   : > { %35146 = vst [vmem:[#allocation67_spill] sm:$0xff] %v30473_v63  ;;  %v30476_v17 = vpop.f32.mrb[78].mxu0  ;;  %v29558_v63 = vld [vmem:[%s30131_s21 + $0x300] sm:$0xff]  }
 0x18d   : > { %35147 = vst [vmem:[#allocation68_spill] sm:$0xff] %v30476_v17  ;;  %v30479_v35 = vpop.f32.mrb[79].mxu0 }
 0x18e   : > { %35148 = vst [vmem:[#allocation69_spill] sm:$0xff] %v30479_v35 }
 0x18f   : > { %25470 = vmatmul.mubr.msk.bf16.gmra.mrb[184].mxu0 %vm2309_vm2, %v29555_v11 }
 0x190   : > { %25473 = vmatprep.mubr.msk.bf16.mxu0 %vm2309_vm2, %v29556_v29  ;;  %v29559_v29 = vld [vmem:[%s30131_s21 + $0x308] sm:$0xff]  }
 0x192   : > { %v30483_v55 = vpop.f32.mrb[80].mxu0 }
 0x193   : > { %35149 = vst [vmem:[#allocation70_spill] sm:$0xff] %v30483_v55  ;;  %v30485_v47 = vpop.f32.mrb[81].mxu0 }
 0x194   : > { %35150 = vst [vmem:[#allocation71_spill] sm:$0xff] %v30485_v47  ;;  %v30488_v59 = vpop.f32.mrb[82].mxu0  ;;  %v29560_v47 = vld [vmem:[%s30131_s21 + $0x310] sm:$0xff]  }
 0x195   : > { %35151 = vst [vmem:[#allocation72_spill] sm:$0xff] %v30488_v59  ;;  %v30491_v49 = vpop.f32.mrb[83].mxu0 }
 0x196   : > { %35152 = vst [vmem:[#allocation73_spill] sm:$0xff] %v30491_v49 }
 0x197   : > { %25474 = vmatmul.mubr.msk.bf16.gmra.mrb[188].mxu0 %vm2309_vm2, %v29557_v53 }
 0x198   : > { %25477 = vmatprep.mubr.msk.bf16.mxu0 %vm2309_vm2, %v29558_v63  ;;  %v29561_v63 = vld [vmem:[%s30131_s21 + $0x318] sm:$0xff]  }
 0x19a   : > { %v30495_v35 = vpop.f32.mrb[84].mxu0 }
 0x19b   : > { %35153 = vst [vmem:[#allocation74_spill] sm:$0xff] %v30495_v35  ;;  %v30497_v11 = vpop.f32.mrb[85].mxu0 }
 0x19c   : > { %35154 = vst [vmem:[#allocation75_spill] sm:$0xff] %v30497_v11  ;;  %v30500_v55 = vpop.f32.mrb[86].mxu0  ;;  %v29562_v11 = vld [vmem:[%s30131_s21 + $0x320] sm:$0xff]  }
 0x19d   : > { %35155 = vst [vmem:[#allocation76_spill] sm:$0xff] %v30500_v55  ;;  %v30503_v17 = vpop.f32.mrb[87].mxu0 }
 0x19e   : > { %35156 = vst [vmem:[#allocation77_spill] sm:$0xff] %v30503_v17 }
 0x19f   : > { %25478 = vmatmul.mubr.msk.bf16.gmra.mrb[192].mxu0 %vm2309_vm2, %v29559_v29 }
 0x1a0   : > { %25481 = vmatprep.mubr.msk.bf16.mxu0 %vm2309_vm2, %v29560_v47  ;;  %v29563_v47 = vld [vmem:[%s30131_s21 + $0x328] sm:$0xff]  }
 0x1a2   : > { %v30507_v49 = vpop.f32.mrb[88].mxu0 }
 0x1a3   : > { %35157 = vst [vmem:[#allocation78_spill] sm:$0xff] %v30507_v49  ;;  %v30509_v53 = vpop.f32.mrb[89].mxu0 }
 0x1a4   : > { %35158 = vst [vmem:[#allocation79_spill] sm:$0xff] %v30509_v53  ;;  %v30512_v35 = vpop.f32.mrb[90].mxu0  ;;  %v29564_v53 = vld [vmem:[%s30131_s21 + $0x330] sm:$0xff]  }
 0x1a5   : > { %35159 = vst [vmem:[#allocation80_spill] sm:$0xff] %v30512_v35  ;;  %v30515_v59 = vpop.f32.mrb[91].mxu0 }
 0x1a6   : > { %35160 = vst [vmem:[#allocation81_spill] sm:$0xff] %v30515_v59 }
 0x1a7   : > { %25482 = vmatmul.mubr.msk.bf16.gmra.mrb[196].mxu0 %vm2309_vm2, %v29561_v63 }
 0x1a8   : > { %25485 = vmatprep.mubr.msk.bf16.mxu0 %vm2309_vm2, %v29562_v11  ;;  %v29565_v11 = vld [vmem:[%s30131_s21 + $0x338] sm:$0xff]  }
 0x1aa   : > { %v30519_v17 = vpop.f32.mrb[92].mxu0 }
 0x1ab   : > { %35161 = vst [vmem:[#allocation82_spill] sm:$0xff] %v30519_v17  ;;  %v30521_v29 = vpop.f32.mrb[93].mxu0 }
 0x1ac   : > { %35162 = vst [vmem:[#allocation83_spill] sm:$0xff] %v30521_v29  ;;  %v30524_v49 = vpop.f32.mrb[94].mxu0  ;;  %v29566_v29 = vld [vmem:[%s30131_s21 + $0x340] sm:$0xff]  }
 0x1ad   : > { %35163 = vst [vmem:[#allocation84_spill] sm:$0xff] %v30524_v49  ;;  %v30527_v55 = vpop.f32.mrb[95].mxu0 }
 0x1ae   : > { %35164 = vst [vmem:[#allocation85_spill] sm:$0xff] %v30527_v55 }
 0x1af   : > { %25486 = vmatmul.mubr.msk.bf16.gmra.mrb[200].mxu0 %vm2309_vm2, %v29563_v47 }
 0x1b0   : > { %25489 = vmatprep.mubr.msk.bf16.mxu0 %vm2309_vm2, %v29564_v53  ;;  %v29567_v53 = vld [vmem:[%s30131_s21 + $0x348] sm:$0xff]  }
 0x1b2   : > { %v30531_v59 = vpop.f32.mrb[96].mxu0 }
 0x1b3   : > { %35165 = vst [vmem:[#allocation86_spill] sm:$0xff] %v30531_v59  ;;  %v30533_v63 = vpop.f32.mrb[97].mxu0 }
 0x1b4   : > { %35166 = vst [vmem:[#allocation87_spill] sm:$0xff] %v30533_v63  ;;  %v30536_v17 = vpop.f32.mrb[98].mxu0  ;;  %v29568_v63 = vld [vmem:[%s30131_s21 + $0x350] sm:$0xff]  }
 0x1b5   : > { %35167 = vst [vmem:[#allocation88_spill] sm:$0xff] %v30536_v17  ;;  %v30539_v35 = vpop.f32.mrb[99].mxu0 }
 0x1b6   : > { %35168 = vst [vmem:[#allocation89_spill] sm:$0xff] %v30539_v35 }
 0x1b7   : > { %25490 = vmatmul.mubr.msk.bf16.gmra.mrb[204].mxu0 %vm2309_vm2, %v29565_v11 }
 0x1b8   : > { %25493 = vmatprep.mubr.msk.bf16.mxu0 %vm2309_vm2, %v29566_v29  ;;  %v29569_v29 = vld [vmem:[%s30131_s21 + $0x358] sm:$0xff]  }
 0x1ba   : > { %v30543_v55 = vpop.f32.mrb[100].mxu0 }
 0x1bb   : > { %35169 = vst [vmem:[#allocation90_spill] sm:$0xff] %v30543_v55  ;;  %v30545_v47 = vpop.f32.mrb[101].mxu0 }
 0x1bc   : > { %35170 = vst [vmem:[#allocation91_spill] sm:$0xff] %v30545_v47  ;;  %v30548_v59 = vpop.f32.mrb[102].mxu0  ;;  %v29570_v47 = vld [vmem:[%s30131_s21 + $0x360] sm:$0xff]  }
 0x1bd   : > { %35171 = vst [vmem:[#allocation92_spill] sm:$0xff] %v30548_v59  ;;  %v30551_v49 = vpop.f32.mrb[103].mxu0 }
 0x1be   : > { %35172 = vst [vmem:[#allocation93_spill] sm:$0xff] %v30551_v49 }
 0x1bf   : > { %25494 = vmatmul.mubr.msk.bf16.gmra.mrb[208].mxu0 %vm2309_vm2, %v29567_v53 }
 0x1c0   : > { %25497 = vmatprep.mubr.msk.bf16.mxu0 %vm2309_vm2, %v29568_v63  ;;  %v29571_v63 = vld [vmem:[%s30131_s21 + $0x368] sm:$0xff]  }
 0x1c2   : > { %v30555_v35 = vpop.f32.mrb[104].mxu0 }
 0x1c3   : > { %35173 = vst [vmem:[#allocation94_spill] sm:$0xff] %v30555_v35  ;;  %v30557_v11 = vpop.f32.mrb[105].mxu0 }
 0x1c4   : > { %35174 = vst [vmem:[#allocation95_spill] sm:$0xff] %v30557_v11  ;;  %v30560_v55 = vpop.f32.mrb[106].mxu0  ;;  %v29572_v11 = vld [vmem:[%s30131_s21 + $0x370] sm:$0xff]  }
 0x1c5   : > { %35175 = vst [vmem:[#allocation96_spill] sm:$0xff] %v30560_v55  ;;  %v30563_v17 = vpop.f32.mrb[107].mxu0 }
 0x1c6   : > { %35176 = vst [vmem:[#allocation97_spill] sm:$0xff] %v30563_v17 }
 0x1c7   : > { %25498 = vmatmul.mubr.msk.bf16.gmra.mrb[212].mxu0 %vm2309_vm2, %v29569_v29 }
 0x1c8   : > { %25501 = vmatprep.mubr.msk.bf16.mxu0 %vm2309_vm2, %v29570_v47  ;;  %v29573_v47 = vld [vmem:[%s30131_s21 + $0x378] sm:$0xff]  }
 0x1ca   : > { %v30567_v49 = vpop.f32.mrb[108].mxu0 }
 0x1cb   : > { %35177 = vst [vmem:[#allocation98_spill] sm:$0xff] %v30567_v49  ;;  %v30569_v53 = vpop.f32.mrb[109].mxu0 }
 0x1cc   : > { %35178 = vst [vmem:[#allocation99_spill] sm:$0xff] %v30569_v53  ;;  %v30572_v35 = vpop.f32.mrb[110].mxu0  ;;  %v29574_v53 = vld [vmem:[%s30131_s21 + $0x380] sm:$0xff]  }
 0x1cd   : > { %35179 = vst [vmem:[#allocation100_spill] sm:$0xff] %v30572_v35  ;;  %v30575_v59 = vpop.f32.mrb[111].mxu0 }
 0x1ce   : > { %35180 = vst [vmem:[#allocation101_spill] sm:$0xff] %v30575_v59 }
 0x1cf   : > { %25502 = vmatmul.mubr.msk.bf16.gmra.mrb[216].mxu0 %vm2309_vm2, %v29571_v63 }
 0x1d0   : > { %25505 = vmatprep.mubr.msk.bf16.mxu0 %vm2309_vm2, %v29572_v11  ;;  %v29575_v11 = vld [vmem:[%s30131_s21 + $0x388] sm:$0xff]  }
 0x1d2   : > { %v30579_v17 = vpop.f32.mrb[112].mxu0 }
 0x1d3   : > { %35181 = vst [vmem:[#allocation102_spill] sm:$0xff] %v30579_v17  ;;  %v30581_v29 = vpop.f32.mrb[113].mxu0 }
 0x1d4   : > { %35182 = vst [vmem:[#allocation103_spill] sm:$0xff] %v30581_v29  ;;  %v30584_v49 = vpop.f32.mrb[114].mxu0  ;;  %v29576_v29 = vld [vmem:[%s30131_s21 + $0x390] sm:$0xff]  }
 0x1d5   : > { %35183 = vst [vmem:[#allocation104_spill] sm:$0xff] %v30584_v49  ;;  %v30587_v55 = vpop.f32.mrb[115].mxu0 }
 0x1d6   : > { %35184 = vst [vmem:[#allocation105_spill] sm:$0xff] %v30587_v55 }
 0x1d7   : > { %25506 = vmatmul.mubr.msk.bf16.gmra.mrb[220].mxu0 %vm2309_vm2, %v29573_v47 }
 0x1d8   : > { %25509 = vmatprep.mubr.msk.bf16.mxu0 %vm2309_vm2, %v29574_v53  ;;  %v29577_v53 = vld [vmem:[%s30131_s21 + $0x398] sm:$0xff]  }
 0x1da   : > { %v30591_v59 = vpop.f32.mrb[116].mxu0 }
 0x1db   : > { %35185 = vst [vmem:[#allocation106_spill] sm:$0xff] %v30591_v59  ;;  %v30593_v63 = vpop.f32.mrb[117].mxu0 }
 0x1dc   : > { %35186 = vst [vmem:[#allocation107_spill] sm:$0xff] %v30593_v63  ;;  %v30596_v17 = vpop.f32.mrb[118].mxu0  ;;  %v29578_v63 = vld [vmem:[%s30131_s21 + $0x3a0] sm:$0xff]  }
 0x1dd   : > { %35187 = vst [vmem:[#allocation108_spill] sm:$0xff] %v30596_v17  ;;  %v30599_v35 = vpop.f32.mrb[119].mxu0 }
 0x1de   : > { %35188 = vst [vmem:[#allocation109_spill] sm:$0xff] %v30599_v35 }
 0x1df   : > { %25510 = vmatmul.mubr.msk.bf16.gmra.mrb[224].mxu0 %vm2309_vm2, %v29575_v11 }
 0x1e0   : > { %25513 = vmatprep.mubr.msk.bf16.mxu0 %vm2309_vm2, %v29576_v29  ;;  %v29579_v29 = vld [vmem:[%s30131_s21 + $0x3a8] sm:$0xff]  }
 0x1e2   : > { %v30603_v55 = vpop.f32.mrb[120].mxu0 }
 0x1e3   : > { %35189 = vst [vmem:[#allocation110_spill] sm:$0xff] %v30603_v55  ;;  %v30605_v47 = vpop.f32.mrb[121].mxu0 }
 0x1e4   : > { %35190 = vst [vmem:[#allocation111_spill] sm:$0xff] %v30605_v47  ;;  %v30608_v59 = vpop.f32.mrb[122].mxu0  ;;  %v29580_v47 = vld [vmem:[%s30131_s21 + $0x3b0] sm:$0xff]  }
 0x1e5   : > { %35191 = vst [vmem:[#allocation112_spill] sm:$0xff] %v30608_v59  ;;  %v30611_v49 = vpop.f32.mrb[123].mxu0 }
 0x1e6   : > { %35192 = vst [vmem:[#allocation113_spill] sm:$0xff] %v30611_v49 }
 0x1e7   : > { %25514 = vmatmul.mubr.msk.bf16.gmra.mrb[228].mxu0 %vm2309_vm2, %v29577_v53 }
 0x1e8   : > { %25517 = vmatprep.mubr.msk.bf16.mxu0 %vm2309_vm2, %v29578_v63  ;;  %v29581_v63 = vld [vmem:[%s30131_s21 + $0x3b8] sm:$0xff]  }
 0x1ea   : > { %v30615_v35 = vpop.f32.mrb[124].mxu0 }
 0x1eb   : > { %35193 = vst [vmem:[#allocation114_spill] sm:$0xff] %v30615_v35  ;;  %v30617_v11 = vpop.f32.mrb[125].mxu0 }
 0x1ec   : > { %35194 = vst [vmem:[#allocation115_spill] sm:$0xff] %v30617_v11  ;;  %v30620_v55 = vpop.f32.mrb[126].mxu0  ;;  %v29582_v11 = vld [vmem:[%s30131_s21 + $0x3c0] sm:$0xff]  }
 0x1ed   : > { %35195 = vst [vmem:[#allocation116_spill] sm:$0xff] %v30620_v55  ;;  %v30623_v17 = vpop.f32.mrb[127].mxu0 }
 0x1ee   : > { %35196 = vst [vmem:[#allocation117_spill] sm:$0xff] %v30623_v17 }
 0x1ef   : > { %25518 = vmatmul.mubr.msk.bf16.gmra.mrb[232].mxu0 %vm2309_vm2, %v29579_v29 }
 0x1f0   : > { %25521 = vmatprep.mubr.msk.bf16.mxu0 %vm2309_vm2, %v29580_v47  ;;  %v29583_v47 = vld [vmem:[%s30131_s21 + $0x3c8] sm:$0xff]  }
 0x1f2   : > { %v30627_v49 = vpop.f32.mrb[128].mxu0 }
 0x1f3   : > { %35197 = vst [vmem:[#allocation118_spill] sm:$0xff] %v30627_v49  ;;  %v30629_v53 = vpop.f32.mrb[129].mxu0 }
 0x1f4   : > { %35198 = vst [vmem:[#allocation119_spill] sm:$0xff] %v30629_v53  ;;  %v30632_v35 = vpop.f32.mrb[130].mxu0  ;;  %v29584_v53 = vld [vmem:[%s30131_s21 + $0x3d0] sm:$0xff]  }
 0x1f5   : > { %35199 = vst [vmem:[#allocation120_spill] sm:$0xff] %v30632_v35  ;;  %v30635_v59 = vpop.f32.mrb[131].mxu0 }
 0x1f6   : > { %35200 = vst [vmem:[#allocation121_spill] sm:$0xff] %v30635_v59 }
 0x1f7   : > { %25522 = vmatmul.mubr.msk.bf16.gmra.mrb[236].mxu0 %vm2309_vm2, %v29581_v63 }
 0x1f8   : > { %25525 = vmatprep.mubr.msk.bf16.mxu0 %vm2309_vm2, %v29582_v11  ;;  %v29585_v11 = vld [vmem:[%s30131_s21 + $0x3d8] sm:$0xff]  }
 0x1fa   : > { %v30639_v17 = vpop.f32.mrb[132].mxu0 }
 0x1fb   : > { %35201 = vst [vmem:[#allocation122_spill] sm:$0xff] %v30639_v17  ;;  %v30641_v29 = vpop.f32.mrb[133].mxu0 }
 0x1fc   : > { %35202 = vst [vmem:[#allocation123_spill] sm:$0xff] %v30641_v29  ;;  %v30644_v49 = vpop.f32.mrb[134].mxu0  ;;  %v29586_v29 = vld [vmem:[%s30131_s21 + $0x3e0] sm:$0xff]  }
 0x1fd   : > { %35203 = vst [vmem:[#allocation124_spill] sm:$0xff] %v30644_v49  ;;  %v30647_v55 = vpop.f32.mrb[135].mxu0 }
 0x1fe   : > { %35204 = vst [vmem:[#allocation125_spill] sm:$0xff] %v30647_v55 }
 0x1ff   : > { %25526 = vmatmul.mubr.msk.bf16.gmra.mrb[240].mxu0 %vm2309_vm2, %v29583_v47 }
 0x200   : > { %25529 = vmatprep.mubr.msk.bf16.mxu0 %vm2309_vm2, %v29584_v53  ;;  %v29587_v53 = vld [vmem:[%s30131_s21 + $0x3e8] sm:$0xff]  }
 0x202   : > { %v30651_v59 = vpop.f32.mrb[136].mxu0 }
 0x203   : > { %35205 = vst [vmem:[#allocation126_spill] sm:$0xff] %v30651_v59  ;;  %v30653_v63 = vpop.f32.mrb[137].mxu0 }
 0x204   : > { %35206 = vst [vmem:[#allocation127_spill] sm:$0xff] %v30653_v63  ;;  %v30656_v17 = vpop.f32.mrb[138].mxu0  ;;  %v29588_v63 = vld [vmem:[%s30131_s21 + $0x3f0] sm:$0xff]  }
 0x205   : > { %35207 = vst [vmem:[#allocation128_spill] sm:$0xff] %v30656_v17  ;;  %v30659_v35 = vpop.f32.mrb[139].mxu0  ;;  %v29592_v17 = vld [vmem:[%s30131_s21 + $0x410] sm:$0xff]  }
 0x206   : > { %35208 = vst [vmem:[#allocation129_spill] sm:$0xff] %v30659_v35 }
 0x207   : > { %25530 = vmatmul.mubr.msk.bf16.gmra.mrb[244].mxu0 %vm2309_vm2, %v29585_v11 }
 0x208   : > { %25533 = vmatprep.mubr.msk.bf16.mxu0 %vm2309_vm2, %v29586_v29 }
 0x20a   : > { %v30663_v55 = vpop.f32.mrb[140].mxu0 }
 0x20b   : > { %35209 = vst [vmem:[#allocation130_spill] sm:$0xff] %v30663_v55  ;;  %v30665_v47 = vpop.f32.mrb[141].mxu0 }
 0x20c   : > { %35210 = vst [vmem:[#allocation131_spill] sm:$0xff] %v30665_v47  ;;  %v30668_v59 = vpop.f32.mrb[142].mxu0  ;;  %v29589_v47 = vld [vmem:[%s30131_s21 + $0x3f8] sm:$0xff]  }
 0x20d   : > { %35211 = vst [vmem:[#allocation132_spill] sm:$0xff] %v30668_v59  ;;  %v30671_v49 = vpop.f32.mrb[143].mxu0 }
 0x20e   : > { %35212 = vst [vmem:[#allocation133_spill] sm:$0xff] %v30671_v49  ;;  %v29590_v49 = vld [vmem:[%s30131_s21 + $0x400] sm:$0xff]  }
 0x20f   : > { %25534 = vmatmul.mubr.msk.bf16.gmra.mrb[248].mxu0 %vm2309_vm2, %v29587_v53 }
 0x210   : > { %25537 = vmatprep.mubr.msk.bf16.mxu0 %vm2309_vm2, %v29588_v63 }
 0x212   : > { %v30675_v35 = vpop.f32.mrb[144].mxu0 }
 0x213   : > { %v30679_v11 = vpop.f32.mrb[145].mxu0 }
 0x214   : > { %35213 = vst [vmem:[#allocation134_spill] sm:$0xff] %v30679_v11  ;;  %v30684_v55 = vpop.f32.mrb[146].mxu0 }
 0x215   : > { %35214 = vst [vmem:[#allocation135_spill] sm:$0xff] %v30684_v55  ;;  %v30689_v63 = vpop.f32.mrb[147].mxu0 }
 0x216   : > { %35215 = vst [vmem:[#allocation136_spill] sm:$0xff] %v30689_v63  ;;  %v29594_v63 = vld [vmem:[%s30131_s21 + $0x420] sm:$0xff]  }
 0x217   : > { %25538 = vmatmul.mubr.msk.bf16.gmra.mrb[252].mxu0 %vm2309_vm2, %v29589_v47 }
 0x218   : > { %25541 = vmatprep.mubr.msk.bf16.mxu0 %vm2309_vm2, %v29590_v49 }
 0x21a   : > { %v30695_v29 = vpop.f32.mrb[148].mxu0 }
 0x21b   : > { %v30699_v11 = vpop.f32.mrb[149].mxu0 }
 0x21c   : > { %35216 = vst [vmem:[#allocation137_spill] sm:$0xff] %v30699_v11  ;;  %v30704_v55 = vpop.f32.mrb[150].mxu0 }
 0x21d   : > { %35217 = vst [vmem:[#allocation138_spill] sm:$0xff] %v30704_v55  ;;  %v30709_v49 = vpop.f32.mrb[151].mxu0 }
 0x21e   : > { %35218 = vst [vmem:[#allocation139_spill] sm:$0xff] %v30709_v49  ;;  %v29596_v49 = vld [vmem:[%s30131_s21 + $0x430] sm:$0xff]  }
 0x21f   : > { %25542 = vmatmul.mubr.msk.bf16.gmra.mrb[0].mxu0 %vm2309_vm2, %v29591_v62 }
 0x220   : > { %25545 = vmatprep.mubr.msk.bf16.mxu0 %vm2309_vm2, %v29592_v17 }
 0x222   : > { %v30715_v59 = vpop.f32.mrb[152].mxu0 }
 0x223   : > { %v30719_v11 = vpop.f32.mrb[153].mxu0 }
 0x224   : > { %35219 = vst [vmem:[#allocation140_spill] sm:$0xff] %v30719_v11  ;;  %v30724_v55 = vpop.f32.mrb[154].mxu0 }
 0x225   : > { %35220 = vst [vmem:[#allocation141_spill] sm:$0xff] %v30724_v55  ;;  %v30729_v17 = vpop.f32.mrb[155].mxu0 }
 0x226   : > { %35221 = vst [vmem:[#allocation142_spill] sm:$0xff] %v30729_v17  ;;  %v29598_v17 = vld [vmem:[%s30131_s21 + $0x440] sm:$0xff]  }
 0x227   : > { %25546 = vmatmul.mubr.msk.bf16.gmra.mrb[4].mxu0 %vm2309_vm2, %v29593_v4 }
 0x228   : > { %25549 = vmatprep.mubr.msk.bf16.mxu0 %vm2309_vm2, %v29594_v63 }
 0x22a   : > { %v30735_v53 = vpop.f32.mrb[156].mxu0 }
 0x22b   : > { %v30739_v11 = vpop.f32.mrb[157].mxu0 }
 0x22c   : > { %35222 = vst [vmem:[#allocation143_spill] sm:$0xff] %v30739_v11  ;;  %v30744_v55 = vpop.f32.mrb[158].mxu0 }
 0x22d   : > { %35223 = vst [vmem:[#allocation144_spill] sm:$0xff] %v30744_v55  ;;  %v30749_v63 = vpop.f32.mrb[159].mxu0 }
 0x22e   : > { %35224 = vst [vmem:[#allocation145_spill] sm:$0xff] %v30749_v63  ;;  %v29600_v63 = vld [vmem:[%s30131_s21 + $0x450] sm:$0xff]  }
 0x22f   : > { %25550 = vmatmul.mubr.msk.bf16.gmra.mrb[8].mxu0 %vm2309_vm2, %v29595_v10 }
 0x230   : > { %25553 = vmatprep.mubr.msk.bf16.mxu0 %vm2309_vm2, %v29596_v49 }
 0x232   : > { %v30755_v47 = vpop.f32.mrb[160].mxu0 }
 0x233   : > { %v30759_v11 = vpop.f32.mrb[161].mxu0 }
 0x234   : > { %35225 = vst [vmem:[#allocation146_spill] sm:$0xff] %v30759_v11  ;;  %v30764_v55 = vpop.f32.mrb[162].mxu0 }
 0x235   : > { %35226 = vst [vmem:[#allocation147_spill] sm:$0xff] %v30764_v55  ;;  %v30769_v49 = vpop.f32.mrb[163].mxu0 }
 0x236   : > { %35227 = vst [vmem:[#allocation148_spill] sm:$0xff] %v30769_v49  ;;  %v29602_v49 = vld [vmem:[%s30131_s21 + $0x460] sm:$0xff]  }
 0x237   : > { %25554 = vmatmul.mubr.msk.bf16.gmra.mrb[12].mxu0 %vm2309_vm2, %v29597_v16 }
 0x238   : > { %25557 = vmatprep.mubr.msk.bf16.mxu0 %vm2309_vm2, %v29598_v17 }
 0x23a   : > { %v30775_v62 = vpop.f32.mrb[164].mxu0 }
 0x23b   : > { %v30779_v11 = vpop.f32.mrb[165].mxu0 }
 0x23c   : > { %35228 = vst [vmem:[#allocation149_spill] sm:$0xff] %v30779_v11  ;;  %v30784_v55 = vpop.f32.mrb[166].mxu0 }
 0x23d   : > { %35229 = vst [vmem:[#allocation150_spill] sm:$0xff] %v30784_v55  ;;  %v30789_v17 = vpop.f32.mrb[167].mxu0 }
 0x23e   : > { %35230 = vst [vmem:[#allocation151_spill] sm:$0xff] %v30789_v17  ;;  %v29604_v17 = vld [vmem:[%s30131_s21 + $0x470] sm:$0xff]  }
 0x23f   : > { %25558 = vmatmul.mubr.msk.bf16.gmra.mrb[16].mxu0 %vm2309_vm2, %v29599_v22 }
 0x240   : > { %25561 = vmatprep.mubr.msk.bf16.mxu0 %vm2309_vm2, %v29600_v63 }
 0x242   : > { %v30795_v4 = vpop.f32.mrb[168].mxu0 }
 0x243   : > { %35231 = vst [vmem:[#allocation152_spill] sm:$0xff] %v30795_v4  ;;  %v30799_v11 = vpop.f32.mrb[169].mxu0 }
 0x244   : > { %35232 = vst [vmem:[#allocation153_spill] sm:$0xff] %v30799_v11  ;;  %v30804_v55 = vpop.f32.mrb[170].mxu0 }
 0x245   : > { %35233 = vst [vmem:[#allocation154_spill] sm:$0xff] %v30804_v55  ;;  %v30809_v63 = vpop.f32.mrb[171].mxu0 }
 0x246   : > { %35234 = vst [vmem:[#allocation155_spill] sm:$0xff] %v30809_v63  ;;  %v29606_v63 = vld [vmem:[%s30131_s21 + $0x480] sm:$0xff]  }
 0x247   : > { %25562 = vmatmul.mubr.msk.bf16.gmra.mrb[20].mxu0 %vm2309_vm2, %v29601_v28 }
 0x248   : > { %25565 = vmatprep.mubr.msk.bf16.mxu0 %vm2309_vm2, %v29602_v49 }
 0x24a   : > { %v30815_v10 = vpop.f32.mrb[172].mxu0 }
 0x24b   : > { %35235 = vst [vmem:[#allocation156_spill] sm:$0xff] %v30815_v10  ;;  %v30819_v11 = vpop.f32.mrb[173].mxu0  ;;  %v29676_v10 = vld [vmem:[%s30131_s21 + $0x6b0] sm:$0xff]  }
 0x24c   : > { %35236 = vst [vmem:[#allocation157_spill] sm:$0xff] %v30819_v11  ;;  %v30824_v55 = vpop.f32.mrb[174].mxu0 }
 0x24d   : > { %35237 = vst [vmem:[#allocation158_spill] sm:$0xff] %v30824_v55  ;;  %v30829_v49 = vpop.f32.mrb[175].mxu0 }
 0x24e   : > { %35238 = vst [vmem:[#allocation159_spill] sm:$0xff] %v30829_v49  ;;  %v29608_v49 = vld [vmem:[%s30131_s21 + $0x490] sm:$0xff]  }
 0x24f   : > { %25566 = vmatmul.mubr.msk.bf16.gmra.mrb[24].mxu0 %vm2309_vm2, %v29603_v34 }
 0x250   : > { %25569 = vmatprep.mubr.msk.bf16.mxu0 %vm2309_vm2, %v29604_v17 }
 0x252   : > { %v30835_v16 = vpop.f32.mrb[176].mxu0 }
 0x253   : > { %35239 = vst [vmem:[#allocation160_spill] sm:$0xff] %v30835_v16  ;;  %v30839_v11 = vpop.f32.mrb[177].mxu0  ;;  %v29674_v16 = vld [vmem:[%s30131_s21 + $0x6a0] sm:$0xff]  }
 0x254   : > { %35240 = vst [vmem:[#allocation161_spill] sm:$0xff] %v30839_v11  ;;  %v30844_v55 = vpop.f32.mrb[178].mxu0 }
 0x255   : > { %35241 = vst [vmem:[#allocation162_spill] sm:$0xff] %v30844_v55  ;;  %v30849_v17 = vpop.f32.mrb[179].mxu0 }
 0x256   : > { %35242 = vst [vmem:[#allocation163_spill] sm:$0xff] %v30849_v17  ;;  %v29610_v17 = vld [vmem:[%s30131_s21 + $0x4a0] sm:$0xff]  }
 0x257   : > { %25570 = vmatmul.mubr.msk.bf16.gmra.mrb[28].mxu0 %vm2309_vm2, %v29605_v40 }
 0x258   : > { %25573 = vmatprep.mubr.msk.bf16.mxu0 %vm2309_vm2, %v29606_v63 }
 0x25a   : > { %v30855_v22 = vpop.f32.mrb[180].mxu0 }
 0x25b   : > { %35243 = vst [vmem:[#allocation164_spill] sm:$0xff] %v30855_v22  ;;  %v30859_v11 = vpop.f32.mrb[181].mxu0  ;;  %v29672_v22 = vld [vmem:[%s30131_s21 + $0x690] sm:$0xff]  }
 0x25c   : > { %35244 = vst [vmem:[#allocation165_spill] sm:$0xff] %v30859_v11  ;;  %v30864_v55 = vpop.f32.mrb[182].mxu0 }
 0x25d   : > { %35245 = vst [vmem:[#allocation166_spill] sm:$0xff] %v30864_v55  ;;  %v30869_v63 = vpop.f32.mrb[183].mxu0 }
 0x25e   : > { %35246 = vst [vmem:[#allocation167_spill] sm:$0xff] %v30869_v63  ;;  %v29612_v63 = vld [vmem:[%s30131_s21 + $0x4b0] sm:$0xff]  }
 0x25f   : > { %25574 = vmatmul.mubr.msk.bf16.gmra.mrb[32].mxu0 %vm2309_vm2, %v29607_v46 }
 0x260   : > { %25577 = vmatprep.mubr.msk.bf16.mxu0 %vm2309_vm2, %v29608_v49 }
 0x262   : > { %v30875_v28 = vpop.f32.mrb[184].mxu0 }
 0x263   : > { %35247 = vst [vmem:[#allocation168_spill] sm:$0xff] %v30875_v28  ;;  %v30879_v11 = vpop.f32.mrb[185].mxu0  ;;  %v29670_v28 = vld [vmem:[%s30131_s21 + $0x680] sm:$0xff]  }
 0x264   : > { %35248 = vst [vmem:[#allocation169_spill] sm:$0xff] %v30879_v11  ;;  %v30884_v55 = vpop.f32.mrb[186].mxu0 }
 0x265   : > { %35249 = vst [vmem:[#allocation170_spill] sm:$0xff] %v30884_v55  ;;  %v30889_v49 = vpop.f32.mrb[187].mxu0 }
 0x266   : > { %35250 = vst [vmem:[#allocation171_spill] sm:$0xff] %v30889_v49  ;;  %v29614_v49 = vld [vmem:[%s30131_s21 + $0x4c0] sm:$0xff]  }
 0x267   : > { %25578 = vmatmul.mubr.msk.bf16.gmra.mrb[36].mxu0 %vm2309_vm2, %v29609_v52 }
 0x268   : > { %25581 = vmatprep.mubr.msk.bf16.mxu0 %vm2309_vm2, %v29610_v17 }
 0x26a   : > { %v30895_v34 = vpop.f32.mrb[188].mxu0 }
 0x26b   : > { %35251 = vst [vmem:[#allocation172_spill] sm:$0xff] %v30895_v34  ;;  %v30899_v11 = vpop.f32.mrb[189].mxu0  ;;  %v29668_v34 = vld [vmem:[%s30131_s21 + $0x670] sm:$0xff]  }
 0x26c   : > { %35252 = vst [vmem:[#allocation173_spill] sm:$0xff] %v30899_v11  ;;  %v30904_v55 = vpop.f32.mrb[190].mxu0 }
 0x26d   : > { %35253 = vst [vmem:[#allocation174_spill] sm:$0xff] %v30904_v55  ;;  %v30909_v17 = vpop.f32.mrb[191].mxu0 }
 0x26e   : > { %35254 = vst [vmem:[#allocation175_spill] sm:$0xff] %v30909_v17  ;;  %v29616_v17 = vld [vmem:[%s30131_s21 + $0x4d0] sm:$0xff]  }
 0x26f   : > { %25582 = vmatmul.mubr.msk.bf16.gmra.mrb[40].mxu0 %vm2309_vm2, %v29611_v58  ;;  %v29622_v58 = vld [vmem:[%s30131_s21 + $0x500] sm:$0xff]  }
 0x270   : > { %25585 = vmatprep.mubr.msk.bf16.mxu0 %vm2309_vm2, %v29612_v63 }
 0x272   : > { %v30915_v40 = vpop.f32.mrb[192].mxu0 }
 0x273   : > { %35255 = vst [vmem:[#allocation176_spill] sm:$0xff] %v30915_v40  ;;  %v30919_v11 = vpop.f32.mrb[193].mxu0  ;;  %v29666_v40 = vld [vmem:[%s30131_s21 + $0x660] sm:$0xff]  }
 0x274   : > { %35256 = vst [vmem:[#allocation177_spill] sm:$0xff] %v30919_v11  ;;  %v30924_v55 = vpop.f32.mrb[194].mxu0 }
 0x275   : > { %35257 = vst [vmem:[#allocation178_spill] sm:$0xff] %v30924_v55  ;;  %v30929_v63 = vpop.f32.mrb[195].mxu0 }
 0x276   : > { %35258 = vst [vmem:[#allocation179_spill] sm:$0xff] %v30929_v63 }
 0x277   : > { %25586 = vmatmul.mubr.msk.bf16.gmra.mrb[44].mxu0 %vm2309_vm2, %v29613_v7 }
 0x278   : > { %25589 = vmatprep.mubr.msk.bf16.mxu0 %vm2309_vm2, %v29614_v49 }
 0x27a   : > { %v30935_v46 = vpop.f32.mrb[196].mxu0 }
 0x27b   : > { %35259 = vst [vmem:[#allocation180_spill] sm:$0xff] %v30935_v46  ;;  %v30939_v11 = vpop.f32.mrb[197].mxu0  ;;  %v29617_v46 = vld [vmem:[%s30131_s21 + $0x4d8] sm:$0xff]  }
 0x27c   : > { %35260 = vst [vmem:[#allocation181_spill] sm:$0xff] %v30939_v11  ;;  %v30944_v55 = vpop.f32.mrb[198].mxu0 }
 0x27d   : > { %35261 = vst [vmem:[#allocation182_spill] sm:$0xff] %v30944_v55  ;;  %v30949_v49 = vpop.f32.mrb[199].mxu0  ;;  %v29624_v55 = vld [vmem:[%s30131_s21 + $0x510] sm:$0xff]  }
 0x27e   : > { %35263 = vst [vmem:[#allocation183_spill] sm:$0xff] %v30949_v49 }
 0x27f   : > { %25590 = vmatmul.mubr.msk.bf16.gmra.mrb[48].mxu0 %vm2309_vm2, %v29615_v25 }
 0x280   : > { %25593 = vmatprep.mubr.msk.bf16.mxu0 %vm2309_vm2, %v29616_v17 }
 0x282   : > { %v30955_v52 = vpop.f32.mrb[200].mxu0 }
 0x283   : > { %35265 = vst [vmem:[#allocation184_spill] sm:$0xff] %v30955_v52  ;;  %v30959_v43 = vpop.f32.mrb[201].mxu0  ;;  %v29619_v52 = vld [vmem:[%s30131_s21 + $0x4e8] sm:$0xff]  }
 0x284   : > { %35267 = vst [vmem:[#allocation185_spill] sm:$0xff] %v30959_v43  ;;  %v30964_v7 = vpop.f32.mrb[202].mxu0 }
 0x285   : > { %35269 = vst [vmem:[#allocation186_spill] sm:$0xff] %v30964_v7  ;;  %v30969_v17 = vpop.f32.mrb[203].mxu0  ;;  %v29626_v7 = vld [vmem:[%s30131_s21 + $0x520] sm:$0xff]  }
 0x286   : > { %35271 = vst [vmem:[#allocation187_spill] sm:$0xff] %v30969_v17 }
 0x287   : > { %25594 = vmatmul.mubr.msk.bf16.gmra.mrb[52].mxu0 %vm2309_vm2, %v29617_v46 }
 0x288   : > { %25597 = vmatprep.mubr.msk.bf16.mxu0 %vm2309_vm2, %v29618_v31 }
 0x28a   : > { %v30975_v11 = vpop.f32.mrb[204].mxu0 }
 0x28b   : > { %35273 = vst [vmem:[#allocation188_spill] sm:$0xff] %v30975_v11  ;;  %v30979_v63 = vpop.f32.mrb[205].mxu0  ;;  %v29621_v11 = vld [vmem:[%s30131_s21 + $0x4f8] sm:$0xff]  }
 0x28c   : > { %35275 = vst [vmem:[#allocation189_spill] sm:$0xff] %v30979_v63  ;;  %v30984_v25 = vpop.f32.mrb[206].mxu0 }
 0x28d   : > { %35277 = vst [vmem:[#allocation190_spill] sm:$0xff] %v30984_v25  ;;  %v30989_v31 = vpop.f32.mrb[207].mxu0  ;;  %v29628_v25 = vld [vmem:[%s30131_s21 + $0x530] sm:$0xff]  }
 0x28e   : > { %35279 = vst [vmem:[#allocation191_spill] sm:$0xff] %v30989_v31 }
 0x28f   : > { %25598 = vmatmul.mubr.msk.bf16.gmra.mrb[56].mxu0 %vm2309_vm2, %v29619_v52 }
 0x290   : > { %25601 = vmatprep.mubr.msk.bf16.mxu0 %vm2309_vm2, %v29620_v41 }
 0x292   : > { %v30995_v43 = vpop.f32.mrb[208].mxu0 }
 0x293   : > { %35281 = vst [vmem:[#allocation192_spill] sm:$0xff] %v30995_v43  ;;  %v30999_v49 = vpop.f32.mrb[209].mxu0  ;;  %v29623_v43 = vld [vmem:[%s30131_s21 + $0x508] sm:$0xff]  }
 0x294   : > { %35283 = vst [vmem:[#allocation193_spill] sm:$0xff] %v30999_v49  ;;  %v31004_v46 = vpop.f32.mrb[210].mxu0 }
 0x295   : > { %35285 = vst [vmem:[#allocation194_spill] sm:$0xff] %v31004_v46  ;;  %v31009_v41 = vpop.f32.mrb[211].mxu0  ;;  %v29630_v46 = vld [vmem:[%s30131_s21 + $0x540] sm:$0xff]  }
 0x296   : > { %35287 = vst [vmem:[#allocation195_spill] sm:$0xff] %v31009_v41 }
 0x297   : > { %25602 = vmatmul.mubr.msk.bf16.gmra.mrb[60].mxu0 %vm2309_vm2, %v29621_v11 }
 0x298   : > { %25605 = vmatprep.mubr.msk.bf16.mxu0 %vm2309_vm2, %v29622_v58 }
 0x29a   : > { %v31015_v63 = vpop.f32.mrb[212].mxu0 }
 0x29b   : > { %35289 = vst [vmem:[#allocation196_spill] sm:$0xff] %v31015_v63  ;;  %v31019_v17 = vpop.f32.mrb[213].mxu0  ;;  %v29625_v63 = vld [vmem:[%s30131_s21 + $0x518] sm:$0xff]  }
 0x29c   : > { %35291 = vst [vmem:[#allocation197_spill] sm:$0xff] %v31019_v17  ;;  %v31024_v52 = vpop.f32.mrb[214].mxu0 }
 0x29d   : > { %35293 = vst [vmem:[#allocation198_spill] sm:$0xff] %v31024_v52  ;;  %v31029_v58 = vpop.f32.mrb[215].mxu0  ;;  %v29632_v52 = vld [vmem:[%s30131_s21 + $0x550] sm:$0xff]  }
 0x29e   : > { %35295 = vst [vmem:[#allocation199_spill] sm:$0xff] %v31029_v58 }
 0x29f   : > { %25606 = vmatmul.mubr.msk.bf16.gmra.mrb[64].mxu0 %vm2309_vm2, %v29623_v43 }
 0x2a0   : > { %25609 = vmatprep.mubr.msk.bf16.mxu0 %vm2309_vm2, %v29624_v55 }
 0x2a2   : > { %v31035_v49 = vpop.f32.mrb[216].mxu0 }
 0x2a3   : > { %35297 = vst [vmem:[#allocation200_spill] sm:$0xff] %v31035_v49  ;;  %v31039_v31 = vpop.f32.mrb[217].mxu0  ;;  %v29627_v49 = vld [vmem:[%s30131_s21 + $0x528] sm:$0xff]  }
 0x2a4   : > { %35299 = vst [vmem:[#allocation201_spill] sm:$0xff] %v31039_v31  ;;  %v31044_v11 = vpop.f32.mrb[218].mxu0 }
 0x2a5   : > { %35301 = vst [vmem:[#allocation202_spill] sm:$0xff] %v31044_v11  ;;  %v31049_v55 = vpop.f32.mrb[219].mxu0  ;;  %v29634_v11 = vld [vmem:[%s30131_s21 + $0x560] sm:$0xff]  }
 0x2a6   : > { %35303 = vst [vmem:[#allocation203_spill] sm:$0xff] %v31049_v55 }
 0x2a7   : > { %25610 = vmatmul.mubr.msk.bf16.gmra.mrb[68].mxu0 %vm2309_vm2, %v29625_v63 }
 0x2a8   : > { %25613 = vmatprep.mubr.msk.bf16.mxu0 %vm2309_vm2, %v29626_v7 }
 0x2aa   : > { %v31055_v17 = vpop.f32.mrb[220].mxu0 }
 0x2ab   : > { %35305 = vst [vmem:[#allocation204_spill] sm:$0xff] %v31055_v17  ;;  %v31059_v41 = vpop.f32.mrb[221].mxu0  ;;  %v29629_v17 = vld [vmem:[%s30131_s21 + $0x538] sm:$0xff]  }
 0x2ac   : > { %35307 = vst [vmem:[#allocation205_spill] sm:$0xff] %v31059_v41  ;;  %v31064_v43 = vpop.f32.mrb[222].mxu0 }
 0x2ad   : > { %35309 = vst [vmem:[#allocation206_spill] sm:$0xff] %v31064_v43  ;;  %v31069_v7 = vpop.f32.mrb[223].mxu0  ;;  %v29636_v43 = vld [vmem:[%s30131_s21 + $0x570] sm:$0xff]  }
 0x2ae   : > { %35311 = vst [vmem:[#allocation207_spill] sm:$0xff] %v31069_v7 }
 0x2af   : > { %25614 = vmatmul.mubr.msk.bf16.gmra.mrb[72].mxu0 %vm2309_vm2, %v29627_v49 }
 0x2b0   : > { %25617 = vmatprep.mubr.msk.bf16.mxu0 %vm2309_vm2, %v29628_v25 }
 0x2b2   : > { %v31075_v31 = vpop.f32.mrb[224].mxu0 }
 0x2b3   : > { %35313 = vst [vmem:[#allocation208_spill] sm:$0xff] %v31075_v31  ;;  %v31079_v58 = vpop.f32.mrb[225].mxu0  ;;  %v29631_v31 = vld [vmem:[%s30131_s21 + $0x548] sm:$0xff]  }
 0x2b4   : > { %35315 = vst [vmem:[#allocation209_spill] sm:$0xff] %v31079_v58  ;;  %v31084_v63 = vpop.f32.mrb[226].mxu0 }
 0x2b5   : > { %35317 = vst [vmem:[#allocation210_spill] sm:$0xff] %v31084_v63  ;;  %v31089_v25 = vpop.f32.mrb[227].mxu0  ;;  %v29638_v63 = vld [vmem:[%s30131_s21 + $0x580] sm:$0xff]  }
 0x2b6   : > { %35319 = vst [vmem:[#allocation211_spill] sm:$0xff] %v31089_v25 }
 0x2b7   : > { %25618 = vmatmul.mubr.msk.bf16.gmra.mrb[76].mxu0 %vm2309_vm2, %v29629_v17 }
 0x2b8   : > { %25621 = vmatprep.mubr.msk.bf16.mxu0 %vm2309_vm2, %v29630_v46 }
 0x2ba   : > { %v31095_v41 = vpop.f32.mrb[228].mxu0 }
 0x2bb   : > { %35321 = vst [vmem:[#allocation212_spill] sm:$0xff] %v31095_v41  ;;  %v31099_v55 = vpop.f32.mrb[229].mxu0  ;;  %v29633_v41 = vld [vmem:[%s30131_s21 + $0x558] sm:$0xff]  }
 0x2bc   : > { %35323 = vst [vmem:[#allocation213_spill] sm:$0xff] %v31099_v55  ;;  %v31104_v49 = vpop.f32.mrb[230].mxu0 }
 0x2bd   : > { %35325 = vst [vmem:[#allocation214_spill] sm:$0xff] %v31104_v49  ;;  %v31109_v46 = vpop.f32.mrb[231].mxu0  ;;  %v29640_v49 = vld [vmem:[%s30131_s21 + $0x590] sm:$0xff]  }
 0x2be   : > { %35327 = vst [vmem:[#allocation215_spill] sm:$0xff] %v31109_v46 }
 0x2bf   : > { %25622 = vmatmul.mubr.msk.bf16.gmra.mrb[80].mxu0 %vm2309_vm2, %v29631_v31 }
 0x2c0   : > { %25625 = vmatprep.mubr.msk.bf16.mxu0 %vm2309_vm2, %v29632_v52 }
 0x2c2   : > { %v31115_v58 = vpop.f32.mrb[232].mxu0 }
 0x2c3   : > { %35329 = vst [vmem:[#allocation216_spill] sm:$0xff] %v31115_v58  ;;  %v31119_v7 = vpop.f32.mrb[233].mxu0  ;;  %v29635_v58 = vld [vmem:[%s30131_s21 + $0x568] sm:$0xff]  }
 0x2c4   : > { %35331 = vst [vmem:[#allocation217_spill] sm:$0xff] %v31119_v7  ;;  %v31124_v17 = vpop.f32.mrb[234].mxu0 }
 0x2c5   : > { %35333 = vst [vmem:[#allocation218_spill] sm:$0xff] %v31124_v17  ;;  %v31129_v52 = vpop.f32.mrb[235].mxu0  ;;  %v29642_v17 = vld [vmem:[%s30131_s21 + $0x5a0] sm:$0xff]  }
 0x2c6   : > { %35335 = vst [vmem:[#allocation219_spill] sm:$0xff] %v31129_v52 }
 0x2c7   : > { %25626 = vmatmul.mubr.msk.bf16.gmra.mrb[84].mxu0 %vm2309_vm2, %v29633_v41 }
 0x2c8   : > { %25629 = vmatprep.mubr.msk.bf16.mxu0 %vm2309_vm2, %v29634_v11 }
 0x2ca   : > { %v31135_v55 = vpop.f32.mrb[236].mxu0 }
 0x2cb   : > { %35337 = vst [vmem:[#allocation220_spill] sm:$0xff] %v31135_v55  ;;  %v31139_v25 = vpop.f32.mrb[237].mxu0  ;;  %v29637_v55 = vld [vmem:[%s30131_s21 + $0x578] sm:$0xff]  }
 0x2cc   : > { %35339 = vst [vmem:[#allocation221_spill] sm:$0xff] %v31139_v25  ;;  %v31144_v31 = vpop.f32.mrb[238].mxu0 }
 0x2cd   : > { %35341 = vst [vmem:[#allocation222_spill] sm:$0xff] %v31144_v31  ;;  %v31149_v11 = vpop.f32.mrb[239].mxu0  ;;  %v29644_v31 = vld [vmem:[%s30131_s21 + $0x5b0] sm:$0xff]  }
 0x2ce   : > { %35343 = vst [vmem:[#allocation223_spill] sm:$0xff] %v31149_v11 }
 0x2cf   : > { %25630 = vmatmul.mubr.msk.bf16.gmra.mrb[88].mxu0 %vm2309_vm2, %v29635_v58 }
 0x2d0   : > { %25633 = vmatprep.mubr.msk.bf16.mxu0 %vm2309_vm2, %v29636_v43 }
 0x2d2   : > { %v31155_v7 = vpop.f32.mrb[240].mxu0 }
 0x2d3   : > { %35345 = vst [vmem:[#allocation224_spill] sm:$0xff] %v31155_v7  ;;  %v31159_v46 = vpop.f32.mrb[241].mxu0  ;;  %v29639_v7 = vld [vmem:[%s30131_s21 + $0x588] sm:$0xff]  }
 0x2d4   : > { %35347 = vst [vmem:[#allocation225_spill] sm:$0xff] %v31159_v46  ;;  %v31164_v41 = vpop.f32.mrb[242].mxu0 }
 0x2d5   : > { %35349 = vst [vmem:[#allocation226_spill] sm:$0xff] %v31164_v41  ;;  %v31169_v43 = vpop.f32.mrb[243].mxu0  ;;  %v29646_v41 = vld [vmem:[%s30131_s21 + $0x5c0] sm:$0xff]  }
 0x2d6   : > { %35351 = vst [vmem:[#allocation227_spill] sm:$0xff] %v31169_v43 }
 0x2d7   : > { %25634 = vmatmul.mubr.msk.bf16.gmra.mrb[92].mxu0 %vm2309_vm2, %v29637_v55 }
 0x2d8   : > { %25637 = vmatprep.mubr.msk.bf16.mxu0 %vm2309_vm2, %v29638_v63 }
 0x2da   : > { %v31175_v25 = vpop.f32.mrb[244].mxu0 }
 0x2db   : > { %35353 = vst [vmem:[#allocation228_spill] sm:$0xff] %v31175_v25  ;;  %v31179_v52 = vpop.f32.mrb[245].mxu0  ;;  %v29641_v25 = vld [vmem:[%s30131_s21 + $0x598] sm:$0xff]  }
 0x2dc   : > { %35355 = vst [vmem:[#allocation229_spill] sm:$0xff] %v31179_v52  ;;  %v31184_v58 = vpop.f32.mrb[246].mxu0 }
 0x2dd   : > { %35357 = vst [vmem:[#allocation230_spill] sm:$0xff] %v31184_v58  ;;  %v31189_v63 = vpop.f32.mrb[247].mxu0  ;;  %v29648_v58 = vld [vmem:[%s30131_s21 + $0x5d0] sm:$0xff]  }
 0x2de   : > { %35359 = vst [vmem:[#allocation231_spill] sm:$0xff] %v31189_v63 }
 0x2df   : > { %25638 = vmatmul.mubr.msk.bf16.gmra.mrb[96].mxu0 %vm2309_vm2, %v29639_v7 }
 0x2e0   : > { %25641 = vmatprep.mubr.msk.bf16.mxu0 %vm2309_vm2, %v29640_v49 }
 0x2e2   : > { %v31195_v46 = vpop.f32.mrb[248].mxu0 }
 0x2e3   : > { %35361 = vst [vmem:[#allocation232_spill] sm:$0xff] %v31195_v46  ;;  %v31199_v11 = vpop.f32.mrb[249].mxu0  ;;  %v29643_v46 = vld [vmem:[%s30131_s21 + $0x5a8] sm:$0xff]  }
 0x2e4   : > { %35363 = vst [vmem:[#allocation233_spill] sm:$0xff] %v31199_v11  ;;  %v31204_v55 = vpop.f32.mrb[250].mxu0 }
 0x2e5   : > { %35365 = vst [vmem:[#allocation234_spill] sm:$0xff] %v31204_v55  ;;  %v31209_v49 = vpop.f32.mrb[251].mxu0  ;;  %v29650_v55 = vld [vmem:[%s30131_s21 + $0x5e0] sm:$0xff]  }
 0x2e6   : > { %35367 = vst [vmem:[#allocation235_spill] sm:$0xff] %v31209_v49 }
 0x2e7   : > { %25642 = vmatmul.mubr.msk.bf16.gmra.mrb[100].mxu0 %vm2309_vm2, %v29641_v25 }
 0x2e8   : > { %25645 = vmatprep.mubr.msk.bf16.mxu0 %vm2309_vm2, %v29642_v17 }
 0x2ea   : > { %v31215_v52 = vpop.f32.mrb[252].mxu0 }
 0x2eb   : > { %35369 = vst [vmem:[#allocation236_spill] sm:$0xff] %v31215_v52  ;;  %v31219_v43 = vpop.f32.mrb[253].mxu0  ;;  %v29645_v52 = vld [vmem:[%s30131_s21 + $0x5b8] sm:$0xff]  }
 0x2ec   : > { %35371 = vst [vmem:[#allocation237_spill] sm:$0xff] %v31219_v43  ;;  %v31224_v7 = vpop.f32.mrb[254].mxu0 }
 0x2ed   : > { %35373 = vst [vmem:[#allocation238_spill] sm:$0xff] %v31224_v7  ;;  %v31229_v17 = vpop.f32.mrb[255].mxu0  ;;  %v29652_v7 = vld [vmem:[%s30131_s21 + $0x5f0] sm:$0xff]  }
 0x2ee   : > { %35375 = vst [vmem:[#allocation239_spill] sm:$0xff] %v31229_v17 }
 0x2ef   : > { %25646 = vmatmul.mubr.msk.bf16.gmra.mrb[104].mxu0 %vm2309_vm2, %v29643_v46 }
 0x2f0   : > { %25649 = vmatprep.mubr.msk.bf16.mxu0 %vm2309_vm2, %v29644_v31 }
 0x2f2   : > { %v31235_v11 = vpop.f32.mrb[0].mxu0 }
 0x2f3   : > { %35377 = vst [vmem:[#allocation240_spill] sm:$0xff] %v31235_v11  ;;  %v31239_v63 = vpop.f32.mrb[1].mxu0  ;;  %v29647_v11 = vld [vmem:[%s30131_s21 + $0x5c8] sm:$0xff]  }
 0x2f4   : > { %35379 = vst [vmem:[#allocation241_spill] sm:$0xff] %v31239_v63  ;;  %v31244_v25 = vpop.f32.mrb[2].mxu0 }
 0x2f5   : > { %35381 = vst [vmem:[#allocation242_spill] sm:$0xff] %v31244_v25  ;;  %v31249_v31 = vpop.f32.mrb[3].mxu0  ;;  %v29654_v25 = vld [vmem:[%s30131_s21 + $0x600] sm:$0xff]  }
 0x2f6   : > { %35383 = vst [vmem:[#allocation243_spill] sm:$0xff] %v31249_v31 }
 0x2f7   : > { %25650 = vmatmul.mubr.msk.bf16.gmra.mrb[108].mxu0 %vm2309_vm2, %v29645_v52 }
 0x2f8   : > { %25653 = vmatprep.mubr.msk.bf16.mxu0 %vm2309_vm2, %v29646_v41 }
 0x2fa   : > { %v31255_v43 = vpop.f32.mrb[4].mxu0 }
 0x2fb   : > { %35385 = vst [vmem:[#allocation244_spill] sm:$0xff] %v31255_v43  ;;  %v31259_v49 = vpop.f32.mrb[5].mxu0  ;;  %v29649_v43 = vld [vmem:[%s30131_s21 + $0x5d8] sm:$0xff]  }
 0x2fc   : > { %35387 = vst [vmem:[#allocation245_spill] sm:$0xff] %v31259_v49  ;;  %v31264_v46 = vpop.f32.mrb[6].mxu0 }
 0x2fd   : > { %35389 = vst [vmem:[#allocation246_spill] sm:$0xff] %v31264_v46  ;;  %v31269_v41 = vpop.f32.mrb[7].mxu0  ;;  %v29656_v46 = vld [vmem:[%s30131_s21 + $0x610] sm:$0xff]  }
 0x2fe   : > { %35391 = vst [vmem:[#allocation247_spill] sm:$0xff] %v31269_v41 }
 0x2ff   : > { %25654 = vmatmul.mubr.msk.bf16.gmra.mrb[112].mxu0 %vm2309_vm2, %v29647_v11 }
 0x300   : > { %25657 = vmatprep.mubr.msk.bf16.mxu0 %vm2309_vm2, %v29648_v58 }
 0x302   : > { %v31275_v63 = vpop.f32.mrb[8].mxu0 }
 0x303   : > { %35393 = vst [vmem:[#allocation248_spill] sm:$0xff] %v31275_v63  ;;  %v31279_v17 = vpop.f32.mrb[9].mxu0  ;;  %v29651_v63 = vld [vmem:[%s30131_s21 + $0x5e8] sm:$0xff]  }
 0x304   : > { %35395 = vst [vmem:[#allocation249_spill] sm:$0xff] %v31279_v17  ;;  %v31284_v52 = vpop.f32.mrb[10].mxu0 }
 0x305   : > { %35397 = vst [vmem:[#allocation250_spill] sm:$0xff] %v31284_v52  ;;  %v31289_v58 = vpop.f32.mrb[11].mxu0  ;;  %v29658_v52 = vld [vmem:[%s30131_s21 + $0x620] sm:$0xff]  }
 0x306   : > { %35399 = vst [vmem:[#allocation251_spill] sm:$0xff] %v31289_v58 }
 0x307   : > { %25658 = vmatmul.mubr.msk.bf16.gmra.mrb[116].mxu0 %vm2309_vm2, %v29649_v43 }
 0x308   : > { %25661 = vmatprep.mubr.msk.bf16.mxu0 %vm2309_vm2, %v29650_v55 }
 0x30a   : > { %v31295_v49 = vpop.f32.mrb[12].mxu0 }
 0x30b   : > { %35401 = vst [vmem:[#allocation252_spill] sm:$0xff] %v31295_v49  ;;  %v31299_v31 = vpop.f32.mrb[13].mxu0  ;;  %v29653_v49 = vld [vmem:[%s30131_s21 + $0x5f8] sm:$0xff]  }
 0x30c   : > { %35403 = vst [vmem:[#allocation253_spill] sm:$0xff] %v31299_v31  ;;  %v31304_v11 = vpop.f32.mrb[14].mxu0 }
 0x30d   : > { %35405 = vst [vmem:[#allocation254_spill] sm:$0xff] %v31304_v11  ;;  %v31309_v55 = vpop.f32.mrb[15].mxu0  ;;  %v29660_v11 = vld [vmem:[%s30131_s21 + $0x630] sm:$0xff]  }
 0x30e   : > { %35407 = vst [vmem:[#allocation255_spill] sm:$0xff] %v31309_v55 }
 0x30f   : > { %25662 = vmatmul.mubr.msk.bf16.gmra.mrb[120].mxu0 %vm2309_vm2, %v29651_v63 }
 0x310   : > { %25665 = vmatprep.mubr.msk.bf16.mxu0 %vm2309_vm2, %v29652_v7 }
 0x312   : > { %v31315_v17 = vpop.f32.mrb[16].mxu0 }
 0x313   : > { %35409 = vst [vmem:[#allocation256_spill] sm:$0xff] %v31315_v17  ;;  %v31319_v41 = vpop.f32.mrb[17].mxu0  ;;  %v29655_v17 = vld [vmem:[%s30131_s21 + $0x608] sm:$0xff]  }
 0x314   : > { %35411 = vst [vmem:[#allocation257_spill] sm:$0xff] %v31319_v41  ;;  %v31324_v43 = vpop.f32.mrb[18].mxu0 }
 0x315   : > { %35413 = vst [vmem:[#allocation258_spill] sm:$0xff] %v31324_v43  ;;  %v31329_v7 = vpop.f32.mrb[19].mxu0 }
 0x316   : > { %35415 = vst [vmem:[#allocation259_spill] sm:$0xff] %v31329_v7 }
 0x317   : > { %25666 = vmatmul.mubr.msk.bf16.gmra.mrb[124].mxu0 %vm2309_vm2, %v29653_v49 }
 0x318   : > { %25669 = vmatprep.mubr.msk.bf16.mxu0 %vm2309_vm2, %v29654_v25 }
 0x31a   : > { %v31335_v31 = vpop.f32.mrb[20].mxu0 }
 0x31b   : > { %35417 = vst [vmem:[#allocation260_spill] sm:$0xff] %v31335_v31  ;;  %v31339_v58 = vpop.f32.mrb[21].mxu0  ;;  %v29657_v31 = vld [vmem:[%s30131_s21 + $0x618] sm:$0xff]  }
 0x31c   : > { %35419 = vst [vmem:[#allocation261_spill] sm:$0xff] %v31339_v58  ;;  %v31344_v63 = vpop.f32.mrb[22].mxu0 }
 0x31d   : > { %35421 = vst [vmem:[#allocation262_spill] sm:$0xff] %v31344_v63  ;;  %v31349_v25 = vpop.f32.mrb[23].mxu0 }
 0x31e   : > { %35423 = vst [vmem:[#allocation263_spill] sm:$0xff] %v31349_v25 }
 0x31f   : > { %25670 = vmatmul.mubr.msk.bf16.gmra.mrb[128].mxu0 %vm2309_vm2, %v29655_v17 }
 0x320   : > { %25673 = vmatprep.mubr.msk.bf16.mxu0 %vm2309_vm2, %v29656_v46 }
 0x322   : > { %v31355_v41 = vpop.f32.mrb[24].mxu0 }
 0x323   : > { %35425 = vst [vmem:[#allocation264_spill] sm:$0xff] %v31355_v41  ;;  %v31359_v55 = vpop.f32.mrb[25].mxu0  ;;  %v29659_v41 = vld [vmem:[%s30131_s21 + $0x628] sm:$0xff]  }
 0x324   : > { %35427 = vst [vmem:[#allocation265_spill] sm:$0xff] %v31359_v55  ;;  %v31364_v49 = vpop.f32.mrb[26].mxu0 }
 0x325   : > { %35429 = vst [vmem:[#allocation266_spill] sm:$0xff] %v31364_v49  ;;  %v31369_v46 = vpop.f32.mrb[27].mxu0 }
 0x326   : > { %35431 = vst [vmem:[#allocation267_spill] sm:$0xff] %v31369_v46 }
 0x327   : > { %25674 = vmatmul.mubr.msk.bf16.gmra.mrb[132].mxu0 %vm2309_vm2, %v29657_v31 }
 0x328   : > { %25677 = vmatprep.mubr.msk.bf16.mxu0 %vm2309_vm2, %v29658_v52 }
 0x32a   : > { %v31375_v58 = vpop.f32.mrb[28].mxu0 }
 0x32b   : > { %35433 = vst [vmem:[#allocation268_spill] sm:$0xff] %v31375_v58  ;;  %v31379_v7 = vpop.f32.mrb[29].mxu0  ;;  %v29662_v58 = vld [vmem:[%s30131_s21 + $0x640] sm:$0xff]  }
 0x32c   : > { %35435 = vst [vmem:[#allocation269_spill] sm:$0xff] %v31379_v7  ;;  %v31384_v17 = vpop.f32.mrb[30].mxu0  ;;  %v29661_v7 = vld [vmem:[%s30131_s21 + $0x638] sm:$0xff]  }
 0x32d   : > { %35437 = vst [vmem:[#allocation270_spill] sm:$0xff] %v31384_v17  ;;  %v31389_v52 = vpop.f32.mrb[31].mxu0 }
 0x32e   : > { %35439 = vst [vmem:[#allocation271_spill] sm:$0xff] %v31389_v52 }
 0x32f   : > { %25678 = vmatmul.mubr.msk.bf16.gmra.mrb[136].mxu0 %vm2309_vm2, %v29659_v41 }
 0x330   : > { %25681 = vmatprep.mubr.msk.bf16.mxu0 %vm2309_vm2, %v29660_v11  ;;  %v29663_v11 = vld [vmem:[%s30131_s21 + $0x648] sm:$0xff]  }
 0x332   : > { %v31395_v55 = vpop.f32.mrb[32].mxu0 }
 0x333   : > { %v31397_v49 = vpop.f32.mrb[33].mxu0 }
 0x334   : > { %v31400_v25 = vpop.f32.mrb[34].mxu0 }
 0x335   : > { %v31403_v46 = vpop.f32.mrb[35].mxu0 }
 0x337   : > { %25682 = vmatmul.mubr.msk.bf16.gmra.mrb[140].mxu0 %vm2309_vm2, %v29661_v7 }
 0x338   : > { %25685 = vmatprep.mubr.msk.bf16.mxu0 %vm2309_vm2, %v29662_v58  ;;  %v29665_v58 = vld [vmem:[%s30131_s21 + $0x658] sm:$0xff]  }
 0x33a   : > { %v31407_v43 = vpop.f32.mrb[36].mxu0 }
 0x33b   : > { %v31409_v41 = vpop.f32.mrb[37].mxu0 }
 0x33c   : > { %v31412_v52 = vpop.f32.mrb[38].mxu0 }
 0x33d   : > { %v31415_v17 = vpop.f32.mrb[39].mxu0 }
 0x33f   : > { %25686 = vmatmul.mubr.msk.bf16.gmra.mrb[144].mxu0 %vm2309_vm2, %v29663_v11 }
 0x340   : > { %25689 = vmatprep.mubr.msk.bf16.mxu0 %vm2309_vm2, %v29664_v37  ;;  %v29667_v37 = vld [vmem:[%s30131_s21 + $0x668] sm:$0xff]  }
 0x342   : > { %v31419_v31 = vpop.f32.mrb[40].mxu0 }
 0x343   : > { %v31421_v7 = vpop.f32.mrb[41].mxu0 }
 0x344   : > { %v31424_v63 = vpop.f32.mrb[42].mxu0 }
 0x345   : > { %v31427_v23 = vpop.f32.mrb[43].mxu0 }
 0x347   : > { %25690 = vmatmul.mubr.msk.bf16.gmra.mrb[148].mxu0 %vm2309_vm2, %v29665_v58 }
 0x348   : > { %25693 = vmatprep.mubr.msk.bf16.mxu0 %vm2309_vm2, %v29666_v40  ;;  %v29669_v40 = vld [vmem:[%s30131_s21 + $0x678] sm:$0xff]  }
 0x34a   : > { %v31431_v19 = vpop.f32.mrb[44].mxu0 }
 0x34b   : > { %v31433_v11 = vpop.f32.mrb[45].mxu0 }
 0x34c   : > { %v31436_v13 = vpop.f32.mrb[46].mxu0 }
 0x34d   : > { %v31439_v5 = vpop.f32.mrb[47].mxu0 }
 0x34f   : > { %25694 = vmatmul.mubr.msk.bf16.gmra.mrb[152].mxu0 %vm2309_vm2, %v29667_v37 }
 0x350   : > { %25697 = vmatprep.mubr.msk.bf16.mxu0 %vm2309_vm2, %v29668_v34  ;;  %v29671_v34 = vld [vmem:[%s30131_s21 + $0x688] sm:$0xff]  }
 0x352   : > { %v31443_v1 = vpop.f32.mrb[48].mxu0 }
 0x353   : > { %v31445_v58 = vpop.f32.mrb[49].mxu0 }
 0x354   : > { %v31448_v60 = vpop.f32.mrb[50].mxu0 }
 0x355   : > { %v31451_v57 = vpop.f32.mrb[51].mxu0 }
 0x357   : > { %25698 = vmatmul.mubr.msk.bf16.gmra.mrb[156].mxu0 %vm2309_vm2, %v29669_v40 }
 0x358   : > { %25701 = vmatprep.mubr.msk.bf16.mxu0 %vm2309_vm2, %v29670_v28  ;;  %v29673_v28 = vld [vmem:[%s30131_s21 + $0x698] sm:$0xff]  }
 0x35a   : > { %v31455_v56 = vpop.f32.mrb[52].mxu0 }
 0x35b   : > { %v31457_v37 = vpop.f32.mrb[53].mxu0 }
 0x35c   : > { %v31460_v54 = vpop.f32.mrb[54].mxu0 }
 0x35d   : > { %v31463_v51 = vpop.f32.mrb[55].mxu0 }
 0x35f   : > { %25702 = vmatmul.mubr.msk.bf16.gmra.mrb[160].mxu0 %vm2309_vm2, %v29671_v34 }
 0x360   : > { %25705 = vmatprep.mubr.msk.bf16.mxu0 %vm2309_vm2, %v29672_v22  ;;  %v29675_v22 = vld [vmem:[%s30131_s21 + $0x6a8] sm:$0xff]  }
 0x362   : > { %v31467_v50 = vpop.f32.mrb[56].mxu0 }
 0x363   : > { %35441 = vst [vmem:[#allocation272_spill] sm:$0xff] %v31467_v50  ;;  %v31469_v40 = vpop.f32.mrb[57].mxu0 }
 0x364   : > { %35442 = vst [vmem:[#allocation273_spill] sm:$0xff] %v31469_v40  ;;  %v31472_v48 = vpop.f32.mrb[58].mxu0 }
 0x365   : > { %35443 = vst [vmem:[#allocation274_spill] sm:$0xff] %v31472_v48  ;;  %v31475_v45 = vpop.f32.mrb[59].mxu0  ;;  %v29734_v48 = vld [vmem:[%s30131_s21 + $0x880] sm:$0xff]  }
 0x366   : > { %35444 = vst [vmem:[#allocation275_spill] sm:$0xff] %v31475_v45 }
 0x367   : > { %25706 = vmatmul.mubr.msk.bf16.gmra.mrb[164].mxu0 %vm2309_vm2, %v29673_v28 }
 0x368   : > { %25709 = vmatprep.mubr.msk.bf16.mxu0 %vm2309_vm2, %v29674_v16  ;;  %v29677_v16 = vld [vmem:[%s30131_s21 + $0x6b8] sm:$0xff]  }
 0x36a   : > { %v31479_v44 = vpop.f32.mrb[60].mxu0 }
 0x36b   : > { %35445 = vst [vmem:[#allocation276_spill] sm:$0xff] %v31479_v44  ;;  %v31481_v34 = vpop.f32.mrb[61].mxu0 }
 0x36c   : > { %35446 = vst [vmem:[#allocation277_spill] sm:$0xff] %v31481_v34  ;;  %v31484_v42 = vpop.f32.mrb[62].mxu0  ;;  %v29678_v34 = vld [vmem:[%s30131_s21 + $0x6c0] sm:$0xff]  }
 0x36d   : > { %35447 = vst [vmem:[#allocation278_spill] sm:$0xff] %v31484_v42  ;;  %v31487_v39 = vpop.f32.mrb[63].mxu0 }
 0x36e   : > { %35448 = vst [vmem:[#allocation279_spill] sm:$0xff] %v31487_v39 }
 0x36f   : > { %25710 = vmatmul.mubr.msk.bf16.gmra.mrb[168].mxu0 %vm2309_vm2, %v29675_v22 }
 0x370   : > { %25713 = vmatprep.mubr.msk.bf16.mxu0 %vm2309_vm2, %v29676_v10  ;;  %v29679_v10 = vld [vmem:[%s30131_s21 + $0x6c8] sm:$0xff]  }
 0x372   : > { %v31491_v38 = vpop.f32.mrb[64].mxu0 }
 0x373   : > { %35449 = vst [vmem:[#allocation280_spill] sm:$0xff] %v31491_v38  ;;  %v31493_v28 = vpop.f32.mrb[65].mxu0 }
 0x374   : > { %35450 = vst [vmem:[#allocation281_spill] sm:$0xff] %v31493_v28  ;;  %v31496_v44 = vpop.f32.mrb[66].mxu0  ;;  %v29680_v28 = vld [vmem:[%s30131_s21 + $0x6d0] sm:$0xff]  }
 0x375   : > { %35451 = vst [vmem:[#allocation282_spill] sm:$0xff] %v31496_v44  ;;  %v31499_v36 = vpop.f32.mrb[67].mxu0 }
 0x376   : > { %35452 = vst [vmem:[#allocation283_spill] sm:$0xff] %v31499_v36 }
 0x377   : > { %25714 = vmatmul.mubr.msk.bf16.gmra.mrb[172].mxu0 %vm2309_vm2, %v29677_v16 }
 0x378   : > { %25717 = vmatprep.mubr.msk.bf16.mxu0 %vm2309_vm2, %v29678_v34  ;;  %v29681_v34 = vld [vmem:[%s30131_s21 + $0x6d8] sm:$0xff]  }
 0x37a   : > { %v31503_v39 = vpop.f32.mrb[68].mxu0 }
 0x37b   : > { %35453 = vst [vmem:[#allocation284_spill] sm:$0xff] %v31503_v39  ;;  %v31505_v22 = vpop.f32.mrb[69].mxu0 }
 0x37c   : > { %35454 = vst [vmem:[#allocation285_spill] sm:$0xff] %v31505_v22  ;;  %v31508_v38 = vpop.f32.mrb[70].mxu0  ;;  %v29682_v22 = vld [vmem:[%s30131_s21 + $0x6e0] sm:$0xff]  }
 0x37d   : > { %35455 = vst [vmem:[#allocation286_spill] sm:$0xff] %v31508_v38  ;;  %v31511_v42 = vpop.f32.mrb[71].mxu0 }
 0x37e   : > { %35456 = vst [vmem:[#allocation287_spill] sm:$0xff] %v31511_v42 }
 0x37f   : > { %25718 = vmatmul.mubr.msk.bf16.gmra.mrb[176].mxu0 %vm2309_vm2, %v29679_v10 }
 0x380   : > { %25721 = vmatprep.mubr.msk.bf16.mxu0 %vm2309_vm2, %v29680_v28  ;;  %v29683_v28 = vld [vmem:[%s30131_s21 + $0x6e8] sm:$0xff]  }
 0x382   : > { %v31515_v36 = vpop.f32.mrb[72].mxu0 }
 0x383   : > { %35457 = vst [vmem:[#allocation288_spill] sm:$0xff] %v31515_v36  ;;  %v31517_v16 = vpop.f32.mrb[73].mxu0 }
 0x384   : > { %35458 = vst [vmem:[#allocation289_spill] sm:$0xff] %v31517_v16  ;;  %v31520_v39 = vpop.f32.mrb[74].mxu0  ;;  %v29684_v16 = vld [vmem:[%s30131_s21 + $0x6f0] sm:$0xff]  }
 0x385   : > { %35459 = vst [vmem:[#allocation290_spill] sm:$0xff] %v31520_v39  ;;  %v31523_v44 = vpop.f32.mrb[75].mxu0 }
 0x386   : > { %35460 = vst [vmem:[#allocation291_spill] sm:$0xff] %v31523_v44 }
 0x387   : > { %25722 = vmatmul.mubr.msk.bf16.gmra.mrb[180].mxu0 %vm2309_vm2, %v29681_v34 }
 0x388   : > { %25725 = vmatprep.mubr.msk.bf16.mxu0 %vm2309_vm2, %v29682_v22  ;;  %v29685_v22 = vld [vmem:[%s30131_s21 + $0x6f8] sm:$0xff]  }
 0x38a   : > { %v31527_v42 = vpop.f32.mrb[76].mxu0 }
 0x38b   : > { %35461 = vst [vmem:[#allocation292_spill] sm:$0xff] %v31527_v42  ;;  %v31529_v10 = vpop.f32.mrb[77].mxu0 }
 0x38c   : > { %35462 = vst [vmem:[#allocation293_spill] sm:$0xff] %v31529_v10  ;;  %v31532_v36 = vpop.f32.mrb[78].mxu0  ;;  %v29686_v10 = vld [vmem:[%s30131_s21 + $0x700] sm:$0xff]  }
 0x38d   : > { %35463 = vst [vmem:[#allocation294_spill] sm:$0xff] %v31532_v36  ;;  %v31535_v38 = vpop.f32.mrb[79].mxu0 }
 0x38e   : > { %35464 = vst [vmem:[#allocation295_spill] sm:$0xff] %v31535_v38 }
 0x38f   : > { %25726 = vmatmul.mubr.msk.bf16.gmra.mrb[184].mxu0 %vm2309_vm2, %v29683_v28 }
 0x390   : > { %25729 = vmatprep.mubr.msk.bf16.mxu0 %vm2309_vm2, %v29684_v16  ;;  %v29687_v16 = vld [vmem:[%s30131_s21 + $0x708] sm:$0xff]  }
 0x392   : > { %v31539_v44 = vpop.f32.mrb[80].mxu0 }
 0x393   : > { %35465 = vst [vmem:[#allocation296_spill] sm:$0xff] %v31539_v44  ;;  %v31541_v34 = vpop.f32.mrb[81].mxu0 }
 0x394   : > { %35466 = vst [vmem:[#allocation297_spill] sm:$0xff] %v31541_v34  ;;  %v31544_v42 = vpop.f32.mrb[82].mxu0  ;;  %v29688_v34 = vld [vmem:[%s30131_s21 + $0x710] sm:$0xff]  }
 0x395   : > { %35467 = vst [vmem:[#allocation298_spill] sm:$0xff] %v31544_v42  ;;  %v31547_v39 = vpop.f32.mrb[83].mxu0 }
 0x396   : > { %35468 = vst [vmem:[#allocation299_spill] sm:$0xff] %v31547_v39 }
 0x397   : > { %25730 = vmatmul.mubr.msk.bf16.gmra.mrb[188].mxu0 %vm2309_vm2, %v29685_v22 }
 0x398   : > { %25733 = vmatprep.mubr.msk.bf16.mxu0 %vm2309_vm2, %v29686_v10  ;;  %v29689_v10 = vld [vmem:[%s30131_s21 + $0x718] sm:$0xff]  }
 0x39a   : > { %v31551_v38 = vpop.f32.mrb[84].mxu0 }
 0x39b   : > { %35469 = vst [vmem:[#allocation300_spill] sm:$0xff] %v31551_v38  ;;  %v31553_v28 = vpop.f32.mrb[85].mxu0 }
 0x39c   : > { %35470 = vst [vmem:[#allocation301_spill] sm:$0xff] %v31553_v28  ;;  %v31556_v44 = vpop.f32.mrb[86].mxu0  ;;  %v29690_v28 = vld [vmem:[%s30131_s21 + $0x720] sm:$0xff]  }
 0x39d   : > { %35471 = vst [vmem:[#allocation302_spill] sm:$0xff] %v31556_v44  ;;  %v31559_v36 = vpop.f32.mrb[87].mxu0 }
 0x39e   : > { %35472 = vst [vmem:[#allocation303_spill] sm:$0xff] %v31559_v36 }
 0x39f   : > { %25734 = vmatmul.mubr.msk.bf16.gmra.mrb[192].mxu0 %vm2309_vm2, %v29687_v16 }
 0x3a0   : > { %25737 = vmatprep.mubr.msk.bf16.mxu0 %vm2309_vm2, %v29688_v34  ;;  %v29691_v34 = vld [vmem:[%s30131_s21 + $0x728] sm:$0xff]  }
 0x3a2   : > { %v31563_v39 = vpop.f32.mrb[88].mxu0 }
 0x3a3   : > { %35473 = vst [vmem:[#allocation304_spill] sm:$0xff] %v31563_v39  ;;  %v31565_v22 = vpop.f32.mrb[89].mxu0 }
 0x3a4   : > { %35474 = vst [vmem:[#allocation305_spill] sm:$0xff] %v31565_v22  ;;  %v31568_v38 = vpop.f32.mrb[90].mxu0  ;;  %v29692_v22 = vld [vmem:[%s30131_s21 + $0x730] sm:$0xff]  }
 0x3a5   : > { %35475 = vst [vmem:[#allocation306_spill] sm:$0xff] %v31568_v38  ;;  %v31571_v42 = vpop.f32.mrb[91].mxu0 }
 0x3a6   : > { %35476 = vst [vmem:[#allocation307_spill] sm:$0xff] %v31571_v42 }
 0x3a7   : > { %25738 = vmatmul.mubr.msk.bf16.gmra.mrb[196].mxu0 %vm2309_vm2, %v29689_v10 }
 0x3a8   : > { %25741 = vmatprep.mubr.msk.bf16.mxu0 %vm2309_vm2, %v29690_v28  ;;  %v29693_v28 = vld [vmem:[%s30131_s21 + $0x738] sm:$0xff]  }
 0x3aa   : > { %v31575_v36 = vpop.f32.mrb[92].mxu0 }
 0x3ab   : > { %35477 = vst [vmem:[#allocation308_spill] sm:$0xff] %v31575_v36  ;;  %v31577_v16 = vpop.f32.mrb[93].mxu0 }
 0x3ac   : > { %35478 = vst [vmem:[#allocation309_spill] sm:$0xff] %v31577_v16  ;;  %v31580_v39 = vpop.f32.mrb[94].mxu0  ;;  %v29694_v16 = vld [vmem:[%s30131_s21 + $0x740] sm:$0xff]  }
 0x3ad   : > { %35479 = vst [vmem:[#allocation310_spill] sm:$0xff] %v31580_v39  ;;  %v31583_v44 = vpop.f32.mrb[95].mxu0 }
 0x3ae   : > { %35480 = vst [vmem:[#allocation311_spill] sm:$0xff] %v31583_v44 }
 0x3af   : > { %25742 = vmatmul.mubr.msk.bf16.gmra.mrb[200].mxu0 %vm2309_vm2, %v29691_v34 }
 0x3b0   : > { %25745 = vmatprep.mubr.msk.bf16.mxu0 %vm2309_vm2, %v29692_v22  ;;  %v29695_v22 = vld [vmem:[%s30131_s21 + $0x748] sm:$0xff]  }
 0x3b2   : > { %v31587_v42 = vpop.f32.mrb[96].mxu0 }
 0x3b3   : > { %35481 = vst [vmem:[#allocation312_spill] sm:$0xff] %v31587_v42  ;;  %v31589_v10 = vpop.f32.mrb[97].mxu0 }
 0x3b4   : > { %35482 = vst [vmem:[#allocation313_spill] sm:$0xff] %v31589_v10  ;;  %v31592_v36 = vpop.f32.mrb[98].mxu0  ;;  %v29696_v10 = vld [vmem:[%s30131_s21 + $0x750] sm:$0xff]  }
 0x3b5   : > { %35483 = vst [vmem:[#allocation314_spill] sm:$0xff] %v31592_v36  ;;  %v31595_v38 = vpop.f32.mrb[99].mxu0 }
 0x3b6   : > { %35484 = vst [vmem:[#allocation315_spill] sm:$0xff] %v31595_v38 }
 0x3b7   : > { %25746 = vmatmul.mubr.msk.bf16.gmra.mrb[204].mxu0 %vm2309_vm2, %v29693_v28 }
 0x3b8   : > { %25749 = vmatprep.mubr.msk.bf16.mxu0 %vm2309_vm2, %v29694_v16  ;;  %v29697_v16 = vld [vmem:[%s30131_s21 + $0x758] sm:$0xff]  }
 0x3ba   : > { %v31599_v44 = vpop.f32.mrb[100].mxu0 }
 0x3bb   : > { %35485 = vst [vmem:[#allocation316_spill] sm:$0xff] %v31599_v44  ;;  %v31601_v34 = vpop.f32.mrb[101].mxu0 }
 0x3bc   : > { %35486 = vst [vmem:[#allocation317_spill] sm:$0xff] %v31601_v34  ;;  %v31604_v42 = vpop.f32.mrb[102].mxu0  ;;  %v29698_v34 = vld [vmem:[%s30131_s21 + $0x760] sm:$0xff]  }
 0x3bd   : > { %35487 = vst [vmem:[#allocation318_spill] sm:$0xff] %v31604_v42  ;;  %v31607_v39 = vpop.f32.mrb[103].mxu0 }
 0x3be   : > { %35488 = vst [vmem:[#allocation319_spill] sm:$0xff] %v31607_v39 }
 0x3bf   : > { %25750 = vmatmul.mubr.msk.bf16.gmra.mrb[208].mxu0 %vm2309_vm2, %v29695_v22 }
 0x3c0   : > { %25753 = vmatprep.mubr.msk.bf16.mxu0 %vm2309_vm2, %v29696_v10  ;;  %v29699_v10 = vld [vmem:[%s30131_s21 + $0x768] sm:$0xff]  }
 0x3c2   : > { %v31611_v38 = vpop.f32.mrb[104].mxu0 }
 0x3c3   : > { %35489 = vst [vmem:[#allocation320_spill] sm:$0xff] %v31611_v38  ;;  %v31613_v28 = vpop.f32.mrb[105].mxu0 }
 0x3c4   : > { %35490 = vst [vmem:[#allocation321_spill] sm:$0xff] %v31613_v28  ;;  %v31616_v44 = vpop.f32.mrb[106].mxu0  ;;  %v29700_v28 = vld [vmem:[%s30131_s21 + $0x770] sm:$0xff]  }
 0x3c5   : > { %35491 = vst [vmem:[#allocation322_spill] sm:$0xff] %v31616_v44  ;;  %v31619_v36 = vpop.f32.mrb[107].mxu0 }
 0x3c6   : > { %35492 = vst [vmem:[#allocation323_spill] sm:$0xff] %v31619_v36 }
 0x3c7   : > { %25754 = vmatmul.mubr.msk.bf16.gmra.mrb[212].mxu0 %vm2309_vm2, %v29697_v16 }
 0x3c8   : > { %25757 = vmatprep.mubr.msk.bf16.mxu0 %vm2309_vm2, %v29698_v34  ;;  %v29701_v34 = vld [vmem:[%s30131_s21 + $0x778] sm:$0xff]  }
 0x3ca   : > { %v31623_v39 = vpop.f32.mrb[108].mxu0 }
 0x3cb   : > { %35493 = vst [vmem:[#allocation324_spill] sm:$0xff] %v31623_v39  ;;  %v31625_v22 = vpop.f32.mrb[109].mxu0 }
 0x3cc   : > { %35494 = vst [vmem:[#allocation325_spill] sm:$0xff] %v31625_v22  ;;  %v31628_v38 = vpop.f32.mrb[110].mxu0  ;;  %v29702_v22 = vld [vmem:[%s30131_s21 + $0x780] sm:$0xff]  }
 0x3cd   : > { %35495 = vst [vmem:[#allocation326_spill] sm:$0xff] %v31628_v38  ;;  %v31631_v42 = vpop.f32.mrb[111].mxu0 }
 0x3ce   : > { %35496 = vst [vmem:[#allocation327_spill] sm:$0xff] %v31631_v42 }
 0x3cf   : > { %25758 = vmatmul.mubr.msk.bf16.gmra.mrb[216].mxu0 %vm2309_vm2, %v29699_v10 }
 0x3d0   : > { %25761 = vmatprep.mubr.msk.bf16.mxu0 %vm2309_vm2, %v29700_v28  ;;  %v29703_v28 = vld [vmem:[%s30131_s21 + $0x788] sm:$0xff]  }
 0x3d2   : > { %v31635_v36 = vpop.f32.mrb[112].mxu0 }
 0x3d3   : > { %35497 = vst [vmem:[#allocation328_spill] sm:$0xff] %v31635_v36  ;;  %v31637_v16 = vpop.f32.mrb[113].mxu0 }
 0x3d4   : > { %35498 = vst [vmem:[#allocation329_spill] sm:$0xff] %v31637_v16  ;;  %v31640_v39 = vpop.f32.mrb[114].mxu0  ;;  %v29704_v16 = vld [vmem:[%s30131_s21 + $0x790] sm:$0xff]  }
 0x3d5   : > { %35499 = vst [vmem:[#allocation330_spill] sm:$0xff] %v31640_v39  ;;  %v31643_v44 = vpop.f32.mrb[115].mxu0  ;;  %v29722_v39 = vld [vmem:[%s30131_s21 + $0x820] sm:$0xff]  }
 0x3d6   : > { %35500 = vst [vmem:[#allocation331_spill] sm:$0xff] %v31643_v44  ;;  %v29736_v44 = vld [vmem:[%s34628_s3 + $0x200] sm:$0xff]  }
 0x3d7   : > { %25762 = vmatmul.mubr.msk.bf16.gmra.mrb[220].mxu0 %vm2309_vm2, %v29701_v34  ;;  %26501 = vmatprep.subr.bf16.mxu1 %v29736_v44  ;;  %v29737_v34 = vld [vmem:[%s34628_s3 + $0x208] sm:$0xff]  }
 0x3d8   : > { %25765 = vmatprep.mubr.msk.bf16.mxu0 %vm2309_vm2, %v29702_v22  ;;  %26502 = vmatpush3.bf16.msra.mxu1 %v29736_v44  ;;  %v29740_v44 = vld [vmem:[%s34628_s3 + $0x210] sm:$0xff]  }
 0x3d9   : > { %26503 = vmatprep.subr.bf16.mxu1 %v29737_v34 }
 0x3da   : > { %v31647_v42 = vpop.f32.mrb[116].mxu0 }
 0x3db   : > { %35501 = vst [vmem:[#allocation332_spill] sm:$0xff] %v31647_v42  ;;  %v31649_v10 = vpop.f32.mrb[117].mxu0  ;;  %v29706_v42 = vld [vmem:[%s30131_s21 + $0x7a0] sm:$0xff]  }
 0x3dc   : > { %35502 = vst [vmem:[#allocation333_spill] sm:$0xff] %v31649_v10  ;;  %v31652_v36 = vpop.f32.mrb[118].mxu0  ;;  %26504 = vmatpush3.bf16.msra.mxu1 %v29737_v34  ;;  %v29707_v34 = vld [vmem:[%s30131_s21 + $0x7a8] sm:$0xff]  }
 0x3dd   : > { %35503 = vst [vmem:[#allocation334_spill] sm:$0xff] %v31652_v36  ;;  %v31655_v38 = vpop.f32.mrb[119].mxu0  ;;  %26505 = vmatprep.subr.bf16.mxu1 %v29740_v44 }
 0x3de   : > { %35504 = vst [vmem:[#allocation335_spill] sm:$0xff] %v31655_v38  ;;  %v29705_v38 = vld [vmem:[%s30131_s21 + $0x798] sm:$0xff]  }
 0x3df   : > { %25766 = vmatmul.mubr.msk.bf16.gmra.mrb[224].mxu0 %vm2309_vm2, %v29703_v28 }
 0x3e0   : > { %25769 = vmatprep.mubr.msk.bf16.mxu0 %vm2309_vm2, %v29704_v16  ;;  %26506 = vmatpush3.bf16.msra.mxu1 %v29740_v44 }
 0x3e2   : > { %v31662_v22 = vpop.f32.mrb[120].mxu0 }
 0x3e3   : > { %35505 = vst [vmem:[#allocation336_spill] sm:$0xff] %v31662_v22  ;;  %v31667_v36 = vpop.f32.mrb[121].mxu0  ;;  %v29708_v22 = vld [vmem:[%s30131_s21 + $0x7b0] sm:$0xff]  }
 0x3e4   : > { %35506 = vst [vmem:[#allocation337_spill] sm:$0xff] %v31667_v36  ;;  %v31670_v10 = vpop.f32.mrb[122].mxu0 }
 0x3e5   : > { %35507 = vst [vmem:[#allocation338_spill] sm:$0xff] %v31670_v10  ;;  %v31673_v28 = vpop.f32.mrb[123].mxu0  ;;  %v29741_v10 = vld [vmem:[%s34628_s3 + $0x218] sm:$0xff]  }
 0x3e6   : > { %35508 = vst [vmem:[#allocation339_spill] sm:$0xff] %v31673_v28  ;;  %26507 = vmatprep.subr.bf16.mxu1 %v29741_v10 }
 0x3e7   : > { %25770 = vmatmul.mubr.msk.bf16.gmra.mrb[228].mxu0 %vm2309_vm2, %v29705_v38  ;;  %26508 = vmatpush3.bf16.msra.mxu1 %v29741_v10  ;;  %v29709_v10 = vld [vmem:[%s30131_s21 + $0x7b8] sm:$0xff]  }
 0x3e8   : > { %25773 = vmatprep.mubr.msk.bf16.mxu0 %vm2309_vm2, %v29706_v42  ;;  %v29744_v42 = vld [vmem:[%s34628_s3 + $0x220] sm:$0xff]  }
 0x3e9   : > { %26509 = vmatprep.subr.bf16.mxu1 %v29744_v42 }
 0x3ea   : > { %v31680_v16 = vpop.f32.mrb[124].mxu0 }
 0x3eb   : > { %35509 = vst [vmem:[#allocation340_spill] sm:$0xff] %v31680_v16  ;;  %v31685_v36 = vpop.f32.mrb[125].mxu0  ;;  %26510 = vmatpush3.bf16.msra.mxu1 %v29744_v42  ;;  %v29710_v16 = vld [vmem:[%s30131_s21 + $0x7c0] sm:$0xff]  }
 0x3ec   : > { %35510 = vst [vmem:[#allocation341_spill] sm:$0xff] %v31685_v36  ;;  %v31688_v28 = vpop.f32.mrb[126].mxu0 }
 0x3ed   : > { %35511 = vst [vmem:[#allocation342_spill] sm:$0xff] %v31688_v28  ;;  %v31691_v38 = vpop.f32.mrb[127].mxu0  ;;  %v29745_v28 = vld [vmem:[%s34628_s3 + $0x228] sm:$0xff]  }
 0x3ee   : > { %35512 = vst [vmem:[#allocation343_spill] sm:$0xff] %v31691_v38  ;;  %26511 = vmatprep.subr.bf16.mxu1 %v29745_v28 }
 0x3ef   : > { %25774 = vmatmul.mubr.msk.bf16.gmra.mrb[232].mxu0 %vm2309_vm2, %v29707_v34  ;;  %26512 = vmatpush3.bf16.msra.mxu1 %v29745_v28  ;;  %v29711_v28 = vld [vmem:[%s30131_s21 + $0x7c8] sm:$0xff]  }
 0x3f0   : > { %25777 = vmatprep.mubr.msk.bf16.mxu0 %vm2309_vm2, %v29708_v22  ;;  %v29748_v22 = vld [vmem:[%s34628_s3 + $0x230] sm:$0xff]  }
 0x3f1   : > { %26513 = vmatprep.subr.bf16.mxu1 %v29748_v22 }
 0x3f2   : > { %v31698_v44 = vpop.f32.mrb[128].mxu0 }
 0x3f3   : > { %35513 = vst [vmem:[#allocation344_spill] sm:$0xff] %v31698_v44  ;;  %v31703_v36 = vpop.f32.mrb[129].mxu0  ;;  %26514 = vmatpush3.bf16.msra.mxu1 %v29748_v22  ;;  %v29712_v44 = vld [vmem:[%s30131_s21 + $0x7d0] sm:$0xff]   ;;  %v29753_v22 = vld [vmem:[%s34628_s3 + $0x8] sm:$0xff]  }
 0x3f4   : > { %35514 = vst [vmem:[#allocation345_spill] sm:$0xff] %v31703_v36  ;;  %v31706_v38 = vpop.f32.mrb[130].mxu0 }
 0x3f5   : > { %35515 = vst [vmem:[#allocation346_spill] sm:$0xff] %v31706_v38  ;;  %v31709_v34 = vpop.f32.mrb[131].mxu0  ;;  %v29749_v38 = vld [vmem:[%s34628_s3 + $0x238] sm:$0xff]  }
 0x3f6   : > { %35516 = vst [vmem:[#allocation347_spill] sm:$0xff] %v31709_v34  ;;  %26515 = vmatprep.subr.bf16.mxu1 %v29749_v38 }
 0x3f7   : > { %25778 = vmatmul.mubr.msk.bf16.gmra.mrb[236].mxu0 %vm2309_vm2, %v29709_v10  ;;  %26516 = vmatpush3.bf16.msra.mxu1 %v29749_v38  ;;  %v29713_v38 = vld [vmem:[%s30131_s21 + $0x7d8] sm:$0xff]  }
 0x3f8   : > { %25781 = vmatprep.mubr.msk.bf16.mxu0 %vm2309_vm2, %v29710_v16  ;;  %v29752_v16 = vld [vmem:[%s34628_s3] sm:$0xff]  }
 0x3f9   : > { %25861 = vmatprep.subr.bf16.mxu0 %v29752_v16 }
 0x3fa   : > { %v31716_v42 = vpop.f32.mrb[132].mxu0  ;;  %25862 = vmatpush3.bf16.msra.mxu0 %v29752_v16  ;;  %v29757_v16 = vld [vmem:[%s34628_s3 + $0x18] sm:$0xff]  }
 0x3fb   : > { %35517 = vst [vmem:[#allocation348_spill] sm:$0xff] %v31716_v42  ;;  %v31721_v36 = vpop.f32.mrb[133].mxu0  ;;  %25863 = vmatprep.subr.bf16.mxu0 %v29753_v22  ;;  %v29714_v42 = vld [vmem:[%s30131_s21 + $0x7e0] sm:$0xff]  }
 0x3fc   : > { %35518 = vst [vmem:[#allocation349_spill] sm:$0xff] %v31721_v36  ;;  %v31724_v34 = vpop.f32.mrb[134].mxu0 }
 0x3fd   : > { %35519 = vst [vmem:[#allocation350_spill] sm:$0xff] %v31724_v34  ;;  %v31727_v10 = vpop.f32.mrb[135].mxu0 }
 0x3fe   : > { %35520 = vst [vmem:[#allocation351_spill] sm:$0xff] %v31727_v10  ;;  %25864 = vmatpush3.bf16.msra.mxu0 %v29753_v22 }
 0x3ff   : > { %25782 = vmatmul.mubr.msk.bf16.gmra.mrb[240].mxu0 %vm2309_vm2, %v29711_v28 }
 0x400   : > { %25785 = vmatprep.mubr.msk.bf16.mxu0 %vm2309_vm2, %v29712_v44  ;;  %v29756_v44 = vld [vmem:[%s34628_s3 + $0x10] sm:$0xff]  }
 0x401   : > { %25865 = vmatprep.subr.bf16.mxu0 %v29756_v44 }
 0x402   : > { %v31737_v34 = vpop.f32.mrb[136].mxu0  ;;  %25866 = vmatpush3.bf16.msra.mxu0 %v29756_v44  ;;  %v29761_v44 = vld [vmem:[%s34628_s3 + $0x28] sm:$0xff]  }
 0x403   : > { %35521 = vst [vmem:[#allocation352_spill] sm:$0xff] %v31737_v34  ;;  %v31739_v36 = vpop.f32.mrb[137].mxu0  ;;  %25867 = vmatprep.subr.bf16.mxu0 %v29757_v16  ;;  %v29716_v34 = vld [vmem:[%s30131_s21 + $0x7f0] sm:$0xff]  }
 0x404   : > { %35522 = vst [vmem:[#allocation353_spill] sm:$0xff] %v31739_v36  ;;  %v31742_v10 = vpop.f32.mrb[138].mxu0 }
 0x405   : > { %35523 = vst [vmem:[#allocation354_spill] sm:$0xff] %v31742_v10  ;;  %v31745_v28 = vpop.f32.mrb[139].mxu0 }
 0x406   : > { %35524 = vst [vmem:[#allocation355_spill] sm:$0xff] %v31745_v28  ;;  %v29715_v28 = vld [vmem:[%s30131_s21 + $0x7e8] sm:$0xff]   ;;  %25868 = vmatpush3.bf16.msra.mxu0 %v29757_v16 }
 0x407   : > { %25786 = vmatmul.mubr.msk.bf16.gmra.mrb[244].mxu0 %vm2309_vm2, %v29713_v38 }
 0x408   : > { %25789 = vmatprep.mubr.msk.bf16.mxu0 %vm2309_vm2, %v29714_v42  ;;  %v29760_v42 = vld [vmem:[%s34628_s3 + $0x20] sm:$0xff]  }
 0x409   : > { %25869 = vmatprep.subr.bf16.mxu0 %v29760_v42 }
 0x40a   : > { %v31755_v36 = vpop.f32.mrb[140].mxu0  ;;  %25870 = vmatpush3.bf16.msra.mxu0 %v29760_v42  ;;  %v29765_v42 = vld [vmem:[%s34628_s3 + $0x38] sm:$0xff]  }
 0x40b   : > { %35525 = vst [vmem:[#allocation356_spill] sm:$0xff] %v31755_v36  ;;  %v31757_v22 = vpop.f32.mrb[141].mxu0  ;;  %25871 = vmatprep.subr.bf16.mxu0 %v29761_v44  ;;  %v29718_v36 = vld [vmem:[%s30131_s21 + $0x800] sm:$0xff]  }
 0x40c   : > { %35526 = vst [vmem:[#allocation357_spill] sm:$0xff] %v31757_v22  ;;  %v31760_v10 = vpop.f32.mrb[142].mxu0 }
 0x40d   : > { %35527 = vst [vmem:[#allocation358_spill] sm:$0xff] %v31760_v10  ;;  %v31763_v38 = vpop.f32.mrb[143].mxu0 }
 0x40e   : > { %35528 = vst [vmem:[#allocation359_spill] sm:$0xff] %v31763_v38  ;;  %v29717_v38 = vld [vmem:[%s30131_s21 + $0x7f8] sm:$0xff]   ;;  %25872 = vmatpush3.bf16.msra.mxu0 %v29761_v44 }
 0x40f   : > { %25790 = vmatmul.mubr.msk.bf16.gmra.mrb[248].mxu0 %vm2309_vm2, %v29715_v28 }
 0x410   : > { %25793 = vmatprep.mubr.msk.bf16.mxu0 %vm2309_vm2, %v29716_v34  ;;  %v29764_v34 = vld [vmem:[%s34628_s3 + $0x30] sm:$0xff]  }
 0x411   : > { %25873 = vmatprep.subr.bf16.mxu0 %v29764_v34 }
 0x412   : > { %v31773_v22 = vpop.f32.mrb[144].mxu0  ;;  %25874 = vmatpush3.bf16.msra.mxu0 %v29764_v34 }
 0x413   : > { %35529 = vst [vmem:[#allocation360_spill] sm:$0xff] %v31773_v22  ;;  %v31775_v16 = vpop.f32.mrb[145].mxu0  ;;  %25875 = vmatprep.subr.bf16.mxu0 %v29765_v42 }
 0x414   : > { %35530 = vst [vmem:[#allocation361_spill] sm:$0xff] %v31775_v16  ;;  %v31778_v10 = vpop.f32.mrb[146].mxu0 }
 0x415   : > { %35531 = vst [vmem:[#allocation362_spill] sm:$0xff] %v31778_v10  ;;  %v31781_v28 = vpop.f32.mrb[147].mxu0 }
 0x416   : > { %35532 = vst [vmem:[#allocation363_spill] sm:$0xff] %v31781_v28  ;;  %v29719_v28 = vld [vmem:[%s30131_s21 + $0x808] sm:$0xff]   ;;  %25876 = vmatpush3.bf16.msra.mxu0 %v29765_v42 }
 0x417   : > { %25794 = vmatmul.mubr.msk.bf16.gmra.mrb[252].mxu0 %vm2309_vm2, %v29717_v38  ;;  %v29720_v38 = vld [vmem:[%s30131_s21 + $0x810] sm:$0xff]  }
 0x418   : > { %25797 = vmatprep.mubr.msk.bf16.mxu0 %vm2309_vm2, %v29718_v36 }
 0x41a   : > { %v31791_v10 = vpop.f32.mrb[148].mxu0 }
 0x41b   : > { %35533 = vst [vmem:[#allocation364_spill] sm:$0xff] %v31791_v10  ;;  %v31793_v44 = vpop.f32.mrb[149].mxu0  ;;  %v29721_v10 = vld [vmem:[%s30131_s21 + $0x818] sm:$0xff]  }
 0x41c   : > { %35534 = vst [vmem:[#allocation365_spill] sm:$0xff] %v31793_v44  ;;  %v31796_v16 = vpop.f32.mrb[150].mxu0 }
 0x41d   : > { %35535 = vst [vmem:[#allocation366_spill] sm:$0xff] %v31796_v16  ;;  %v31799_v22 = vpop.f32.mrb[151].mxu0 }
 0x41e   : > { %35536 = vst [vmem:[#allocation367_spill] sm:$0xff] %v31799_v22 }
 0x41f   : > { %25798 = vmatmul.mubr.msk.bf16.gmra.mrb[0].mxu0 %vm2309_vm2, %v29719_v28 }
 0x420   : > { %25801 = vmatprep.mubr.msk.bf16.mxu0 %vm2309_vm2, %v29720_v38  ;;  %v29723_v38 = vld [vmem:[%s30131_s21 + $0x828] sm:$0xff]  }
 0x422   : > { %v31803_v36 = vpop.f32.mrb[152].mxu0 }
 0x423   : > { %35537 = vst [vmem:[#allocation368_spill] sm:$0xff] %v31803_v36  ;;  %v31805_v34 = vpop.f32.mrb[153].mxu0 }
 0x424   : > { %35538 = vst [vmem:[#allocation369_spill] sm:$0xff] %v31805_v34  ;;  %v31808_v44 = vpop.f32.mrb[154].mxu0  ;;  %v29724_v34 = vld [vmem:[%s30131_s21 + $0x830] sm:$0xff]  }
 0x425   : > { %35539 = vst [vmem:[#allocation370_spill] sm:$0xff] %v31808_v44  ;;  %v31811_v16 = vpop.f32.mrb[155].mxu0 }
 0x426   : > { %35540 = vst [vmem:[#allocation371_spill] sm:$0xff] %v31811_v16 }
 0x427   : > { %25802 = vmatmul.mubr.msk.bf16.gmra.mrb[4].mxu0 %vm2309_vm2, %v29721_v10 }
 0x428   : > { %25805 = vmatprep.mubr.msk.bf16.mxu0 %vm2309_vm2, %v29722_v39  ;;  %v29725_v39 = vld [vmem:[%s30131_s21 + $0x838] sm:$0xff]  }
 0x42a   : > { %v31815_v42 = vpop.f32.mrb[156].mxu0 }
 0x42b   : > { %35541 = vst [vmem:[#allocation372_spill] sm:$0xff] %v31815_v42  ;;  %v31817_v28 = vpop.f32.mrb[157].mxu0 }
 0x42c   : > { %35542 = vst [vmem:[#allocation373_spill] sm:$0xff] %v31817_v28  ;;  %v31820_v36 = vpop.f32.mrb[158].mxu0  ;;  %v29726_v28 = vld [vmem:[%s30131_s21 + $0x840] sm:$0xff]  }
 0x42d   : > { %35543 = vst [vmem:[#allocation374_spill] sm:$0xff] %v31820_v36  ;;  %v31823_v22 = vpop.f32.mrb[159].mxu0 }
 0x42e   : > { %35544 = vst [vmem:[#allocation375_spill] sm:$0xff] %v31823_v22 }
 0x42f   : > { %25806 = vmatmul.mubr.msk.bf16.gmra.mrb[8].mxu0 %vm2309_vm2, %v29723_v38 }
 0x430   : > { %25809 = vmatprep.mubr.msk.bf16.mxu0 %vm2309_vm2, %v29724_v34  ;;  %v29727_v34 = vld [vmem:[%s30131_s21 + $0x848] sm:$0xff]  }
 0x432   : > { %v31827_v16 = vpop.f32.mrb[160].mxu0 }
 0x433   : > { %35545 = vst [vmem:[#allocation376_spill] sm:$0xff] %v31827_v16  ;;  %v31829_v10 = vpop.f32.mrb[161].mxu0 }
 0x434   : > { %35546 = vst [vmem:[#allocation377_spill] sm:$0xff] %v31829_v10  ;;  %v31832_v42 = vpop.f32.mrb[162].mxu0  ;;  %v29728_v10 = vld [vmem:[%s30131_s21 + $0x850] sm:$0xff]  }
 0x435   : > { %35547 = vst [vmem:[#allocation378_spill] sm:$0xff] %v31832_v42  ;;  %v31835_v44 = vpop.f32.mrb[163].mxu0  ;;  %v29731_v42 = vld [vmem:[%s30131_s21 + $0x868] sm:$0xff]  }
 0x436   : > { %35548 = vst [vmem:[#allocation379_spill] sm:$0xff] %v31835_v44  ;;  %v31852_v44 = vld [vmem:[%s34628_s3 + $0x240] sm:$0xff]  }
 0x437   : > { %25810 = vmatmul.mubr.msk.bf16.gmra.mrb[12].mxu0 %vm2309_vm2, %v29725_v39  ;;  %35553 = vst [vmem:[#allocation384_spill] sm:$0xff] %v31852_v44  ;;  %26581 = vmatprep.subr.bf16.mxu1 %v31852_v44 }
 0x438   : > { %25813 = vmatprep.mubr.msk.bf16.mxu0 %vm2309_vm2, %v29726_v28 }
 0x43a   : > { %v31839_v22 = vpop.f32.mrb[164].mxu0 }
 0x43b   : > { %35549 = vst [vmem:[#allocation380_spill] sm:$0xff] %v31839_v22  ;;  %v31841_v38 = vpop.f32.mrb[165].mxu0 }
 0x43c   : > { %35550 = vst [vmem:[#allocation381_spill] sm:$0xff] %v31841_v38  ;;  %v31844_v16 = vpop.f32.mrb[166].mxu0 }
 0x43d   : > { %35551 = vst [vmem:[#allocation382_spill] sm:$0xff] %v31844_v16  ;;  %v31847_v36 = vpop.f32.mrb[167].mxu0  ;;  %v29729_v16 = vld [vmem:[%s30131_s21 + $0x858] sm:$0xff]  }
 0x43e   : > { %35552 = vst [vmem:[#allocation383_spill] sm:$0xff] %v31847_v36  ;;  %v29730_v36 = vld [vmem:[%s30131_s21 + $0x860] sm:$0xff]  }
 0x43f   : > { %25814 = vmatmul.mubr.msk.bf16.gmra.mrb[16].mxu0 %vm2309_vm2, %v29727_v34 }
 0x440   : > { %25817 = vmatprep.mubr.msk.bf16.mxu0 %vm2309_vm2, %v29728_v10 }
 0x442   : > { %v31857_v28 = vpop.f32.mrb[168].mxu0 }
 0x443   : > { %35554 = vst [vmem:[#allocation385_spill] sm:$0xff] %v31857_v28  ;;  %v31859_v39 = vpop.f32.mrb[169].mxu0 }
 0x444   : > { %35555 = vst [vmem:[#allocation386_spill] sm:$0xff] %v31859_v39  ;;  %v31862_v38 = vpop.f32.mrb[170].mxu0  ;;  %v29732_v39 = vld [vmem:[%s30131_s21 + $0x870] sm:$0xff]  }
 0x445   : > { %35556 = vst [vmem:[#allocation387_spill] sm:$0xff] %v31862_v38  ;;  %v31865_v22 = vpop.f32.mrb[171].mxu0 }
 0x446   : > { %35557 = vst [vmem:[#allocation388_spill] sm:$0xff] %v31865_v22 }
 0x447   : > { %25818 = vmatmul.mubr.msk.bf16.gmra.mrb[20].mxu0 %vm2309_vm2, %v29729_v16 }
 0x448   : > { %25821 = vmatprep.mubr.msk.bf16.mxu0 %vm2309_vm2, %v29730_v36  ;;  %v29733_v36 = vld [vmem:[%s30131_s21 + $0x878] sm:$0xff]  }
 0x44a   : > { %v31869_v34 = vpop.f32.mrb[172].mxu0 }
 0x44b   : > { %35558 = vst [vmem:[#allocation389_spill] sm:$0xff] %v31869_v34  ;;  %v31871_v10 = vpop.f32.mrb[173].mxu0  ;;  %v31886_v34 = vld [vmem:[%s34627_s2] ss:$0 sm:$0xff] }
 0x44c   : > { %35559 = vst [vmem:[#allocation390_spill] sm:$0xff] %v31871_v10  ;;  %v31874_v28 = vpop.f32.mrb[174].mxu0 }
 0x44d   : > { %35560 = vst [vmem:[#allocation391_spill] sm:$0xff] %v31874_v28  ;;  %v31877_v45 = vpop.f32.mrb[175].mxu0 }
 0x44e   : > { %35561 = vst [vmem:[#allocation392_spill] sm:$0xff] %v31877_v45  ;;  %v35562_v45 = vmax.f32 %v30243_v61, %v30675_v35 }
 0x44f   : > { %25822 = vmatmul.mubr.msk.bf16.gmra.mrb[24].mxu0 %vm2309_vm2, %v29731_v42 }
 0x450   : > { %25825 = vmatprep.mubr.msk.bf16.mxu0 %vm2309_vm2, %v29732_v39 }
 0x452   : > { %v25719_v22 = vpop.f32.mrb[176].mxu0 }
 0x453   : > { %v5664_v16 = vmax.f32 %v31395_v55, %v25719_v22  ;;  %v4943_v38 = vpop.f32.mrb[177].mxu0  ;;  %v35564_v55 = vld [vmem:[#allocation134_spill] sm:$0xff] }
 0x454   : > { %v5662_v10 = vmax.f32 %v31397_v49, %v4943_v38  ;;  %v25720_v28 = vpop.f32.mrb[178].mxu0  ;;  %v35565_v22 = vmax.f32 %v35563_v33, %v35564_v55  ;;  %v35566_v49 = vld [vmem:[#allocation135_spill] sm:$0xff] }
 0x455   : > { %v5808_v42 = vmax.f32 %v35562_v45, %v5664_v16  ;;  %v5665_v39 = vmax.f32 %v31400_v25, %v25720_v28  ;;  %v4946_v4 = vpop.f32.mrb[179].mxu0  ;;  %v35567_v38 = vmax.f32 %v30248_v0, %v35566_v49  ;;  %v35568_v45 = vld [vmem:[#allocation136_spill] sm:$0xff] }
 0x456   : > { %v5806_v40 = vmax.f32 %v35565_v22, %v5662_v10  ;;  %v5663_v50 = vmax.f32 %v31403_v46, %v4946_v4  ;;  %v35569_v35 = vmax.f32 %v30251_v2, %v35568_v45  ;;  %v29738_v2 = vld [vmem:[%s30131_s21 + $0x890] sm:$0xff]   ;;  %v35572_v49 = vld [vmem:[#allocation8_spill] sm:$0xff] }
 0x457   : > { %v5959_v44 = vadd.f32 %v31886_v34, %v5808_v42  ;;  %v5809_v32 = vmax.f32 %v35567_v38, %v5665_v39  ;;  %25826 = vmatmul.mubr.msk.bf16.gmra.mrb[28].mxu0 %vm2309_vm2, %v29733_v36  ;;  %v29735_v36 = vld [vmem:[%s30131_s21 + $0x888] sm:$0xff]   ;;  %v35573_v38 = vld [vmem:[#allocation137_spill] sm:$0xff] }
 0x458   : > { %v5957_v61 = vadd.f32 %v31886_v34, %v5806_v40  ;;  %v5807_v25 = vmax.f32 %v35569_v35, %v5663_v50  ;;  %25829 = vmatprep.mubr.msk.bf16.mxu0 %vm2309_vm2, %v29734_v48 }
 0x459   : > { %v5960_v33 = vadd.f32 %v31886_v34, %v5809_v32  ;;  %v6103_v28 = vmax.f32 %v5959_v44, 0.0  ;;  %v35571_v32 = vmax.f32 %v30255_v3, %v30695_v29 }
 0x45a   : > { %v5958_v4 = vadd.f32 %v31886_v34, %v5807_v25  ;;  %v25723_v46 = vpop.f32.mrb[180].mxu0  ;;  %v6101_v42 = vmax.f32 %v5957_v61, 0.0 }
 0x45b   : > { %v6104_v10 = vmax.f32 %v5960_v33, 0.0  ;;  %v5668_v0 = vmax.f32 %v31407_v43, %v25723_v46  ;;  %v4959_v16 = vpop.f32.mrb[181].mxu0  ;;  %v35574_v43 = vmax.f32 %v35572_v49, %v35573_v38  ;;  %v35575_v33 = vld [vmem:[#allocation138_spill] sm:$0xff]  ;;  %v35581_v49 = vmax.f32 %v30267_v9, %v30715_v59 }
 0x45c   : > { %v6102_v39 = vmax.f32 %v5958_v4, 0.0  ;;  %v5666_v40 = vmax.f32 %v31409_v41, %v4959_v16  ;;  %v25724_v55 = vpop.f32.mrb[182].mxu0  ;;  %v35576_v3 = vmax.f32 %v30260_v6, %v35575_v33  ;;  %v35577_v4 = vld [vmem:[#allocation139_spill] sm:$0xff] }
 0x45d   : > { %v31914_v50 = vpack.c.bf16 %v6104_v10, %v6103_v28  ;;  %v5812_v48 = vmax.f32 %v35571_v32, %v5668_v0  ;;  %v5669_v22 = vmax.f32 %v31412_v52, %v25724_v55  ;;  %v4962_v44 = vpop.f32.mrb[183].mxu0  ;;  %v35578_v46 = vmax.f32 %v30263_v8, %v35577_v4  ;;  %v29739_v55 = vld [vmem:[%s30131_s21 + $0x898] sm:$0xff]   ;;  %v35589_v4 = vld [vmem:[#allocation142_spill] sm:$0xff] }
 0x45e   : > { %v5810_v45 = vmax.f32 %v35574_v43, %v5666_v40  ;;  %v5667_v61 = vmax.f32 %v31415_v17, %v4962_v44  ;;  %v31924_v35 = vpack.c.bf16 %v6102_v39, %v6101_v42  ;;  %v31926_v41 = vpack.c.bf16 %v6103_v28, %v6102_v39  ;;  %v29742_v44 = vld [vmem:[%s30131_s21 + $0x8a0] sm:$0xff]  }
 0x45f   : > { %35570 = vst [vmem:[#allocation7_spill] sm:$0xff] %v31914_v50  ;;  %v5963_v25 = vadd.f32 %v31886_v34, %v5812_v48  ;;  %v5813_v29 = vmax.f32 %v35576_v3, %v5669_v22  ;;  %25830 = vmatmul.mubr.msk.bf16.gmra.mrb[32].mxu0 %vm2309_vm2, %v29735_v36 }
 0x460   : > { %v5961_v52 = vadd.f32 %v31886_v34, %v5810_v45  ;;  %v5811_v17 = vmax.f32 %v35578_v46, %v5667_v61  ;;  %25833 = vmatprep.mubr.msk.bf16.mxu0 %vm2309_vm2, %v29738_v2  ;;  %v35582_v61 = vld [vmem:[#allocation9_spill] sm:$0xff]  ;;  %v35590_v46 = vmax.f32 %v30275_v14, %v35589_v4 }
 0x461   : > { %v5964_v28 = vadd.f32 %v31886_v34, %v5813_v29  ;;  %v6107_v39 = vmax.f32 %v5963_v25, 0.0 }
 0x462   : > { %v6105_v0 = vmax.f32 %v5961_v52, 0.0  ;;  %v5962_v16 = vadd.f32 %v31886_v34, %v5811_v17  ;;  %v25727_v42 = vpop.f32.mrb[184].mxu0  ;;  %v35587_v52 = vld [vmem:[#allocation141_spill] sm:$0xff] }
 0x463   : > { %v6108_v6 = vmax.f32 %v5964_v28, 0.0  ;;  %v5672_v40 = vmax.f32 %v31419_v31, %v25727_v42  ;;  %v4975_v36 = vpop.f32.mrb[185].mxu0  ;;  %v35583_v31 = vld [vmem:[#allocation140_spill] sm:$0xff]  ;;  %v35588_v9 = vmax.f32 %v30272_v12, %v35587_v52  ;;  %v35601_v52 = vld [vmem:[#allocation145_spill] sm:$0xff] }
 0x464   : > { %v31942_v32 = vpack.c.bf16 %v6105_v0, %v6104_v10  ;;  %v6106_v48 = vmax.f32 %v5962_v16, 0.0  ;;  %v5670_v8 = vmax.f32 %v31421_v7, %v4975_v36  ;;  %v25728_v22 = vpop.f32.mrb[186].mxu0  ;;  %v35584_v25 = vmax.f32 %v35582_v61, %v35583_v31  ;;  %v29743_v36 = vld [vmem:[%s30131_s21 + $0x8a8] sm:$0xff]   ;;  %v35597_v31 = vld [vmem:[#allocation143_spill] sm:$0xff] }
 0x465   : > { %v31946_v2 = vpack.c.bf16 %v6108_v6, %v6107_v39  ;;  %v5816_v38 = vmax.f32 %v35581_v49, %v5672_v40  ;;  %v5673_v43 = vmax.f32 %v31424_v63, %v25728_v22  ;;  %v4978_v45 = vpop.f32.mrb[187].mxu0  ;;  %v29746_v22 = vld [vmem:[%s30131_s21 + $0x8b0] sm:$0xff]   ;;  %v35593_v49 = vmax.f32 %v30279_v15, %v30735_v53 }
 0x466   : > { %35579 = vst [vmem:[#allocation134_spill] sm:$0xff] %v31942_v32  ;;  %v5814_v33 = vmax.f32 %v35584_v25, %v5670_v8  ;;  %v5671_v10 = vmax.f32 %v31427_v23, %v4978_v45  ;;  %v31956_v3 = vpack.c.bf16 %v6106_v48, %v6105_v0  ;;  %v31958_v7 = vpack.c.bf16 %v6107_v39, %v6106_v48 }
 0x467   : > { %35580 = vst [vmem:[#allocation135_spill] sm:$0xff] %v31946_v2  ;;  %v5967_v29 = vadd.f32 %v31886_v34, %v5816_v38  ;;  %v5817_v59 = vmax.f32 %v35588_v9, %v5673_v43  ;;  %25834 = vmatmul.mubr.msk.bf16.gmra.mrb[36].mxu0 %vm2309_vm2, %v29739_v55  ;;  %v35602_v9 = vmax.f32 %v30287_v20, %v35601_v52  ;;  %v29750_v20 = vld [vmem:[%s30131_s21 + $0x8c0] sm:$0xff]   ;;  %v29751_v52 = vld [vmem:[%s30131_s21 + $0x8c8] sm:$0xff]  }
 0x468   : > { %35585 = vst [vmem:[#allocation136_spill] sm:$0xff] %v31956_v3  ;;  %35586 = vst [vmem:[#allocation8_spill] sm:$0xff] %v31958_v7  ;;  %v5965_v63 = vadd.f32 %v31886_v34, %v5814_v33  ;;  %v5815_v23 = vmax.f32 %v35590_v46, %v5671_v10  ;;  %25837 = vmatprep.mubr.msk.bf16.mxu0 %vm2309_vm2, %v29742_v44 }
 0x469   : > { %v5968_v17 = vadd.f32 %v31886_v34, %v5817_v59  ;;  %v6111_v42 = vmax.f32 %v5967_v29, 0.0  ;;  %v35599_v29 = vld [vmem:[#allocation144_spill] sm:$0xff] }
 0x46a   : > { %v6109_v28 = vmax.f32 %v5965_v63, 0.0  ;;  %v5966_v0 = vadd.f32 %v31886_v34, %v5815_v23  ;;  %v25731_v16 = vpop.f32.mrb[188].mxu0  ;;  %v35600_v15 = vmax.f32 %v30284_v18, %v35599_v29 }
 0x46b   : > { %v6112_v12 = vmax.f32 %v5968_v17, 0.0  ;;  %v5676_v39 = vmax.f32 %v31431_v19, %v25731_v16  ;;  %v4991_v40 = vpop.f32.mrb[189].mxu0 }
 0x46c   : > { %v31974_v55 = vpack.c.bf16 %v6109_v28, %v6108_v6  ;;  %v6110_v48 = vmax.f32 %v5966_v0, 0.0  ;;  %v5674_v14 = vmax.f32 %v31433_v11, %v4991_v40  ;;  %v25732_v8 = vpop.f32.mrb[190].mxu0  ;;  %v35596_v6 = vld [vmem:[#allocation10_spill] sm:$0xff]  ;;  %v35604_v40 = vmax.f32 %v30291_v21, %v30755_v47 }
 0x46d   : > { %v31978_v44 = vpack.c.bf16 %v6112_v12, %v6111_v42  ;;  %v5820_v38 = vmax.f32 %v35593_v49, %v5676_v39  ;;  %v5677_v43 = vmax.f32 %v31436_v13, %v25732_v8  ;;  %v4994_v45 = vpop.f32.mrb[191].mxu0  ;;  %v35598_v25 = vmax.f32 %v35596_v6, %v35597_v31  ;;  %v35605_v8 = vld [vmem:[#allocation11_spill] sm:$0xff]  ;;  %v35612_v31 = vld [vmem:[#allocation148_spill] sm:$0xff] }
 0x46e   : > { %35591 = vst [vmem:[#allocation137_spill] sm:$0xff] %v31974_v55  ;;  %v31984_v61 = vpack.c.bf16 %v6110_v48, %v6109_v28  ;;  %v31986_v19 = vpack.c.bf16 %v6111_v42, %v6110_v48  ;;  %v5675_v33 = vmax.f32 %v31439_v5, %v4994_v45  ;;  %v29747_v28 = vld [vmem:[%s30131_s21 + $0x8b8] sm:$0xff]   ;;  %v35610_v6 = vld [vmem:[#allocation147_spill] sm:$0xff] }
 0x46f   : > { %35592 = vst [vmem:[#allocation138_spill] sm:$0xff] %v31978_v44  ;;  %v5818_v11 = vmax.f32 %v35598_v25, %v5674_v14  ;;  %v5971_v10 = vadd.f32 %v31886_v34, %v5820_v38  ;;  %v5821_v53 = vmax.f32 %v35600_v15, %v5677_v43  ;;  %25838 = vmatmul.mubr.msk.bf16.gmra.mrb[40].mxu0 %vm2309_vm2, %v29743_v36 }
 0x470   : > { %35594 = vst [vmem:[#allocation139_spill] sm:$0xff] %v31984_v61  ;;  %35595 = vst [vmem:[#allocation9_spill] sm:$0xff] %v31986_v19  ;;  %v5819_v59 = vmax.f32 %v35602_v9, %v5675_v33  ;;  %25841 = vmatprep.mubr.msk.bf16.mxu0 %vm2309_vm2, %v29746_v22  ;;  %v35606_v22 = vld [vmem:[#allocation146_spill] sm:$0xff]  ;;  %v35611_v21 = vmax.f32 %v30296_v24, %v35610_v6  ;;  %v35613_v25 = vmax.f32 %v30299_v26, %v35612_v31  ;;  %v35777_v19 = vld [vmem:[#allocation184_spill] sm:$0xff] }
 0x471   : > { %v5969_v13 = vadd.f32 %v31886_v34, %v5818_v11  ;;  %v5972_v63 = vadd.f32 %v31886_v34, %v5821_v53  ;;  %v6115_v46 = vmax.f32 %v5971_v10, 0.0  ;;  %v35785_v61 = vld [vmem:[#allocation48_spill] sm:$0xff] }
 0x472   : > { %v5970_v5 = vadd.f32 %v31886_v34, %v5819_v59  ;;  %v25735_v4 = vpop.f32.mrb[192].mxu0 }
 0x473   : > { %v6116_v23 = vmax.f32 %v5972_v63, 0.0  ;;  %v5680_v18 = vmax.f32 %v31443_v1, %v25735_v4  ;;  %v5007_v17 = vpop.f32.mrb[193].mxu0  ;;  %v6113_v0 = vmax.f32 %v5969_v13, 0.0  ;;  %v35607_v1 = vmax.f32 %v35605_v8, %v35606_v22 }
 0x474   : > { %v6114_v16 = vmax.f32 %v5970_v5, 0.0  ;;  %v5678_v42 = vmax.f32 %v31445_v58, %v5007_v17  ;;  %v25736_v12 = vpop.f32.mrb[194].mxu0  ;;  %v29754_v5 = vld [vmem:[%s30131_s21 + $0x8d0] sm:$0xff]  }
 0x475   : > { %v32008_v39 = vpack.c.bf16 %v6116_v23, %v6115_v46  ;;  %v5824_v36 = vmax.f32 %v35604_v40, %v5680_v18  ;;  %v5681_v48 = vmax.f32 %v31448_v60, %v25736_v12  ;;  %v5010_v14 = vpop.f32.mrb[195].mxu0 }
 0x476   : > { %v5822_v49 = vmax.f32 %v35607_v1, %v5678_v42  ;;  %v5679_v38 = vmax.f32 %v31451_v57, %v5010_v14  ;;  %v32018_v43 = vpack.c.bf16 %v6114_v16, %v6113_v0  ;;  %v32020_v58 = vpack.c.bf16 %v6115_v46, %v6114_v16  ;;  %v35618_v16 = vld [vmem:[#allocation149_spill] sm:$0xff]  ;;  %v35623_v14 = vld [vmem:[#allocation151_spill] sm:$0xff] }
 0x477   : > { %35603 = vst [vmem:[#allocation140_spill] sm:$0xff] %v32008_v39  ;;  %v5975_v45 = vadd.f32 %v31886_v34, %v5824_v36  ;;  %v5825_v47 = vmax.f32 %v35611_v21, %v5681_v48  ;;  %25842 = vmatmul.mubr.msk.bf16.gmra.mrb[44].mxu0 %vm2309_vm2, %v29747_v28  ;;  %v35615_v46 = vmax.f32 %v30303_v27, %v30775_v62  ;;  %v29767_v27 = vld [vmem:[%s34628_s3 + $0x248] sm:$0xff]  }
 0x478   : > { %35608 = vst [vmem:[#allocation141_spill] sm:$0xff] %v32018_v43  ;;  %35609 = vst [vmem:[#allocation142_spill] sm:$0xff] %v32020_v58  ;;  %v5973_v60 = vadd.f32 %v31886_v34, %v5822_v49  ;;  %v5823_v57 = vmax.f32 %v35613_v25, %v5679_v38  ;;  %25845 = vmatprep.mubr.msk.bf16.mxu0 %vm2309_vm2, %v29750_v20  ;;  %v35620_v62 = vld [vmem:[#allocation150_spill] sm:$0xff]  ;;  %v35625_v49 = vld [vmem:[#allocation384_spill] sm:$0xff] }
 0x479   : > { %v5976_v11 = vadd.f32 %v31886_v34, %v5825_v47  ;;  %v6119_v15 = vmax.f32 %v5975_v45, 0.0  ;;  %v35621_v40 = vmax.f32 %v30308_v30, %v35620_v62  ;;  %v35626_v47 = vld [vmem:[#allocation272_spill] sm:$0xff] }
 0x47a   : > { %v6117_v33 = vmax.f32 %v5973_v60, 0.0  ;;  %v5974_v10 = vadd.f32 %v31886_v34, %v5823_v57  ;;  %v25739_v29 = vpop.f32.mrb[196].mxu0  ;;  %v29755_v25 = vld [vmem:[%s30131_s21 + $0x8d8] sm:$0xff]   ;;  %v29768_v57 = vld [vmem:[%s34628_s3 + $0x250] sm:$0xff]  }
 0x47b   : > { %v6120_v24 = vmax.f32 %v5976_v11, 0.0  ;;  %v5684_v53 = vmax.f32 %v31455_v56, %v25739_v29  ;;  %v5023_v13 = vpop.f32.mrb[197].mxu0  ;;  %v32049_v56 = vld [vmem:[%s34628_s3 + $0x40] sm:$0xff]   ;;  %v35640_v62 = vld [vmem:[#allocation16_spill] sm:$0xff] }
 0x47c   : > { %v32036_v9 = vpack.c.bf16 %v6117_v33, %v6116_v23  ;;  %v6118_v59 = vmax.f32 %v5974_v10, 0.0  ;;  %v5682_v26 = vmax.f32 %v31457_v37, %v5023_v13  ;;  %v25740_v63 = vpop.f32.mrb[198].mxu0  ;;  %v35617_v37 = vld [vmem:[#allocation12_spill] sm:$0xff]  ;;  %25941 = vmatprep.subr.bf16.mxu0 %v32049_v56  ;;  %v35628_v10 = vld [vmem:[#allocation273_spill] sm:$0xff]  ;;  %v35629_v13 = vld [vmem:[#allocation14_spill] sm:$0xff] }
 0x47d   : > { %v32040_v4 = vpack.c.bf16 %v6120_v24, %v6119_v15  ;;  %v5828_v18 = vmax.f32 %v35615_v46, %v5684_v53  ;;  %v5685_v17 = vmax.f32 %v31460_v54, %v25740_v63  ;;  %v5026_v28 = vpop.f32.mrb[199].mxu0  ;;  %v35619_v42 = vmax.f32 %v35617_v37, %v35618_v16  ;;  %v29758_v53 = vld [vmem:[%s30131_s21 + $0x8e0] sm:$0xff]   ;;  %v35632_v63 = vld [vmem:[#allocation274_spill] sm:$0xff] }
 0x47e   : > { %35614 = vst [vmem:[#allocation10_spill] sm:$0xff] %v32036_v9  ;;  %v32051_v23 = vpack.c.bf16 %v6118_v59, %v6117_v33  ;;  %v32053_v0 = vpack.c.bf16 %v6119_v15, %v6118_v59  ;;  %v5683_v20 = vmax.f32 %v31463_v51, %v5026_v28  ;;  %26517 = vmatprep.mubr.bf16.mxu1 %v32036_v9  ;;  %v35622_v51 = vld [vmem:[#allocation13_spill] sm:$0xff]  ;;  %v35635_v28 = vld [vmem:[#allocation15_spill] sm:$0xff] }
 0x47f   : > { %v5826_v12 = vmax.f32 %v35619_v42, %v5682_v26  ;;  %v5979_v54 = vadd.f32 %v31886_v34, %v5828_v18  ;;  %v5829_v36 = vmax.f32 %v35621_v40, %v5685_v17  ;;  %25846 = vmatmul.mubr.msk.bf16.gmra.mrb[48].mxu0 %vm2309_vm2, %v29751_v52  ;;  %v35624_v8 = vmax.f32 %v35622_v51, %v35623_v14  ;;  %v35630_v52 = vld [vmem:[#allocation152_spill] sm:$0xff]  ;;  %v35638_v42 = vld [vmem:[#allocation275_spill] sm:$0xff]  ;;  %v35641_v40 = vld [vmem:[#allocation154_spill] sm:$0xff] }
 0x480   : > { %35616 = vst [vmem:[#allocation143_spill] sm:$0xff] %v32053_v0  ;;  %26518 = vmatmul.mubr.bf16.vlgmr.msra.gmra.mrb[0].mxu1 %v32053_v0  ;;  %25849 = vmatprep.mubr.msk.bf16.mxu0 %vm2309_vm2, %v29754_v5  ;;  %v35631_v59 = vmax.f32 %v35629_v13, %v35630_v52  ;;  %v35643_v14 = vld [vmem:[#allocation17_spill] sm:$0xff]  ;;  %v35649_v52 = vld [vmem:[#allocation18_spill] sm:$0xff] }
 0x481   : > { %v5977_v48 = vadd.f32 %v31886_v34, %v5826_v12  ;;  %v5827_v22 = vmax.f32 %v35624_v8, %v5683_v20  ;;  %v5980_v1 = vadd.f32 %v31886_v34, %v5829_v36  ;;  %26582 = vmatpush3.bf16.msra.mxu1 %v35625_v49  ;;  %v6123_v6 = vmax.f32 %v5979_v54, 0.0  ;;  %v29769_v54 = vld [vmem:[%s34628_s3 + $0x258] sm:$0xff]   ;;  %v35644_v8 = vld [vmem:[#allocation155_spill] sm:$0xff] }
 0x482   : > { %v25743_v45 = vpop.f32.mrb[200].mxu0  ;;  %26583 = vmatprep.subr.bf16.mxu1 %v29767_v27  ;;  %v35642_v36 = vmax.f32 %v35640_v62, %v35641_v40  ;;  %v29774_v40 = vld [vmem:[%s34628_s3 + $0x268] sm:$0xff]  }
 0x483   : > { %v6121_v30 = vmax.f32 %v5977_v48, 0.0  ;;  %v5978_v38 = vadd.f32 %v31886_v34, %v5827_v22  ;;  %v6124_v21 = vmax.f32 %v5980_v1, 0.0  ;;  %v5688_v60 = vmax.f32 %v35626_v47, %v25743_v45  ;;  %v5039_v31 = vpop.f32.mrb[201].mxu0  ;;  %v29770_v45 = vld [vmem:[%s34628_s3 + $0x260] sm:$0xff]   ;;  %v35646_v47 = vld [vmem:[#allocation276_spill] sm:$0xff] }
 0x484   : > { %v5686_v29 = vmax.f32 %v35628_v10, %v5039_v31  ;;  %v25744_v15 = vpop.f32.mrb[202].mxu0  ;;  %v35645_v22 = vmax.f32 %v35643_v14, %v35644_v8  ;;  %v35660_v14 = vld [vmem:[#allocation158_spill] sm:$0xff] }
 0x485   : > { %v32083_v11 = vpack.c.bf16 %v6121_v30, %v6120_v24  ;;  %v6122_v33 = vmax.f32 %v5978_v38, 0.0  ;;  %v5832_v26 = vmax.f32 %v35631_v59, %v5688_v60  ;;  %v5689_v5 = vmax.f32 %v35632_v63, %v25744_v15  ;;  %v5042_v46 = vpop.f32.mrb[203].mxu0  ;;  %26584 = vmatpush3.bf16.msra.mxu1 %v29767_v27  ;;  %v35636_v24 = vld [vmem:[#allocation153_spill] sm:$0xff]  ;;  %v35650_v59 = vld [vmem:[#allocation156_spill] sm:$0xff] }
 0x486   : > { %v32091_v18 = vpack.c.bf16 %v6124_v21, %v6123_v6  ;;  %v35637_v37 = vmax.f32 %v35635_v28, %v35636_v24  ;;  %v5687_v12 = vmax.f32 %v35638_v42, %v5042_v46  ;;  %26585 = vmatprep.subr.bf16.mxu1 %v29768_v57  ;;  %v35653_v24 = vld [vmem:[#allocation19_spill] sm:$0xff] }
 0x487   : > { %35627 = vst [vmem:[#allocation144_spill] sm:$0xff] %v32083_v11  ;;  %v32093_v17 = vpack.c.bf16 %v6122_v33, %v6121_v30  ;;  %26521 = vmatprep.mubr.bf16.mxu1 %v32083_v11  ;;  %v32100_v20 = vpack.c.bf16 %v6123_v6, %v6122_v33  ;;  %v5983_v27 = vadd.f32 %v31886_v34, %v5832_v26 }
 0x488   : > { %35633 = vst [vmem:[#allocation145_spill] sm:$0xff] %v32091_v18  ;;  %v5830_v16 = vmax.f32 %v35637_v37, %v5686_v29  ;;  %v5833_v48 = vmax.f32 %v35642_v36, %v5689_v5  ;;  %25850 = vmatmul.mubr.msk.bf16.gmra.mrb[52].mxu0 %vm2309_vm2, %v29755_v25  ;;  %v5831_v1 = vmax.f32 %v35645_v22, %v5687_v12  ;;  %v29759_v25 = vld [vmem:[%s30131_s21 + $0x8e8] sm:$0xff]   ;;  %v35647_v29 = vld [vmem:[#allocation277_spill] sm:$0xff]  ;;  %v35656_v12 = vld [vmem:[#allocation279_spill] sm:$0xff] }
 0x489   : > { %35634 = vst [vmem:[#allocation11_spill] sm:$0xff] %v32093_v17  ;;  %35639 = vst [vmem:[#allocation146_spill] sm:$0xff] %v32100_v20  ;;  %26522 = vmatmul.mubr.bf16.gmra.mrb[4].mxu1 %v32100_v20  ;;  %25853 = vmatprep.mubr.msk.bf16.mxu0 %vm2309_vm2, %v29758_v53  ;;  %v6127_v6 = vmax.f32 %v5983_v27, 0.0  ;;  %v35651_v26 = vmax.f32 %v35649_v52, %v35650_v59  ;;  %v35652_v5 = vld [vmem:[#allocation278_spill] sm:$0xff]  ;;  %v35654_v37 = vld [vmem:[#allocation157_spill] sm:$0xff] }
 0x48a   : > { %v5981_v51 = vadd.f32 %v31886_v34, %v5830_v16  ;;  %v5984_v49 = vadd.f32 %v31886_v34, %v5833_v48  ;;  %26586 = vmatpush3.bf16.msra.mxu1 %v29768_v57  ;;  %v5982_v30 = vadd.f32 %v31886_v34, %v5831_v1  ;;  %v25747_v38 = vpop.f32.mrb[204].mxu0  ;;  %v29762_v57 = vld [vmem:[%s30131_s21 + $0x8f0] sm:$0xff]   ;;  %v35655_v16 = vmax.f32 %v35653_v24, %v35654_v37  ;;  %v35662_v1 = vld [vmem:[#allocation21_spill] sm:$0xff]  ;;  %v35670_v37 = vld [vmem:[#allocation282_spill] sm:$0xff] }
 0x48b   : > { %26587 = vmatprep.subr.bf16.mxu1 %v29769_v54  ;;  %v5692_v60 = vmax.f32 %v35646_v47, %v25747_v38  ;;  %v5055_v31 = vpop.f32.mrb[205].mxu0  ;;  %v32358_v20 = vld [vmem:[%s34628_s3 + $0x280] sm:$0xff]  }
 0x48c   : > { %v6128_v21 = vmax.f32 %v5984_v49, 0.0  ;;  %v6125_v33 = vmax.f32 %v5981_v51, 0.0  ;;  %v6126_v10 = vmax.f32 %v5982_v30, 0.0  ;;  %v5690_v15 = vmax.f32 %v35647_v29, %v5055_v31  ;;  %v25748_v53 = vpop.f32.mrb[206].mxu0  ;;  %v35659_v51 = vld [vmem:[#allocation20_spill] sm:$0xff]  ;;  %v35663_v49 = vld [vmem:[#allocation159_spill] sm:$0xff] }
 0x48d   : > { %v5836_v63 = vmax.f32 %v35651_v26, %v5692_v60  ;;  %v5693_v46 = vmax.f32 %v35652_v5, %v25748_v53  ;;  %v5058_v28 = vpop.f32.mrb[207].mxu0  ;;  %v35664_v30 = vmax.f32 %v35662_v1, %v35663_v49  ;;  %v35665_v29 = vld [vmem:[#allocation280_spill] sm:$0xff]  ;;  %v35666_v26 = vld [vmem:[#allocation281_spill] sm:$0xff]  ;;  %v35677_v49 = vld [vmem:[#allocation162_spill] sm:$0xff] }
 0x48e   : > { %v32125_v13 = vpack.c.bf16 %v6128_v21, %v6127_v6  ;;  %26588 = vmatpush3.bf16.msra.mxu1 %v29769_v54  ;;  %v5834_v42 = vmax.f32 %v35655_v16, %v5690_v15  ;;  %v5691_v27 = vmax.f32 %v35656_v12, %v5058_v28  ;;  %v32135_v62 = vpack.c.bf16 %v6126_v10, %v6125_v33  ;;  %v29763_v53 = vld [vmem:[%s30131_s21 + $0x8f8] sm:$0xff]   ;;  %s269_s21 = sand.u32 1, %s30018_s25  }
 0x48f   : > { %26589 = vmatprep.subr.bf16.mxu1 %v29770_v45  ;;  %v32140_v36 = vpack.c.bf16 %v6127_v6, %v6126_v10  ;;  %v5987_v48 = vadd.f32 %v31886_v34, %v5836_v63  ;;  %v35661_v54 = vmax.f32 %v35659_v51, %v35660_v14  ;;  %v35676_v1 = vld [vmem:[#allocation24_spill] sm:$0xff]  ;;  %s22803_s17 = sshll.u32 %s269_s21, 3  ;;  %s22727_s8 = scalar_lea.sflag [#allocation5], %s269_s21 }
 0x490   : > { %35648 = vst [vmem:[#allocation147_spill] sm:$0xff] %v32125_v13  ;;  %35657 = vst [vmem:[#allocation148_spill] sm:$0xff] %v32135_v62  ;;  %25854 = vmatmul.mubr.msk.bf16.gmra.mrb[56].mxu0 %vm2309_vm2, %v29759_v25  ;;  %v5985_v22 = vadd.f32 %v31886_v34, %v5834_v42  ;;  %v5835_v38 = vmax.f32 %v35664_v30, %v5691_v27  ;;  %v35678_v30 = vmax.f32 %v35676_v1, %v35677_v49  ;;  %v35690_v1 = vld [vmem:[#allocation165_spill] sm:$0xff]  ;;  %s271_s19 = scalar_lea.vmem [#allocation4], %s22803_s17 }
 0x491   : > { %35658 = vst [vmem:[#allocation12_spill] sm:$0xff] %v32140_v36  ;;  %v5837_v8 = vmax.f32 %v35661_v54, %v5693_v46  ;;  %25857 = vmatprep.mubr.msk.bf16.mxu0 %vm2309_vm2, %v29762_v57  ;;  %v6131_v33 = vmax.f32 %v5987_v48, 0.0  ;;  %v35668_v46 = vld [vmem:[#allocation160_spill] sm:$0xff]  ;;  %v35673_v48 = vld [vmem:[#allocation161_spill] sm:$0xff]  ;;  %v35675_v54 = vld [vmem:[#allocation283_spill] sm:$0xff]  ;;  %s22740_s20 = sshll.u32 %s271_s19, 4  ;;  %s34585_s20 = int_to_ptr.vmem [resolvable:$true] %s22740_s20 }
 0x492   : > { %26590 = vmatpush3.bf16.msra.mxu1 %v29770_v45  ;;  %v6129_v47 = vmax.f32 %v5985_v22, 0.0  ;;  %v5986_v60 = vadd.f32 %v31886_v34, %v5835_v38  ;;  %v25751_v31 = vpop.f32.mrb[208].mxu0  ;;  %v35667_v45 = vld [vmem:[#allocation22_spill] sm:$0xff]  ;;  %s29964_s9 = scalar_lea.vmem %s34585_s20, 128  ;;  %p29971_p0 = scmp.lt.s32.totalorder %s34585_s20, %s29969_s13 }
 0x493   : > { %v5988_v6 = vadd.f32 %v31886_v34, %v5837_v8  ;;  %26591 = vmatprep.subr.bf16.mxu1 %v29774_v40  ;;  %v5696_v25 = vmax.f32 %v35665_v29, %v25751_v31  ;;  %v5071_v15 = vpop.f32.mrb[209].mxu0  ;;  %v35669_v28 = vmax.f32 %v35667_v45, %v35668_v46  ;;  %p29965_p11 = scmp.ne.s32.totalorder %s34585_s20, %s29964_s9  ;;  %p29972_p1 = scmp.lt.s32.totalorder %s29970_s14, %s29964_s9 }
 0x494   : > { %v32156_v52 = vpack.c.bf16 %v6129_v47, %v6128_v21  ;;  %v6130_v59 = vmax.f32 %v5986_v60, 0.0  ;;  %v5694_v63 = vmax.f32 %v35666_v26, %v5071_v15  ;;  %v25752_v57 = vpop.f32.mrb[210].mxu0  ;;  %v35672_v21 = vld [vmem:[#allocation23_spill] sm:$0xff] }
 0x495   : > { %v6132_v10 = vmax.f32 %v5988_v6, 0.0  ;;  %v5840_v24 = vmax.f32 %v35669_v28, %v5696_v25  ;;  %v5697_v16 = vmax.f32 %v35670_v37, %v25752_v57  ;;  %v5074_v42 = vpop.f32.mrb[211].mxu0  ;;  %v35674_v51 = vmax.f32 %v35672_v21, %v35673_v48  ;;  %v35679_v6 = vld [vmem:[#allocation25_spill] sm:$0xff]  ;;  %v35687_v48 = vld [vmem:[#allocation286_spill] sm:$0xff]  ;;  %p29966_p12 = pnand %p29965_p11, %p30110_p5  ;;  %p29973_p2 = por %p29972_p1, %p29971_p0 }
 0x496   : > { %26592 = vmatpush3.bf16.msra.mxu1 %v29774_v40  ;;  %v32165_v12 = vpack.c.bf16 %v6130_v59, %v6129_v47  ;;  %v32167_v27 = vpack.c.bf16 %v6131_v33, %v6130_v59  ;;  %v5695_v8 = vmax.f32 %v35675_v54, %v5074_v42  ;;  %26525 = vmatprep.mubr.bf16.mxu1 %v32156_v52  ;;  %v35680_v47 = vld [vmem:[#allocation163_spill] sm:$0xff]  ;;  %v35683_v28 = vld [vmem:[#allocation285_spill] sm:$0xff] }
 0x497   : > { %v32159_v5 = vpack.c.bf16 %v6132_v10, %v6131_v33  ;;  %v5838_v14 = vmax.f32 %v35674_v51, %v5694_v63  ;;  %v5991_v22 = vadd.f32 %v31886_v34, %v5840_v24  ;;  %v5841_v38 = vmax.f32 %v35678_v30, %v5697_v16  ;;  %v35682_v63 = vld [vmem:[#allocation284_spill] sm:$0xff]  ;;  %v35692_v30 = vld [vmem:[#allocation287_spill] sm:$0xff]  ;;  %p29967_p13 = pneg %p29966_p12 }
 0x498   : > { %35671 = vst [vmem:[#allocation149_spill] sm:$0xff] %v32167_v27  ;;  %25858 = vmatmul.mubr.msk.bf16.gmra.mrb[60].mxu0 %vm2309_vm2, %v29763_v53  ;;  %v35681_v60 = vmax.f32 %v35679_v6, %v35680_v47  ;;  %26526 = vmatmul.mubr.bf16.gmra.mrb[8].mxu1 %v32167_v27  ;;  %v35685_v16 = vld [vmem:[#allocation164_spill] sm:$0xff]  ;;  %v29772_v6 = vld [vmem:[%s34628_s3 + $0x48] sm:$0xff]   ;;  %v29779_v47 = vld [vmem:[%s34628_s3 + $0x270] sm:$0xff]  }
 0x499   : > { %v5989_v40 = vadd.f32 %v31886_v34, %v5838_v14  ;;  %25877 = vmatprep.mubr.bf16.mxu0 %v31924_v35  ;;  %v5992_v33 = vadd.f32 %v31886_v34, %v5841_v38  ;;  %v6135_v59 = vmax.f32 %v5991_v22, 0.0  ;;  %v35684_v35 = vld [vmem:[#allocation26_spill] sm:$0xff]  ;;  %v35689_v22 = vld [vmem:[#allocation27_spill] sm:$0xff]  ;;  %26593 = vmatprep.subr.bf16.mxu1 %v29779_v47  ;;  %p29974_p3 = pnand %p29973_p2, %p29967_p13 }
 0x49a   : > { %v5839_v31 = vmax.f32 %v35681_v60, %v5695_v8  ;;  %v25755_v15 = vpop.f32.mrb[212].mxu0  ;;  %v35686_v42 = vmax.f32 %v35684_v35, %v35685_v16  ;;  %v35691_v49 = vmax.f32 %v35689_v22, %v35690_v1  ;;  %26594 = vmatpush3.bf16.msra.mxu1 %v29779_v47  ;;  %v35700_v16 = vld [vmem:[#allocation288_spill] sm:$0xff] }
 0x49b   : > { %v6133_v29 = vmax.f32 %v5989_v40, 0.0  ;;  %v6136_v26 = vmax.f32 %v5992_v33, 0.0  ;;  %v5700_v53 = vmax.f32 %v35682_v63, %v25755_v15  ;;  %v5087_v57 = vpop.f32.mrb[213].mxu0  ;;  %v35695_v33 = vld [vmem:[#allocation166_spill] sm:$0xff] }
 0x49c   : > { %v5990_v25 = vadd.f32 %v31886_v34, %v5839_v31  ;;  %v5698_v24 = vmax.f32 %v35683_v28, %v5087_v57  ;;  %v25756_v37 = vpop.f32.mrb[214].mxu0  ;;  %v35694_v31 = vld [vmem:[#allocation28_spill] sm:$0xff] }
 0x49d   : > { %v32188_v45 = vpack.c.bf16 %v6133_v29, %v6132_v10  ;;  %v5844_v21 = vmax.f32 %v35686_v42, %v5700_v53  ;;  %v5701_v51 = vmax.f32 %v35687_v48, %v25756_v37  ;;  %v5090_v14 = vpop.f32.mrb[215].mxu0  ;;  %v32195_v54 = vpack.c.bf16 %v6136_v26, %v6135_v59  ;;  %v35698_v26 = vld [vmem:[#allocation167_spill] sm:$0xff] }
 0x49e   : > { %v6134_v46 = vmax.f32 %v5990_v25, 0.0  ;;  %v5842_v10 = vmax.f32 %v35691_v49, %v5698_v24  ;;  %v5699_v38 = vmax.f32 %v35692_v30, %v5090_v14  ;;  %v29773_v24 = vld [vmem:[%s34628_s3 + $0x50] sm:$0xff]   ;;  %v35701_v14 = vld [vmem:[#allocation289_spill] sm:$0xff]  ;;  %v35703_v49 = vld [vmem:[#allocation30_spill] sm:$0xff] }
 0x49f   : > { %35688 = vst [vmem:[#allocation150_spill] sm:$0xff] %v32195_v54  ;;  %26529 = vmatprep.mubr.bf16.mxu1 %v32188_v45  ;;  %v5995_v60 = vadd.f32 %v31886_v34, %v5844_v21 }
 0x4a0   : > { %v32197_v8 = vpack.c.bf16 %v6134_v46, %v6133_v29  ;;  %v32204_v40 = vpack.c.bf16 %v6135_v59, %v6134_v46  ;;  %v35696_v29 = vmax.f32 %v35694_v31, %v35695_v33  ;;  %25878 = vmatmul.mubr.bf16.vlgmr.msra.gmra.mrb[64].mxu0 %v31914_v50  ;;  %v5993_v15 = vadd.f32 %v31886_v34, %v5842_v10  ;;  %v35697_v59 = vld [vmem:[#allocation29_spill] sm:$0xff]  ;;  %v35704_v10 = vld [vmem:[#allocation168_spill] sm:$0xff]  ;;  %v35706_v31 = vld [vmem:[#allocation290_spill] sm:$0xff] }
 0x4a1   : > { %v35699_v63 = vmax.f32 %v35697_v59, %v35698_v26  ;;  %25881 = vmatprep.mubr.bf16.mxu0 %v31956_v3  ;;  %25942 = vmatpush3.bf16.msra.mxu0 %v32049_v56  ;;  %v6139_v37 = vmax.f32 %v5995_v60, 0.0  ;;  %v35705_v30 = vmax.f32 %v35703_v49, %v35704_v10  ;;  %v35804_v3 = vld [vmem:[#allocation311_spill] sm:$0xff] }
 0x4a2   : > { %35693 = vst [vmem:[#allocation13_spill] sm:$0xff] %v32204_v40  ;;  %v5845_v25 = vmax.f32 %v35696_v29, %v5701_v51  ;;  %26530 = vmatmul.mubr.bf16.gmra.mrb[12].mxu1 %v32204_v40  ;;  %v25759_v28 = vpop.f32.mrb[216].mxu0  ;;  %25943 = vmatprep.subr.bf16.mxu0 %v29772_v6  ;;  %v6137_v48 = vmax.f32 %v5993_v15, 0.0  ;;  %v35710_v15 = vld [vmem:[#allocation169_spill] sm:$0xff] }
 0x4a3   : > { %v5843_v53 = vmax.f32 %v35699_v63, %v5699_v38  ;;  %v5704_v42 = vmax.f32 %v35700_v16, %v25759_v28  ;;  %v5103_v21 = vpop.f32.mrb[217].mxu0  ;;  %v35712_v63 = vld [vmem:[#allocation291_spill] sm:$0xff]  ;;  %v35713_v28 = vld [vmem:[#allocation32_spill] sm:$0xff]  ;;  %v35714_v16 = vld [vmem:[#allocation170_spill] sm:$0xff] }
 0x4a4   : > { %v5996_v57 = vadd.f32 %v31886_v34, %v5845_v25  ;;  %v5702_v22 = vmax.f32 %v35701_v14, %v5103_v21  ;;  %v25760_v56 = vpop.f32.mrb[218].mxu0  ;;  %v35709_v25 = vld [vmem:[#allocation31_spill] sm:$0xff]  ;;  %v35716_v21 = vld [vmem:[#allocation33_spill] sm:$0xff] }
 0x4a5   : > { %v5994_v46 = vadd.f32 %v31886_v34, %v5843_v53  ;;  %v5848_v38 = vmax.f32 %v35705_v30, %v5704_v42  ;;  %v5705_v33 = vmax.f32 %v35706_v31, %v25760_v56  ;;  %v5106_v29 = vpop.f32.mrb[219].mxu0  ;;  %25944 = vmatpush3.bf16.msra.mxu0 %v29772_v6  ;;  %v35711_v59 = vmax.f32 %v35709_v25, %v35710_v15  ;;  %v35719_v31 = vld [vmem:[#allocation292_spill] sm:$0xff]  ;;  %v29776_v25 = vld [vmem:[%s34628_s3 + $0x60] sm:$0xff]  }
 0x4a6   : > { %v6140_v35 = vmax.f32 %v5996_v57, 0.0  ;;  %v5703_v53 = vmax.f32 %v35712_v63, %v5106_v29  ;;  %25945 = vmatprep.subr.bf16.mxu0 %v29773_v24  ;;  %v29775_v57 = vld [vmem:[%s34628_s3 + $0x58] sm:$0xff]   ;;  %v35715_v6 = vmax.f32 %v35713_v28, %v35714_v16  ;;  %v35721_v28 = vld [vmem:[#allocation34_spill] sm:$0xff] }
 0x4a7   : > { %v6138_v51 = vmax.f32 %v5994_v46, 0.0  ;;  %v5846_v26 = vmax.f32 %v35711_v59, %v5702_v22  ;;  %v5999_v46 = vadd.f32 %v31886_v34, %v5848_v38  ;;  %v35722_v16 = vld [vmem:[#allocation172_spill] sm:$0xff] }
 0x4a8   : > { %v32231_v1 = vpack.c.bf16 %v6140_v35, %v6139_v37  ;;  %v5849_v42 = vmax.f32 %v35715_v6, %v5705_v33  ;;  %25882 = vmatmul.mubr.bf16.gmra.mrb[68].mxu0 %v31946_v2  ;;  %v35723_v6 = vmax.f32 %v35721_v28, %v35722_v16  ;;  %v35733_v28 = vld [vmem:[#allocation175_spill] sm:$0xff] }
 0x4a9   : > { %v32237_v47 = vpack.c.bf16 %v6138_v51, %v6137_v48  ;;  %v32239_v60 = vpack.c.bf16 %v6139_v37, %v6138_v51  ;;  %v5997_v37 = vadd.f32 %v31886_v34, %v5846_v26  ;;  %v35717_v48 = vld [vmem:[#allocation171_spill] sm:$0xff]  ;;  %25885 = vmatprep.mubr.bf16.mxu0 %v32018_v43  ;;  %25946 = vmatpush3.bf16.msra.mxu0 %v29773_v24  ;;  %v6143_v30 = vmax.f32 %v5999_v46, 0.0  ;;  %v35720_v26 = vld [vmem:[#allocation293_spill] sm:$0xff] }
 0x4aa   : > { %35702 = vst [vmem:[#allocation151_spill] sm:$0xff] %v32231_v1  ;;  %v35718_v51 = vmax.f32 %v35716_v21, %v35717_v48  ;;  %v6000_v22 = vadd.f32 %v31886_v34, %v5849_v42  ;;  %v25763_v10 = vpop.f32.mrb[220].mxu0  ;;  %25947 = vmatprep.subr.bf16.mxu0 %v29775_v57  ;;  %v35724_v42 = vld [vmem:[#allocation294_spill] sm:$0xff]  ;;  %v35744_v43 = vld [vmem:[#allocation177_spill] sm:$0xff] }
 0x4ab   : > { %35707 = vst [vmem:[#allocation384_spill] sm:$0xff] %v32237_v47  ;;  %35708 = vst [vmem:[#allocation272_spill] sm:$0xff] %v32239_v60  ;;  %v6141_v56 = vmax.f32 %v5997_v37, 0.0  ;;  %v5708_v33 = vmax.f32 %v35719_v31, %v25763_v10  ;;  %v5119_v29 = vpop.f32.mrb[221].mxu0  ;;  %v35728_v10 = vld [vmem:[#allocation295_spill] sm:$0xff] }
 0x4ac   : > { %v5847_v14 = vmax.f32 %v35718_v51, %v5703_v53  ;;  %v6144_v38 = vmax.f32 %v6000_v22, 0.0  ;;  %v5706_v63 = vmax.f32 %v35720_v26, %v5119_v29  ;;  %v25764_v24 = vpop.f32.mrb[222].mxu0  ;;  %v35730_v29 = vld [vmem:[#allocation174_spill] sm:$0xff] }
 0x4ad   : > { %v32264_v15 = vpack.c.bf16 %v6141_v56, %v6140_v35  ;;  %v5852_v46 = vmax.f32 %v35723_v6, %v5708_v33  ;;  %v5709_v37 = vmax.f32 %v35724_v42, %v25764_v24  ;;  %v5122_v21 = vpop.f32.mrb[223].mxu0  ;;  %25948 = vmatpush3.bf16.msra.mxu0 %v29775_v57  ;;  %v35725_v35 = vld [vmem:[#allocation35_spill] sm:$0xff]  ;;  %v29777_v33 = vld [vmem:[%s34628_s3 + $0x68] sm:$0xff]   ;;  %v29781_v57 = vld [vmem:[%s34628_s3 + $0x278] sm:$0xff]  }
 0x4ae   : > { %v5998_v49 = vadd.f32 %v31886_v34, %v5847_v14  ;;  %v32267_v53 = vpack.c.bf16 %v6144_v38, %v6143_v30  ;;  %v35726_v14 = vld [vmem:[#allocation173_spill] sm:$0xff]  ;;  %v5707_v31 = vmax.f32 %v35728_v10, %v5122_v21  ;;  %25949 = vmatprep.subr.bf16.mxu0 %v29776_v25  ;;  %26595 = vmatprep.subr.bf16.mxu1 %v29781_v57 }
 0x4af   : > { %v35727_v22 = vmax.f32 %v35725_v35, %v35726_v14  ;;  %26533 = vmatprep.mubr.bf16.mxu1 %v32264_v15  ;;  %v35732_v24 = vld [vmem:[#allocation37_spill] sm:$0xff]  ;;  %26596 = vmatpush3.bf16.msra.mxu1 %v29781_v57 }
 0x4b0   : > { %v6142_v59 = vmax.f32 %v5998_v49, 0.0  ;;  %25886 = vmatmul.mubr.bf16.gmra.mrb[72].mxu0 %v32008_v39  ;;  %v35734_v16 = vmax.f32 %v35732_v24, %v35733_v28  ;;  %v35738_v24 = vld [vmem:[#allocation38_spill] sm:$0xff]  ;;  %v35739_v28 = vld [vmem:[#allocation176_spill] sm:$0xff]  ;;  %26661 = vmatprep.subr.bf16.mxu1 %v32358_v20  ;;  %v35784_v39 = vld [vmem:[#allocation307_spill] sm:$0xff] }
 0x4b1   : > { %v5850_v49 = vmax.f32 %v35727_v22, %v5706_v63  ;;  %25889 = vmatprep.mubr.bf16.mxu0 %v32051_v23  ;;  %25950 = vmatpush3.bf16.msra.mxu0 %v29776_v25  ;;  %v35735_v22 = vld [vmem:[#allocation296_spill] sm:$0xff]  ;;  %v35736_v25 = vld [vmem:[#allocation297_spill] sm:$0xff]  ;;  %v35740_v57 = vmax.f32 %v35738_v24, %v35739_v28 }
 0x4b2   : > { %v32273_v48 = vpack.c.bf16 %v6142_v59, %v6141_v56  ;;  %v32275_v51 = vpack.c.bf16 %v6143_v30, %v6142_v59  ;;  %v6003_v56 = vadd.f32 %v31886_v34, %v5852_v46  ;;  %v35729_v30 = vld [vmem:[#allocation36_spill] sm:$0xff]  ;;  %v5851_v6 = vmax.f32 %v35734_v16, %v5707_v31  ;;  %v25767_v21 = vpop.f32.mrb[224].mxu0  ;;  %25951 = vmatprep.subr.bf16.mxu0 %v29777_v33  ;;  %v29778_v31 = vld [vmem:[%s34628_s3 + $0x70] sm:$0xff]   ;;  %v35741_v16 = vld [vmem:[#allocation298_spill] sm:$0xff] }
 0x4b3   : > { %v35731_v59 = vmax.f32 %v35729_v30, %v35730_v29  ;;  %v6001_v63 = vadd.f32 %v31886_v34, %v5850_v49  ;;  %v5712_v49 = vmax.f32 %v35735_v22, %v25767_v21  ;;  %v5135_v10 = vpop.f32.mrb[225].mxu0 }
 0x4b4   : > { %26534 = vmatmul.mubr.bf16.gmra.mrb[16].mxu1 %v32275_v51  ;;  %v6147_v35 = vmax.f32 %v6003_v56, 0.0 }
 0x4b5   : > { %v5853_v26 = vmax.f32 %v35731_v59, %v5709_v37  ;;  %v6145_v46 = vmax.f32 %v6001_v63, 0.0  ;;  %v6002_v37 = vadd.f32 %v31886_v34, %v5851_v6  ;;  %v5710_v59 = vmax.f32 %v35736_v25, %v5135_v10  ;;  %25952 = vmatpush3.bf16.msra.mxu0 %v29777_v33  ;;  %v35746_v10 = vld [vmem:[#allocation299_spill] sm:$0xff]  ;;  %v35748_v33 = vld [vmem:[#allocation178_spill] sm:$0xff] }
 0x4b6   : > { %v5856_v56 = vmax.f32 %v35740_v57, %v5712_v49  ;;  %25953 = vmatprep.subr.bf16.mxu0 %v29778_v31 }
 0x4b7   : > { %v6004_v42 = vadd.f32 %v31886_v34, %v5853_v26  ;;  %v32305_v30 = vpack.c.bf16 %v6145_v46, %v6144_v38  ;;  %v6146_v29 = vmax.f32 %v6002_v37, 0.0  ;;  %v25768_v26 = vpop.f32.mrb[226].mxu0  ;;  %v35743_v38 = vld [vmem:[#allocation39_spill] sm:$0xff] }
 0x4b8   : > { %v5713_v6 = vmax.f32 %v35741_v16, %v25768_v26  ;;  %v35745_v37 = vmax.f32 %v35743_v38, %v35744_v43  ;;  %v6007_v49 = vadd.f32 %v31886_v34, %v5856_v56  ;;  %v35747_v26 = vld [vmem:[#allocation40_spill] sm:$0xff]  ;;  %25890 = vmatmul.mubr.bf16.gmra.mrb[76].mxu0 %v32040_v4 }
 0x4b9   : > { %v6148_v14 = vmax.f32 %v6004_v42, 0.0  ;;  %v5138_v42 = vpop.f32.mrb[227].mxu0  ;;  %v32314_v21 = vpack.c.bf16 %v6146_v29, %v6145_v46  ;;  %v32316_v22 = vpack.c.bf16 %v6147_v35, %v6146_v29  ;;  %26537 = vmatprep.mubr.bf16.mxu1 %v32305_v30  ;;  %v35749_v46 = vmax.f32 %v35747_v26, %v35748_v33  ;;  %v35751_v29 = vld [vmem:[#allocation179_spill] sm:$0xff]  ;;  %25893 = vmatprep.mubr.bf16.mxu0 %v32135_v62  ;;  %v35753_v38 = vld [vmem:[#allocation300_spill] sm:$0xff]  ;;  %v35754_v33 = vld [vmem:[#allocation301_spill] sm:$0xff] }
 0x4ba   : > { %v5854_v44 = vmax.f32 %v35745_v37, %v5710_v59  ;;  %v5711_v25 = vmax.f32 %v35746_v10, %v5138_v42  ;;  %25954 = vmatpush3.bf16.msra.mxu0 %v29778_v31  ;;  %v25771_v16 = vpop.f32.mrb[228].mxu0 }
 0x4bb   : > { %v32308_v63 = vpack.c.bf16 %v6148_v14, %v6147_v35  ;;  %35742 = vst [vmem:[#allocation14_spill] sm:$0xff] %v32316_v22  ;;  %v29780_v14 = vld [vmem:[%s34628_s3 + $0x78] sm:$0xff]   ;;  %v5857_v24 = vmax.f32 %v35749_v46, %v5713_v6  ;;  %v35750_v35 = vld [vmem:[#allocation41_spill] sm:$0xff]  ;;  %v6151_v6 = vmax.f32 %v6007_v49, 0.0  ;;  %v5716_v37 = vmax.f32 %v35753_v38, %v25771_v16  ;;  %v35762_v16 = vld [vmem:[#allocation43_spill] sm:$0xff] }
 0x4bc   : > { %v6005_v43 = vadd.f32 %v31886_v34, %v5854_v44  ;;  %v35752_v59 = vmax.f32 %v35750_v35, %v35751_v29  ;;  %26538 = vmatmul.mubr.bf16.gmra.mrb[20].mxu1 %v32316_v22  ;;  %25955 = vmatprep.subr.bf16.mxu0 %v29780_v14  ;;  %v5151_v44 = vpop.f32.mrb[229].mxu0  ;;  %v35756_v29 = vld [vmem:[#allocation42_spill] sm:$0xff] }
 0x4bd   : > { %35737 = vst [vmem:[#allocation273_spill] sm:$0xff] %v32308_v63  ;;  %v6008_v57 = vadd.f32 %v31886_v34, %v5857_v24  ;;  %v25772_v46 = vpop.f32.mrb[230].mxu0  ;;  %v35759_v22 = vld [vmem:[#allocation302_spill] sm:$0xff] }
 0x4be   : > { %v5855_v28 = vmax.f32 %v35752_v59, %v5711_v25  ;;  %v6149_v10 = vmax.f32 %v6005_v43, 0.0  ;;  %v5714_v25 = vmax.f32 %v35754_v33, %v5151_v44  ;;  %v35757_v59 = vld [vmem:[#allocation180_spill] sm:$0xff]  ;;  %v5154_v40 = vpop.f32.mrb[231].mxu0  ;;  %25956 = vmatpush3.bf16.msra.mxu0 %v29780_v14  ;;  %v35763_v43 = vld [vmem:[#allocation181_spill] sm:$0xff]  ;;  %v35765_v44 = vld [vmem:[#allocation303_spill] sm:$0xff] }
 0x4bf   : > { %v6152_v42 = vmax.f32 %v6008_v57, 0.0  ;;  %v35758_v24 = vmax.f32 %v35756_v29, %v35757_v59  ;;  %v5715_v33 = vmax.f32 %v35765_v44, %v5154_v40  ;;  %v35770_v29 = vld [vmem:[#allocation183_spill] sm:$0xff] }
 0x4c0   : > { %v6006_v56 = vadd.f32 %v31886_v34, %v5855_v28  ;;  %v5717_v28 = vmax.f32 %v35759_v22, %v25772_v46  ;;  %v35766_v22 = vld [vmem:[#allocation44_spill] sm:$0xff]  ;;  %v35767_v46 = vld [vmem:[#allocation182_spill] sm:$0xff]  ;;  %25894 = vmatmul.mubr.bf16.gmra.mrb[80].mxu0 %v32125_v13 }
 0x4c1   : > { %v32341_v35 = vpack.c.bf16 %v6152_v42, %v6151_v6  ;;  %v5860_v31 = vmax.f32 %v35758_v24, %v5716_v37  ;;  %v35768_v14 = vmax.f32 %v35766_v22, %v35767_v46  ;;  %25897 = vmatprep.mubr.bf16.mxu0 %v32165_v12  ;;  %v35779_v13 = vld [vmem:[#allocation306_spill] sm:$0xff] }
 0x4c2   : > { %v6150_v26 = vmax.f32 %v6006_v56, 0.0  ;;  %v35764_v56 = vmax.f32 %v35762_v16, %v35763_v43  ;;  %v25775_v16 = vpop.f32.mrb[232].mxu0 }
 0x4c3   : > { %35755 = vst [vmem:[#allocation152_spill] sm:$0xff] %v32341_v35  ;;  %v6011_v37 = vadd.f32 %v31886_v34, %v5860_v31  ;;  %v5167_v22 = vpop.f32.mrb[233].mxu0 }
 0x4c4   : > { %v32347_v49 = vpack.c.bf16 %v6150_v26, %v6149_v10  ;;  %v32349_v57 = vpack.c.bf16 %v6151_v6, %v6150_v26  ;;  %v5858_v38 = vmax.f32 %v35764_v56, %v5714_v25  ;;  %v5861_v10 = vmax.f32 %v35768_v14, %v5717_v28  ;;  %v35769_v26 = vld [vmem:[#allocation45_spill] sm:$0xff]  ;;  %v35772_v56 = vld [vmem:[#allocation304_spill] sm:$0xff] }
 0x4c5   : > { %v35771_v25 = vmax.f32 %v35769_v26, %v35770_v29  ;;  %v6155_v43 = vmax.f32 %v6011_v37, 0.0  ;;  %v5720_v44 = vmax.f32 %v35772_v56, %v25775_v16  ;;  %v35774_v14 = vld [vmem:[#allocation305_spill] sm:$0xff]  ;;  %v25776_v26 = vpop.f32.mrb[234].mxu0  ;;  %v35781_v16 = vld [vmem:[#allocation47_spill] sm:$0xff] }
 0x4c6   : > { %35760 = vst [vmem:[#allocation274_spill] sm:$0xff] %v32347_v49  ;;  %35761 = vst [vmem:[#allocation15_spill] sm:$0xff] %v32349_v57  ;;  %v6009_v6 = vadd.f32 %v31886_v34, %v5858_v38  ;;  %v6012_v40 = vadd.f32 %v31886_v34, %v5861_v10  ;;  %v5170_v62 = vpop.f32.mrb[235].mxu0 }
 0x4c7   : > { %v5859_v59 = vmax.f32 %v35771_v25, %v5715_v33  ;;  %v5718_v33 = vmax.f32 %v35774_v14, %v5167_v22  ;;  %v35776_v25 = vld [vmem:[#allocation46_spill] sm:$0xff]  ;;  %v5719_v22 = vmax.f32 %v35784_v39, %v5170_v62 }
 0x4c8   : > { %v6153_v24 = vmax.f32 %v6009_v6, 0.0  ;;  %v6156_v28 = vmax.f32 %v6012_v40, 0.0  ;;  %v35778_v10 = vmax.f32 %v35776_v25, %v35777_v19  ;;  %v35786_v19 = vld [vmem:[#allocation186_spill] sm:$0xff]  ;;  %25898 = vmatmul.mubr.bf16.gmra.mrb[84].mxu0 %v32159_v5 }
 0x4c9   : > { %v6010_v31 = vadd.f32 %v31886_v34, %v5859_v59  ;;  %v5721_v59 = vmax.f32 %v35779_v13, %v25776_v26  ;;  %25901 = vmatprep.mubr.bf16.mxu0 %v32237_v47  ;;  %v35798_v47 = vld [vmem:[#allocation310_spill] sm:$0xff] }
 0x4ca   : > { %v32374_v38 = vpack.c.bf16 %v6153_v24, %v6152_v42  ;;  %v32377_v29 = vpack.c.bf16 %v6156_v28, %v6155_v43  ;;  %v5864_v6 = vmax.f32 %v35778_v10, %v5720_v44  ;;  %v35782_v42 = vld [vmem:[#allocation185_spill] sm:$0xff]  ;;  %v35787_v44 = vmax.f32 %v35785_v61, %v35786_v19  ;;  %v25779_v10 = vpop.f32.mrb[236].mxu0 }
 0x4cb   : > { %v6154_v46 = vmax.f32 %v6010_v31, 0.0  ;;  %v35783_v56 = vmax.f32 %v35781_v16, %v35782_v42  ;;  %v5183_v42 = vpop.f32.mrb[237].mxu0  ;;  %v35793_v19 = vld [vmem:[#allocation309_spill] sm:$0xff] }
 0x4cc   : > { %35773 = vst [vmem:[#allocation153_spill] sm:$0xff] %v32374_v38  ;;  %35775 = vst [vmem:[#allocation275_spill] sm:$0xff] %v32377_v29  ;;  %26541 = vmatprep.mubr.bf16.mxu1 %v32374_v38  ;;  %v6015_v14 = vadd.f32 %v31886_v34, %v5864_v6  ;;  %v5865_v25 = vmax.f32 %v35787_v44, %v5721_v59  ;;  %v35791_v59 = vld [vmem:[#allocation308_spill] sm:$0xff]  ;;  %v25780_v44 = vpop.f32.mrb[238].mxu0 }
 0x4cd   : > { %v32383_v37 = vpack.c.bf16 %v6154_v46, %v6153_v24  ;;  %v32385_v40 = vpack.c.bf16 %v6155_v43, %v6154_v46  ;;  %v5862_v31 = vmax.f32 %v35783_v56, %v5718_v33  ;;  %v35788_v24 = vld [vmem:[#allocation49_spill] sm:$0xff]  ;;  %v35789_v43 = vld [vmem:[#allocation187_spill] sm:$0xff]  ;;  %v5724_v16 = vmax.f32 %v35791_v59, %v25779_v10  ;;  %v5186_v2 = vpop.f32.mrb[239].mxu0 }
 0x4ce   : > { %v35790_v46 = vmax.f32 %v35788_v24, %v35789_v43  ;;  %v6016_v39 = vadd.f32 %v31886_v34, %v5865_v25  ;;  %v6159_v61 = vmax.f32 %v6015_v14, 0.0  ;;  %v35795_v43 = vld [vmem:[#allocation50_spill] sm:$0xff]  ;;  %v35801_v10 = vld [vmem:[#allocation51_spill] sm:$0xff] }
 0x4cf   : > { %35780 = vst [vmem:[#allocation16_spill] sm:$0xff] %v32385_v40  ;;  %v6013_v13 = vadd.f32 %v31886_v34, %v5862_v31  ;;  %26542 = vmatmul.mubr.bf16.gmra.mrb[24].mxu1 %v32385_v40 }
 0x4d0   : > { %v5863_v26 = vmax.f32 %v35790_v46, %v5719_v22  ;;  %v6160_v6 = vmax.f32 %v6016_v39, 0.0  ;;  %v5722_v22 = vmax.f32 %v35793_v19, %v5183_v42  ;;  %v35796_v46 = vld [vmem:[#allocation188_spill] sm:$0xff]  ;;  %v5723_v42 = vmax.f32 %v35804_v3, %v5186_v2  ;;  %25902 = vmatmul.mubr.bf16.gmra.mrb[88].mxu0 %v32231_v1 }
 0x4d1   : > { %v6157_v62 = vmax.f32 %v6013_v13, 0.0  ;;  %v35797_v25 = vmax.f32 %v35795_v43, %v35796_v46  ;;  %v35805_v19 = vld [vmem:[#allocation52_spill] sm:$0xff]  ;;  %v35806_v43 = vld [vmem:[#allocation190_spill] sm:$0xff]  ;;  %25905 = vmatprep.mubr.bf16.mxu0 %v32273_v48 }
 0x4d2   : > { %v6014_v33 = vadd.f32 %v31886_v34, %v5863_v26  ;;  %v32409_v24 = vpack.c.bf16 %v6160_v6, %v6159_v61  ;;  %v5725_v26 = vmax.f32 %v35798_v47, %v25780_v44 }
 0x4d3   : > { %v32406_v56 = vpack.c.bf16 %v6157_v62, %v6156_v28  ;;  %v5868_v13 = vmax.f32 %v35797_v25, %v5724_v16  ;;  %v35802_v28 = vld [vmem:[#allocation189_spill] sm:$0xff]  ;;  %v35807_v16 = vmax.f32 %v35805_v19, %v35806_v43 }
 0x4d4   : > { %v6158_v31 = vmax.f32 %v6014_v33, 0.0  ;;  %35794 = vst [vmem:[#allocation17_spill] sm:$0xff] %v32409_v24  ;;  %v35803_v59 = vmax.f32 %v35801_v10, %v35802_v28  ;;  %v35812_v19 = vld [vmem:[#allocation313_spill] sm:$0xff]  ;;  %v35824_v24 = vld [vmem:[#allocation56_spill] sm:$0xff] }
 0x4d5   : > { %35792 = vst [vmem:[#allocation154_spill] sm:$0xff] %v32406_v56  ;;  %26545 = vmatprep.mubr.bf16.mxu1 %v32406_v56  ;;  %v6019_v6 = vadd.f32 %v31886_v34, %v5868_v13  ;;  %v5869_v46 = vmax.f32 %v35807_v16, %v5725_v26  ;;  %v35811_v26 = vld [vmem:[#allocation312_spill] sm:$0xff] }
 0x4d6   : > { %v32415_v14 = vpack.c.bf16 %v6158_v31, %v6157_v62  ;;  %v32417_v39 = vpack.c.bf16 %v6159_v61, %v6158_v31  ;;  %v5866_v33 = vmax.f32 %v35803_v59, %v5722_v22  ;;  %v35808_v62 = vld [vmem:[#allocation53_spill] sm:$0xff]  ;;  %v35809_v61 = vld [vmem:[#allocation191_spill] sm:$0xff]  ;;  %v25783_v22 = vpop.f32.mrb[240].mxu0 }
 0x4d7   : > { %v35810_v31 = vmax.f32 %v35808_v62, %v35809_v61  ;;  %v6020_v2 = vadd.f32 %v31886_v34, %v5869_v46  ;;  %v6163_v25 = vmax.f32 %v6019_v6, 0.0  ;;  %v5728_v10 = vmax.f32 %v35811_v26, %v25783_v22  ;;  %v5199_v28 = vpop.f32.mrb[241].mxu0  ;;  %v35814_v62 = vld [vmem:[#allocation54_spill] sm:$0xff]  ;;  %v35815_v61 = vld [vmem:[#allocation192_spill] sm:$0xff]  ;;  %v35821_v22 = vld [vmem:[#allocation193_spill] sm:$0xff] }
 0x4d8   : > { %35799 = vst [vmem:[#allocation155_spill] sm:$0xff] %v32415_v14  ;;  %35800 = vst [vmem:[#allocation276_spill] sm:$0xff] %v32417_v39  ;;  %v6017_v47 = vadd.f32 %v31886_v34, %v5866_v33  ;;  %26546 = vmatmul.mubr.bf16.gmra.mrb[28].mxu1 %v32417_v39  ;;  %v5726_v43 = vmax.f32 %v35812_v19, %v5199_v28  ;;  %v25784_v16 = vpop.f32.mrb[242].mxu0  ;;  %v35817_v46 = vld [vmem:[#allocation314_spill] sm:$0xff]  ;;  %v35823_v26 = vld [vmem:[#allocation315_spill] sm:$0xff]  ;;  %25906 = vmatmul.mubr.bf16.gmra.mrb[92].mxu0 %v32267_v53 }
 0x4d9   : > { %v5867_v44 = vmax.f32 %v35810_v31, %v5723_v42  ;;  %v6164_v13 = vmax.f32 %v6020_v2, 0.0  ;;  %v35816_v31 = vmax.f32 %v35814_v62, %v35815_v61  ;;  %v5729_v1 = vmax.f32 %v35817_v46, %v25784_v16  ;;  %v35820_v2 = vld [vmem:[#allocation55_spill] sm:$0xff]  ;;  %v35825_v14 = vld [vmem:[#allocation194_spill] sm:$0xff]  ;;  %25909 = vmatprep.mubr.bf16.mxu0 %v32347_v49  ;;  %v35854_v49 = vld [vmem:[#allocation200_spill] sm:$0xff] }
 0x4da   : > { %v6161_v59 = vmax.f32 %v6017_v47, 0.0  ;;  %v35822_v47 = vmax.f32 %v35820_v2, %v35821_v22  ;;  %v35826_v56 = vmax.f32 %v35824_v24, %v35825_v14  ;;  %v35828_v16 = vld [vmem:[#allocation195_spill] sm:$0xff]  ;;  %v35830_v24 = vld [vmem:[#allocation316_spill] sm:$0xff]  ;;  %v35832_v22 = vld [vmem:[#allocation317_spill] sm:$0xff] }
 0x4db   : > { %v6018_v3 = vadd.f32 %v31886_v34, %v5867_v44  ;;  %v32439_v42 = vpack.c.bf16 %v6164_v13, %v6163_v25  ;;  %v5872_v39 = vmax.f32 %v35816_v31, %v5728_v10  ;;  %v5202_v44 = vpop.f32.mrb[243].mxu0 }
 0x4dc   : > { %v5727_v28 = vmax.f32 %v35823_v26, %v5202_v44  ;;  %v5873_v62 = vmax.f32 %v35826_v56, %v5729_v1 }
 0x4dd   : > { %v6162_v33 = vmax.f32 %v6018_v3, 0.0  ;;  %35813 = vst [vmem:[#allocation277_spill] sm:$0xff] %v32439_v42  ;;  %v5870_v3 = vmax.f32 %v35822_v47, %v5726_v43  ;;  %v6023_v19 = vadd.f32 %v31886_v34, %v5872_v39  ;;  %v25787_v39 = vpop.f32.mrb[244].mxu0 }
 0x4de   : > { %v6024_v43 = vadd.f32 %v31886_v34, %v5873_v62  ;;  %v5732_v1 = vmax.f32 %v35830_v24, %v25787_v39  ;;  %v5215_v56 = vpop.f32.mrb[245].mxu0  ;;  %v35842_v24 = vld [vmem:[#allocation319_spill] sm:$0xff] }
 0x4df   : > { %v32445_v50 = vpack.c.bf16 %v6162_v33, %v6161_v59  ;;  %v32447_v6 = vpack.c.bf16 %v6163_v25, %v6162_v33  ;;  %v6021_v10 = vadd.f32 %v31886_v34, %v5870_v3  ;;  %v35827_v59 = vld [vmem:[#allocation57_spill] sm:$0xff]  ;;  %v6167_v46 = vmax.f32 %v6023_v19, 0.0  ;;  %v25788_v3 = vpop.f32.mrb[246].mxu0 }
 0x4e0   : > { %v35829_v25 = vmax.f32 %v35827_v59, %v35828_v16  ;;  %v6168_v44 = vmax.f32 %v6024_v43, 0.0  ;;  %v5730_v47 = vmax.f32 %v35832_v22, %v5215_v56  ;;  %v35835_v59 = vld [vmem:[#allocation196_spill] sm:$0xff]  ;;  %v35837_v16 = vld [vmem:[#allocation318_spill] sm:$0xff]  ;;  %v35839_v43 = vld [vmem:[#allocation59_spill] sm:$0xff]  ;;  %25910 = vmatmul.mubr.bf16.gmra.mrb[96].mxu0 %v32341_v35 }
 0x4e1   : > { %35818 = vst [vmem:[#allocation18_spill] sm:$0xff] %v32445_v50  ;;  %35819 = vst [vmem:[#allocation156_spill] sm:$0xff] %v32447_v6  ;;  %v6165_v61 = vmax.f32 %v6021_v10, 0.0  ;;  %v32487_v22 = vld [vmem:[%s34627_s2] ss:$0 sm:$0xff]  ;;  %25913 = vmatprep.mubr.bf16.mxu0 %v32383_v37  ;;  %v35853_v35 = vld [vmem:[#allocation62_spill] sm:$0xff] }
 0x4e2   : > { %v5871_v33 = vmax.f32 %v35829_v25, %v5727_v28  ;;  %v32469_v26 = vpack.c.bf16 %v6168_v44, %v6167_v46  ;;  %v35834_v28 = vld [vmem:[#allocation58_spill] sm:$0xff]  ;;  %v5218_v25 = vpop.f32.mrb[247].mxu0  ;;  %v35862_v6 = vld [vmem:[#allocation323_spill] sm:$0xff] }
 0x4e3   : > { %v32466_v14 = vpack.c.bf16 %v6165_v61, %v6164_v13  ;;  %v35836_v62 = vmax.f32 %v35834_v28, %v35835_v59  ;;  %v35840_v13 = vld [vmem:[#allocation197_spill] sm:$0xff]  ;;  %v5731_v56 = vmax.f32 %v35842_v24, %v5218_v25  ;;  %v35847_v59 = vld [vmem:[#allocation199_spill] sm:$0xff]  ;;  %v35849_v24 = vld [vmem:[#allocation320_spill] sm:$0xff] }
 0x4e4   : > { %v6022_v31 = vadd.f32 %v31886_v34, %v5871_v33  ;;  %35833 = vst [vmem:[#allocation19_spill] sm:$0xff] %v32469_v26  ;;  %v5733_v34 = vmax.f32 %v35837_v16, %v25788_v3  ;;  %v35841_v39 = vmax.f32 %v35839_v43, %v35840_v13  ;;  %v35843_v3 = vld [vmem:[#allocation60_spill] sm:$0xff]  ;;  %v25791_v13 = vpop.f32.mrb[248].mxu0 }
 0x4e5   : > { %35831 = vst [vmem:[#allocation278_spill] sm:$0xff] %v32466_v14  ;;  %v5876_v10 = vmax.f32 %v35836_v62, %v5732_v1  ;;  %26549 = vmatprep.mubr.bf16.mxu1 %v32466_v14 }
 0x4e6   : > { %v6166_v2 = vmax.f32 %v6022_v31, 0.0  ;;  %v5874_v31 = vmax.f32 %v35841_v39, %v5730_v47  ;;  %v35846_v47 = vld [vmem:[#allocation61_spill] sm:$0xff] }
 0x4e7   : > { %v6027_v1 = vadd.f32 %v32487_v22, %v5876_v10  ;;  %v35848_v62 = vmax.f32 %v35846_v47, %v35847_v59  ;;  %v35851_v47 = vld [vmem:[#allocation321_spill] sm:$0xff] }
 0x4e8   : > { %v32475_v19 = vpack.c.bf16 %v6166_v2, %v6165_v61  ;;  %v32477_v33 = vpack.c.bf16 %v6167_v46, %v6166_v2  ;;  %v35844_v61 = vld [vmem:[#allocation198_spill] sm:$0xff]  ;;  %v6025_v2 = vadd.f32 %v32487_v22, %v5874_v31  ;;  %25914 = vmatmul.mubr.bf16.gmra.mrb[100].mxu0 %v32377_v29 }
 0x4e9   : > { %v35845_v28 = vmax.f32 %v35843_v3, %v35844_v61  ;;  %v5875_v16 = vmax.f32 %v35848_v62, %v5731_v56  ;;  %v6171_v39 = vmax.f32 %v6027_v1, 0.0  ;;  %v5736_v3 = vmax.f32 %v35849_v24, %v25791_v13  ;;  %v5231_v61 = vpop.f32.mrb[249].mxu0  ;;  %v35859_v13 = vld [vmem:[#allocation63_spill] sm:$0xff]  ;;  %25917 = vmatprep.mubr.bf16.mxu0 %v32445_v50 }
 0x4ea   : > { %35838 = vst [vmem:[#allocation157_spill] sm:$0xff] %v32477_v33  ;;  %26550 = vmatmul.mubr.bf16.gmra.mrb[32].mxu1 %v32477_v33  ;;  %v6169_v43 = vmax.f32 %v6025_v2, 0.0  ;;  %v5734_v56 = vmax.f32 %v35851_v47, %v5231_v61  ;;  %v25792_v59 = vpop.f32.mrb[250].mxu0  ;;  %v35856_v33 = vld [vmem:[#allocation322_spill] sm:$0xff]  ;;  %v35863_v47 = vld [vmem:[#allocation64_spill] sm:$0xff] }
 0x4eb   : > { %v5877_v46 = vmax.f32 %v35845_v28, %v5733_v34  ;;  %v6026_v10 = vadd.f32 %v32487_v22, %v5875_v16  ;;  %v5737_v16 = vmax.f32 %v35856_v33, %v25792_v59  ;;  %v5234_v14 = vpop.f32.mrb[251].mxu0 }
 0x4ec   : > { %v32503_v31 = vpack.c.bf16 %v6169_v43, %v6168_v44  ;;  %v35860_v44 = vld [vmem:[#allocation201_spill] sm:$0xff]  ;;  %v5735_v61 = vmax.f32 %v35862_v6, %v5234_v14 }
 0x4ed   : > { %v6028_v25 = vadd.f32 %v32487_v22, %v5877_v46  ;;  %v6170_v28 = vmax.f32 %v6026_v10, 0.0  ;;  %v35855_v46 = vmax.f32 %v35853_v35, %v35854_v49  ;;  %v35861_v24 = vmax.f32 %v35859_v13, %v35860_v44  ;;  %v35864_v35 = vld [vmem:[#allocation202_spill] sm:$0xff] }
 0x4ee   : > { %35850 = vst [vmem:[#allocation279_spill] sm:$0xff] %v32503_v31  ;;  %26553 = vmatprep.mubr.bf16.mxu1 %v32503_v31  ;;  %v35865_v49 = vmax.f32 %v35863_v47, %v35864_v35  ;;  %v35870_v47 = vld [vmem:[#allocation325_spill] sm:$0xff]  ;;  %v35883_v31 = vld [vmem:[#allocation206_spill] sm:$0xff] }
 0x4ef   : > { %v6172_v34 = vmax.f32 %v6028_v25, 0.0  ;;  %v5880_v2 = vmax.f32 %v35855_v46, %v5736_v3  ;;  %v32512_v1 = vpack.c.bf16 %v6170_v28, %v6169_v43  ;;  %v32514_v25 = vpack.c.bf16 %v6171_v39, %v6170_v28  ;;  %v35866_v43 = vld [vmem:[#allocation65_spill] sm:$0xff] }
 0x4f0   : > { %v5878_v10 = vmax.f32 %v35861_v24, %v5734_v56  ;;  %v5881_v3 = vmax.f32 %v35865_v49, %v5737_v16  ;;  %v25795_v56 = vpop.f32.mrb[252].mxu0  ;;  %v35869_v16 = vld [vmem:[#allocation324_spill] sm:$0xff]  ;;  %25918 = vmatmul.mubr.bf16.gmra.mrb[104].mxu0 %v32439_v42  ;;  %v35901_v42 = vld [vmem:[#allocation331_spill] sm:$0xff] }
 0x4f1   : > { %v32506_v62 = vpack.c.bf16 %v6172_v34, %v6171_v39  ;;  %35857 = vst [vmem:[#allocation158_spill] sm:$0xff] %v32512_v1  ;;  %35858 = vst [vmem:[#allocation21_spill] sm:$0xff] %v32514_v25  ;;  %v6031_v34 = vadd.f32 %v32487_v22, %v5880_v2  ;;  %v35867_v39 = vld [vmem:[#allocation203_spill] sm:$0xff]  ;;  %v5740_v13 = vmax.f32 %v35869_v16, %v25795_v56  ;;  %v5247_v44 = vpop.f32.mrb[253].mxu0  ;;  %v35879_v56 = vld [vmem:[#allocation205_spill] sm:$0xff]  ;;  %25921 = vmatprep.mubr.bf16.mxu0 %v32475_v19 }
 0x4f2   : > { %v6029_v33 = vadd.f32 %v32487_v22, %v5878_v10  ;;  %v35868_v28 = vmax.f32 %v35866_v43, %v35867_v39  ;;  %26554 = vmatmul.mubr.bf16.gmra.mrb[36].mxu1 %v32514_v25  ;;  %v6032_v6 = vadd.f32 %v32487_v22, %v5881_v3  ;;  %v5738_v35 = vmax.f32 %v35870_v47, %v5247_v44  ;;  %v25796_v49 = vpop.f32.mrb[254].mxu0  ;;  %v35872_v43 = vld [vmem:[#allocation66_spill] sm:$0xff]  ;;  %v35873_v39 = vld [vmem:[#allocation204_spill] sm:$0xff]  ;;  %v35881_v16 = vld [vmem:[#allocation327_spill] sm:$0xff] }
 0x4f3   : > { %35852 = vst [vmem:[#allocation20_spill] sm:$0xff] %v32506_v62  ;;  %v6175_v46 = vmax.f32 %v6031_v34, 0.0  ;;  %v35875_v3 = vld [vmem:[#allocation326_spill] sm:$0xff]  ;;  %v35882_v1 = vld [vmem:[#allocation68_spill] sm:$0xff] }
 0x4f4   : > { %v5879_v59 = vmax.f32 %v35868_v28, %v5735_v61  ;;  %v6176_v2 = vmax.f32 %v6032_v6, 0.0  ;;  %v6173_v24 = vmax.f32 %v6029_v33, 0.0  ;;  %v35874_v28 = vmax.f32 %v35872_v43, %v35873_v39  ;;  %v35878_v6 = vld [vmem:[#allocation67_spill] sm:$0xff] }
 0x4f5   : > { %v5741_v50 = vmax.f32 %v35875_v3, %v25796_v49  ;;  %v35880_v33 = vmax.f32 %v35878_v6, %v35879_v56  ;;  %v35884_v29 = vmax.f32 %v35882_v1, %v35883_v31  ;;  %v35886_v49 = vld [vmem:[#allocation207_spill] sm:$0xff]  ;;  %v35888_v31 = vld [vmem:[#allocation328_spill] sm:$0xff]  ;;  %v35890_v56 = vld [vmem:[#allocation329_spill] sm:$0xff] }
 0x4f6   : > { %v6030_v14 = vadd.f32 %v32487_v22, %v5879_v59  ;;  %v32536_v61 = vpack.c.bf16 %v6176_v2, %v6175_v46  ;;  %v5884_v25 = vmax.f32 %v35874_v28, %v5740_v13  ;;  %v5250_v59 = vpop.f32.mrb[255].mxu0 }
 0x4f7   : > { %v5739_v44 = vmax.f32 %v35881_v16, %v5250_v59  ;;  %v5885_v43 = vmax.f32 %v35884_v29, %v5741_v50 }
 0x4f8   : > { %v6174_v10 = vmax.f32 %v6030_v14, 0.0  ;;  %35871 = vst [vmem:[#allocation159_spill] sm:$0xff] %v32536_v61  ;;  %v5882_v14 = vmax.f32 %v35880_v33, %v5738_v35  ;;  %v6035_v47 = vadd.f32 %v32487_v22, %v5884_v25  ;;  %v25799_v25 = vpop.f32.mrb[0].mxu0  ;;  %25922 = vmatmul.mubr.bf16.gmra.mrb[108].mxu0 %v32469_v26 }
 0x4f9   : > { %v6036_v35 = vadd.f32 %v32487_v22, %v5885_v43  ;;  %v5744_v50 = vmax.f32 %v35888_v31, %v25799_v25  ;;  %v5263_v29 = vpop.f32.mrb[1].mxu0  ;;  %v35898_v25 = vld [vmem:[#allocation71_spill] sm:$0xff] }
 0x4fa   : > { %v32542_v62 = vpack.c.bf16 %v6174_v10, %v6173_v24  ;;  %v32544_v34 = vpack.c.bf16 %v6175_v46, %v6174_v10  ;;  %v6033_v13 = vadd.f32 %v32487_v22, %v5882_v14  ;;  %v35885_v24 = vld [vmem:[#allocation69_spill] sm:$0xff]  ;;  %v6179_v3 = vmax.f32 %v6035_v47, 0.0  ;;  %v25800_v14 = vpop.f32.mrb[2].mxu0 }
 0x4fb   : > { %v35887_v46 = vmax.f32 %v35885_v24, %v35886_v49  ;;  %v6180_v59 = vmax.f32 %v6036_v35, 0.0  ;;  %v5742_v33 = vmax.f32 %v35890_v56, %v5263_v29  ;;  %v35893_v24 = vld [vmem:[#allocation208_spill] sm:$0xff]  ;;  %v35895_v49 = vld [vmem:[#allocation330_spill] sm:$0xff] }
 0x4fc   : > { %35876 = vst [vmem:[#allocation280_spill] sm:$0xff] %v32542_v62  ;;  %35877 = vst [vmem:[#allocation281_spill] sm:$0xff] %v32544_v34  ;;  %v6177_v39 = vmax.f32 %v6033_v13, 0.0  ;;  %v35902_v34 = vld [vmem:[#allocation72_spill] sm:$0xff]  ;;  %25925 = vmatprep.mubr.bf16.mxu0 %v32542_v62  ;;  %v35915_v62 = vld [vmem:[#allocation334_spill] sm:$0xff] }
 0x4fd   : > { %v5883_v10 = vmax.f32 %v35887_v46, %v5739_v44  ;;  %v32566_v16 = vpack.c.bf16 %v6180_v59, %v6179_v3  ;;  %v35892_v44 = vld [vmem:[#allocation70_spill] sm:$0xff]  ;;  %v5745_v46 = vmax.f32 %v35895_v49, %v25800_v14 }
 0x4fe   : > { %v32563_v1 = vpack.c.bf16 %v6177_v39, %v6176_v2  ;;  %v35894_v43 = vmax.f32 %v35892_v44, %v35893_v24  ;;  %v35899_v2 = vld [vmem:[#allocation209_spill] sm:$0xff]  ;;  %v35903_v44 = vld [vmem:[#allocation210_spill] sm:$0xff] }
 0x4ff   : > { %v6034_v28 = vadd.f32 %v32487_v22, %v5883_v10  ;;  %35891 = vst [vmem:[#allocation160_spill] sm:$0xff] %v32566_v16  ;;  %v5266_v10 = vpop.f32.mrb[3].mxu0  ;;  %v35900_v31 = vmax.f32 %v35898_v25, %v35899_v2 }
 0x500   : > { %35889 = vst [vmem:[#allocation22_spill] sm:$0xff] %v32563_v1  ;;  %v5888_v13 = vmax.f32 %v35894_v43, %v5744_v50  ;;  %v5743_v29 = vmax.f32 %v35901_v42, %v5266_v10  ;;  %26557 = vmatprep.mubr.bf16.mxu1 %v32563_v1  ;;  %v35904_v50 = vmax.f32 %v35902_v34, %v35903_v44  ;;  %v25803_v49 = vpop.f32.mrb[4].mxu0  ;;  %v35908_v10 = vld [vmem:[#allocation332_spill] sm:$0xff]  ;;  %v35910_v44 = vld [vmem:[#allocation333_spill] sm:$0xff]  ;;  %v35942_v1 = vld [vmem:[#allocation218_spill] sm:$0xff] }
 0x501   : > { %v6178_v6 = vmax.f32 %v6034_v28, 0.0  ;;  %v5886_v28 = vmax.f32 %v35900_v31, %v5742_v33  ;;  %v5748_v25 = vmax.f32 %v35908_v10, %v25803_v49  ;;  %v5279_v2 = vpop.f32.mrb[5].mxu0  ;;  %v35919_v49 = vld [vmem:[#allocation213_spill] sm:$0xff]  ;;  %25926 = vmatmul.mubr.bf16.gmra.mrb[112].mxu0 %v32536_v61 }
 0x502   : > { %v6039_v56 = vadd.f32 %v32487_v22, %v5888_v13  ;;  %v5889_v24 = vmax.f32 %v35904_v50, %v5745_v46  ;;  %v25804_v50 = vpop.f32.mrb[6].mxu0 }
 0x503   : > { %v32572_v47 = vpack.c.bf16 %v6178_v6, %v6177_v39  ;;  %v32574_v35 = vpack.c.bf16 %v6179_v3, %v6178_v6  ;;  %v6037_v39 = vadd.f32 %v32487_v22, %v5886_v28  ;;  %v35905_v3 = vld [vmem:[#allocation73_spill] sm:$0xff]  ;;  %v35906_v6 = vld [vmem:[#allocation211_spill] sm:$0xff] }
 0x504   : > { %v35907_v14 = vmax.f32 %v35905_v3, %v35906_v6  ;;  %v6040_v42 = vadd.f32 %v32487_v22, %v5889_v24  ;;  %v6183_v34 = vmax.f32 %v6039_v56, 0.0  ;;  %v35912_v6 = vld [vmem:[#allocation74_spill] sm:$0xff]  ;;  %v32607_v56 = vld [vmem:[%s34628_s3 + $0x80] sm:$0xff]  }
 0x505   : > { %35896 = vst [vmem:[#allocation282_spill] sm:$0xff] %v32572_v47  ;;  %35897 = vst [vmem:[#allocation23_spill] sm:$0xff] %v32574_v35  ;;  %26558 = vmatmul.mubr.bf16.gmra.mrb[40].mxu1 %v32574_v35  ;;  %v6181_v33 = vmax.f32 %v6037_v39, 0.0  ;;  %v5282_v35 = vpop.f32.mrb[7].mxu0  ;;  %26021 = vmatprep.subr.bf16.mxu0 %v32607_v56 }
 0x506   : > { %v5887_v43 = vmax.f32 %v35907_v14, %v5743_v29  ;;  %v6184_v46 = vmax.f32 %v6040_v42, 0.0  ;;  %v5746_v29 = vmax.f32 %v35910_v44, %v5279_v2  ;;  %v35913_v14 = vld [vmem:[#allocation212_spill] sm:$0xff]  ;;  %v35921_v2 = vld [vmem:[#allocation335_spill] sm:$0xff]  ;;  %25929 = vmatprep.mubr.bf16.mxu0 %v32572_v47 }
 0x507   : > { %v32595_v31 = vpack.c.bf16 %v6181_v33, %v6180_v59  ;;  %v35914_v24 = vmax.f32 %v35912_v6, %v35913_v14  ;;  %v5747_v44 = vmax.f32 %v35921_v2, %v5282_v35  ;;  %v35941_v47 = vld [vmem:[#allocation80_spill] sm:$0xff] }
 0x508   : > { %v6038_v13 = vadd.f32 %v32487_v22, %v5887_v43  ;;  %v32598_v3 = vpack.c.bf16 %v6184_v46, %v6183_v34  ;;  %v5749_v43 = vmax.f32 %v35915_v62, %v25804_v50  ;;  %v35923_v50 = vld [vmem:[#allocation214_spill] sm:$0xff]  ;;  %v35943_v26 = vmax.f32 %v35941_v47, %v35942_v1  ;;  %v35947_v1 = vld [vmem:[#allocation340_spill] sm:$0xff] }
 0x509   : > { %35909 = vst [vmem:[#allocation161_spill] sm:$0xff] %v32595_v31  ;;  %v5892_v39 = vmax.f32 %v35914_v24, %v5748_v25  ;;  %26561 = vmatprep.mubr.bf16.mxu1 %v32595_v31  ;;  %v35922_v25 = vld [vmem:[#allocation76_spill] sm:$0xff]  ;;  %25930 = vmatmul.mubr.bf16.gmra.mrb[116].mxu0 %v32566_v16 }
 0x50a   : > { %v6182_v28 = vmax.f32 %v6038_v13, 0.0  ;;  %35911 = vst [vmem:[#allocation283_spill] sm:$0xff] %v32598_v3  ;;  %v35918_v13 = vld [vmem:[#allocation75_spill] sm:$0xff]  ;;  %v35924_v6 = vmax.f32 %v35922_v25, %v35923_v50  ;;  %v35960_v16 = vld [vmem:[#allocation84_spill] sm:$0xff] }
 0x50b   : > { %v35920_v46 = vmax.f32 %v35918_v13, %v35919_v49  ;;  %v6043_v62 = vadd.f32 %v32487_v22, %v5892_v39  ;;  %v25807_v13 = vpop.f32.mrb[8].mxu0 }
 0x50c   : > { %v32609_v59 = vpack.c.bf16 %v6182_v28, %v6181_v33  ;;  %v32611_v42 = vpack.c.bf16 %v6183_v34, %v6182_v28  ;;  %v5893_v14 = vmax.f32 %v35924_v6, %v5749_v43  ;;  %v35925_v34 = vld [vmem:[#allocation77_spill] sm:$0xff]  ;;  %v35926_v28 = vld [vmem:[#allocation215_spill] sm:$0xff]  ;;  %v5295_v25 = vpop.f32.mrb[9].mxu0 }
 0x50d   : > { %v5890_v10 = vmax.f32 %v35920_v46, %v5746_v29  ;;  %v35927_v24 = vmax.f32 %v35925_v34, %v35926_v28  ;;  %v6187_v43 = vmax.f32 %v6043_v62, 0.0  ;;  %v35928_v46 = vld [vmem:[#allocation336_spill] sm:$0xff]  ;;  %v35929_v6 = vld [vmem:[#allocation337_spill] sm:$0xff]  ;;  %v25808_v34 = vpop.f32.mrb[10].mxu0  ;;  %v35931_v28 = vld [vmem:[#allocation78_spill] sm:$0xff] }
 0x50e   : > { %35916 = vst [vmem:[#allocation24_spill] sm:$0xff] %v32609_v59  ;;  %35917 = vst [vmem:[#allocation162_spill] sm:$0xff] %v32611_v42  ;;  %26562 = vmatmul.mubr.bf16.gmra.mrb[44].mxu1 %v32611_v42  ;;  %v6044_v35 = vadd.f32 %v32487_v22, %v5893_v14  ;;  %v5752_v2 = vmax.f32 %v35928_v46, %v25807_v13  ;;  %v5750_v61 = vmax.f32 %v35929_v6, %v5295_v25  ;;  %v35934_v14 = vld [vmem:[#allocation338_spill] sm:$0xff]  ;;  %v35938_v13 = vld [vmem:[#allocation217_spill] sm:$0xff] }
 0x50f   : > { %v6041_v33 = vadd.f32 %v32487_v22, %v5890_v10  ;;  %v5891_v29 = vmax.f32 %v35927_v24, %v5747_v44  ;;  %v35932_v24 = vld [vmem:[#allocation216_spill] sm:$0xff]  ;;  %v5753_v59 = vmax.f32 %v35934_v14, %v25808_v34  ;;  %v35940_v46 = vld [vmem:[#allocation339_spill] sm:$0xff] }
 0x510   : > { %v6188_v49 = vmax.f32 %v6044_v35, 0.0  ;;  %v35933_v42 = vmax.f32 %v35931_v28, %v35932_v24  ;;  %v35937_v35 = vld [vmem:[#allocation79_spill] sm:$0xff] }
 0x511   : > { %v6042_v39 = vadd.f32 %v32487_v22, %v5891_v29  ;;  %v6185_v50 = vmax.f32 %v6041_v33, 0.0  ;;  %v5298_v29 = vpop.f32.mrb[11].mxu0  ;;  %v35939_v33 = vmax.f32 %v35937_v35, %v35938_v13  ;;  %v5897_v28 = vmax.f32 %v35943_v26, %v5753_v59  ;;  %v35949_v13 = vld [vmem:[#allocation341_spill] sm:$0xff] }
 0x512   : > { %v32634_v44 = vpack.c.bf16 %v6188_v49, %v6187_v43  ;;  %v5896_v3 = vmax.f32 %v35933_v42, %v5752_v2  ;;  %v5751_v25 = vmax.f32 %v35940_v46, %v5298_v29  ;;  %v35944_v2 = vld [vmem:[#allocation81_spill] sm:$0xff] }
 0x513   : > { %v6186_v10 = vmax.f32 %v6042_v39, 0.0  ;;  %v5894_v39 = vmax.f32 %v35939_v33, %v5750_v61  ;;  %v6048_v61 = vadd.f32 %v32487_v22, %v5897_v28 }
 0x514   : > { %35930 = vst [vmem:[#allocation25_spill] sm:$0xff] %v32634_v44  ;;  %v6047_v6 = vadd.f32 %v32487_v22, %v5896_v3  ;;  %v25811_v3 = vpop.f32.mrb[12].mxu0 }
 0x515   : > { %v32640_v31 = vpack.c.bf16 %v6186_v10, %v6185_v50  ;;  %v32642_v62 = vpack.c.bf16 %v6187_v43, %v6186_v10  ;;  %v6045_v42 = vadd.f32 %v32487_v22, %v5894_v39  ;;  %v35945_v50 = vld [vmem:[#allocation219_spill] sm:$0xff]  ;;  %v6192_v29 = vmax.f32 %v6048_v61, 0.0  ;;  %v5311_v47 = vpop.f32.mrb[13].mxu0 }
 0x516   : > { %v35946_v43 = vmax.f32 %v35944_v2, %v35945_v50  ;;  %v6191_v14 = vmax.f32 %v6047_v6, 0.0  ;;  %v5756_v26 = vmax.f32 %v35947_v1, %v25811_v3  ;;  %v5754_v33 = vmax.f32 %v35949_v13, %v5311_v47  ;;  %v25812_v39 = vpop.f32.mrb[14].mxu0  ;;  %v35951_v2 = vld [vmem:[#allocation220_spill] sm:$0xff]  ;;  %v35953_v50 = vld [vmem:[#allocation342_spill] sm:$0xff]  ;;  %v35956_v3 = vld [vmem:[#allocation83_spill] sm:$0xff] }
 0x517   : > { %35935 = vst [vmem:[#allocation163_spill] sm:$0xff] %v32640_v31  ;;  %35936 = vst [vmem:[#allocation284_spill] sm:$0xff] %v32642_v62  ;;  %25933 = vmatprep.mubr.bf16.mxu0 %v32640_v31  ;;  %v6189_v34 = vmax.f32 %v6045_v42, 0.0  ;;  %v35959_v31 = vld [vmem:[#allocation343_spill] sm:$0xff] }
 0x518   : > { %v5895_v10 = vmax.f32 %v35946_v43, %v5751_v25  ;;  %v32664_v46 = vpack.c.bf16 %v6192_v29, %v6191_v14  ;;  %v35950_v25 = vld [vmem:[#allocation82_spill] sm:$0xff]  ;;  %v5757_v43 = vmax.f32 %v35953_v50, %v25812_v39  ;;  %25934 = vmatmul.mubr.bf16.gmra.mrb[120].mxu0 %v32634_v44 }
 0x519   : > { %v32661_v59 = vpack.c.bf16 %v6189_v34, %v6188_v49  ;;  %v35952_v28 = vmax.f32 %v35950_v25, %v35951_v2  ;;  %v35957_v49 = vld [vmem:[#allocation221_spill] sm:$0xff]  ;;  %v35961_v25 = vld [vmem:[#allocation222_spill] sm:$0xff] }
 0x51a   : > { %v6046_v24 = vadd.f32 %v32487_v22, %v5895_v10  ;;  %v5314_v10 = vpop.f32.mrb[15].mxu0  ;;  %v35958_v1 = vmax.f32 %v35956_v3, %v35957_v49  ;;  %v35973_v44 = vld [vmem:[#allocation346_spill] sm:$0xff] }
 0x51b   : > { %35948 = vst [vmem:[#allocation285_spill] sm:$0xff] %v32661_v59  ;;  %v5900_v42 = vmax.f32 %v35952_v28, %v5756_v26  ;;  %v5755_v47 = vmax.f32 %v35959_v31, %v5314_v10  ;;  %26565 = vmatprep.mubr.bf16.mxu1 %v32661_v59  ;;  %v35962_v26 = vmax.f32 %v35960_v16, %v35961_v25  ;;  %v25815_v50 = vpop.f32.mrb[16].mxu0  ;;  %v35966_v10 = vld [vmem:[#allocation344_spill] sm:$0xff]  ;;  %v35968_v25 = vld [vmem:[#allocation345_spill] sm:$0xff] }
 0x51c   : > { %v6190_v35 = vmax.f32 %v6046_v24, 0.0  ;;  %v5898_v24 = vmax.f32 %v35958_v1, %v5754_v33  ;;  %v5760_v3 = vmax.f32 %v35966_v10, %v25815_v50  ;;  %v5327_v49 = vpop.f32.mrb[17].mxu0  ;;  %v35975_v50 = vld [vmem:[#allocation87_spill] sm:$0xff] }
 0x51d   : > { %v6051_v13 = vadd.f32 %v32487_v22, %v5900_v42  ;;  %v5901_v2 = vmax.f32 %v35962_v26, %v5757_v43  ;;  %v25816_v26 = vpop.f32.mrb[18].mxu0 }
 0x51e   : > { %v32670_v6 = vpack.c.bf16 %v6190_v35, %v6189_v34  ;;  %v32672_v61 = vpack.c.bf16 %v6191_v14, %v6190_v35  ;;  %v6049_v34 = vadd.f32 %v32487_v22, %v5898_v24  ;;  %v35963_v14 = vld [vmem:[#allocation85_spill] sm:$0xff]  ;;  %v35964_v35 = vld [vmem:[#allocation223_spill] sm:$0xff] }
 0x51f   : > { %v35965_v39 = vmax.f32 %v35963_v14, %v35964_v35  ;;  %v6052_v31 = vadd.f32 %v32487_v22, %v5901_v2  ;;  %v6195_v16 = vmax.f32 %v6051_v13, 0.0  ;;  %v35970_v35 = vld [vmem:[#allocation86_spill] sm:$0xff] }
 0x520   : > { %35954 = vst [vmem:[#allocation26_spill] sm:$0xff] %v32670_v6  ;;  %35955 = vst [vmem:[#allocation164_spill] sm:$0xff] %v32672_v61  ;;  %25937 = vmatprep.mubr.bf16.mxu0 %v32670_v6  ;;  %26566 = vmatmul.mubr.bf16.gmra.mrb[48].mxu1 %v32672_v61  ;;  %v6193_v33 = vmax.f32 %v6049_v34, 0.0  ;;  %v5330_v6 = vpop.f32.mrb[19].mxu0  ;;  %v35978_v61 = vld [vmem:[#allocation347_spill] sm:$0xff] }
 0x521   : > { %v5899_v28 = vmax.f32 %v35965_v39, %v5755_v47  ;;  %v6196_v43 = vmax.f32 %v6052_v31, 0.0  ;;  %v5758_v47 = vmax.f32 %v35968_v25, %v5327_v49  ;;  %v35971_v39 = vld [vmem:[#allocation224_spill] sm:$0xff]  ;;  %v5759_v49 = vmax.f32 %v35978_v61, %v5330_v6  ;;  %25938 = vmatmul.mubr.bf16.gmra.mrb[124].mxu0 %v32664_v46 }
 0x522   : > { %v32693_v1 = vpack.c.bf16 %v6193_v33, %v6192_v29  ;;  %v35972_v2 = vmax.f32 %v35970_v35, %v35971_v39  ;;  %v35976_v29 = vld [vmem:[#allocation225_spill] sm:$0xff]  ;;  %v35979_v25 = vld [vmem:[#allocation88_spill] sm:$0xff]  ;;  %v35980_v35 = vld [vmem:[#allocation226_spill] sm:$0xff]  ;;  %25957 = vmatprep.mubr.bf16.mxu0 %v31926_v41 }
 0x523   : > { %v6050_v42 = vadd.f32 %v32487_v22, %v5899_v28  ;;  %v32696_v14 = vpack.c.bf16 %v6196_v43, %v6195_v16  ;;  %v5761_v28 = vmax.f32 %v35973_v44, %v25816_v26  ;;  %v35977_v10 = vmax.f32 %v35975_v50, %v35976_v29  ;;  %v35988_v41 = vld [vmem:[#allocation90_spill] sm:$0xff] }
 0x524   : > { %35967 = vst [vmem:[#allocation286_spill] sm:$0xff] %v32693_v1  ;;  %v5904_v34 = vmax.f32 %v35972_v2, %v5760_v3  ;;  %26569 = vmatprep.mubr.bf16.mxu1 %v32693_v1  ;;  %v35981_v3 = vmax.f32 %v35979_v25, %v35980_v35  ;;  %v35986_v25 = vld [vmem:[#allocation349_spill] sm:$0xff] }
 0x525   : > { %v6194_v24 = vmax.f32 %v6050_v42, 0.0  ;;  %35969 = vst [vmem:[#allocation27_spill] sm:$0xff] %v32696_v14  ;;  %v5902_v42 = vmax.f32 %v35977_v10, %v5758_v47  ;;  %v25819_v47 = vpop.f32.mrb[20].mxu0 }
 0x526   : > { %v6055_v43 = vadd.f32 %v32487_v22, %v5904_v34  ;;  %v5905_v39 = vmax.f32 %v35981_v3, %v5761_v28  ;;  %v35985_v28 = vld [vmem:[#allocation348_spill] sm:$0xff]  ;;  %v5343_v29 = vpop.f32.mrb[21].mxu0 }
 0x527   : > { %v32702_v13 = vpack.c.bf16 %v6194_v24, %v6193_v33  ;;  %v32704_v31 = vpack.c.bf16 %v6195_v16, %v6194_v24  ;;  %v6053_v44 = vadd.f32 %v32487_v22, %v5902_v42  ;;  %v35982_v33 = vld [vmem:[#allocation89_spill] sm:$0xff]  ;;  %v35983_v16 = vld [vmem:[#allocation227_spill] sm:$0xff]  ;;  %v5764_v50 = vmax.f32 %v35985_v28, %v25819_v47  ;;  %v25820_v3 = vpop.f32.mrb[22].mxu0 }
 0x528   : > { %v35984_v24 = vmax.f32 %v35982_v33, %v35983_v16  ;;  %v6056_v6 = vadd.f32 %v32487_v22, %v5905_v39  ;;  %v6199_v2 = vmax.f32 %v6055_v43, 0.0  ;;  %v5762_v35 = vmax.f32 %v35986_v25, %v5343_v29  ;;  %v35989_v33 = vld [vmem:[#allocation228_spill] sm:$0xff]  ;;  %v35991_v39 = vld [vmem:[#allocation350_spill] sm:$0xff]  ;;  %v35995_v47 = vld [vmem:[#allocation229_spill] sm:$0xff] }
 0x529   : > { %35974 = vst [vmem:[#allocation165_spill] sm:$0xff] %v32704_v31  ;;  %26570 = vmatmul.mubr.bf16.gmra.mrb[52].mxu1 %v32704_v31  ;;  %v6197_v10 = vmax.f32 %v6053_v44, 0.0  ;;  %v35990_v16 = vmax.f32 %v35988_v41, %v35989_v33  ;;  %v5765_v31 = vmax.f32 %v35991_v39, %v25820_v3  ;;  %v29788_v43 = vld [vmem:[%s34628_s3 + $0x88] sm:$0xff]   ;;  %v35997_v25 = vld [vmem:[#allocation351_spill] sm:$0xff]  ;;  %25958 = vmatmul.mubr.bf16.vlgmr.msra.gmra.mrb[64].mxu0 %v31942_v32 }
 0x52a   : > { %v5903_v26 = vmax.f32 %v35984_v24, %v5759_v49  ;;  %v6200_v34 = vmax.f32 %v6056_v6, 0.0  ;;  %v35999_v33 = vld [vmem:[#allocation230_spill] sm:$0xff]  ;;  %25961 = vmatprep.mubr.bf16.mxu0 %v31958_v7  ;;  %26022 = vmatpush3.bf16.msra.mxu0 %v32607_v56  ;;  %v36006_v56 = vld [vmem:[#allocation353_spill] sm:$0xff] }
 0x52b   : > { %v5908_v24 = vmax.f32 %v35990_v16, %v5764_v50  ;;  %v35998_v50 = vld [vmem:[#allocation92_spill] sm:$0xff]  ;;  %26023 = vmatprep.subr.bf16.mxu0 %v29788_v43 }
 0x52c   : > { %v6054_v61 = vadd.f32 %v32487_v22, %v5903_v26  ;;  %v32726_v49 = vpack.c.bf16 %v6200_v34, %v6199_v2  ;;  %v5346_v26 = vpop.f32.mrb[23].mxu0  ;;  %v36000_v3 = vmax.f32 %v35998_v50, %v35999_v33 }
 0x52d   : > { %v6059_v41 = vadd.f32 %v32487_v22, %v5908_v24  ;;  %v29789_v24 = vld [vmem:[%s34628_s3 + $0x90] sm:$0xff]  }
 0x52e   : > { %v6198_v42 = vmax.f32 %v6054_v61, 0.0  ;;  %35987 = vst [vmem:[#allocation287_spill] sm:$0xff] %v32726_v49  ;;  %v35994_v61 = vld [vmem:[#allocation91_spill] sm:$0xff]  ;;  %v5763_v49 = vmax.f32 %v35997_v25, %v5346_v26  ;;  %v5909_v16 = vmax.f32 %v36000_v3, %v5765_v31  ;;  %26024 = vmatpush3.bf16.msra.mxu0 %v29788_v43 }
 0x52f   : > { %v35996_v28 = vmax.f32 %v35994_v61, %v35995_v47  ;;  %v25823_v61 = vpop.f32.mrb[24].mxu0  ;;  %v6203_v47 = vmax.f32 %v6059_v41, 0.0  ;;  %26025 = vmatprep.subr.bf16.mxu0 %v29789_v24 }
 0x530   : > { %v32735_v6 = vpack.c.bf16 %v6198_v42, %v6197_v10  ;;  %v32737_v44 = vpack.c.bf16 %v6199_v2, %v6198_v42  ;;  %v36001_v10 = vld [vmem:[#allocation93_spill] sm:$0xff] }
 0x531   : > { %v5906_v29 = vmax.f32 %v35996_v28, %v5762_v35  ;;  %v6060_v35 = vadd.f32 %v32487_v22, %v5909_v16  ;;  %25962 = vmatmul.mubr.bf16.gmra.mrb[68].mxu0 %v31974_v55  ;;  %v36034_v55 = vld [vmem:[#allocation237_spill] sm:$0xff] }
 0x532   : > { %35992 = vst [vmem:[#allocation28_spill] sm:$0xff] %v32735_v6  ;;  %35993 = vst [vmem:[#allocation166_spill] sm:$0xff] %v32737_v44  ;;  %v36002_v6 = vld [vmem:[#allocation231_spill] sm:$0xff]  ;;  %25965 = vmatprep.mubr.bf16.mxu0 %v32020_v58  ;;  %26026 = vmatpush3.bf16.msra.mxu0 %v29789_v24 }
 0x533   : > { %v6057_v39 = vadd.f32 %v32487_v22, %v5906_v29  ;;  %v36003_v2 = vmax.f32 %v36001_v10, %v36002_v6  ;;  %v6204_v28 = vmax.f32 %v6060_v35, 0.0  ;;  %v36004_v29 = vld [vmem:[#allocation352_spill] sm:$0xff]  ;;  %v36007_v10 = vld [vmem:[#allocation94_spill] sm:$0xff] }
 0x534   : > { %v5768_v6 = vmax.f32 %v36004_v29, %v25823_v61 }
 0x535   : > { %v5907_v42 = vmax.f32 %v36003_v2, %v5763_v49  ;;  %v6201_v31 = vmax.f32 %v6057_v39, 0.0  ;;  %v5359_v49 = vpop.f32.mrb[25].mxu0  ;;  %v32763_v16 = vpack.c.bf16 %v6204_v28, %v6203_v47  ;;  %v36008_v2 = vld [vmem:[#allocation232_spill] sm:$0xff] }
 0x536   : > { %v5766_v33 = vmax.f32 %v36006_v56, %v5359_v49  ;;  %v25824_v3 = vpop.f32.mrb[26].mxu0  ;;  %v36009_v39 = vmax.f32 %v36007_v10, %v36008_v2  ;;  %v36016_v56 = vld [vmem:[#allocation355_spill] sm:$0xff]  ;;  %v36017_v10 = vld [vmem:[#allocation96_spill] sm:$0xff]  ;;  %v36018_v2 = vld [vmem:[#allocation234_spill] sm:$0xff] }
 0x537   : > { %v6058_v26 = vadd.f32 %v32487_v22, %v5907_v42  ;;  %v32760_v25 = vpack.c.bf16 %v6201_v31, %v6200_v34  ;;  %v36010_v42 = vld [vmem:[#allocation354_spill] sm:$0xff]  ;;  %v5362_v41 = vpop.f32.mrb[27].mxu0  ;;  %v36013_v34 = vld [vmem:[#allocation95_spill] sm:$0xff] }
 0x538   : > { %v5912_v44 = vmax.f32 %v36009_v39, %v5768_v6  ;;  %v5769_v7 = vmax.f32 %v36010_v42, %v25824_v3  ;;  %v5767_v43 = vmax.f32 %v36016_v56, %v5362_v41  ;;  %v29791_v6 = vld [vmem:[%s34628_s3 + $0x98] sm:$0xff]  }
 0x539   : > { %36005 = vst [vmem:[#allocation29_spill] sm:$0xff] %v32760_v25  ;;  %v6202_v50 = vmax.f32 %v6058_v26, 0.0  ;;  %v36014_v26 = vld [vmem:[#allocation233_spill] sm:$0xff]  ;;  %26573 = vmatprep.mubr.bf16.mxu1 %v32760_v25  ;;  %26027 = vmatprep.subr.bf16.mxu0 %v29791_v6 }
 0x53a   : > { %v36015_v29 = vmax.f32 %v36013_v34, %v36014_v26  ;;  %v6063_v3 = vadd.f32 %v32487_v22, %v5912_v44  ;;  %26028 = vmatpush3.bf16.msra.mxu0 %v29791_v6  ;;  %v36038_v6 = vld [vmem:[#allocation238_spill] sm:$0xff] }
 0x53b   : > { %v32769_v35 = vpack.c.bf16 %v6202_v50, %v6201_v31  ;;  %v32771_v61 = vpack.c.bf16 %v6203_v47, %v6202_v50  ;;  %v36019_v31 = vmax.f32 %v36017_v10, %v36018_v2  ;;  %v36020_v50 = vld [vmem:[#allocation97_spill] sm:$0xff]  ;;  %v36023_v10 = vld [vmem:[#allocation356_spill] sm:$0xff]  ;;  %25966 = vmatmul.mubr.bf16.gmra.mrb[72].mxu0 %v32036_v9 }
 0x53c   : > { %v5910_v49 = vmax.f32 %v36015_v29, %v5766_v33  ;;  %v36021_v33 = vld [vmem:[#allocation235_spill] sm:$0xff]  ;;  %v25827_v29 = vpop.f32.mrb[28].mxu0  ;;  %25969 = vmatprep.mubr.bf16.mxu0 %v32053_v0 }
 0x53d   : > { %36011 = vst [vmem:[#allocation167_spill] sm:$0xff] %v32769_v35  ;;  %36012 = vst [vmem:[#allocation288_spill] sm:$0xff] %v32771_v61  ;;  %v5913_v39 = vmax.f32 %v36019_v31, %v5769_v7  ;;  %v36022_v42 = vmax.f32 %v36020_v50, %v36021_v33  ;;  %26574 = vmatmul.mubr.bf16.gmra.mrb[56].mxu1 %v32771_v61  ;;  %v6207_v7 = vmax.f32 %v6063_v3, 0.0  ;;  %v5375_v2 = vpop.f32.mrb[29].mxu0  ;;  %v36025_v33 = vld [vmem:[#allocation357_spill] sm:$0xff] }
 0x53e   : > { %v6061_v47 = vadd.f32 %v32487_v22, %v5910_v49  ;;  %v5772_v49 = vmax.f32 %v36023_v10, %v25827_v29  ;;  %v25828_v24 = vpop.f32.mrb[30].mxu0 }
 0x53f   : > { %v5911_v41 = vmax.f32 %v36022_v42, %v5767_v43  ;;  %v6064_v34 = vadd.f32 %v32487_v22, %v5913_v39  ;;  %v29792_v43 = vld [vmem:[%s34628_s3 + $0xa0] sm:$0xff]   ;;  %v5770_v39 = vmax.f32 %v36025_v33, %v5375_v2  ;;  %v36027_v42 = vld [vmem:[#allocation98_spill] sm:$0xff]  ;;  %v5378_v29 = vpop.f32.mrb[31].mxu0  ;;  %v36036_v2 = vld [vmem:[#allocation359_spill] sm:$0xff] }
 0x540   : > { %v6205_v44 = vmax.f32 %v6061_v47, 0.0  ;;  %v5771_v33 = vmax.f32 %v36036_v2, %v5378_v29  ;;  %26029 = vmatprep.subr.bf16.mxu0 %v29792_v43 }
 0x541   : > { %v6062_v26 = vadd.f32 %v32487_v22, %v5911_v41  ;;  %v6208_v56 = vmax.f32 %v6064_v34, 0.0  ;;  %v36028_v41 = vld [vmem:[#allocation236_spill] sm:$0xff]  ;;  %v36030_v34 = vld [vmem:[#allocation358_spill] sm:$0xff]  ;;  %26030 = vmatpush3.bf16.msra.mxu0 %v29792_v43 }
 0x542   : > { %v32798_v31 = vpack.c.bf16 %v6205_v44, %v6204_v28  ;;  %v36029_v58 = vmax.f32 %v36027_v42, %v36028_v41  ;;  %v5773_v61 = vmax.f32 %v36030_v34, %v25828_v24  ;;  %v36033_v28 = vld [vmem:[#allocation99_spill] sm:$0xff]  ;;  %v36046_v43 = vld [vmem:[#allocation102_spill] sm:$0xff] }
 0x543   : > { %v6206_v50 = vmax.f32 %v6062_v26, 0.0  ;;  %v32801_v47 = vpack.c.bf16 %v6208_v56, %v6207_v7  ;;  %v36035_v26 = vmax.f32 %v36033_v28, %v36034_v55  ;;  %v36043_v28 = vld [vmem:[#allocation360_spill] sm:$0xff]  ;;  %25970 = vmatmul.mubr.bf16.gmra.mrb[76].mxu0 %v32083_v11 }
 0x544   : > { %36024 = vst [vmem:[#allocation289_spill] sm:$0xff] %v32798_v31  ;;  %v5916_v3 = vmax.f32 %v36029_v58, %v5772_v49  ;;  %26577 = vmatprep.mubr.bf16.mxu1 %v32798_v31  ;;  %v29793_v58 = vld [vmem:[%s34628_s3 + $0xa8] sm:$0xff]   ;;  %v36037_v49 = vld [vmem:[#allocation100_spill] sm:$0xff]  ;;  %25973 = vmatprep.mubr.bf16.mxu0 %v32140_v36 }
 0x545   : > { %36026 = vst [vmem:[#allocation30_spill] sm:$0xff] %v32801_v47  ;;  %v32807_v10 = vpack.c.bf16 %v6206_v50, %v6205_v44  ;;  %v32809_v25 = vpack.c.bf16 %v6207_v7, %v6206_v50  ;;  %v5914_v32 = vmax.f32 %v36035_v26, %v5770_v39  ;;  %v36039_v44 = vmax.f32 %v36037_v49, %v36038_v6  ;;  %v36040_v7 = vld [vmem:[#allocation101_spill] sm:$0xff]  ;;  %v36041_v50 = vld [vmem:[#allocation239_spill] sm:$0xff]  ;;  %v36068_v36 = vld [vmem:[#allocation366_spill] sm:$0xff] }
 0x546   : > { %v6067_v56 = vadd.f32 %v32487_v22, %v5916_v3  ;;  %v36042_v39 = vmax.f32 %v36040_v7, %v36041_v50  ;;  %v25831_v3 = vpop.f32.mrb[32].mxu0  ;;  %26031 = vmatprep.subr.bf16.mxu0 %v29793_v58  ;;  %v36044_v6 = vld [vmem:[#allocation361_spill] sm:$0xff]  ;;  %v36047_v50 = vld [vmem:[#allocation240_spill] sm:$0xff] }
 0x547   : > { %36031 = vst [vmem:[#allocation168_spill] sm:$0xff] %v32807_v10  ;;  %36032 = vst [vmem:[#allocation290_spill] sm:$0xff] %v32809_v25  ;;  %v5917_v24 = vmax.f32 %v36039_v44, %v5773_v61  ;;  %v6065_v55 = vadd.f32 %v32487_v22, %v5914_v32  ;;  %26578 = vmatmul.mubr.bf16.gmra.mrb[60].mxu1 %v32809_v25  ;;  %v29794_v32 = vld [vmem:[%s34628_s3 + $0xb0] sm:$0xff]   ;;  %v5776_v26 = vmax.f32 %v36043_v28, %v25831_v3  ;;  %v5391_v2 = vpop.f32.mrb[33].mxu0  ;;  %v36049_v25 = vld [vmem:[#allocation362_spill] sm:$0xff] }
 0x548   : > { %v5915_v42 = vmax.f32 %v36042_v39, %v5771_v33  ;;  %26597 = vmatprep.mubr.bf16.mxu1 %v32051_v23  ;;  %v6211_v34 = vmax.f32 %v6067_v56, 0.0  ;;  %v5774_v44 = vmax.f32 %v36044_v6, %v5391_v2  ;;  %v36048_v39 = vmax.f32 %v36046_v43, %v36047_v50  ;;  %26032 = vmatpush3.bf16.msra.mxu0 %v29793_v58  ;;  %v36050_v56 = vld [vmem:[#allocation103_spill] sm:$0xff] }
 0x549   : > { %v6068_v41 = vadd.f32 %v32487_v22, %v5917_v24  ;;  %v6209_v33 = vmax.f32 %v6065_v55, 0.0  ;;  %v25832_v24 = vpop.f32.mrb[34].mxu0  ;;  %v36053_v28 = vld [vmem:[#allocation363_spill] sm:$0xff]  ;;  %26033 = vmatprep.subr.bf16.mxu0 %v29794_v32 }
 0x54a   : > { %v6066_v61 = vadd.f32 %v32487_v22, %v5915_v42  ;;  %v5920_v42 = vmax.f32 %v36048_v39, %v5776_v26  ;;  %v5777_v31 = vmax.f32 %v36049_v25, %v25832_v24  ;;  %v5394_v0 = vpop.f32.mrb[35].mxu0  ;;  %v36056_v25 = vld [vmem:[#allocation104_spill] sm:$0xff]  ;;  %v36057_v24 = vld [vmem:[#allocation242_spill] sm:$0xff]  ;;  %v36060_v50 = vld [vmem:[#allocation243_spill] sm:$0xff] }
 0x54b   : > { %v6212_v29 = vmax.f32 %v6068_v41, 0.0  ;;  %v36051_v41 = vld [vmem:[#allocation241_spill] sm:$0xff]  ;;  %v5775_v55 = vmax.f32 %v36053_v28, %v5394_v0  ;;  %v36058_v58 = vmax.f32 %v36056_v25, %v36057_v24  ;;  %v36062_v28 = vld [vmem:[#allocation364_spill] sm:$0xff]  ;;  %25974 = vmatmul.mubr.bf16.gmra.mrb[80].mxu0 %v32156_v52 }
 0x54c   : > { %v6210_v49 = vmax.f32 %v6066_v61, 0.0  ;;  %v36052_v9 = vmax.f32 %v36050_v56, %v36051_v41  ;;  %v29783_v61 = vld [vmem:[%s34628_s3 + $0x288] sm:$0xff]   ;;  %v6071_v26 = vadd.f32 %v32487_v22, %v5920_v42  ;;  %v25835_v42 = vpop.f32.mrb[36].mxu0  ;;  %v29784_v56 = vld [vmem:[%s34628_s3 + $0x290] sm:$0xff]   ;;  %26034 = vmatpush3.bf16.msra.mxu0 %v29794_v32  ;;  %25977 = vmatprep.mubr.bf16.mxu0 %v32167_v27 }
 0x54d   : > { %v32838_v7 = vpack.c.bf16 %v6212_v29, %v6211_v34  ;;  %v5921_v43 = vmax.f32 %v36058_v58, %v5777_v31  ;;  %v5407_v25 = vpop.f32.mrb[37].mxu0  ;;  %v36064_v58 = vld [vmem:[#allocation365_spill] sm:$0xff] }
 0x54e   : > { %v5918_v3 = vmax.f32 %v36052_v9, %v5774_v44  ;;  %v32851_v2 = vpack.c.bf16 %v6210_v49, %v6209_v33  ;;  %v32853_v6 = vpack.c.bf16 %v6211_v34, %v6210_v49  ;;  %v29796_v9 = vld [vmem:[%s34628_s3 + $0xb8] sm:$0xff]   ;;  %v36059_v44 = vld [vmem:[#allocation105_spill] sm:$0xff]  ;;  %v6215_v41 = vmax.f32 %v6071_v26, 0.0 }
 0x54f   : > { %36045 = vst [vmem:[#allocation31_spill] sm:$0xff] %v32838_v7  ;;  %v36061_v33 = vmax.f32 %v36059_v44, %v36060_v50  ;;  %26598 = vmatmul.mubr.bf16.vlgmr.msra.gmra.mrb[0].mxu1 %v32040_v4  ;;  %v6072_v34 = vadd.f32 %v32487_v22, %v5921_v43  ;;  %26035 = vmatprep.subr.bf16.mxu0 %v29796_v9  ;;  %v36065_v50 = vld [vmem:[#allocation106_spill] sm:$0xff] }
 0x550   : > { %36054 = vst [vmem:[#allocation169_spill] sm:$0xff] %v32851_v2  ;;  %36055 = vst [vmem:[#allocation291_spill] sm:$0xff] %v32853_v6  ;;  %v6069_v0 = vadd.f32 %v32487_v22, %v5918_v3  ;;  %26662 = vmatpush3.bf16.msra.mxu1 %v32358_v20  ;;  %26601 = vmatprep.mubr.bf16.mxu1 %v32093_v17  ;;  %v5778_v43 = vmax.f32 %v36064_v58, %v5407_v25  ;;  %v36073_v25 = vld [vmem:[#allocation367_spill] sm:$0xff] }
 0x551   : > { %v5919_v39 = vmax.f32 %v36061_v33, %v5775_v55  ;;  %26663 = vmatprep.subr.bf16.mxu1 %v29783_v61  ;;  %v6216_v3 = vmax.f32 %v6072_v34, 0.0  ;;  %v5780_v55 = vmax.f32 %v36062_v28, %v25835_v42  ;;  %v36066_v33 = vld [vmem:[#allocation244_spill] sm:$0xff]  ;;  %v36071_v28 = vld [vmem:[#allocation245_spill] sm:$0xff]  ;;  %26036 = vmatpush3.bf16.msra.mxu0 %v29796_v9 }
 0x552   : > { %v6213_v31 = vmax.f32 %v6069_v0, 0.0  ;;  %v25836_v0 = vpop.f32.mrb[38].mxu0 }
 0x553   : > { %v6070_v49 = vadd.f32 %v32487_v22, %v5919_v39  ;;  %v32880_v44 = vpack.c.bf16 %v6216_v3, %v6215_v41  ;;  %v36067_v39 = vmax.f32 %v36065_v50, %v36066_v33  ;;  %v5781_v32 = vmax.f32 %v36068_v36, %v25836_v0  ;;  %v5410_v26 = vpop.f32.mrb[39].mxu0  ;;  %v29785_v50 = vld [vmem:[%s34628_s3 + $0x298] sm:$0xff]   ;;  %v36075_v0 = vld [vmem:[#allocation246_spill] sm:$0xff]  ;;  %v36078_v33 = vld [vmem:[#allocation247_spill] sm:$0xff]  ;;  %25978 = vmatmul.mubr.bf16.gmra.mrb[84].mxu0 %v32188_v45 }
 0x554   : > { %v32877_v24 = vpack.c.bf16 %v6213_v31, %v6212_v29  ;;  %26664 = vmatpush3.bf16.msra.mxu1 %v29783_v61  ;;  %v36070_v29 = vld [vmem:[#allocation107_spill] sm:$0xff]  ;;  %v5779_v58 = vmax.f32 %v36073_v25, %v5410_v26  ;;  %v36074_v36 = vld [vmem:[#allocation108_spill] sm:$0xff]  ;;  %25981 = vmatprep.mubr.bf16.mxu0 %v32239_v60 }
 0x555   : > { %v6214_v20 = vmax.f32 %v6070_v49, 0.0  ;;  %v5924_v6 = vmax.f32 %v36067_v39, %v5780_v55  ;;  %v36072_v49 = vmax.f32 %v36070_v29, %v36071_v28  ;;  %26665 = vmatprep.subr.bf16.mxu1 %v29784_v56  ;;  %v36076_v61 = vmax.f32 %v36074_v36, %v36075_v0  ;;  %v25839_v29 = vpop.f32.mrb[40].mxu0  ;;  %v36080_v25 = vld [vmem:[#allocation368_spill] sm:$0xff] }
 0x556   : > { %36063 = vst [vmem:[#allocation32_spill] sm:$0xff] %v32877_v24  ;;  %v5423_v36 = vpop.f32.mrb[41].mxu0 }
 0x557   : > { %v32886_v34 = vpack.c.bf16 %v6214_v20, %v6213_v31  ;;  %v32888_v42 = vpack.c.bf16 %v6215_v41, %v6214_v20  ;;  %v5922_v24 = vmax.f32 %v36072_v49, %v5778_v43  ;;  %v6075_v55 = vadd.f32 %v32487_v22, %v5924_v6  ;;  %v36077_v20 = vld [vmem:[#allocation109_spill] sm:$0xff]  ;;  %26602 = vmatmul.mubr.bf16.gmra.mrb[4].mxu1 %v32091_v18  ;;  %v36086_v18 = vld [vmem:[#allocation370_spill] sm:$0xff] }
 0x558   : > { %v5925_v31 = vmax.f32 %v36076_v61, %v5781_v32  ;;  %v36079_v43 = vmax.f32 %v36077_v20, %v36078_v33  ;;  %26605 = vmatprep.mubr.bf16.mxu1 %v32165_v12  ;;  %26666 = vmatpush3.bf16.msra.mxu1 %v29784_v56  ;;  %v36083_v20 = vld [vmem:[#allocation110_spill] sm:$0xff]  ;;  %v36084_v33 = vld [vmem:[#allocation248_spill] sm:$0xff] }
 0x559   : > { %36069 = vst [vmem:[#allocation170_spill] sm:$0xff] %v32888_v42  ;;  %v6073_v41 = vadd.f32 %v32487_v22, %v5922_v24  ;;  %26667 = vmatprep.subr.bf16.mxu1 %v29785_v50  ;;  %v29786_v24 = vld [vmem:[%s34628_s3 + $0x2a0] sm:$0xff]   ;;  %v6219_v28 = vmax.f32 %v6075_v55, 0.0 }
 0x55a   : > { %v5923_v39 = vmax.f32 %v36079_v43, %v5779_v58  ;;  %v6076_v26 = vadd.f32 %v32487_v22, %v5925_v31  ;;  %v5784_v58 = vmax.f32 %v36080_v25, %v25839_v29  ;;  %v36082_v31 = vld [vmem:[#allocation369_spill] sm:$0xff]  ;;  %v36085_v43 = vmax.f32 %v36083_v20, %v36084_v33  ;;  %v36098_v20 = vld [vmem:[#allocation251_spill] sm:$0xff] }
 0x55b   : > { %v6217_v6 = vmax.f32 %v6073_v41, 0.0  ;;  %v5782_v56 = vmax.f32 %v36082_v31, %v5423_v36  ;;  %v25840_v41 = vpop.f32.mrb[42].mxu0  ;;  %v36090_v29 = vld [vmem:[#allocation249_spill] sm:$0xff]  ;;  %v29790_v36 = vld [vmem:[%s34628_s3 + $0x2a8] sm:$0xff]   ;;  %25982 = vmatmul.mubr.bf16.gmra.mrb[88].mxu0 %v32264_v15 }
 0x55c   : > { %v6074_v32 = vadd.f32 %v32487_v22, %v5923_v39  ;;  %v6220_v49 = vmax.f32 %v6076_v26, 0.0  ;;  %v5928_v39 = vmax.f32 %v36085_v43, %v5784_v58  ;;  %v5785_v42 = vmax.f32 %v36086_v18, %v25840_v41  ;;  %v5426_v27 = vpop.f32.mrb[43].mxu0  ;;  %26668 = vmatpush3.bf16.msra.mxu1 %v29785_v50  ;;  %v36089_v26 = vld [vmem:[#allocation111_spill] sm:$0xff]  ;;  %v36094_v50 = vld [vmem:[#allocation112_spill] sm:$0xff]  ;;  %25985 = vmatprep.mubr.bf16.mxu0 %v32275_v51 }
 0x55d   : > { %v32915_v0 = vpack.c.bf16 %v6217_v6, %v6216_v3  ;;  %v36091_v3 = vmax.f32 %v36089_v26, %v36090_v29  ;;  %26669 = vmatprep.subr.bf16.mxu1 %v29786_v24  ;;  %v29795_v43 = vld [vmem:[%s34628_s3 + $0x2b0] sm:$0xff]  }
 0x55e   : > { %v6218_v61 = vmax.f32 %v6074_v32, 0.0  ;;  %v32922_v9 = vpack.c.bf16 %v6220_v49, %v6219_v28  ;;  %v36092_v32 = vld [vmem:[#allocation371_spill] sm:$0xff]  ;;  %v6079_v18 = vadd.f32 %v32487_v22, %v5928_v39  ;;  %v36095_v49 = vld [vmem:[#allocation250_spill] sm:$0xff] }
 0x55f   : > { %36081 = vst [vmem:[#allocation33_spill] sm:$0xff] %v32915_v0  ;;  %v5926_v25 = vmax.f32 %v36091_v3, %v5782_v56  ;;  %v5783_v0 = vmax.f32 %v36092_v32, %v5426_v27  ;;  %v36096_v31 = vmax.f32 %v36094_v50, %v36095_v49  ;;  %v36097_v56 = vld [vmem:[#allocation113_spill] sm:$0xff]  ;;  %26606 = vmatmul.mubr.bf16.gmra.mrb[8].mxu1 %v32159_v5 }
 0x560   : > { %36087 = vst [vmem:[#allocation171_spill] sm:$0xff] %v32922_v9  ;;  %v32924_v55 = vpack.c.bf16 %v6218_v61, %v6217_v6  ;;  %v32933_v58 = vpack.c.bf16 %v6219_v28, %v6218_v61  ;;  %v36099_v27 = vmax.f32 %v36097_v56, %v36098_v20  ;;  %26609 = vmatprep.mubr.bf16.mxu1 %v32197_v8  ;;  %v6223_v39 = vmax.f32 %v6079_v18, 0.0  ;;  %v36101_v50 = vld [vmem:[#allocation373_spill] sm:$0xff]  ;;  %v36104_v56 = vld [vmem:[#allocation252_spill] sm:$0xff]  ;;  %v36107_v18 = vld [vmem:[#allocation115_spill] sm:$0xff] }
 0x561   : > { %v5929_v6 = vmax.f32 %v36096_v31, %v5785_v42  ;;  %v6077_v41 = vadd.f32 %v32487_v22, %v5926_v25  ;;  %26670 = vmatpush3.bf16.msra.mxu1 %v29786_v24  ;;  %v25843_v42 = vpop.f32.mrb[44].mxu0  ;;  %v36103_v24 = vld [vmem:[#allocation114_spill] sm:$0xff] }
 0x562   : > { %36088 = vst [vmem:[#allocation292_spill] sm:$0xff] %v32924_v55  ;;  %36093 = vst [vmem:[#allocation293_spill] sm:$0xff] %v32933_v58  ;;  %v5927_v33 = vmax.f32 %v36099_v27, %v5783_v0  ;;  %26671 = vmatprep.subr.bf16.mxu1 %v29790_v36  ;;  %v36100_v0 = vld [vmem:[#allocation372_spill] sm:$0xff]  ;;  %v5439_v3 = vpop.f32.mrb[45].mxu0  ;;  %v36105_v20 = vmax.f32 %v36103_v24, %v36104_v56  ;;  %v36114_v24 = vld [vmem:[#allocation254_spill] sm:$0xff] }
 0x563   : > { %v6080_v28 = vadd.f32 %v32487_v22, %v5929_v6  ;;  %v5788_v29 = vmax.f32 %v36100_v0, %v25843_v42  ;;  %v6221_v25 = vmax.f32 %v6077_v41, 0.0  ;;  %v5786_v49 = vmax.f32 %v36101_v50, %v5439_v3  ;;  %v25844_v31 = vpop.f32.mrb[46].mxu0  ;;  %v36110_v0 = vld [vmem:[#allocation375_spill] sm:$0xff]  ;;  %25986 = vmatmul.mubr.bf16.gmra.mrb[92].mxu0 %v32305_v30 }
 0x564   : > { %v6078_v61 = vadd.f32 %v32487_v22, %v5927_v33  ;;  %v36106_v33 = vld [vmem:[#allocation374_spill] sm:$0xff]  ;;  %v5442_v58 = vpop.f32.mrb[47].mxu0  ;;  %25989 = vmatprep.mubr.bf16.mxu0 %v32349_v57 }
 0x565   : > { %v6224_v26 = vmax.f32 %v6080_v28, 0.0  ;;  %v5932_v27 = vmax.f32 %v36105_v20, %v5788_v29  ;;  %v5789_v9 = vmax.f32 %v36106_v33, %v25844_v31  ;;  %26672 = vmatpush3.bf16.msra.mxu1 %v29790_v36  ;;  %v36108_v28 = vld [vmem:[#allocation253_spill] sm:$0xff]  ;;  %v5787_v41 = vmax.f32 %v36110_v0, %v5442_v58  ;;  %v36113_v31 = vld [vmem:[#allocation116_spill] sm:$0xff] }
 0x566   : > { %v6222_v32 = vmax.f32 %v6078_v61, 0.0  ;;  %v36109_v55 = vmax.f32 %v36107_v18, %v36108_v28  ;;  %26673 = vmatprep.subr.bf16.mxu1 %v29795_v43  ;;  %v29797_v61 = vld [vmem:[%s34628_s3 + $0x2b8] sm:$0xff]   ;;  %v36115_v36 = vmax.f32 %v36113_v31, %v36114_v24  ;;  %v36116_v58 = vld [vmem:[#allocation117_spill] sm:$0xff] }
 0x567   : > { %v32954_v6 = vpack.c.bf16 %v6224_v26, %v6223_v39  ;;  %v6083_v29 = vadd.f32 %v32487_v22, %v5932_v27  ;;  %26610 = vmatmul.mubr.bf16.gmra.mrb[12].mxu1 %v32195_v54  ;;  %v32988_v27 = vld [vmem:[%s34628_s3 + $0x2c0] sm:$0xff]   ;;  %v36188_v54 = vld [vmem:[#allocation391_spill] sm:$0xff] }
 0x568   : > { %v5930_v42 = vmax.f32 %v36109_v55, %v5786_v49  ;;  %v32967_v3 = vpack.c.bf16 %v6222_v32, %v6221_v25  ;;  %v32969_v50 = vpack.c.bf16 %v6223_v39, %v6222_v32  ;;  %v5933_v56 = vmax.f32 %v36115_v36, %v5789_v9  ;;  %v36117_v49 = vld [vmem:[#allocation255_spill] sm:$0xff]  ;;  %26613 = vmatprep.mubr.bf16.mxu1 %v32273_v48  ;;  %v25847_v32 = vpop.f32.mrb[48].mxu0  ;;  %v36121_v36 = vld [vmem:[#allocation377_spill] sm:$0xff] }
 0x569   : > { %36102 = vst [vmem:[#allocation34_spill] sm:$0xff] %v32954_v6  ;;  %v36118_v20 = vmax.f32 %v36116_v58, %v36117_v49  ;;  %26674 = vmatpush3.bf16.msra.mxu1 %v29795_v43  ;;  %v6227_v18 = vmax.f32 %v6083_v29, 0.0  ;;  %v36123_v58 = vld [vmem:[#allocation118_spill] sm:$0xff]  ;;  %v36124_v49 = vld [vmem:[#allocation256_spill] sm:$0xff] }
 0x56a   : > { %36111 = vst [vmem:[#allocation172_spill] sm:$0xff] %v32967_v3  ;;  %36112 = vst [vmem:[#allocation294_spill] sm:$0xff] %v32969_v50  ;;  %v6081_v55 = vadd.f32 %v32487_v22, %v5930_v42  ;;  %v6084_v39 = vadd.f32 %v32487_v22, %v5933_v56  ;;  %26675 = vmatprep.subr.bf16.mxu1 %v29797_v61  ;;  %v36119_v42 = vld [vmem:[#allocation376_spill] sm:$0xff]  ;;  %v36126_v50 = vld [vmem:[#allocation378_spill] sm:$0xff] }
 0x56b   : > { %v5931_v33 = vmax.f32 %v36118_v20, %v5787_v41  ;;  %v5792_v0 = vmax.f32 %v36119_v42, %v25847_v32  ;;  %v5455_v41 = vpop.f32.mrb[49].mxu0  ;;  %v36125_v20 = vmax.f32 %v36123_v58, %v36124_v49  ;;  %v36130_v32 = vld [vmem:[#allocation257_spill] sm:$0xff]  ;;  %v36133_v58 = vld [vmem:[#allocation120_spill] sm:$0xff]  ;;  %25990 = vmatmul.mubr.bf16.gmra.mrb[96].mxu0 %v32374_v38 }
 0x56c   : > { %v6225_v25 = vmax.f32 %v6081_v55, 0.0  ;;  %v6228_v28 = vmax.f32 %v6084_v39, 0.0  ;;  %v5790_v43 = vmax.f32 %v36121_v36, %v5455_v41  ;;  %v25848_v56 = vpop.f32.mrb[50].mxu0  ;;  %v36132_v41 = vld [vmem:[#allocation379_spill] sm:$0xff]  ;;  %25993 = vmatprep.mubr.bf16.mxu0 %v32385_v40 }
 0x56d   : > { %v6082_v9 = vadd.f32 %v32487_v22, %v5931_v33  ;;  %v5936_v33 = vmax.f32 %v36125_v20, %v5792_v0  ;;  %v5793_v6 = vmax.f32 %v36126_v50, %v25848_v56  ;;  %v5458_v3 = vpop.f32.mrb[51].mxu0  ;;  %26676 = vmatpush3.bf16.msra.mxu1 %v29797_v61  ;;  %v36134_v0 = vld [vmem:[#allocation258_spill] sm:$0xff] }
 0x56e   : > { %v32991_v31 = vpack.c.bf16 %v6225_v25, %v6224_v26  ;;  %v32994_v55 = vpack.c.bf16 %v6228_v28, %v6227_v18  ;;  %v36129_v26 = vld [vmem:[#allocation119_spill] sm:$0xff]  ;;  %v5791_v36 = vmax.f32 %v36132_v41, %v5458_v3  ;;  %26741 = vmatprep.subr.bf16.mxu1 %v32988_v27  ;;  %v36135_v49 = vmax.f32 %v36133_v58, %v36134_v0  ;;  %v36141_v58 = vld [vmem:[#allocation381_spill] sm:$0xff] }
 0x56f   : > { %v6226_v24 = vmax.f32 %v6082_v9, 0.0  ;;  %v36131_v9 = vmax.f32 %v36129_v26, %v36130_v32  ;;  %26614 = vmatmul.mubr.bf16.gmra.mrb[16].mxu1 %v32267_v53  ;;  %v36139_v32 = vld [vmem:[#allocation380_spill] sm:$0xff] }
 0x570   : > { %36120 = vst [vmem:[#allocation35_spill] sm:$0xff] %v32991_v31  ;;  %36122 = vst [vmem:[#allocation173_spill] sm:$0xff] %v32994_v55  ;;  %v6087_v31 = vadd.f32 %v32487_v22, %v5936_v33  ;;  %v5937_v50 = vmax.f32 %v36135_v49, %v5793_v6  ;;  %26617 = vmatprep.mubr.bf16.mxu1 %v32314_v21  ;;  %v25851_v6 = vpop.f32.mrb[52].mxu0 }
 0x571   : > { %v33000_v29 = vpack.c.bf16 %v6226_v24, %v6225_v25  ;;  %v33002_v39 = vpack.c.bf16 %v6227_v18, %v6226_v24  ;;  %v5934_v42 = vmax.f32 %v36131_v9, %v5790_v43  ;;  %v36136_v25 = vld [vmem:[#allocation121_spill] sm:$0xff]  ;;  %v36137_v18 = vld [vmem:[#allocation259_spill] sm:$0xff]  ;;  %v5796_v9 = vmax.f32 %v36139_v32, %v25851_v6 }
 0x572   : > { %v36138_v24 = vmax.f32 %v36136_v25, %v36137_v18  ;;  %v6088_v3 = vadd.f32 %v32487_v22, %v5937_v50  ;;  %v6231_v33 = vmax.f32 %v6087_v31, 0.0  ;;  %v36142_v25 = vld [vmem:[#allocation122_spill] sm:$0xff]  ;;  %v36143_v18 = vld [vmem:[#allocation260_spill] sm:$0xff]  ;;  %v36149_v6 = vld [vmem:[#allocation261_spill] sm:$0xff] }
 0x573   : > { %36127 = vst [vmem:[#allocation295_spill] sm:$0xff] %v33000_v29  ;;  %36128 = vst [vmem:[#allocation36_spill] sm:$0xff] %v33002_v39  ;;  %v6085_v61 = vadd.f32 %v32487_v22, %v5934_v42  ;;  %v5471_v42 = vpop.f32.mrb[53].mxu0  ;;  %v36144_v50 = vmax.f32 %v36142_v25, %v36143_v18  ;;  %v36145_v39 = vld [vmem:[#allocation382_spill] sm:$0xff] }
 0x574   : > { %v5935_v56 = vmax.f32 %v36138_v24, %v5791_v36  ;;  %v6232_v26 = vmax.f32 %v6088_v3, 0.0  ;;  %v5794_v0 = vmax.f32 %v36141_v58, %v5471_v42  ;;  %v25852_v49 = vpop.f32.mrb[54].mxu0  ;;  %v36148_v3 = vld [vmem:[#allocation123_spill] sm:$0xff]  ;;  %v36153_v58 = vld [vmem:[#allocation124_spill] sm:$0xff]  ;;  %v36154_v25 = vld [vmem:[#allocation262_spill] sm:$0xff] }
 0x575   : > { %v6229_v43 = vmax.f32 %v6085_v61, 0.0  ;;  %v5940_v24 = vmax.f32 %v36144_v50, %v5796_v9  ;;  %v5797_v61 = vmax.f32 %v36145_v39, %v25852_v49  ;;  %v5474_v55 = vpop.f32.mrb[55].mxu0  ;;  %v36150_v32 = vmax.f32 %v36148_v3, %v36149_v6 }
 0x576   : > { %v6086_v20 = vadd.f32 %v32487_v22, %v5935_v56  ;;  %v33031_v56 = vpack.c.bf16 %v6232_v26, %v6231_v33  ;;  %v36155_v9 = vmax.f32 %v36153_v58, %v36154_v25  ;;  %v36157_v26 = vld [vmem:[#allocation263_spill] sm:$0xff]  ;;  %v36161_v25 = vld [vmem:[#allocation126_spill] sm:$0xff] }
 0x577   : > { %v33024_v41 = vpack.c.bf16 %v6229_v43, %v6228_v28  ;;  %v5938_v28 = vmax.f32 %v36150_v32, %v5794_v0  ;;  %v6091_v42 = vadd.f32 %v32487_v22, %v5940_v24  ;;  %26618 = vmatmul.mubr.bf16.gmra.mrb[20].mxu1 %v32308_v63  ;;  %v36159_v24 = vld [vmem:[#allocation385_spill] sm:$0xff] }
 0x578   : > { %v6230_v36 = vmax.f32 %v6086_v20, 0.0  ;;  %36146 = vst [vmem:[#allocation37_spill] sm:$0xff] %v33031_v56  ;;  %v5941_v18 = vmax.f32 %v36155_v9, %v5797_v61  ;;  %26621 = vmatprep.mubr.bf16.mxu1 %v32383_v37  ;;  %v36162_v9 = vld [vmem:[#allocation264_spill] sm:$0xff] }
 0x579   : > { %36140 = vst [vmem:[#allocation174_spill] sm:$0xff] %v33024_v41  ;;  %v36151_v41 = vld [vmem:[#allocation383_spill] sm:$0xff]  ;;  %v6089_v39 = vadd.f32 %v32487_v22, %v5938_v28  ;;  %v36160_v28 = vld [vmem:[#allocation386_spill] sm:$0xff] }
 0x57a   : > { %v33033_v31 = vpack.c.bf16 %v6230_v36, %v6229_v43  ;;  %v5795_v20 = vmax.f32 %v36151_v41, %v5474_v55  ;;  %v33039_v29 = vpack.c.bf16 %v6231_v33, %v6230_v36  ;;  %v36156_v43 = vld [vmem:[#allocation125_spill] sm:$0xff]  ;;  %v6092_v55 = vadd.f32 %v32487_v22, %v5941_v18  ;;  %v25855_v41 = vpop.f32.mrb[56].mxu0  ;;  %v36164_v18 = vld [vmem:[#allocation387_spill] sm:$0xff] }
 0x57b   : > { %v36158_v49 = vmax.f32 %v36156_v43, %v36157_v26  ;;  %v6235_v36 = vmax.f32 %v6091_v42, 0.0  ;;  %v5800_v61 = vmax.f32 %v36159_v24, %v25855_v41  ;;  %v5487_v3 = vpop.f32.mrb[57].mxu0  ;;  %v6233_v6 = vmax.f32 %v6089_v39, 0.0  ;;  %v36167_v42 = vld [vmem:[#allocation265_spill] sm:$0xff]  ;;  %v36169_v41 = vld [vmem:[#allocation388_spill] sm:$0xff] }
 0x57c   : > { %36147 = vst [vmem:[#allocation175_spill] sm:$0xff] %v33033_v31  ;;  %36152 = vst [vmem:[#allocation296_spill] sm:$0xff] %v33039_v29  ;;  %v6236_v0 = vmax.f32 %v6092_v55, 0.0  ;;  %v25856_v58 = vpop.f32.mrb[58].mxu0  ;;  %v36163_v43 = vmax.f32 %v36161_v25, %v36162_v9 }
 0x57d   : > { %v5939_v50 = vmax.f32 %v36158_v49, %v5795_v20  ;;  %v5798_v20 = vmax.f32 %v36160_v28, %v5487_v3  ;;  %v5801_v49 = vmax.f32 %v36164_v18, %v25856_v58  ;;  %v5490_v56 = vpop.f32.mrb[59].mxu0  ;;  %v29963_v3 = vld [vmem:[%s34627_s2] ss:$0 sm:$0xff]  ;;  %v36172_v28 = vld [vmem:[#allocation128_spill] sm:$0xff]  ;;  %v36173_v58 = vld [vmem:[#allocation266_spill] sm:$0xff] }
 0x57e   : > { %v5944_v26 = vmax.f32 %v36163_v43, %v5800_v61  ;;  %v33061_v29 = vpack.c.bf16 %v6236_v0, %v6235_v36  ;;  %v5799_v24 = vmax.f32 %v36169_v41, %v5490_v56  ;;  %v36174_v25 = vmax.f32 %v36172_v28, %v36173_v58  ;;  %v36175_v43 = vld [vmem:[#allocation154_spill] sm:$0xff] }
 0x57f   : > { %v6090_v33 = vadd.f32 %v32487_v22, %v5939_v50  ;;  %v36166_v22 = vld [vmem:[#allocation127_spill] sm:$0xff]  ;;  %25994 = vmatmul.mubr.bf16.gmra.mrb[100].mxu0 %v36175_v43 }
 0x580   : > { %36165 = vst [vmem:[#allocation297_spill] sm:$0xff] %v33061_v29  ;;  %v36168_v50 = vmax.f32 %v36166_v22, %v36167_v42  ;;  %v6095_v61 = vadd.f32 %v29963_v3, %v5944_v26  ;;  %v5945_v9 = vmax.f32 %v36174_v25, %v5801_v49  ;;  %v36176_v22 = vld [vmem:[#allocation129_spill] sm:$0xff] }
 0x581   : > { %v6234_v32 = vmax.f32 %v6090_v33, 0.0  ;;  %v36182_v49 = vld [vmem:[#allocation389_spill] sm:$0xff] }
 0x582   : > { %v5942_v55 = vmax.f32 %v36168_v50, %v5798_v20  ;;  %v36177_v20 = vld [vmem:[#allocation267_spill] sm:$0xff]  ;;  %v6239_v29 = vmax.f32 %v6095_v61, 0.0 }
 0x583   : > { %v33067_v39 = vpack.c.bf16 %v6234_v32, %v6233_v6  ;;  %v33069_v33 = vpack.c.bf16 %v6235_v36, %v6234_v32  ;;  %v36178_v42 = vmax.f32 %v36176_v22, %v36177_v20  ;;  %v36179_v6 = vld [vmem:[#allocation156_spill] sm:$0xff]  ;;  %v36180_v36 = vld [vmem:[#allocation275_spill] sm:$0xff]  ;;  %v6096_v32 = vadd.f32 %v29963_v3, %v5945_v9  ;;  %v36185_v20 = vld [vmem:[#allocation130_spill] sm:$0xff] }
 0x584   : > { %v6093_v18 = vadd.f32 %v29963_v3, %v5942_v55  ;;  %25997 = vmatprep.mubr.bf16.mxu0 %v36179_v6  ;;  %26622 = vmatmul.mubr.bf16.gmra.mrb[24].mxu1 %v36180_v36  ;;  %v36181_v50 = vld [vmem:[#allocation155_spill] sm:$0xff] }
 0x585   : > { %36170 = vst [vmem:[#allocation38_spill] sm:$0xff] %v33067_v39  ;;  %36171 = vst [vmem:[#allocation176_spill] sm:$0xff] %v33069_v33  ;;  %v5943_v56 = vmax.f32 %v36178_v42, %v5799_v24  ;;  %26625 = vmatprep.mubr.bf16.mxu1 %v36181_v50  ;;  %v25859_v33 = vpop.f32.mrb[60].mxu0  ;;  %v6240_v28 = vmax.f32 %v6096_v32, 0.0  ;;  %v36183_v39 = vld [vmem:[#allocation390_spill] sm:$0xff]  ;;  %v36186_v42 = vld [vmem:[#allocation268_spill] sm:$0xff] }
 0x586   : > { %v6237_v41 = vmax.f32 %v6093_v18, 0.0  ;;  %v5804_v58 = vmax.f32 %v36182_v49, %v25859_v33  ;;  %v5503_v25 = vpop.f32.mrb[61].mxu0  ;;  %v36187_v63 = vmax.f32 %v36185_v20, %v36186_v42  ;;  %v36190_v61 = vld [vmem:[#allocation131_spill] sm:$0xff]  ;;  %v36191_v32 = vld [vmem:[#allocation269_spill] sm:$0xff]  ;;  %v36193_v49 = vld [vmem:[#allocation392_spill] sm:$0xff] }
 0x587   : > { %v6094_v26 = vadd.f32 %v29963_v3, %v5943_v56  ;;  %v5802_v31 = vmax.f32 %v36183_v39, %v5503_v25  ;;  %v25860_v22 = vpop.f32.mrb[62].mxu0  ;;  %v33092_v56 = vpack.c.bf16 %v6240_v28, %v6239_v29  ;;  %v36192_v43 = vmax.f32 %v36190_v61, %v36191_v32  ;;  %v36196_v25 = vld [vmem:[#allocation132_spill] sm:$0xff]  ;;  %v36201_v42 = vld [vmem:[#allocation271_spill] sm:$0xff]  ;;  %v36203_v61 = vld [vmem:[#allocation157_spill] sm:$0xff] }
 0x588   : > { %v33086_v24 = vpack.c.bf16 %v6237_v41, %v6236_v0  ;;  %v5948_v9 = vmax.f32 %v36187_v63, %v5804_v58  ;;  %v5805_v6 = vmax.f32 %v36188_v54, %v25860_v22  ;;  %v5506_v18 = vpop.f32.mrb[63].mxu0  ;;  %v36199_v58 = vld [vmem:[#allocation278_spill] sm:$0xff]  ;;  %v36200_v22 = vld [vmem:[#allocation133_spill] sm:$0xff] }
 0x589   : > { %v6238_v55 = vmax.f32 %v6094_v26, 0.0  ;;  %36189 = vst [vmem:[#allocation39_spill] sm:$0xff] %v33092_v56  ;;  %v5946_v33 = vmax.f32 %v36192_v43, %v5802_v31  ;;  %v5803_v26 = vmax.f32 %v36193_v49, %v5506_v18  ;;  %25998 = vmatmul.mubr.bf16.gmra.mrb[104].mxu0 %v36199_v58  ;;  %v36202_v56 = vmax.f32 %v36200_v22, %v36201_v42  ;;  %v36204_v31 = vld [vmem:[#allocation17_spill] sm:$0xff]  ;;  %v36219_v22 = vld [vmem:[#allocation24_spill] sm:$0xff] }
 0x58a   : > { %36184 = vst [vmem:[#allocation298_spill] sm:$0xff] %v33086_v24  ;;  %v6099_v0 = vadd.f32 %v29963_v3, %v5948_v9  ;;  %v36197_v24 = vld [vmem:[#allocation270_spill] sm:$0xff]  ;;  %26001 = vmatprep.mubr.bf16.mxu0 %v36203_v61  ;;  %v36210_v49 = vld [vmem:[#allocation281_spill] sm:$0xff]  ;;  %v36220_v42 = vld [vmem:[#allocation164_spill] sm:$0xff] }
 0x58b   : > { %v33098_v40 = vpack.c.bf16 %v6238_v55, %v6237_v41  ;;  %v33100_v39 = vpack.c.bf16 %v6239_v29, %v6238_v55  ;;  %v36198_v20 = vmax.f32 %v36196_v25, %v36197_v24  ;;  %v6097_v54 = vadd.f32 %v29963_v3, %v5946_v33  ;;  %v36212_v25 = vld [vmem:[#allocation158_spill] sm:$0xff] }
 0x58c   : > { %v5947_v38 = vmax.f32 %v36202_v56, %v5803_v26  ;;  %26626 = vmatmul.mubr.bf16.gmra.mrb[28].mxu1 %v36204_v31  ;;  %v6243_v55 = vmax.f32 %v6099_v0, 0.0  ;;  %v36209_v56 = vld [vmem:[#allocation279_spill] sm:$0xff]  ;;  %v36215_v0 = vld [vmem:[#allocation20_spill] sm:$0xff] }
 0x58d   : > { %36194 = vst [vmem:[#allocation177_spill] sm:$0xff] %v33098_v40  ;;  %36195 = vst [vmem:[#allocation299_spill] sm:$0xff] %v33100_v39  ;;  %v5949_v63 = vmax.f32 %v36198_v20, %v5805_v6  ;;  %26629 = vmatprep.mubr.bf16.mxu1 %v32475_v19  ;;  %v6241_v29 = vmax.f32 %v6097_v54, 0.0  ;;  %v36211_v26 = vld [vmem:[#allocation19_spill] sm:$0xff]  ;;  %v36216_v20 = vld [vmem:[#allocation282_spill] sm:$0xff] }
 0x58e   : > { %v6098_v41 = vadd.f32 %v29963_v3, %v5947_v38  ;;  %v29803_v38 = vld [vmem:[%s34628_s3 + $0xc0] sm:$0xff]   ;;  %v36218_v54 = vld [vmem:[#allocation160_spill] sm:$0xff]  ;;  %v36229_v40 = vld [vmem:[#allocation147_spill] sm:$0xff] }
 0x58f   : > { %v6100_v43 = vadd.f32 %v29963_v3, %v5949_v63  ;;  %v33112_v6 = vpack.c.bf16 %v6241_v29, %v6240_v28  ;;  %v36213_v3 = vld [vmem:[#allocation22_spill] sm:$0xff]  ;;  %26101 = vmatprep.subr.bf16.mxu0 %v29803_v38  ;;  %v36214_v28 = vld [vmem:[#allocation23_spill] sm:$0xff]  ;;  %v36217_v63 = vld [vmem:[#allocation161_spill] sm:$0xff] }
 0x590   : > { %v6242_v24 = vmax.f32 %v6098_v41, 0.0  ;;  %v36223_v41 = vld [vmem:[#allocation7_spill] sm:$0xff]  ;;  %v29812_v39 = vld [vmem:[%s34628_s3 + $0xf8] sm:$0xff]  }
 0x591   : > { %v6244_v9 = vmax.f32 %v6100_v43, 0.0  ;;  %36205 = vst [vmem:[#allocation40_spill] sm:$0xff] %v33112_v6  ;;  %26002 = vmatmul.mubr.bf16.gmra.mrb[108].mxu0 %v36209_v56  ;;  %v36221_v43 = vld [vmem:[#allocation283_spill] sm:$0xff]  ;;  %v36228_v6 = vld [vmem:[#allocation148_spill] sm:$0xff] }
 0x592   : > { %v33116_v32 = vpack.c.bf16 %v6242_v24, %v6241_v29  ;;  %v33118_v33 = vpack.c.bf16 %v6243_v55, %v6242_v24  ;;  %26005 = vmatprep.mubr.bf16.mxu0 %v36210_v49  ;;  %v36222_v29 = vld [vmem:[#allocation26_spill] sm:$0xff]  ;;  %v36225_v24 = vld [vmem:[#allocation135_spill] sm:$0xff] }
 0x593   : > { %v33114_v18 = vpack.c.bf16 %v6244_v9, %v6243_v55  ;;  %v29804_v55 = vld [vmem:[%s34628_s3 + $0xc8] sm:$0xff]   ;;  %v36224_v9 = vld [vmem:[#allocation136_spill] sm:$0xff] }
 0x594   : > { %36207 = vst [vmem:[#allocation41_spill] sm:$0xff] %v33116_v32  ;;  %36208 = vst [vmem:[#allocation179_spill] sm:$0xff] %v33118_v33  ;;  %26630 = vmatmul.mubr.bf16.gmra.mrb[32].mxu1 %v36211_v26  ;;  %v36226_v33 = vld [vmem:[#allocation139_spill] sm:$0xff]  ;;  %v36227_v32 = vld [vmem:[#allocation140_spill] sm:$0xff] }
 0x595   : > { %36206 = vst [vmem:[#allocation178_spill] sm:$0xff] %v33114_v18  ;;  %26633 = vmatprep.mubr.bf16.mxu1 %v36212_v25  ;;  %v29807_v18 = vld [vmem:[%s34628_s3 + $0xd8] sm:$0xff]  }
 0x599   : > { %26006 = vmatmul.mubr.bf16.gmra.mrb[112].mxu0 %v36213_v3 }
 0x59a   : > { %26009 = vmatprep.mubr.bf16.mxu0 %v36214_v28 }
 0x59c   : > { %26634 = vmatmul.mubr.bf16.gmra.mrb[36].mxu1 %v36215_v0 }
 0x59d   : > { %26637 = vmatprep.mubr.bf16.mxu1 %v36216_v20 }
 0x5a1   : > { %26010 = vmatmul.mubr.bf16.gmra.mrb[116].mxu0 %v36217_v63 }
 0x5a2   : > { %26013 = vmatprep.mubr.bf16.mxu0 %v32642_v62 }
 0x5a4   : > { %26638 = vmatmul.mubr.bf16.gmra.mrb[40].mxu1 %v36218_v54 }
 0x5a5   : > { %26641 = vmatprep.mubr.bf16.mxu1 %v36219_v22 }
 0x5a9   : > { %26014 = vmatmul.mubr.bf16.gmra.mrb[120].mxu0 %v32661_v59 }
 0x5aa   : > { %26017 = vmatprep.mubr.bf16.mxu0 %v36220_v42 }
 0x5ac   : > { %26642 = vmatmul.mubr.bf16.gmra.mrb[44].mxu1 %v36221_v43  ;;  %v36243_v43 = vld [vmem:[#allocation8_spill] sm:$0xff] }
 0x5ad   : > { %26645 = vmatprep.mubr.bf16.mxu1 %v36222_v29 }
 0x5b1   : > { %26018 = vmatmul.mubr.bf16.gmra.mrb[124].mxu0 %v32693_v1 }
 0x5b2   : > { %26037 = vmatprep.mubr.bf16.mxu0 %v36223_v41  ;;  %v29805_v41 = vld [vmem:[%s34628_s3 + $0xd0] sm:$0xff]  }
 0x5b4   : > { %26646 = vmatmul.mubr.bf16.gmra.mrb[48].mxu1 %v32664_v46 }
 0x5b5   : > { %26649 = vmatprep.mubr.bf16.mxu1 %v32702_v13 }
 0x5b9   : > { %26038 = vmatmul.mubr.bf16.vlgmr.msra.gmra.mrb[64].mxu0 %v36224_v9 }
 0x5ba   : > { %26041 = vmatprep.mubr.bf16.mxu0 %v36225_v24  ;;  %26102 = vmatpush3.bf16.msra.mxu0 %v29803_v38  ;;  %v29808_v38 = vld [vmem:[%s34628_s3 + $0xe0] sm:$0xff]  }
 0x5bb   : > { %26103 = vmatprep.subr.bf16.mxu0 %v29804_v55 }
 0x5bc   : > { %26650 = vmatmul.mubr.bf16.gmra.mrb[52].mxu1 %v32696_v14  ;;  %v29820_v14 = vld [vmem:[%s34628_s3 + $0x108] sm:$0xff]  }
 0x5bd   : > { %26653 = vmatprep.mubr.bf16.mxu1 %v32769_v35 }
 0x5be   : > { %26104 = vmatpush3.bf16.msra.mxu0 %v29804_v55  ;;  %v29809_v55 = vld [vmem:[%s34628_s3 + $0xe8] sm:$0xff]  }
 0x5bf   : > { %26105 = vmatprep.subr.bf16.mxu0 %v29805_v41 }
 0x5c1   : > { %26042 = vmatmul.mubr.bf16.gmra.mrb[68].mxu0 %v36226_v33 }
 0x5c2   : > { %26045 = vmatprep.mubr.bf16.mxu0 %v36227_v32  ;;  %26106 = vmatpush3.bf16.msra.mxu0 %v29805_v41  ;;  %v29810_v41 = vld [vmem:[%s34628_s3 + $0xf0] sm:$0xff]   ;;  %v36241_v32 = vld [vmem:[#allocation134_spill] sm:$0xff] }
 0x5c3   : > { %26107 = vmatprep.subr.bf16.mxu0 %v29807_v18 }
 0x5c4   : > { %26654 = vmatmul.mubr.bf16.gmra.mrb[56].mxu1 %v32763_v16 }
 0x5c5   : > { %26657 = vmatprep.mubr.bf16.mxu1 %v32807_v10  ;;  %v36240_v10 = vld [vmem:[#allocation28_spill] sm:$0xff] }
 0x5c6   : > { %26108 = vmatpush3.bf16.msra.mxu0 %v29807_v18  ;;  %v29799_v18 = vld [vmem:[%s34628_s3 + $0x2c8] sm:$0xff]  }
 0x5c7   : > { %26109 = vmatprep.subr.bf16.mxu0 %v29808_v38 }
 0x5c9   : > { %26046 = vmatmul.mubr.bf16.gmra.mrb[72].mxu0 %v32051_v23 }
 0x5ca   : > { %26049 = vmatprep.mubr.bf16.mxu0 %v32040_v4  ;;  %26110 = vmatpush3.bf16.msra.mxu0 %v29808_v38  ;;  %v29800_v38 = vld [vmem:[%s34628_s3 + $0x2d0] sm:$0xff]  }
 0x5cb   : > { %26111 = vmatprep.subr.bf16.mxu0 %v29809_v55 }
 0x5cc   : > { %26658 = vmatmul.mubr.bf16.gmra.mrb[60].mxu1 %v32801_v47  ;;  %v36232_v47 = vld [vmem:[#allocation274_spill] sm:$0xff] }
 0x5cd   : > { %26677 = vmatprep.mubr.bf16.mxu1 %v36228_v6  ;;  %v36239_v6 = vld [vmem:[#allocation25_spill] sm:$0xff] }
 0x5ce   : > { %26112 = vmatpush3.bf16.msra.mxu0 %v29809_v55  ;;  %v29801_v55 = vld [vmem:[%s34628_s3 + $0x2d8] sm:$0xff]  }
 0x5cf   : > { %26113 = vmatprep.subr.bf16.mxu0 %v29810_v41 }
 0x5d1   : > { %26050 = vmatmul.mubr.bf16.gmra.mrb[76].mxu0 %v32093_v17 }
 0x5d2   : > { %26053 = vmatprep.mubr.bf16.mxu0 %v36229_v40  ;;  %26114 = vmatpush3.bf16.msra.mxu0 %v29810_v41  ;;  %v29802_v41 = vld [vmem:[%s34628_s3 + $0x2e0] sm:$0xff]  }
 0x5d3   : > { %26115 = vmatprep.subr.bf16.mxu0 %v29812_v39 }
 0x5d4   : > { %26678 = vmatmul.mubr.bf16.vlgmr.msra.gmra.mrb[0].mxu1 %v36229_v40 }
 0x5d5   : > { %26742 = vmatpush3.bf16.msra.mxu1 %v32988_v27  ;;  %26681 = vmatprep.mubr.bf16.mxu1 %v32165_v12  ;;  %v36230_v27 = vld [vmem:[#allocation384_spill] sm:$0xff] }
 0x5d6   : > { %26743 = vmatprep.subr.bf16.mxu1 %v29799_v18  ;;  %26116 = vmatpush3.bf16.msra.mxu0 %v29812_v39  ;;  %v29806_v39 = vld [vmem:[%s34628_s3 + $0x2e8] sm:$0xff]  }
 0x5d9   : > { %26744 = vmatpush3.bf16.msra.mxu1 %v29799_v18  ;;  %26054 = vmatmul.mubr.bf16.gmra.mrb[80].mxu0 %v32165_v12  ;;  %v36231_v18 = vld [vmem:[#allocation151_spill] sm:$0xff] }
 0x5da   : > { %26745 = vmatprep.subr.bf16.mxu1 %v29800_v38  ;;  %26057 = vmatprep.mubr.bf16.mxu0 %v32159_v5 }
 0x5dc   : > { %26682 = vmatmul.mubr.bf16.gmra.mrb[4].mxu1 %v32159_v5 }
 0x5dd   : > { %26685 = vmatprep.mubr.bf16.mxu1 %v36230_v27  ;;  %26746 = vmatpush3.bf16.msra.mxu1 %v29800_v38  ;;  %v29811_v38 = vld [vmem:[%s34628_s3 + $0x2f0] sm:$0xff]  }
 0x5de   : > { %26747 = vmatprep.subr.bf16.mxu1 %v29801_v55  ;;  %v36237_v27 = vld [vmem:[#allocation159_spill] sm:$0xff] }
 0x5e1   : > { %26748 = vmatpush3.bf16.msra.mxu1 %v29801_v55  ;;  %26058 = vmatmul.mubr.bf16.gmra.mrb[84].mxu0 %v32197_v8  ;;  %v29813_v55 = vld [vmem:[%s34628_s3 + $0x2f8] sm:$0xff]  }
 0x5e2   : > { %26749 = vmatprep.subr.bf16.mxu1 %v29802_v41  ;;  %26061 = vmatprep.mubr.bf16.mxu0 %v36231_v18 }
 0x5e4   : > { %26686 = vmatmul.mubr.bf16.gmra.mrb[8].mxu1 %v36231_v18 }
 0x5e5   : > { %26689 = vmatprep.mubr.bf16.mxu1 %v32273_v48  ;;  %26750 = vmatpush3.bf16.msra.mxu1 %v29802_v41  ;;  %v33217_v41 = vld [vmem:[%s34628_s3 + $0x300] sm:$0xff]  }
 0x5e6   : > { %26751 = vmatprep.subr.bf16.mxu1 %v29806_v39 }
 0x5e9   : > { %26752 = vmatpush3.bf16.msra.mxu1 %v29806_v39  ;;  %26062 = vmatmul.mubr.bf16.gmra.mrb[88].mxu0 %v32273_v48  ;;  %v36233_v39 = vld [vmem:[#allocation152_spill] sm:$0xff] }
 0x5ea   : > { %26753 = vmatprep.subr.bf16.mxu1 %v29811_v38  ;;  %26065 = vmatprep.mubr.bf16.mxu0 %v32267_v53 }
 0x5ec   : > { %26690 = vmatmul.mubr.bf16.gmra.mrb[12].mxu1 %v32267_v53 }
 0x5ed   : > { %26693 = vmatprep.mubr.bf16.mxu1 %v36232_v47  ;;  %26754 = vmatpush3.bf16.msra.mxu1 %v29811_v38  ;;  %v36234_v38 = vld [vmem:[#allocation18_spill] sm:$0xff]  ;;  %v36236_v47 = vld [vmem:[#allocation280_spill] sm:$0xff] }
 0x5ee   : > { %26755 = vmatprep.subr.bf16.mxu1 %v29813_v55 }
 0x5f1   : > { %26756 = vmatpush3.bf16.msra.mxu1 %v29813_v55  ;;  %26066 = vmatmul.mubr.bf16.gmra.mrb[92].mxu0 %v32314_v21  ;;  %v36235_v55 = vld [vmem:[#allocation277_spill] sm:$0xff] }
 0x5f2   : > { %26821 = vmatprep.subr.bf16.mxu1 %v33217_v41  ;;  %26069 = vmatprep.mubr.bf16.mxu0 %v36233_v39 }
 0x5f4   : > { %26694 = vmatmul.mubr.bf16.gmra.mrb[16].mxu1 %v36233_v39 }
 0x5f5   : > { %26697 = vmatprep.mubr.bf16.mxu1 %v32383_v37 }
 0x5f9   : > { %26070 = vmatmul.mubr.bf16.gmra.mrb[96].mxu0 %v32383_v37 }
 0x5fa   : > { %26073 = vmatprep.mubr.bf16.mxu0 %v36180_v36 }
 0x5fc   : > { %26698 = vmatmul.mubr.bf16.gmra.mrb[20].mxu1 %v36180_v36 }
 0x5fd   : > { %26701 = vmatprep.mubr.bf16.mxu1 %v36234_v38  ;;  %v29819_v38 = vld [vmem:[%s34628_s3 + $0x100] sm:$0xff]  }
 0x5fe   : > { %26181 = vmatprep.subr.bf16.mxu0 %v29819_v38 }
 0x601   : > { %26074 = vmatmul.mubr.bf16.gmra.mrb[100].mxu0 %v36181_v50 }
 0x602   : > { %26077 = vmatprep.mubr.bf16.mxu0 %v36235_v55 }
 0x604   : > { %26702 = vmatmul.mubr.bf16.gmra.mrb[24].mxu1 %v36235_v55 }
 0x605   : > { %26705 = vmatprep.mubr.bf16.mxu1 %v32475_v19 }
 0x609   : > { %26078 = vmatmul.mubr.bf16.gmra.mrb[104].mxu0 %v32475_v19 }
 0x60a   : > { %26081 = vmatprep.mubr.bf16.mxu0 %v36211_v26 }
 0x60c   : > { %26706 = vmatmul.mubr.bf16.gmra.mrb[28].mxu1 %v36211_v26 }
 0x60d   : > { %26709 = vmatprep.mubr.bf16.mxu1 %v36236_v47  ;;  %v36238_v47 = vld [vmem:[#allocation163_spill] sm:$0xff] }
 0x611   : > { %26082 = vmatmul.mubr.bf16.gmra.mrb[108].mxu0 %v36212_v25 }
 0x612   : > { %26085 = vmatprep.mubr.bf16.mxu0 %v36237_v27 }
 0x614   : > { %26710 = vmatmul.mubr.bf16.gmra.mrb[32].mxu1 %v36237_v27 }
 0x615   : > { %26713 = vmatprep.mubr.bf16.mxu1 %v36216_v20 }
 0x619   : > { %26086 = vmatmul.mubr.bf16.gmra.mrb[112].mxu0 %v36216_v20 }
 0x61a   : > { %26089 = vmatprep.mubr.bf16.mxu0 %v36218_v54 }
 0x61c   : > { %26714 = vmatmul.mubr.bf16.gmra.mrb[36].mxu1 %v36218_v54 }
 0x61d   : > { %26717 = vmatprep.mubr.bf16.mxu1 %v36238_v47  ;;  %v36242_v47 = vld [vmem:[#allocation287_spill] sm:$0xff] }
 0x621   : > { %26090 = vmatmul.mubr.bf16.gmra.mrb[116].mxu0 %v36219_v22 }
 0x622   : > { %26093 = vmatprep.mubr.bf16.mxu0 %v36239_v6 }
 0x624   : > { %26718 = vmatmul.mubr.bf16.gmra.mrb[40].mxu1 %v36239_v6 }
 0x625   : > { %26721 = vmatprep.mubr.bf16.mxu1 %v36222_v29 }
 0x629   : > { %26094 = vmatmul.mubr.bf16.gmra.mrb[120].mxu0 %v36222_v29  ;;  %v36244_v29 = vld [vmem:[#allocation137_spill] sm:$0xff] }
 0x62a   : > { %26097 = vmatprep.mubr.bf16.mxu0 %v32664_v46 }
 0x62c   : > { %26722 = vmatmul.mubr.bf16.gmra.mrb[44].mxu1 %v32664_v46 }
 0x62d   : > { %26725 = vmatprep.mubr.bf16.mxu1 %v36240_v10  ;;  %v29823_v10 = vld [vmem:[%s34628_s3 + $0x118] sm:$0xff]  }
 0x631   : > { %26098 = vmatmul.mubr.bf16.gmra.mrb[124].mxu0 %v32702_v13 }
 0x632   : > { %26117 = vmatprep.mubr.bf16.mxu0 %v36241_v32  ;;  %v29821_v32 = vld [vmem:[%s34628_s3 + $0x110] sm:$0xff]  }
 0x634   : > { %26726 = vmatmul.mubr.bf16.gmra.mrb[48].mxu1 %v36242_v47 }
 0x635   : > { %26729 = vmatprep.mubr.bf16.mxu1 %v32769_v35  ;;  %v36245_v35 = vld [vmem:[#allocation9_spill] sm:$0xff] }
 0x639   : > { %26118 = vmatmul.mubr.bf16.vlgmr.msra.gmra.mrb[64].mxu0 %v36243_v43  ;;  %v36246_v43 = vld [vmem:[#allocation10_spill] sm:$0xff] }
 0x63a   : > { %26121 = vmatprep.mubr.bf16.mxu0 %v36244_v29  ;;  %26182 = vmatpush3.bf16.msra.mxu0 %v29819_v38  ;;  %v29824_v29 = vld [vmem:[%s34628_s3 + $0x120] sm:$0xff]   ;;  %v36247_v38 = vld [vmem:[#allocation143_spill] sm:$0xff] }
 0x63b   : > { %26183 = vmatprep.subr.bf16.mxu0 %v29820_v14 }
 0x63c   : > { %26730 = vmatmul.mubr.bf16.gmra.mrb[52].mxu1 %v32763_v16 }
 0x63d   : > { %26733 = vmatprep.mubr.bf16.mxu1 %v32851_v2  ;;  %v36249_v2 = vld [vmem:[#allocation146_spill] sm:$0xff] }
 0x63e   : > { %26184 = vmatpush3.bf16.msra.mxu0 %v29820_v14  ;;  %v29825_v14 = vld [vmem:[%s34628_s3 + $0x128] sm:$0xff]  }
 0x63f   : > { %26185 = vmatprep.subr.bf16.mxu0 %v29821_v32 }
 0x641   : > { %26122 = vmatmul.mubr.bf16.gmra.mrb[68].mxu0 %v36245_v35  ;;  %v36248_v35 = vld [vmem:[#allocation12_spill] sm:$0xff] }
 0x642   : > { %26125 = vmatprep.mubr.bf16.mxu0 %v36246_v43  ;;  %26186 = vmatpush3.bf16.msra.mxu0 %v29821_v32  ;;  %v29826_v32 = vld [vmem:[%s34628_s3 + $0x130] sm:$0xff]   ;;  %v36261_v43 = vld [vmem:[#allocation165_spill] sm:$0xff] }
 0x643   : > { %26187 = vmatprep.subr.bf16.mxu0 %v29823_v10 }
 0x644   : > { %26734 = vmatmul.mubr.bf16.gmra.mrb[56].mxu1 %v32838_v7 }
 0x645   : > { %26737 = vmatprep.mubr.bf16.mxu1 %v32886_v34 }
 0x646   : > { %26188 = vmatpush3.bf16.msra.mxu0 %v29823_v10  ;;  %v29815_v10 = vld [vmem:[%s34628_s3 + $0x308] sm:$0xff]  }
 0x647   : > { %26189 = vmatprep.subr.bf16.mxu0 %v29824_v29 }
 0x649   : > { %26126 = vmatmul.mubr.bf16.gmra.mrb[72].mxu0 %v36247_v38  ;;  %v36260_v38 = vld [vmem:[#allocation166_spill] sm:$0xff] }
 0x64a   : > { %26129 = vmatprep.mubr.bf16.mxu0 %v32083_v11  ;;  %26190 = vmatpush3.bf16.msra.mxu0 %v29824_v29  ;;  %v29828_v11 = vld [vmem:[%s34628_s3 + $0x138] sm:$0xff]   ;;  %v36250_v29 = vld [vmem:[#allocation149_spill] sm:$0xff] }
 0x64b   : > { %26191 = vmatprep.subr.bf16.mxu0 %v29825_v14 }
 0x64c   : > { %26738 = vmatmul.mubr.bf16.gmra.mrb[60].mxu1 %v32880_v44 }
 0x64d   : > { %26757 = vmatprep.mubr.bf16.mxu1 %v36248_v35  ;;  %v36257_v35 = vld [vmem:[#allocation276_spill] sm:$0xff] }
 0x64e   : > { %26192 = vmatpush3.bf16.msra.mxu0 %v29825_v14  ;;  %v29816_v14 = vld [vmem:[%s34628_s3 + $0x310] sm:$0xff]  }
 0x64f   : > { %26193 = vmatprep.subr.bf16.mxu0 %v29826_v32 }
 0x651   : > { %26130 = vmatmul.mubr.bf16.gmra.mrb[76].mxu0 %v36249_v2  ;;  %v29817_v2 = vld [vmem:[%s34628_s3 + $0x318] sm:$0xff]  }
 0x652   : > { %26133 = vmatprep.mubr.bf16.mxu0 %v32156_v52  ;;  %26194 = vmatpush3.bf16.msra.mxu0 %v29826_v32  ;;  %v36251_v32 = vld [vmem:[#allocation13_spill] sm:$0xff] }
 0x653   : > { %26195 = vmatprep.subr.bf16.mxu0 %v29828_v11 }
 0x654   : > { %26758 = vmatmul.mubr.bf16.vlgmr.msra.gmra.mrb[0].mxu1 %v32156_v52 }
 0x655   : > { %26822 = vmatpush3.bf16.msra.mxu1 %v33217_v41  ;;  %26761 = vmatprep.mubr.bf16.mxu1 %v36250_v29  ;;  %v29818_v41 = vld [vmem:[%s34628_s3 + $0x320] sm:$0xff]  }
 0x656   : > { %26823 = vmatprep.subr.bf16.mxu1 %v29815_v10  ;;  %26196 = vmatpush3.bf16.msra.mxu0 %v29828_v11  ;;  %v29822_v11 = vld [vmem:[%s34628_s3 + $0x328] sm:$0xff]  }
 0x659   : > { %26824 = vmatpush3.bf16.msra.mxu1 %v29815_v10  ;;  %26134 = vmatmul.mubr.bf16.gmra.mrb[80].mxu0 %v36250_v29  ;;  %v29827_v10 = vld [vmem:[%s34628_s3 + $0x330] sm:$0xff]  }
 0x65a   : > { %26825 = vmatprep.subr.bf16.mxu1 %v29816_v14  ;;  %26137 = vmatprep.mubr.bf16.mxu0 %v32188_v45 }
 0x65c   : > { %26762 = vmatmul.mubr.bf16.gmra.mrb[4].mxu1 %v32188_v45 }
 0x65d   : > { %26765 = vmatprep.mubr.bf16.mxu1 %v32239_v60  ;;  %26826 = vmatpush3.bf16.msra.mxu1 %v29816_v14  ;;  %v29829_v14 = vld [vmem:[%s34628_s3 + $0x338] sm:$0xff]  }
 0x65e   : > { %26827 = vmatprep.subr.bf16.mxu1 %v29817_v2  ;;  %v36254_v60 = vld [vmem:[#allocation16_spill] sm:$0xff] }
 0x661   : > { %26828 = vmatpush3.bf16.msra.mxu1 %v29817_v2  ;;  %26138 = vmatmul.mubr.bf16.gmra.mrb[84].mxu0 %v36251_v32  ;;  %v33333_v2 = vld [vmem:[%s34628_s3 + $0x340] sm:$0xff]  }
 0x662   : > { %26829 = vmatprep.subr.bf16.mxu1 %v29818_v41  ;;  %26141 = vmatprep.mubr.bf16.mxu0 %v32264_v15 }
 0x664   : > { %26766 = vmatmul.mubr.bf16.gmra.mrb[8].mxu1 %v32264_v15 }
 0x665   : > { %26769 = vmatprep.mubr.bf16.mxu1 %v32275_v51  ;;  %26830 = vmatpush3.bf16.msra.mxu1 %v29818_v41  ;;  %v36252_v41 = vld [vmem:[#allocation14_spill] sm:$0xff] }
 0x666   : > { %26831 = vmatprep.subr.bf16.mxu1 %v29822_v11 }
 0x669   : > { %26832 = vmatpush3.bf16.msra.mxu1 %v29822_v11  ;;  %26142 = vmatmul.mubr.bf16.gmra.mrb[88].mxu0 %v32275_v51  ;;  %v36253_v11 = vld [vmem:[#allocation153_spill] sm:$0xff] }
 0x66a   : > { %26833 = vmatprep.subr.bf16.mxu1 %v29827_v10  ;;  %26145 = vmatprep.mubr.bf16.mxu0 %v32305_v30 }
 0x66c   : > { %26770 = vmatmul.mubr.bf16.gmra.mrb[12].mxu1 %v32305_v30 }
 0x66d   : > { %26773 = vmatprep.mubr.bf16.mxu1 %v32349_v57  ;;  %26834 = vmatpush3.bf16.msra.mxu1 %v29827_v10  ;;  %v36255_v10 = vld [vmem:[#allocation154_spill] sm:$0xff]  ;;  %v36256_v57 = vld [vmem:[#allocation156_spill] sm:$0xff] }
 0x66e   : > { %26835 = vmatprep.subr.bf16.mxu1 %v29829_v14 }
 0x671   : > { %26836 = vmatpush3.bf16.msra.mxu1 %v29829_v14  ;;  %26146 = vmatmul.mubr.bf16.gmra.mrb[92].mxu0 %v36252_v41  ;;  %v36258_v14 = vld [vmem:[#allocation21_spill] sm:$0xff] }
 0x672   : > { %26901 = vmatprep.subr.bf16.mxu1 %v33333_v2  ;;  %26149 = vmatprep.mubr.bf16.mxu0 %v36253_v11 }
 0x674   : > { %26774 = vmatmul.mubr.bf16.gmra.mrb[16].mxu1 %v36253_v11 }
 0x675   : > { %26777 = vmatprep.mubr.bf16.mxu1 %v36254_v60 }
 0x679   : > { %26150 = vmatmul.mubr.bf16.gmra.mrb[96].mxu0 %v36254_v60 }
 0x67a   : > { %26153 = vmatprep.mubr.bf16.mxu0 %v36255_v10 }
 0x67c   : > { %26778 = vmatmul.mubr.bf16.gmra.mrb[20].mxu1 %v36255_v10 }
 0x67d   : > { %26781 = vmatprep.mubr.bf16.mxu1 %v36256_v57  ;;  %v29835_v57 = vld [vmem:[%s34628_s3 + $0x140] sm:$0xff]  }
 0x67e   : > { %26261 = vmatprep.subr.bf16.mxu0 %v29835_v57 }
 0x681   : > { %26154 = vmatmul.mubr.bf16.gmra.mrb[100].mxu0 %v36257_v35 }
 0x682   : > { %26157 = vmatprep.mubr.bf16.mxu0 %v36199_v58 }
 0x684   : > { %26782 = vmatmul.mubr.bf16.gmra.mrb[24].mxu1 %v36199_v58 }
 0x685   : > { %26785 = vmatprep.mubr.bf16.mxu1 %v36203_v61 }
 0x689   : > { %26158 = vmatmul.mubr.bf16.gmra.mrb[104].mxu0 %v36203_v61 }
 0x68a   : > { %26161 = vmatprep.mubr.bf16.mxu0 %v36209_v56 }
 0x68c   : > { %26786 = vmatmul.mubr.bf16.gmra.mrb[28].mxu1 %v36209_v56 }
 0x68d   : > { %26789 = vmatprep.mubr.bf16.mxu1 %v36210_v49  ;;  %v36259_v49 = vld [vmem:[#allocation162_spill] sm:$0xff] }
 0x691   : > { %26162 = vmatmul.mubr.bf16.gmra.mrb[108].mxu0 %v36258_v14 }
 0x692   : > { %26165 = vmatprep.mubr.bf16.mxu0 %v36213_v3 }
 0x694   : > { %26790 = vmatmul.mubr.bf16.gmra.mrb[32].mxu1 %v36213_v3 }
 0x695   : > { %26793 = vmatprep.mubr.bf16.mxu1 %v36214_v28 }
 0x699   : > { %26166 = vmatmul.mubr.bf16.gmra.mrb[112].mxu0 %v36214_v28 }
 0x69a   : > { %26169 = vmatprep.mubr.bf16.mxu0 %v36217_v63 }
 0x69c   : > { %26794 = vmatmul.mubr.bf16.gmra.mrb[36].mxu1 %v36217_v63 }
 0x69d   : > { %26797 = vmatprep.mubr.bf16.mxu1 %v32642_v62  ;;  %v36262_v62 = vld [vmem:[#allocation29_spill] sm:$0xff] }
 0x6a1   : > { %26170 = vmatmul.mubr.bf16.gmra.mrb[116].mxu0 %v36259_v49  ;;  %v36263_v49 = vld [vmem:[#allocation288_spill] sm:$0xff] }
 0x6a2   : > { %26173 = vmatprep.mubr.bf16.mxu0 %v32661_v59 }
 0x6a4   : > { %26798 = vmatmul.mubr.bf16.gmra.mrb[40].mxu1 %v32661_v59  ;;  %v29836_v59 = vld [vmem:[%s34628_s3 + $0x148] sm:$0xff]  }
 0x6a5   : > { %26801 = vmatprep.mubr.bf16.mxu1 %v36220_v42 }
 0x6a9   : > { %26174 = vmatmul.mubr.bf16.gmra.mrb[120].mxu0 %v36220_v42  ;;  %v36264_v42 = vld [vmem:[#allocation289_spill] sm:$0xff] }
 0x6aa   : > { %26177 = vmatprep.mubr.bf16.mxu0 %v32693_v1 }
 0x6ac   : > { %26802 = vmatmul.mubr.bf16.gmra.mrb[44].mxu1 %v32693_v1  ;;  %v36265_v1 = vld [vmem:[#allocation291_spill] sm:$0xff] }
 0x6ad   : > { %26805 = vmatprep.mubr.bf16.mxu1 %v36260_v38  ;;  %v29839_v38 = vld [vmem:[%s34628_s3 + $0x158] sm:$0xff]  }
 0x6b1   : > { %26178 = vmatmul.mubr.bf16.gmra.mrb[124].mxu0 %v36261_v43 }
 0x6b2   : > { %26197 = vmatprep.mubr.bf16.mxu0 %v36224_v9  ;;  %v29837_v9 = vld [vmem:[%s34628_s3 + $0x150] sm:$0xff]  }
 0x6b4   : > { %26806 = vmatmul.mubr.bf16.gmra.mrb[48].mxu1 %v36262_v62 }
 0x6b5   : > { %26809 = vmatprep.mubr.bf16.mxu1 %v36263_v49  ;;  %v36266_v49 = vld [vmem:[#allocation138_spill] sm:$0xff] }
 0x6b9   : > { %26198 = vmatmul.mubr.bf16.vlgmr.msra.gmra.mrb[64].mxu0 %v36225_v24  ;;  %v36268_v24 = vld [vmem:[#allocation170_spill] sm:$0xff] }
 0x6ba   : > { %26201 = vmatprep.mubr.bf16.mxu0 %v36226_v33  ;;  %26262 = vmatpush3.bf16.msra.mxu0 %v29835_v57  ;;  %v36267_v33 = vld [vmem:[#allocation32_spill] sm:$0xff]  ;;  %v29840_v57 = vld [vmem:[%s34628_s3 + $0x160] sm:$0xff]  }
 0x6bb   : > { %26263 = vmatprep.subr.bf16.mxu0 %v29836_v59 }
 0x6bc   : > { %26810 = vmatmul.mubr.bf16.gmra.mrb[52].mxu1 %v36264_v42 }
 0x6bd   : > { %26813 = vmatprep.mubr.bf16.mxu1 %v36265_v1  ;;  %v36270_v1 = vld [vmem:[#allocation145_spill] sm:$0xff] }
 0x6be   : > { %26264 = vmatpush3.bf16.msra.mxu0 %v29836_v59  ;;  %v29841_v59 = vld [vmem:[%s34628_s3 + $0x168] sm:$0xff]  }
 0x6bf   : > { %26265 = vmatprep.subr.bf16.mxu0 %v29837_v9 }
 0x6c1   : > { %26202 = vmatmul.mubr.bf16.gmra.mrb[68].mxu0 %v36266_v49  ;;  %v36269_v49 = vld [vmem:[#allocation33_spill] sm:$0xff] }
 0x6c2   : > { %26205 = vmatprep.mubr.bf16.mxu0 %v32051_v23  ;;  %26266 = vmatpush3.bf16.msra.mxu0 %v29837_v9  ;;  %v29842_v9 = vld [vmem:[%s34628_s3 + $0x170] sm:$0xff]  }
 0x6c3   : > { %26267 = vmatprep.subr.bf16.mxu0 %v29839_v38 }
 0x6c4   : > { %26814 = vmatmul.mubr.bf16.gmra.mrb[56].mxu1 %v36267_v33 }
 0x6c5   : > { %26817 = vmatprep.mubr.bf16.mxu1 %v36268_v24 }
 0x6c6   : > { %26268 = vmatpush3.bf16.msra.mxu0 %v29839_v38  ;;  %v29831_v38 = vld [vmem:[%s34628_s3 + $0x348] sm:$0xff]  }
 0x6c7   : > { %26269 = vmatprep.subr.bf16.mxu0 %v29840_v57 }
 0x6c9   : > { %26206 = vmatmul.mubr.bf16.gmra.mrb[72].mxu0 %v32040_v4 }
 0x6ca   : > { %26209 = vmatprep.mubr.bf16.mxu0 %v32093_v17  ;;  %26270 = vmatpush3.bf16.msra.mxu0 %v29840_v57  ;;  %v29844_v17 = vld [vmem:[%s34628_s3 + $0x178] sm:$0xff]   ;;  %v29832_v57 = vld [vmem:[%s34628_s3 + $0x350] sm:$0xff]  }
 0x6cb   : > { %26271 = vmatprep.subr.bf16.mxu0 %v29841_v59 }
 0x6cc   : > { %26818 = vmatmul.mubr.bf16.gmra.mrb[60].mxu1 %v36269_v49 }
 0x6cd   : > { %26837 = vmatprep.mubr.bf16.mxu1 %v36229_v40 }
 0x6ce   : > { %26272 = vmatpush3.bf16.msra.mxu0 %v29841_v59  ;;  %v36271_v59 = vld [vmem:[#allocation150_spill] sm:$0xff] }
 0x6cf   : > { %26273 = vmatprep.subr.bf16.mxu0 %v29842_v9 }
 0x6d1   : > { %26210 = vmatmul.mubr.bf16.gmra.mrb[76].mxu0 %v36270_v1  ;;  %v29833_v1 = vld [vmem:[%s34628_s3 + $0x358] sm:$0xff]  }
 0x6d2   : > { %26213 = vmatprep.mubr.bf16.mxu0 %v32165_v12  ;;  %26274 = vmatpush3.bf16.msra.mxu0 %v29842_v9  ;;  %v29843_v9 = vld [vmem:[%s34628_s3 + $0x370] sm:$0xff]  }
 0x6d3   : > { %26275 = vmatprep.subr.bf16.mxu0 %v29844_v17 }
 0x6d4   : > { %26838 = vmatmul.mubr.bf16.vlgmr.msra.gmra.mrb[0].mxu1 %v32165_v12 }
 0x6d5   : > { %26902 = vmatpush3.bf16.msra.mxu1 %v33333_v2  ;;  %26841 = vmatprep.mubr.bf16.mxu1 %v32159_v5  ;;  %v29834_v2 = vld [vmem:[%s34628_s3 + $0x360] sm:$0xff]  }
 0x6d6   : > { %26903 = vmatprep.subr.bf16.mxu1 %v29831_v38  ;;  %26276 = vmatpush3.bf16.msra.mxu0 %v29844_v17  ;;  %v29838_v17 = vld [vmem:[%s34628_s3 + $0x368] sm:$0xff]  }
 0x6d9   : > { %26904 = vmatpush3.bf16.msra.mxu1 %v29831_v38  ;;  %26214 = vmatmul.mubr.bf16.gmra.mrb[80].mxu0 %v32159_v5  ;;  %v29845_v38 = vld [vmem:[%s34628_s3 + $0x378] sm:$0xff]  }
 0x6da   : > { %26905 = vmatprep.subr.bf16.mxu1 %v29832_v57  ;;  %26217 = vmatprep.mubr.bf16.mxu0 %v32197_v8 }
 0x6dc   : > { %26842 = vmatmul.mubr.bf16.gmra.mrb[4].mxu1 %v32197_v8 }
 0x6dd   : > { %26845 = vmatprep.mubr.bf16.mxu1 %v36231_v18  ;;  %26906 = vmatpush3.bf16.msra.mxu1 %v29832_v57  ;;  %v33449_v57 = vld [vmem:[%s34628_s3 + $0x380] sm:$0xff]  }
 0x6de   : > { %26907 = vmatprep.subr.bf16.mxu1 %v29833_v1 }
 0x6e1   : > { %26908 = vmatpush3.bf16.msra.mxu1 %v29833_v1  ;;  %26218 = vmatmul.mubr.bf16.gmra.mrb[84].mxu0 %v36271_v59  ;;  %v36272_v1 = vld [vmem:[#allocation273_spill] sm:$0xff] }
 0x6e2   : > { %26909 = vmatprep.subr.bf16.mxu1 %v29834_v2  ;;  %26221 = vmatprep.mubr.bf16.mxu0 %v32273_v48 }
 0x6e4   : > { %26846 = vmatmul.mubr.bf16.gmra.mrb[8].mxu1 %v32273_v48 }
 0x6e5   : > { %26849 = vmatprep.mubr.bf16.mxu1 %v32267_v53  ;;  %26910 = vmatpush3.bf16.msra.mxu1 %v29834_v2  ;;  %v29851_v2 = vld [vmem:[%s34628_s3 + $0x180] sm:$0xff]  }
 0x6e6   : > { %26911 = vmatprep.subr.bf16.mxu1 %v29838_v17  ;;  %26341 = vmatprep.subr.bf16.mxu0 %v29851_v2 }
 0x6e9   : > { %26912 = vmatpush3.bf16.msra.mxu1 %v29838_v17  ;;  %26222 = vmatmul.mubr.bf16.gmra.mrb[88].mxu0 %v32267_v53  ;;  %v36273_v17 = vld [vmem:[#allocation283_spill] sm:$0xff] }
 0x6ea   : > { %26913 = vmatprep.subr.bf16.mxu1 %v29843_v9  ;;  %26225 = vmatprep.mubr.bf16.mxu0 %v32314_v21 }
 0x6ec   : > { %26850 = vmatmul.mubr.bf16.gmra.mrb[12].mxu1 %v32314_v21 }
 0x6ed   : > { %26853 = vmatprep.mubr.bf16.mxu1 %v36233_v39  ;;  %26914 = vmatpush3.bf16.msra.mxu1 %v29843_v9  ;;  %v36274_v9 = vld [vmem:[#allocation26_spill] sm:$0xff] }
 0x6ee   : > { %26915 = vmatprep.subr.bf16.mxu1 %v29845_v38 }
 0x6f1   : > { %26916 = vmatpush3.bf16.msra.mxu1 %v29845_v38  ;;  %26226 = vmatmul.mubr.bf16.gmra.mrb[92].mxu0 %v36272_v1  ;;  %v36275_v38 = vld [vmem:[#allocation27_spill] sm:$0xff] }
 0x6f2   : > { %26981 = vmatprep.subr.bf16.mxu1 %v33449_v57  ;;  %26229 = vmatprep.mubr.bf16.mxu0 %v32383_v37 }
 0x6f4   : > { %26854 = vmatmul.mubr.bf16.gmra.mrb[16].mxu1 %v32383_v37 }
 0x6f5   : > { %26857 = vmatprep.mubr.bf16.mxu1 %v36180_v36 }
 0x6f9   : > { %26230 = vmatmul.mubr.bf16.gmra.mrb[96].mxu0 %v36180_v36 }
 0x6fa   : > { %26233 = vmatprep.mubr.bf16.mxu0 %v36181_v50 }
 0x6fc   : > { %26858 = vmatmul.mubr.bf16.gmra.mrb[20].mxu1 %v36181_v50 }
 0x6fd   : > { %26861 = vmatprep.mubr.bf16.mxu1 %v36235_v55 }
 0x701   : > { %26234 = vmatmul.mubr.bf16.gmra.mrb[100].mxu0 %v36204_v31  ;;  %v36279_v31 = vld [vmem:[#allocation168_spill] sm:$0xff] }
 0x702   : > { %26237 = vmatprep.mubr.bf16.mxu0 %v32475_v19 }
 0x704   : > { %26862 = vmatmul.mubr.bf16.gmra.mrb[24].mxu1 %v32475_v19 }
 0x705   : > { %26865 = vmatprep.mubr.bf16.mxu1 %v36211_v26 }
 0x709   : > { %26238 = vmatmul.mubr.bf16.gmra.mrb[104].mxu0 %v36211_v26 }
 0x70a   : > { %26241 = vmatprep.mubr.bf16.mxu0 %v36212_v25 }
 0x70c   : > { %26866 = vmatmul.mubr.bf16.gmra.mrb[28].mxu1 %v36212_v25  ;;  %v36278_v25 = vld [vmem:[#allocation140_spill] sm:$0xff] }
 0x70d   : > { %26869 = vmatprep.mubr.bf16.mxu1 %v36237_v27 }
 0x711   : > { %26242 = vmatmul.mubr.bf16.gmra.mrb[108].mxu0 %v36215_v0  ;;  %v36277_v0 = vld [vmem:[#allocation167_spill] sm:$0xff] }
 0x712   : > { %26245 = vmatprep.mubr.bf16.mxu0 %v36216_v20 }
 0x714   : > { %26870 = vmatmul.mubr.bf16.gmra.mrb[32].mxu1 %v36216_v20 }
 0x715   : > { %26873 = vmatprep.mubr.bf16.mxu1 %v36218_v54 }
 0x719   : > { %26246 = vmatmul.mubr.bf16.gmra.mrb[112].mxu0 %v36218_v54 }
 0x71a   : > { %26249 = vmatprep.mubr.bf16.mxu0 %v36219_v22 }
 0x71c   : > { %26874 = vmatmul.mubr.bf16.gmra.mrb[36].mxu1 %v36219_v22  ;;  %v36276_v22 = vld [vmem:[#allocation141_spill] sm:$0xff] }
 0x71d   : > { %26877 = vmatprep.mubr.bf16.mxu1 %v36239_v6 }
 0x721   : > { %26250 = vmatmul.mubr.bf16.gmra.mrb[116].mxu0 %v36273_v17  ;;  %v29852_v17 = vld [vmem:[%s34628_s3 + $0x188] sm:$0xff]  }
 0x722   : > { %26253 = vmatprep.mubr.bf16.mxu0 %v36274_v9 }
 0x724   : > { %26878 = vmatmul.mubr.bf16.gmra.mrb[40].mxu1 %v36274_v9 }
 0x725   : > { %26881 = vmatprep.mubr.bf16.mxu1 %v32664_v46 }
 0x729   : > { %26254 = vmatmul.mubr.bf16.gmra.mrb[120].mxu0 %v32664_v46 }
 0x72a   : > { %26257 = vmatprep.mubr.bf16.mxu0 %v32702_v13 }
 0x72c   : > { %26882 = vmatmul.mubr.bf16.gmra.mrb[44].mxu1 %v32702_v13 }
 0x72d   : > { %26885 = vmatprep.mubr.bf16.mxu1 %v36242_v47 }
 0x731   : > { %26258 = vmatmul.mubr.bf16.gmra.mrb[124].mxu0 %v36275_v38  ;;  %v29855_v38 = vld [vmem:[%s34628_s3 + $0x198] sm:$0xff]  }
 0x732   : > { %26277 = vmatprep.mubr.bf16.mxu0 %v36276_v22  ;;  %v29853_v22 = vld [vmem:[%s34628_s3 + $0x190] sm:$0xff]  }
 0x734   : > { %26886 = vmatmul.mubr.bf16.gmra.mrb[48].mxu1 %v36277_v0 }
 0x735   : > { %26889 = vmatprep.mubr.bf16.mxu1 %v32763_v16 }
 0x739   : > { %26278 = vmatmul.mubr.bf16.vlgmr.msra.gmra.mrb[64].mxu0 %v36278_v25  ;;  %v36280_v25 = vld [vmem:[#allocation148_spill] sm:$0xff] }
 0x73a   : > { %26281 = vmatprep.mubr.bf16.mxu0 %v32051_v23  ;;  %26342 = vmatpush3.bf16.msra.mxu0 %v29851_v2  ;;  %v29856_v2 = vld [vmem:[%s34628_s3 + $0x1a0] sm:$0xff]  }
 0x73b   : > { %26343 = vmatprep.subr.bf16.mxu0 %v29852_v17 }
 0x73c   : > { %26890 = vmatmul.mubr.bf16.gmra.mrb[52].mxu1 %v36279_v31 }
 0x73d   : > { %26893 = vmatprep.mubr.bf16.mxu1 %v32838_v7  ;;  %v29860_v7 = vld [vmem:[%s34628_s3 + $0x1b8] sm:$0xff]  }
 0x73e   : > { %26344 = vmatpush3.bf16.msra.mxu0 %v29852_v17  ;;  %v29857_v17 = vld [vmem:[%s34628_s3 + $0x1a8] sm:$0xff]  }
 0x73f   : > { %26345 = vmatprep.subr.bf16.mxu0 %v29853_v22 }
 0x741   : > { %26282 = vmatmul.mubr.bf16.gmra.mrb[68].mxu0 %v32040_v4 }
 0x742   : > { %26285 = vmatprep.mubr.bf16.mxu0 %v36280_v25  ;;  %26346 = vmatpush3.bf16.msra.mxu0 %v29853_v22  ;;  %v36281_v25 = vld [vmem:[#allocation292_spill] sm:$0xff]  ;;  %v29858_v22 = vld [vmem:[%s34628_s3 + $0x1b0] sm:$0xff]  }
 0x743   : > { %26347 = vmatprep.subr.bf16.mxu0 %v29855_v38 }
 0x744   : > { %26894 = vmatmul.mubr.bf16.gmra.mrb[56].mxu1 %v32886_v34 }
 0x745   : > { %26897 = vmatprep.mubr.bf16.mxu1 %v32880_v44 }
 0x746   : > { %26348 = vmatpush3.bf16.msra.mxu0 %v29855_v38  ;;  %v29847_v38 = vld [vmem:[%s34628_s3 + $0x388] sm:$0xff]  }
 0x747   : > { %26349 = vmatprep.subr.bf16.mxu0 %v29856_v2 }
 0x749   : > { %26286 = vmatmul.mubr.bf16.gmra.mrb[72].mxu0 %v36229_v40 }
 0x74a   : > { %26289 = vmatprep.mubr.bf16.mxu0 %v32165_v12  ;;  %26350 = vmatpush3.bf16.msra.mxu0 %v29856_v2  ;;  %v29848_v2 = vld [vmem:[%s34628_s3 + $0x390] sm:$0xff]  }
 0x74b   : > { %26351 = vmatprep.subr.bf16.mxu0 %v29857_v17 }
 0x74c   : > { %26898 = vmatmul.mubr.bf16.gmra.mrb[60].mxu1 %v36281_v25  ;;  %v36282_v25 = vld [vmem:[#allocation384_spill] sm:$0xff] }
 0x74d   : > { %26917 = vmatprep.mubr.bf16.mxu1 %v32156_v52 }
 0x74e   : > { %26352 = vmatpush3.bf16.msra.mxu0 %v29857_v17  ;;  %v29849_v17 = vld [vmem:[%s34628_s3 + $0x398] sm:$0xff]  }
 0x74f   : > { %26353 = vmatprep.subr.bf16.mxu0 %v29858_v22 }
 0x751   : > { %26290 = vmatmul.mubr.bf16.gmra.mrb[76].mxu0 %v32159_v5 }
 0x752   : > { %26293 = vmatprep.mubr.bf16.mxu0 %v36282_v25  ;;  %26354 = vmatpush3.bf16.msra.mxu0 %v29858_v22  ;;  %v36283_v22 = vld [vmem:[#allocation274_spill] sm:$0xff] }
 0x753   : > { %26355 = vmatprep.subr.bf16.mxu0 %v29860_v7 }
 0x754   : > { %26918 = vmatmul.mubr.bf16.vlgmr.msra.gmra.mrb[0].mxu1 %v36250_v29 }
 0x755   : > { %26982 = vmatpush3.bf16.msra.mxu1 %v33449_v57  ;;  %26921 = vmatprep.mubr.bf16.mxu1 %v32188_v45  ;;  %v29850_v57 = vld [vmem:[%s34628_s3 + $0x3a0] sm:$0xff]  }
 0x756   : > { %26983 = vmatprep.subr.bf16.mxu1 %v29847_v38  ;;  %26356 = vmatpush3.bf16.msra.mxu0 %v29860_v7  ;;  %v29854_v7 = vld [vmem:[%s34628_s3 + $0x3a8] sm:$0xff]  }
 0x759   : > { %26984 = vmatpush3.bf16.msra.mxu1 %v29847_v38  ;;  %26294 = vmatmul.mubr.bf16.gmra.mrb[80].mxu0 %v36231_v18  ;;  %v29861_v38 = vld [vmem:[%s34628_s3 + $0x3b8] sm:$0xff]  }
 0x75a   : > { %26985 = vmatprep.subr.bf16.mxu1 %v29848_v2  ;;  %26297 = vmatprep.mubr.bf16.mxu0 %v32273_v48 }
 0x75c   : > { %26922 = vmatmul.mubr.bf16.gmra.mrb[4].mxu1 %v36251_v32  ;;  %v29859_v32 = vld [vmem:[%s34628_s3 + $0x3b0] sm:$0xff]  }
 0x75d   : > { %26925 = vmatprep.mubr.bf16.mxu1 %v32264_v15  ;;  %26986 = vmatpush3.bf16.msra.mxu1 %v29848_v2  ;;  %v33565_v2 = vld [vmem:[%s34628_s3 + $0x3c0] sm:$0xff]  }
 0x75e   : > { %26987 = vmatprep.subr.bf16.mxu1 %v29849_v17 }
 0x761   : > { %26988 = vmatpush3.bf16.msra.mxu1 %v29849_v17  ;;  %26298 = vmatmul.mubr.bf16.gmra.mrb[84].mxu0 %v32267_v53  ;;  %v36284_v17 = vld [vmem:[#allocation18_spill] sm:$0xff] }
 0x762   : > { %26989 = vmatprep.subr.bf16.mxu1 %v29850_v57  ;;  %26301 = vmatprep.mubr.bf16.mxu0 %v36283_v22 }
 0x764   : > { %26926 = vmatmul.mubr.bf16.gmra.mrb[8].mxu1 %v32275_v51 }
 0x765   : > { %26929 = vmatprep.mubr.bf16.mxu1 %v32305_v30  ;;  %26990 = vmatpush3.bf16.msra.mxu1 %v29850_v57  ;;  %v36285_v57 = vld [vmem:[#allocation280_spill] sm:$0xff] }
 0x766   : > { %26991 = vmatprep.subr.bf16.mxu1 %v29854_v7 }
 0x769   : > { %26992 = vmatpush3.bf16.msra.mxu1 %v29854_v7  ;;  %26302 = vmatmul.mubr.bf16.gmra.mrb[88].mxu0 %v36233_v39  ;;  %v36286_v7 = vld [vmem:[#allocation163_spill] sm:$0xff] }
 0x76a   : > { %26993 = vmatprep.subr.bf16.mxu1 %v29859_v32  ;;  %26305 = vmatprep.mubr.bf16.mxu0 %v32383_v37 }
 0x76c   : > { %26930 = vmatmul.mubr.bf16.gmra.mrb[12].mxu1 %v36252_v41  ;;  %v36290_v41 = vld [vmem:[#allocation164_spill] sm:$0xff] }
 0x76d   : > { %26933 = vmatprep.mubr.bf16.mxu1 %v36253_v11  ;;  %26994 = vmatpush3.bf16.msra.mxu1 %v29859_v32  ;;  %v29867_v32 = vld [vmem:[%s34628_s3 + $0x1c0] sm:$0xff]  }
 0x76e   : > { %26995 = vmatprep.subr.bf16.mxu1 %v29861_v38  ;;  %26421 = vmatprep.subr.bf16.mxu0 %v29867_v32 }
 0x771   : > { %26996 = vmatpush3.bf16.msra.mxu1 %v29861_v38  ;;  %26306 = vmatmul.mubr.bf16.gmra.mrb[92].mxu0 %v36180_v36  ;;  %v36287_v38 = vld [vmem:[#allocation162_spill] sm:$0xff] }
 0x772   : > { %27061 = vmatprep.subr.bf16.mxu1 %v33565_v2  ;;  %26309 = vmatprep.mubr.bf16.mxu0 %v36284_v17 }
 0x774   : > { %26934 = vmatmul.mubr.bf16.gmra.mrb[16].mxu1 %v36254_v60 }
 0x775   : > { %26937 = vmatprep.mubr.bf16.mxu1 %v36255_v10 }
 0x779   : > { %26310 = vmatmul.mubr.bf16.gmra.mrb[96].mxu0 %v36235_v55  ;;  %v36297_v55 = vld [vmem:[#allocation144_spill] sm:$0xff] }
 0x77a   : > { %26313 = vmatprep.mubr.bf16.mxu0 %v32475_v19 }
 0x77c   : > { %26938 = vmatmul.mubr.bf16.gmra.mrb[20].mxu1 %v36257_v35  ;;  %v36289_v35 = vld [vmem:[#allocation28_spill] sm:$0xff] }
 0x77d   : > { %26941 = vmatprep.mubr.bf16.mxu1 %v36199_v58 }
 0x781   : > { %26314 = vmatmul.mubr.bf16.gmra.mrb[100].mxu0 %v36211_v26 }
 0x782   : > { %26317 = vmatprep.mubr.bf16.mxu0 %v36285_v57  ;;  %v36296_v57 = vld [vmem:[#allocation290_spill] sm:$0xff] }
 0x784   : > { %26942 = vmatmul.mubr.bf16.gmra.mrb[24].mxu1 %v36203_v61 }
 0x785   : > { %26945 = vmatprep.mubr.bf16.mxu1 %v36209_v56 }
 0x789   : > { %26318 = vmatmul.mubr.bf16.gmra.mrb[104].mxu0 %v36237_v27  ;;  %v36294_v27 = vld [vmem:[#allocation10_spill] sm:$0xff] }
 0x78a   : > { %26321 = vmatprep.mubr.bf16.mxu0 %v36216_v20 }
 0x78c   : > { %26946 = vmatmul.mubr.bf16.gmra.mrb[28].mxu1 %v36258_v14  ;;  %v36288_v14 = vld [vmem:[#allocation285_spill] sm:$0xff] }
 0x78d   : > { %26949 = vmatprep.mubr.bf16.mxu1 %v36213_v3 }
 0x791   : > { %26322 = vmatmul.mubr.bf16.gmra.mrb[108].mxu0 %v36218_v54 }
 0x792   : > { %26325 = vmatprep.mubr.bf16.mxu0 %v36286_v7  ;;  %v36291_v7 = vld [vmem:[#allocation286_spill] sm:$0xff] }
 0x794   : > { %26950 = vmatmul.mubr.bf16.gmra.mrb[32].mxu1 %v36214_v28 }
 0x795   : > { %26953 = vmatprep.mubr.bf16.mxu1 %v36217_v63 }
 0x799   : > { %26326 = vmatmul.mubr.bf16.gmra.mrb[112].mxu0 %v36239_v6  ;;  %v36293_v6 = vld [vmem:[#allocation288_spill] sm:$0xff] }
 0x79a   : > { %26329 = vmatprep.mubr.bf16.mxu0 %v36274_v9 }
 0x79c   : > { %26954 = vmatmul.mubr.bf16.gmra.mrb[36].mxu1 %v36287_v38  ;;  %v36292_v38 = vld [vmem:[#allocation142_spill] sm:$0xff] }
 0x79d   : > { %26957 = vmatprep.mubr.bf16.mxu1 %v36288_v14 }
 0x7a1   : > { %26330 = vmatmul.mubr.bf16.gmra.mrb[116].mxu0 %v32664_v46 }
 0x7a2   : > { %26333 = vmatprep.mubr.bf16.mxu0 %v36289_v35  ;;  %v29868_v35 = vld [vmem:[%s34628_s3 + $0x1c8] sm:$0xff]  }
 0x7a4   : > { %26958 = vmatmul.mubr.bf16.gmra.mrb[40].mxu1 %v36290_v41 }
 0x7a5   : > { %26961 = vmatprep.mubr.bf16.mxu1 %v36291_v7 }
 0x7a9   : > { %26334 = vmatmul.mubr.bf16.gmra.mrb[120].mxu0 %v36242_v47  ;;  %v36295_v47 = vld [vmem:[#allocation143_spill] sm:$0xff] }
 0x7aa   : > { %26337 = vmatprep.mubr.bf16.mxu0 %v36277_v0 }
 0x7ac   : > { %26962 = vmatmul.mubr.bf16.gmra.mrb[44].mxu1 %v36261_v43  ;;  %v29871_v43 = vld [vmem:[%s34628_s3 + $0x1d8] sm:$0xff]  }
 0x7ad   : > { %26965 = vmatprep.mubr.bf16.mxu1 %v36262_v62 }
 0x7b1   : > { %26338 = vmatmul.mubr.bf16.gmra.mrb[124].mxu0 %v32763_v16 }
 0x7b2   : > { %26357 = vmatprep.mubr.bf16.mxu0 %v36292_v38  ;;  %v29869_v38 = vld [vmem:[%s34628_s3 + $0x1d0] sm:$0xff]  }
 0x7b4   : > { %26966 = vmatmul.mubr.bf16.gmra.mrb[48].mxu1 %v36293_v6 }
 0x7b5   : > { %26969 = vmatprep.mubr.bf16.mxu1 %v36264_v42 }
 0x7b9   : > { %26358 = vmatmul.mubr.bf16.vlgmr.msra.gmra.mrb[64].mxu0 %v36294_v27  ;;  %v36298_v27 = vld [vmem:[#allocation12_spill] sm:$0xff] }
 0x7ba   : > { %26361 = vmatprep.mubr.bf16.mxu0 %v36295_v47  ;;  %26422 = vmatpush3.bf16.msra.mxu0 %v29867_v32  ;;  %v29872_v47 = vld [vmem:[%s34628_s3 + $0x1e0] sm:$0xff]   ;;  %v29874_v32 = vld [vmem:[%s34628_s3 + $0x1f0] sm:$0xff]  }
 0x7bb   : > { %26423 = vmatprep.subr.bf16.mxu0 %v29868_v35 }
 0x7bc   : > { %26970 = vmatmul.mubr.bf16.gmra.mrb[52].mxu1 %v36296_v57 }
 0x7bd   : > { %26973 = vmatprep.mubr.bf16.mxu1 %v36267_v33 }
 0x7be   : > { %26424 = vmatpush3.bf16.msra.mxu0 %v29868_v35  ;;  %v29873_v35 = vld [vmem:[%s34628_s3 + $0x1e8] sm:$0xff]  }
 0x7bf   : > { %26425 = vmatprep.subr.bf16.mxu0 %v29869_v38 }
 0x7c1   : > { %26362 = vmatmul.mubr.bf16.gmra.mrb[68].mxu0 %v36297_v55  ;;  %v36299_v55 = vld [vmem:[#allocation293_spill] sm:$0xff] }
 0x7c2   : > { %26365 = vmatprep.mubr.bf16.mxu0 %v36298_v27  ;;  %26426 = vmatpush3.bf16.msra.mxu0 %v29869_v38  ;;  %v29864_v38 = vld [vmem:[%s34628_s3 + $0x3d0] sm:$0xff]   ;;  %v29870_v27 = vld [vmem:[%s34628_s3 + $0x3e8] sm:$0xff]  }
 0x7c3   : > { %26427 = vmatprep.subr.bf16.mxu0 %v29871_v43 }
 0x7c4   : > { %26974 = vmatmul.mubr.bf16.gmra.mrb[56].mxu1 %v36268_v24 }
 0x7c5   : > { %26977 = vmatprep.mubr.bf16.mxu1 %v36269_v49 }
 0x7c6   : > { %26428 = vmatpush3.bf16.msra.mxu0 %v29871_v43  ;;  %v29863_v43 = vld [vmem:[%s34628_s3 + $0x3c8] sm:$0xff]  }
 0x7c7   : > { %26429 = vmatprep.subr.bf16.mxu0 %v29872_v47 }
 0x7c9   : > { %26366 = vmatmul.mubr.bf16.gmra.mrb[72].mxu0 %v32156_v52  ;;  %v29876_v52 = vld [vmem:[%s34628_s3 + $0x1f8] sm:$0xff]  }
 0x7ca   : > { %26369 = vmatprep.mubr.bf16.mxu0 %v36250_v29  ;;  %26430 = vmatpush3.bf16.msra.mxu0 %v29872_v47  ;;  %v36300_v29 = vld [vmem:[#allocation272_spill] sm:$0xff]  ;;  %v36301_v47 = vld [vmem:[#allocation15_spill] sm:$0xff] }
 0x7cb   : > { %26431 = vmatprep.subr.bf16.mxu0 %v29873_v35 }
 0x7cc   : > { %26978 = vmatmul.mubr.bf16.gmra.mrb[60].mxu1 %v36299_v55  ;;  %v36314_v55 = vld [vmem:[#allocation11_spill] sm:$0xff] }
 0x7cd   : > { %26997 = vmatprep.mubr.bf16.mxu1 %v32165_v12 }
 0x7ce   : > { %26432 = vmatpush3.bf16.msra.mxu0 %v29873_v35  ;;  %v29877_v35 = vld [vmem:[%s34628_s3 + $0x3f8] sm:$0xff]  }
 0x7cf   : > { %26433 = vmatprep.subr.bf16.mxu0 %v29874_v32 }
 0x7d1   : > { %26370 = vmatmul.mubr.bf16.gmra.mrb[76].mxu0 %v32188_v45  ;;  %v29865_v45 = vld [vmem:[%s34628_s3 + $0x3d8] sm:$0xff]  }
 0x7d2   : > { %26373 = vmatprep.mubr.bf16.mxu0 %v36300_v29  ;;  %26434 = vmatpush3.bf16.msra.mxu0 %v29874_v32  ;;  %v29878_v32 = vld [vmem:[%s34628_s3 + $0x400] sm:$0xff]  }
 0x7d3   : > { %26435 = vmatprep.subr.bf16.mxu0 %v29876_v52 }
 0x7d4   : > { %26998 = vmatmul.mubr.bf16.vlgmr.msra.gmra.mrb[0].mxu1 %v32159_v5 }
 0x7d5   : > { %27062 = vmatpush3.bf16.msra.mxu1 %v33565_v2  ;;  %27001 = vmatprep.mubr.bf16.mxu1 %v32197_v8  ;;  %v29866_v2 = vld [vmem:[%s34628_s3 + $0x3e0] sm:$0xff]  }
 0x7d6   : > { %27063 = vmatprep.subr.bf16.mxu1 %v29863_v43  ;;  %26436 = vmatpush3.bf16.msra.mxu0 %v29876_v52  ;;  %v36303_v52 = vld [vmem:[#allocation17_spill] sm:$0xff] }
 0x7d9   : > { %27064 = vmatpush3.bf16.msra.mxu1 %v29863_v43  ;;  %26374 = vmatmul.mubr.bf16.gmra.mrb[80].mxu0 %v32264_v15  ;;  %v36302_v43 = vld [vmem:[#allocation156_spill] sm:$0xff] }
 0x7da   : > { %27065 = vmatprep.subr.bf16.mxu1 %v29864_v38  ;;  %26377 = vmatprep.mubr.bf16.mxu0 %v32275_v51 }
 0x7dc   : > { %27002 = vmatmul.mubr.bf16.gmra.mrb[4].mxu1 %v36271_v59  ;;  %v29875_v59 = vld [vmem:[%s34628_s3 + $0x3f0] sm:$0xff]  }
 0x7dd   : > { %27005 = vmatprep.mubr.bf16.mxu1 %v32273_v48  ;;  %27066 = vmatpush3.bf16.msra.mxu1 %v29864_v38  ;;  %v36304_v38 = vld [vmem:[#allocation281_spill] sm:$0xff] }
 0x7de   : > { %27067 = vmatprep.subr.bf16.mxu1 %v29865_v45 }
 0x7e1   : > { %27068 = vmatpush3.bf16.msra.mxu1 %v29865_v45  ;;  %26378 = vmatmul.mubr.bf16.gmra.mrb[84].mxu0 %v32305_v30  ;;  %v36305_v45 = vld [vmem:[#allocation158_spill] sm:$0xff] }
 0x7e2   : > { %27069 = vmatprep.subr.bf16.mxu1 %v29866_v2  ;;  %26381 = vmatprep.mubr.bf16.mxu0 %v36301_v47 }
 0x7e4   : > { %27006 = vmatmul.mubr.bf16.gmra.mrb[8].mxu1 %v32267_v53 }
 0x7e5   : > { %27009 = vmatprep.mubr.bf16.mxu1 %v32314_v21  ;;  %27070 = vmatpush3.bf16.msra.mxu1 %v29866_v2  ;;  %v36306_v2 = vld [vmem:[#allocation20_spill] sm:$0xff] }
 0x7e6   : > { %27071 = vmatprep.subr.bf16.mxu1 %v29870_v27 }
 0x7e9   : > { %27072 = vmatpush3.bf16.msra.mxu1 %v29870_v27  ;;  %26382 = vmatmul.mubr.bf16.gmra.mrb[88].mxu0 %v36253_v11  ;;  %v36307_v27 = vld [vmem:[#allocation284_spill] sm:$0xff] }
 0x7ea   : > { %27073 = vmatprep.subr.bf16.mxu1 %v29875_v59  ;;  %26385 = vmatprep.mubr.bf16.mxu0 %v36254_v60 }
 0x7ec   : > { %27010 = vmatmul.mubr.bf16.gmra.mrb[12].mxu1 %v36272_v1  ;;  %v36313_v1 = vld [vmem:[#allocation30_spill] sm:$0xff] }
 0x7ed   : > { %27013 = vmatprep.mubr.bf16.mxu1 %v32383_v37  ;;  %27074 = vmatpush3.bf16.msra.mxu1 %v29875_v59  ;;  %v36308_v59 = vld [vmem:[#allocation24_spill] sm:$0xff] }
 0x7ee   : > { %27075 = vmatprep.subr.bf16.mxu1 %v29877_v35 }
 0x7f1   : > { %27076 = vmatpush3.bf16.msra.mxu1 %v29877_v35  ;;  %26386 = vmatmul.mubr.bf16.gmra.mrb[92].mxu0 %v36255_v10  ;;  %v36309_v35 = vld [vmem:[#allocation283_spill] sm:$0xff] }
 0x7f2   : > { %27141 = vmatprep.subr.bf16.mxu1 %v29878_v32  ;;  %26389 = vmatprep.mubr.bf16.mxu0 %v36302_v43 }
 0x7f4   : > { %27014 = vmatmul.mubr.bf16.gmra.mrb[16].mxu1 %v36180_v36 }
 0x7f5   : > { %27017 = vmatprep.mubr.bf16.mxu1 %v36181_v50 }
 0x7f9   : > { %26390 = vmatmul.mubr.bf16.gmra.mrb[96].mxu0 %v36199_v58 }
 0x7fa   : > { %26393 = vmatprep.mubr.bf16.mxu0 %v36203_v61 }
 0x7fc   : > { %27018 = vmatmul.mubr.bf16.gmra.mrb[20].mxu1 %v36303_v52  ;;  %v36311_v52 = vld [vmem:[#allocation27_spill] sm:$0xff] }
 0x7fd   : > { %27021 = vmatprep.mubr.bf16.mxu1 %v32475_v19 }
 0x801   : > { %26394 = vmatmul.mubr.bf16.gmra.mrb[100].mxu0 %v36209_v56 }
 0x802   : > { %26397 = vmatprep.mubr.bf16.mxu0 %v36304_v38 }
 0x804   : > { %27022 = vmatmul.mubr.bf16.gmra.mrb[24].mxu1 %v36211_v26 }
 0x805   : > { %27025 = vmatprep.mubr.bf16.mxu1 %v36305_v45 }
 0x809   : > { %26398 = vmatmul.mubr.bf16.gmra.mrb[104].mxu0 %v36213_v3 }
 0x80a   : > { %26401 = vmatprep.mubr.bf16.mxu0 %v36214_v28 }
 0x80c   : > { %27026 = vmatmul.mubr.bf16.gmra.mrb[28].mxu1 %v36306_v2  ;;  %v36310_v2 = vld [vmem:[#allocation166_spill] sm:$0xff] }
 0x80d   : > { %27029 = vmatprep.mubr.bf16.mxu1 %v36216_v20 }
 0x811   : > { %26402 = vmatmul.mubr.bf16.gmra.mrb[108].mxu0 %v36217_v63 }
 0x812   : > { %26405 = vmatprep.mubr.bf16.mxu0 %v36307_v27 }
 0x814   : > { %27030 = vmatmul.mubr.bf16.gmra.mrb[32].mxu1 %v36218_v54 }
 0x815   : > { %27033 = vmatprep.mubr.bf16.mxu1 %v36308_v59 }
 0x819   : > { %26406 = vmatmul.mubr.bf16.gmra.mrb[112].mxu0 %v36288_v14 }
 0x81a   : > { %26409 = vmatprep.mubr.bf16.mxu0 %v36290_v41 }
 0x81c   : > { %27034 = vmatmul.mubr.bf16.gmra.mrb[36].mxu1 %v36309_v35  ;;  %v36312_v35 = vld [vmem:[#allocation140_spill] sm:$0xff] }
 0x81d   : > { %27037 = vmatprep.mubr.bf16.mxu1 %v36274_v9 }
 0x821   : > { %26410 = vmatmul.mubr.bf16.gmra.mrb[116].mxu0 %v36291_v7 }
 0x822   : > { %26413 = vmatprep.mubr.bf16.mxu0 %v36310_v2 }
 0x824   : > { %27038 = vmatmul.mubr.bf16.gmra.mrb[40].mxu1 %v32664_v46 }
 0x825   : > { %27041 = vmatprep.mubr.bf16.mxu1 %v32702_v13 }
 0x829   : > { %26414 = vmatmul.mubr.bf16.gmra.mrb[120].mxu0 %v36262_v62 }
 0x82a   : > { %26417 = vmatprep.mubr.bf16.mxu0 %v36293_v6 }
 0x82c   : > { %27042 = vmatmul.mubr.bf16.gmra.mrb[44].mxu1 %v36311_v52  ;;  %v36315_v52 = vld [vmem:[#allocation292_spill] sm:$0xff] }
 0x82d   : > { %27045 = vmatprep.mubr.bf16.mxu1 %v36277_v0 }
 0x831   : > { %26418 = vmatmul.mubr.bf16.gmra.mrb[124].mxu0 %v36264_v42 }
 0x832   : > { %26437 = vmatprep.mubr.bf16.mxu0 %v36312_v35  ;;  %v36316_v35 = vld [vmem:[#allocation171_spill] sm:$0xff] }
 0x834   : > { %27046 = vmatmul.mubr.bf16.gmra.mrb[48].mxu1 %v32763_v16 }
 0x835   : > { %27049 = vmatprep.mubr.bf16.mxu1 %v36279_v31 }
 0x839   : > { %26438 = vmatmul.mubr.bf16.vlgmr.msra.gmra.mrb[64].mxu0 %v32051_v23  ;;  %v29880_v23 = vld [vmem:[%s34628_s3 + $0x410] sm:$0xff]  }
 0x83a   : > { %26441 = vmatprep.mubr.bf16.mxu0 %v32040_v4  ;;  %v29879_v4 = vld [vmem:[%s34628_s3 + $0x408] sm:$0xff]  }
 0x83c   : > { %27050 = vmatmul.mubr.bf16.gmra.mrb[52].mxu1 %v36313_v1 }
 0x83d   : > { %27053 = vmatprep.mubr.bf16.mxu1 %v32886_v34 }
 0x841   : > { %26442 = vmatmul.mubr.bf16.gmra.mrb[68].mxu0 %v36314_v55  ;;  %v29886_v55 = vld [vmem:[%s34628_s3 + $0x440] sm:$0xff]  }
 0x842   : > { %26445 = vmatprep.mubr.bf16.mxu0 %v36229_v40  ;;  %v29884_v40 = vld [vmem:[%s34628_s3 + $0x430] sm:$0xff]  }
 0x844   : > { %27054 = vmatmul.mubr.bf16.gmra.mrb[56].mxu1 %v32880_v44 }
 0x845   : > { %27057 = vmatprep.mubr.bf16.mxu1 %v36315_v52 }
 0x849   : > { %26446 = vmatmul.mubr.bf16.gmra.mrb[72].mxu0 %v32165_v12  ;;  %v29882_v12 = vld [vmem:[%s34628_s3 + $0x420] sm:$0xff]  }
 0x84a   : > { %26449 = vmatprep.mubr.bf16.mxu0 %v32159_v5  ;;  %v29881_v5 = vld [vmem:[%s34628_s3 + $0x418] sm:$0xff]  }
 0x84c   : > { %27058 = vmatmul.mubr.bf16.gmra.mrb[60].mxu1 %v36316_v35 }
 0x84d   : > { %27077 = vmatprep.mubr.bf16.mxu1 %v36282_v25  ;;  %v29885_v25 = vld [vmem:[%s34628_s3 + $0x438] sm:$0xff]  }
 0x851   : > { %26450 = vmatmul.mubr.bf16.gmra.mrb[76].mxu0 %v32197_v8  ;;  %v29883_v8 = vld [vmem:[%s34628_s3 + $0x428] sm:$0xff]  }
 0x852   : > { %26453 = vmatprep.mubr.bf16.mxu0 %v36231_v18 }
 0x854   : > { %27078 = vmatmul.mubr.bf16.vlgmr.msra.gmra.mrb[0].mxu1 %v36231_v18 }
 0x855   : > { %27142 = vmatpush3.bf16.msra.mxu1 %v29878_v32  ;;  %27081 = vmatprep.mubr.bf16.mxu1 %v32273_v48  ;;  %v36317_v32 = vld [vmem:[#allocation277_spill] sm:$0xff] }
 0x856   : > { %27143 = vmatprep.subr.bf16.mxu1 %v29879_v4 }
 0x859   : > { %27144 = vmatpush3.bf16.msra.mxu1 %v29879_v4  ;;  %26454 = vmatmul.mubr.bf16.gmra.mrb[80].mxu0 %v32273_v48  ;;  %v36318_v4 = vld [vmem:[#allocation280_spill] sm:$0xff] }
 0x85a   : > { %27145 = vmatprep.subr.bf16.mxu1 %v29880_v23  ;;  %26457 = vmatprep.mubr.bf16.mxu0 %v32267_v53 }
 0x85c   : > { %27082 = vmatmul.mubr.bf16.gmra.mrb[4].mxu1 %v32267_v53 }
 0x85d   : > { %27085 = vmatprep.mubr.bf16.mxu1 %v36283_v22  ;;  %27146 = vmatpush3.bf16.msra.mxu1 %v29880_v23  ;;  %v36319_v23 = vld [vmem:[#allocation159_spill] sm:$0xff]  ;;  %v36329_v22 = vld [vmem:[#allocation173_spill] sm:$0xff] }
 0x85e   : > { %27147 = vmatprep.subr.bf16.mxu1 %v29881_v5 }
 0x861   : > { %27148 = vmatpush3.bf16.msra.mxu1 %v29881_v5  ;;  %26458 = vmatmul.mubr.bf16.gmra.mrb[84].mxu0 %v32314_v21  ;;  %v36320_v5 = vld [vmem:[#allocation163_spill] sm:$0xff] }
 0x862   : > { %27149 = vmatprep.subr.bf16.mxu1 %v29882_v12  ;;  %26461 = vmatprep.mubr.bf16.mxu0 %v36233_v39 }
 0x864   : > { %27086 = vmatmul.mubr.bf16.gmra.mrb[8].mxu1 %v36233_v39 }
 0x865   : > { %27089 = vmatprep.mubr.bf16.mxu1 %v32383_v37  ;;  %27150 = vmatpush3.bf16.msra.mxu1 %v29882_v12  ;;  %v36321_v12 = vld [vmem:[#allocation25_spill] sm:$0xff] }
 0x866   : > { %27151 = vmatprep.subr.bf16.mxu1 %v29883_v8 }
 0x869   : > { %27152 = vmatpush3.bf16.msra.mxu1 %v29883_v8  ;;  %26462 = vmatmul.mubr.bf16.gmra.mrb[88].mxu0 %v32383_v37  ;;  %v36322_v8 = vld [vmem:[#allocation28_spill] sm:$0xff] }
 0x86a   : > { %27153 = vmatprep.subr.bf16.mxu1 %v29884_v40  ;;  %26465 = vmatprep.mubr.bf16.mxu0 %v36180_v36 }
 0x86c   : > { %27090 = vmatmul.mubr.bf16.gmra.mrb[12].mxu1 %v36180_v36 }
 0x86d   : > { %27093 = vmatprep.mubr.bf16.mxu1 %v36284_v17  ;;  %27154 = vmatpush3.bf16.msra.mxu1 %v29884_v40  ;;  %v36323_v40 = vld [vmem:[#allocation287_spill] sm:$0xff] }
 0x86e   : > { %27155 = vmatprep.subr.bf16.mxu1 %v29885_v25  ;;  %v36328_v17 = vld [vmem:[#allocation295_spill] sm:$0xff] }
 0x871   : > { %27156 = vmatpush3.bf16.msra.mxu1 %v29885_v25  ;;  %26466 = vmatmul.mubr.bf16.gmra.mrb[92].mxu0 %v36181_v50  ;;  %v36324_v25 = vld [vmem:[#allocation169_spill] sm:$0xff] }
 0x872   : > { %27221 = vmatprep.subr.bf16.mxu1 %v29886_v55  ;;  %26469 = vmatprep.mubr.bf16.mxu0 %v36317_v32 }
 0x874   : > { %27094 = vmatmul.mubr.bf16.gmra.mrb[16].mxu1 %v36317_v32 }
 0x875   : > { %27097 = vmatprep.mubr.bf16.mxu1 %v32475_v19 }
 0x879   : > { %26470 = vmatmul.mubr.bf16.gmra.mrb[96].mxu0 %v32475_v19 }
 0x87a   : > { %26473 = vmatprep.mubr.bf16.mxu0 %v36211_v26 }
 0x87c   : > { %27098 = vmatmul.mubr.bf16.gmra.mrb[20].mxu1 %v36211_v26 }
 0x87d   : > { %27101 = vmatprep.mubr.bf16.mxu1 %v36318_v4  ;;  %v36327_v4 = vld [vmem:[#allocation34_spill] sm:$0xff] }
 0x881   : > { %26474 = vmatmul.mubr.bf16.gmra.mrb[100].mxu0 %v36305_v45 }
 0x882   : > { %26477 = vmatprep.mubr.bf16.mxu0 %v36319_v23 }
 0x884   : > { %27102 = vmatmul.mubr.bf16.gmra.mrb[24].mxu1 %v36319_v23 }
 0x885   : > { %27105 = vmatprep.mubr.bf16.mxu1 %v36216_v20 }
 0x889   : > { %26478 = vmatmul.mubr.bf16.gmra.mrb[104].mxu0 %v36216_v20 }
 0x88a   : > { %26481 = vmatprep.mubr.bf16.mxu0 %v36218_v54 }
 0x88c   : > { %27106 = vmatmul.mubr.bf16.gmra.mrb[28].mxu1 %v36218_v54 }
 0x88d   : > { %27109 = vmatprep.mubr.bf16.mxu1 %v36320_v5  ;;  %v36325_v5 = vld [vmem:[#allocation31_spill] sm:$0xff] }
 0x891   : > { %26482 = vmatmul.mubr.bf16.gmra.mrb[108].mxu0 %v36308_v59 }
 0x892   : > { %26485 = vmatprep.mubr.bf16.mxu0 %v36321_v12 }
 0x894   : > { %27110 = vmatmul.mubr.bf16.gmra.mrb[32].mxu1 %v36321_v12 }
 0x895   : > { %27113 = vmatprep.mubr.bf16.mxu1 %v36274_v9 }
 0x899   : > { %26486 = vmatmul.mubr.bf16.gmra.mrb[112].mxu0 %v36274_v9 }
 0x89a   : > { %26489 = vmatprep.mubr.bf16.mxu0 %v32664_v46 }
 0x89c   : > { %27114 = vmatmul.mubr.bf16.gmra.mrb[36].mxu1 %v32664_v46 }
 0x89d   : > { %27117 = vmatprep.mubr.bf16.mxu1 %v36322_v8  ;;  %v36326_v8 = vld [vmem:[#allocation172_spill] sm:$0xff] }
 0x8a1   : > { %26490 = vmatmul.mubr.bf16.gmra.mrb[116].mxu0 %v32702_v13 }
 0x8a2   : > { %26493 = vmatprep.mubr.bf16.mxu0 %v36323_v40 }
 0x8a4   : > { %27118 = vmatmul.mubr.bf16.gmra.mrb[40].mxu1 %v36323_v40 }
 0x8a5   : > { %27121 = vmatprep.mubr.bf16.mxu1 %v36277_v0 }
 0x8a9   : > { %26494 = vmatmul.mubr.bf16.gmra.mrb[120].mxu0 %v36277_v0 }
 0x8aa   : > { %26497 = vmatprep.mubr.bf16.mxu0 %v32763_v16 }
 0x8ac   : > { %27122 = vmatmul.mubr.bf16.gmra.mrb[44].mxu1 %v32763_v16 }
 0x8ad   : > { %27125 = vmatprep.mubr.bf16.mxu1 %v36324_v25  ;;  %v29887_v25 = vld [vmem:[%s34628_s3 + $0x448] sm:$0xff]  }
 0x8b1   : > { %26498 = vmatmul.mubr.bf16.gmra.mrb[124].mxu0 %v36279_v31 }
 0x8b4   : > { %27126 = vmatmul.mubr.bf16.gmra.mrb[48].mxu1 %v36325_v5 }
 0x8b5   : > { %27129 = vmatprep.mubr.bf16.mxu1 %v32886_v34 }
 0x8bc   : > { %27130 = vmatmul.mubr.bf16.gmra.mrb[52].mxu1 %v32880_v44 }
 0x8bd   : > { %27133 = vmatprep.mubr.bf16.mxu1 %v36326_v8  ;;  %v29888_v8 = vld [vmem:[%s34628_s3 + $0x450] sm:$0xff]  }
 0x8c4   : > { %27134 = vmatmul.mubr.bf16.gmra.mrb[56].mxu1 %v36327_v4 }
 0x8c5   : > { %27137 = vmatprep.mubr.bf16.mxu1 %v36328_v17 }
 0x8cc   : > { %27138 = vmatmul.mubr.bf16.gmra.mrb[60].mxu1 %v36329_v22 }
 0x8cd   : > { %27157 = vmatprep.mubr.bf16.mxu1 %v36300_v29  ;;  %v29889_v29 = vld [vmem:[%s34628_s3 + $0x458] sm:$0xff]  }
 0x8d4   : > { %27158 = vmatmul.mubr.bf16.vlgmr.msra.gmra.mrb[0].mxu1 %v32264_v15 }
 0x8d5   : > { %27222 = vmatpush3.bf16.msra.mxu1 %v29886_v55  ;;  %27161 = vmatprep.mubr.bf16.mxu1 %v32275_v51  ;;  %v29890_v55 = vld [vmem:[%s34628_s3 + $0x460] sm:$0xff]  }
 0x8d6   : > { %27223 = vmatprep.subr.bf16.mxu1 %v29887_v25 }
 0x8d9   : > { %27224 = vmatpush3.bf16.msra.mxu1 %v29887_v25  ;;  %v29891_v25 = vld [vmem:[%s34628_s3 + $0x468] sm:$0xff]  }
 0x8da   : > { %27225 = vmatprep.subr.bf16.mxu1 %v29888_v8 }
 0x8dc   : > { %27162 = vmatmul.mubr.bf16.gmra.mrb[4].mxu1 %v32305_v30 }
 0x8dd   : > { %27165 = vmatprep.mubr.bf16.mxu1 %v36301_v47  ;;  %27226 = vmatpush3.bf16.msra.mxu1 %v29888_v8  ;;  %v29892_v8 = vld [vmem:[%s34628_s3 + $0x470] sm:$0xff]  }
 0x8de   : > { %27227 = vmatprep.subr.bf16.mxu1 %v29889_v29 }
 0x8e1   : > { %27228 = vmatpush3.bf16.msra.mxu1 %v29889_v29  ;;  %v29893_v29 = vld [vmem:[%s34628_s3 + $0x478] sm:$0xff]  }
 0x8e2   : > { %27229 = vmatprep.subr.bf16.mxu1 %v29890_v55 }
 0x8e4   : > { %27166 = vmatmul.mubr.bf16.gmra.mrb[8].mxu1 %v36253_v11 }
 0x8e5   : > { %27169 = vmatprep.mubr.bf16.mxu1 %v36254_v60  ;;  %27230 = vmatpush3.bf16.msra.mxu1 %v29890_v55  ;;  %v33842_v55 = vld [vmem:[%s34628_s3 + $0x480] sm:$0xff]  }
 0x8e6   : > { %27231 = vmatprep.subr.bf16.mxu1 %v29891_v25 }
 0x8e9   : > { %27232 = vmatpush3.bf16.msra.mxu1 %v29891_v25 }
 0x8ea   : > { %27233 = vmatprep.subr.bf16.mxu1 %v29892_v8 }
 0x8ec   : > { %27170 = vmatmul.mubr.bf16.gmra.mrb[12].mxu1 %v36255_v10 }
 0x8ed   : > { %27173 = vmatprep.mubr.bf16.mxu1 %v36302_v43  ;;  %27234 = vmatpush3.bf16.msra.mxu1 %v29892_v8 }
 0x8ee   : > { %27235 = vmatprep.subr.bf16.mxu1 %v29893_v29 }
 0x8f1   : > { %27236 = vmatpush3.bf16.msra.mxu1 %v29893_v29 }
 0x8f2   : > { %27301 = vmatprep.subr.bf16.mxu1 %v33842_v55 }
 0x8f4   : > { %27174 = vmatmul.mubr.bf16.gmra.mrb[16].mxu1 %v36199_v58 }
 0x8f5   : > { %27177 = vmatprep.mubr.bf16.mxu1 %v36203_v61 }
 0x8fc   : > { %27178 = vmatmul.mubr.bf16.gmra.mrb[20].mxu1 %v36209_v56 }
 0x8fd   : > { %27181 = vmatprep.mubr.bf16.mxu1 %v36304_v38 }
 0x904   : > { %27182 = vmatmul.mubr.bf16.gmra.mrb[24].mxu1 %v36213_v3 }
 0x905   : > { %27185 = vmatprep.mubr.bf16.mxu1 %v36214_v28 }
 0x90c   : > { %27186 = vmatmul.mubr.bf16.gmra.mrb[28].mxu1 %v36217_v63  ;;  %v33853_v25 = vpop.f32.mrb[64].mxu0 }
 0x90d   : > { %27189 = vmatprep.mubr.bf16.mxu1 %v36307_v27  ;;  %36330 = vst [vmem:[#allocation300_spill] sm:$0xff] %v33853_v25  ;;  %v33855_v8 = vpop.f32.mrb[65].mxu0  ;;  %v36360_v27 = vld [vmem:[#allocation35_spill] sm:$0xff] }
 0x90e   : > { %36331 = vst [vmem:[#allocation301_spill] sm:$0xff] %v33855_v8  ;;  %v33857_v29 = vpop.f32.mrb[66].mxu0 }
 0x90f   : > { %36332 = vst [vmem:[#allocation42_spill] sm:$0xff] %v33857_v29  ;;  %v33859_v43 = vpop.f32.mrb[67].mxu0 }
 0x910   : > { %36333 = vst [vmem:[#allocation180_spill] sm:$0xff] %v33859_v43 }
 0x914   : > { %27190 = vmatmul.mubr.bf16.gmra.mrb[32].mxu1 %v36288_v14  ;;  %v33863_v38 = vpop.f32.mrb[68].mxu0 }
 0x915   : > { %27193 = vmatprep.mubr.bf16.mxu1 %v36290_v41  ;;  %36334 = vst [vmem:[#allocation302_spill] sm:$0xff] %v33863_v38  ;;  %v33865_v47 = vpop.f32.mrb[69].mxu0 }
 0x916   : > { %36335 = vst [vmem:[#allocation43_spill] sm:$0xff] %v33865_v47  ;;  %v33867_v35 = vpop.f32.mrb[70].mxu0 }
 0x917   : > { %36336 = vst [vmem:[#allocation181_spill] sm:$0xff] %v33867_v35  ;;  %v33869_v1 = vpop.f32.mrb[71].mxu0 }
 0x918   : > { %36337 = vst [vmem:[#allocation303_spill] sm:$0xff] %v33869_v1 }
 0x91c   : > { %27194 = vmatmul.mubr.bf16.gmra.mrb[36].mxu1 %v36291_v7  ;;  %v33873_v8 = vpop.f32.mrb[72].mxu0 }
 0x91d   : > { %27197 = vmatprep.mubr.bf16.mxu1 %v36310_v2  ;;  %36338 = vst [vmem:[#allocation44_spill] sm:$0xff] %v33873_v8  ;;  %v33875_v29 = vpop.f32.mrb[73].mxu0  ;;  %v36346_v8 = vld [vmem:[#allocation291_spill] sm:$0xff] }
 0x91e   : > { %36339 = vst [vmem:[#allocation182_spill] sm:$0xff] %v33875_v29  ;;  %v33877_v43 = vpop.f32.mrb[74].mxu0 }
 0x91f   : > { %36340 = vst [vmem:[#allocation45_spill] sm:$0xff] %v33877_v43  ;;  %v33879_v25 = vpop.f32.mrb[75].mxu0 }
 0x920   : > { %36341 = vst [vmem:[#allocation183_spill] sm:$0xff] %v33879_v25 }
 0x924   : > { %27198 = vmatmul.mubr.bf16.gmra.mrb[40].mxu1 %v36262_v62  ;;  %v33883_v47 = vpop.f32.mrb[76].mxu0 }
 0x925   : > { %27201 = vmatprep.mubr.bf16.mxu1 %v36293_v6  ;;  %36342 = vst [vmem:[#allocation304_spill] sm:$0xff] %v33883_v47  ;;  %v33885_v35 = vpop.f32.mrb[77].mxu0 }
 0x926   : > { %36343 = vst [vmem:[#allocation305_spill] sm:$0xff] %v33885_v35  ;;  %v33887_v1 = vpop.f32.mrb[78].mxu0 }
 0x927   : > { %36344 = vst [vmem:[#allocation46_spill] sm:$0xff] %v33887_v1  ;;  %v33889_v38 = vpop.f32.mrb[79].mxu0 }
 0x928   : > { %36345 = vst [vmem:[#allocation184_spill] sm:$0xff] %v33889_v38 }
 0x92c   : > { %27202 = vmatmul.mubr.bf16.gmra.mrb[44].mxu1 %v36264_v42  ;;  %v33893_v29 = vpop.f32.mrb[80].mxu0 }
 0x92d   : > { %27205 = vmatprep.mubr.bf16.mxu1 %v36346_v8  ;;  %36347 = vst [vmem:[#allocation306_spill] sm:$0xff] %v33893_v29  ;;  %v33895_v43 = vpop.f32.mrb[81].mxu0  ;;  %v36355_v29 = vld [vmem:[#allocation294_spill] sm:$0xff] }
 0x92e   : > { %36348 = vst [vmem:[#allocation47_spill] sm:$0xff] %v33895_v43  ;;  %v33897_v25 = vpop.f32.mrb[82].mxu0 }
 0x92f   : > { %36349 = vst [vmem:[#allocation185_spill] sm:$0xff] %v33897_v25  ;;  %v33899_v2 = vpop.f32.mrb[83].mxu0 }
 0x930   : > { %36350 = vst [vmem:[#allocation307_spill] sm:$0xff] %v33899_v2 }
 0x934   : > { %27206 = vmatmul.mubr.bf16.gmra.mrb[48].mxu1 %v36267_v33  ;;  %v33903_v35 = vpop.f32.mrb[84].mxu0 }
 0x935   : > { %27209 = vmatprep.mubr.bf16.mxu1 %v36268_v24  ;;  %36351 = vst [vmem:[#allocation48_spill] sm:$0xff] %v33903_v35  ;;  %v33905_v1 = vpop.f32.mrb[85].mxu0  ;;  %v36361_v35 = vld [vmem:[#allocation36_spill] sm:$0xff] }
 0x936   : > { %36352 = vst [vmem:[#allocation186_spill] sm:$0xff] %v33905_v1  ;;  %v33907_v38 = vpop.f32.mrb[86].mxu0 }
 0x937   : > { %36353 = vst [vmem:[#allocation49_spill] sm:$0xff] %v33907_v38  ;;  %v33909_v47 = vpop.f32.mrb[87].mxu0 }
 0x938   : > { %36354 = vst [vmem:[#allocation187_spill] sm:$0xff] %v33909_v47 }
 0x93c   : > { %27210 = vmatmul.mubr.bf16.gmra.mrb[52].mxu1 %v36269_v49  ;;  %v33913_v43 = vpop.f32.mrb[88].mxu0 }
 0x93d   : > { %27213 = vmatprep.mubr.bf16.mxu1 %v36355_v29  ;;  %36356 = vst [vmem:[#allocation308_spill] sm:$0xff] %v33913_v43  ;;  %v33915_v25 = vpop.f32.mrb[89].mxu0  ;;  %v36366_v29 = vld [vmem:[#allocation174_spill] sm:$0xff] }
 0x93e   : > { %36357 = vst [vmem:[#allocation309_spill] sm:$0xff] %v33915_v25  ;;  %v33917_v2 = vpop.f32.mrb[90].mxu0 }
 0x93f   : > { %36358 = vst [vmem:[#allocation50_spill] sm:$0xff] %v33917_v2  ;;  %v33919_v8 = vpop.f32.mrb[91].mxu0 }
 0x940   : > { %36359 = vst [vmem:[#allocation188_spill] sm:$0xff] %v33919_v8 }
 0x944   : > { %27214 = vmatmul.mubr.bf16.gmra.mrb[56].mxu1 %v36360_v27  ;;  %v33923_v1 = vpop.f32.mrb[92].mxu0 }
 0x945   : > { %27217 = vmatprep.mubr.bf16.mxu1 %v36361_v35  ;;  %36362 = vst [vmem:[#allocation310_spill] sm:$0xff] %v33923_v1  ;;  %v33925_v38 = vpop.f32.mrb[93].mxu0  ;;  %v36415_v1 = vld [vmem:[#allocation37_spill] sm:$0xff] }
 0x946   : > { %36363 = vst [vmem:[#allocation51_spill] sm:$0xff] %v33925_v38  ;;  %v33927_v47 = vpop.f32.mrb[94].mxu0  ;;  %v29895_v38 = vld [vmem:[%s34628_s3 + $0x488] sm:$0xff]  }
 0x947   : > { %36364 = vst [vmem:[#allocation189_spill] sm:$0xff] %v33927_v47  ;;  %v33929_v49 = vpop.f32.mrb[95].mxu0 }
 0x948   : > { %36365 = vst [vmem:[#allocation311_spill] sm:$0xff] %v33929_v49 }
 0x94c   : > { %27218 = vmatmul.mubr.bf16.gmra.mrb[60].mxu1 %v36366_v29  ;;  %v33933_v25 = vpop.f32.mrb[96].mxu0 }
 0x94d   : > { %27237 = vmatprep.mubr.bf16.mxu1 %v36231_v18  ;;  %36367 = vst [vmem:[#allocation52_spill] sm:$0xff] %v33933_v25  ;;  %v33935_v2 = vpop.f32.mrb[97].mxu0  ;;  %v29896_v18 = vld [vmem:[%s34628_s3 + $0x490] sm:$0xff]   ;;  %v29899_v25 = vld [vmem:[%s34628_s3 + $0x4a8] sm:$0xff]  }
 0x94e   : > { %36368 = vst [vmem:[#allocation190_spill] sm:$0xff] %v33935_v2  ;;  %v33937_v8 = vpop.f32.mrb[98].mxu0 }
 0x94f   : > { %36369 = vst [vmem:[#allocation53_spill] sm:$0xff] %v33937_v8  ;;  %v33939_v43 = vpop.f32.mrb[99].mxu0 }
 0x950   : > { %36370 = vst [vmem:[#allocation191_spill] sm:$0xff] %v33939_v43 }
 0x954   : > { %27238 = vmatmul.mubr.bf16.vlgmr.msra.gmra.mrb[0].mxu1 %v32273_v48  ;;  %v33947_v49 = vpop.f32.mrb[100].mxu0 }
 0x955   : > { %27302 = vmatpush3.bf16.msra.mxu1 %v33842_v55  ;;  %27241 = vmatprep.mubr.bf16.mxu1 %v32267_v53  ;;  %36371 = vst [vmem:[#allocation312_spill] sm:$0xff] %v33947_v49  ;;  %v33952_v8 = vpop.f32.mrb[101].mxu0  ;;  %v29897_v55 = vld [vmem:[%s34628_s3 + $0x498] sm:$0xff]  }
 0x956   : > { %27303 = vmatprep.subr.bf16.mxu1 %v29895_v38  ;;  %36372 = vst [vmem:[#allocation313_spill] sm:$0xff] %v33952_v8  ;;  %v33954_v43 = vpop.f32.mrb[102].mxu0 }
 0x957   : > { %36373 = vst [vmem:[#allocation54_spill] sm:$0xff] %v33954_v43  ;;  %v33956_v2 = vpop.f32.mrb[103].mxu0  ;;  %v29898_v43 = vld [vmem:[%s34628_s3 + $0x4a0] sm:$0xff]  }
 0x958   : > { %36374 = vst [vmem:[#allocation192_spill] sm:$0xff] %v33956_v2 }
 0x959   : > { %27304 = vmatpush3.bf16.msra.mxu1 %v29895_v38 }
 0x95a   : > { %27305 = vmatprep.subr.bf16.mxu1 %v29896_v18 }
 0x95c   : > { %27242 = vmatmul.mubr.bf16.gmra.mrb[4].mxu1 %v32314_v21  ;;  %v33963_v49 = vpop.f32.mrb[104].mxu0 }
 0x95d   : > { %27245 = vmatprep.mubr.bf16.mxu1 %v36233_v39  ;;  %27306 = vmatpush3.bf16.msra.mxu1 %v29896_v18  ;;  %36375 = vst [vmem:[#allocation314_spill] sm:$0xff] %v33963_v49  ;;  %v33968_v8 = vpop.f32.mrb[105].mxu0  ;;  %v29901_v49 = vld [vmem:[%s34628_s3 + $0x4b8] sm:$0xff]  }
 0x95e   : > { %27307 = vmatprep.subr.bf16.mxu1 %v29897_v55  ;;  %36376 = vst [vmem:[#allocation55_spill] sm:$0xff] %v33968_v8  ;;  %v33970_v38 = vpop.f32.mrb[106].mxu0 }
 0x95f   : > { %36377 = vst [vmem:[#allocation193_spill] sm:$0xff] %v33970_v38  ;;  %v33972_v2 = vpop.f32.mrb[107].mxu0  ;;  %v29900_v38 = vld [vmem:[%s34628_s3 + $0x4b0] sm:$0xff]  }
 0x960   : > { %36378 = vst [vmem:[#allocation315_spill] sm:$0xff] %v33972_v2 }
 0x961   : > { %27308 = vmatpush3.bf16.msra.mxu1 %v29897_v55 }
 0x962   : > { %27309 = vmatprep.subr.bf16.mxu1 %v29898_v43 }
 0x964   : > { %27246 = vmatmul.mubr.bf16.gmra.mrb[8].mxu1 %v32383_v37  ;;  %v33979_v18 = vpop.f32.mrb[108].mxu0 }
 0x965   : > { %27249 = vmatprep.mubr.bf16.mxu1 %v36180_v36  ;;  %27310 = vmatpush3.bf16.msra.mxu1 %v29898_v43  ;;  %36379 = vst [vmem:[#allocation56_spill] sm:$0xff] %v33979_v18  ;;  %v33984_v8 = vpop.f32.mrb[109].mxu0 }
 0x966   : > { %27311 = vmatprep.subr.bf16.mxu1 %v29899_v25  ;;  %36380 = vst [vmem:[#allocation194_spill] sm:$0xff] %v33984_v8  ;;  %v33986_v55 = vpop.f32.mrb[110].mxu0 }
 0x967   : > { %36381 = vst [vmem:[#allocation57_spill] sm:$0xff] %v33986_v55  ;;  %v33988_v2 = vpop.f32.mrb[111].mxu0  ;;  %v29902_v55 = vld [vmem:[%s34628_s3 + $0x4c0] sm:$0xff]  }
 0x968   : > { %36382 = vst [vmem:[#allocation195_spill] sm:$0xff] %v33988_v2 }
 0x969   : > { %27312 = vmatpush3.bf16.msra.mxu1 %v29899_v25 }
 0x96a   : > { %27313 = vmatprep.subr.bf16.mxu1 %v29900_v38 }
 0x96c   : > { %27250 = vmatmul.mubr.bf16.gmra.mrb[12].mxu1 %v36181_v50  ;;  %v33995_v43 = vpop.f32.mrb[112].mxu0 }
 0x96d   : > { %27253 = vmatprep.mubr.bf16.mxu1 %v36317_v32  ;;  %27314 = vmatpush3.bf16.msra.mxu1 %v29900_v38  ;;  %36383 = vst [vmem:[#allocation316_spill] sm:$0xff] %v33995_v43  ;;  %v34000_v8 = vpop.f32.mrb[113].mxu0 }
 0x96e   : > { %27315 = vmatprep.subr.bf16.mxu1 %v29901_v49  ;;  %36384 = vst [vmem:[#allocation317_spill] sm:$0xff] %v34000_v8  ;;  %v34002_v25 = vpop.f32.mrb[114].mxu0 }
 0x96f   : > { %36385 = vst [vmem:[#allocation58_spill] sm:$0xff] %v34002_v25  ;;  %v34004_v2 = vpop.f32.mrb[115].mxu0 }
 0x970   : > { %36386 = vst [vmem:[#allocation196_spill] sm:$0xff] %v34004_v2 }
 0x971   : > { %27316 = vmatpush3.bf16.msra.mxu1 %v29901_v49 }
 0x972   : > { %27381 = vmatprep.subr.bf16.mxu1 %v29902_v55 }
 0x974   : > { %27254 = vmatmul.mubr.bf16.gmra.mrb[16].mxu1 %v32475_v19  ;;  %v34008_v38 = vpop.f32.mrb[116].mxu0 }
 0x975   : > { %27257 = vmatprep.mubr.bf16.mxu1 %v36211_v26  ;;  %36387 = vst [vmem:[#allocation318_spill] sm:$0xff] %v34008_v38  ;;  %v34010_v43 = vpop.f32.mrb[117].mxu0 }
 0x976   : > { %36388 = vst [vmem:[#allocation59_spill] sm:$0xff] %v34010_v43  ;;  %v34012_v18 = vpop.f32.mrb[118].mxu0 }
 0x977   : > { %36389 = vst [vmem:[#allocation197_spill] sm:$0xff] %v34012_v18  ;;  %v34014_v47 = vpop.f32.mrb[119].mxu0 }
 0x978   : > { %36390 = vst [vmem:[#allocation319_spill] sm:$0xff] %v34014_v47 }
 0x97c   : > { %27258 = vmatmul.mubr.bf16.gmra.mrb[20].mxu1 %v36305_v45  ;;  %v34018_v25 = vpop.f32.mrb[120].mxu0 }
 0x97d   : > { %27261 = vmatprep.mubr.bf16.mxu1 %v36319_v23  ;;  %36391 = vst [vmem:[#allocation60_spill] sm:$0xff] %v34018_v25  ;;  %v34020_v49 = vpop.f32.mrb[121].mxu0  ;;  %v36408_v25 = vld [vmem:[#allocation273_spill] sm:$0xff] }
 0x97e   : > { %36392 = vst [vmem:[#allocation198_spill] sm:$0xff] %v34020_v49  ;;  %v34022_v2 = vpop.f32.mrb[122].mxu0  ;;  %v29912_v49 = vld [vmem:[%s34628_s3 + $0x510] sm:$0xff]  }
 0x97f   : > { %36393 = vst [vmem:[#allocation61_spill] sm:$0xff] %v34022_v2  ;;  %v34024_v8 = vpop.f32.mrb[123].mxu0  ;;  %v29911_v2 = vld [vmem:[%s34628_s3 + $0x508] sm:$0xff]  }
 0x980   : > { %36394 = vst [vmem:[#allocation199_spill] sm:$0xff] %v34024_v8  ;;  %v36407_v8 = vld [vmem:[#allocation296_spill] sm:$0xff] }
 0x984   : > { %27262 = vmatmul.mubr.bf16.gmra.mrb[24].mxu1 %v36216_v20  ;;  %v34028_v43 = vpop.f32.mrb[124].mxu0 }
 0x985   : > { %27265 = vmatprep.mubr.bf16.mxu1 %v36218_v54  ;;  %36395 = vst [vmem:[#allocation320_spill] sm:$0xff] %v34028_v43  ;;  %v34030_v18 = vpop.f32.mrb[125].mxu0  ;;  %v36400_v43 = vld [vmem:[#allocation14_spill] sm:$0xff] }
 0x986   : > { %36396 = vst [vmem:[#allocation321_spill] sm:$0xff] %v34030_v18  ;;  %v34032_v47 = vpop.f32.mrb[126].mxu0  ;;  %v29904_v18 = vld [vmem:[%s34628_s3 + $0x4d0] sm:$0xff]  }
 0x987   : > { %36397 = vst [vmem:[#allocation62_spill] sm:$0xff] %v34032_v47  ;;  %v34034_v38 = vpop.f32.mrb[127].mxu0  ;;  %v29903_v47 = vld [vmem:[%s34628_s3 + $0x4c8] sm:$0xff]  }
 0x988   : > { %36398 = vst [vmem:[#allocation200_spill] sm:$0xff] %v34034_v38  ;;  %v36399_v38 = vld [vmem:[#allocation175_spill] sm:$0xff] }
 0x98c   : > { %27266 = vmatmul.mubr.bf16.gmra.mrb[28].mxu1 %v36308_v59 }
 0x98d   : > { %27269 = vmatprep.mubr.bf16.mxu1 %v36321_v12 }
 0x994   : > { %27270 = vmatmul.mubr.bf16.gmra.mrb[32].mxu1 %v36274_v9 }
 0x995   : > { %27273 = vmatprep.mubr.bf16.mxu1 %v32664_v46 }
 0x99c   : > { %27274 = vmatmul.mubr.bf16.gmra.mrb[36].mxu1 %v32702_v13 }
 0x99d   : > { %27277 = vmatprep.mubr.bf16.mxu1 %v36323_v40 }
 0x9a4   : > { %27278 = vmatmul.mubr.bf16.gmra.mrb[40].mxu1 %v36277_v0 }
 0x9a5   : > { %27281 = vmatprep.mubr.bf16.mxu1 %v32763_v16 }
 0x9ac   : > { %27282 = vmatmul.mubr.bf16.gmra.mrb[44].mxu1 %v36279_v31 }
 0x9ad   : > { %27285 = vmatprep.mubr.bf16.mxu1 %v36325_v5 }
 0x9b4   : > { %27286 = vmatmul.mubr.bf16.gmra.mrb[48].mxu1 %v32886_v34 }
 0x9b5   : > { %27289 = vmatprep.mubr.bf16.mxu1 %v32880_v44 }
 0x9bc   : > { %27290 = vmatmul.mubr.bf16.gmra.mrb[52].mxu1 %v36315_v52 }
 0x9bd   : > { %27293 = vmatprep.mubr.bf16.mxu1 %v36327_v4 }
 0x9c4   : > { %27294 = vmatmul.mubr.bf16.gmra.mrb[56].mxu1 %v36328_v17 }
 0x9c5   : > { %27297 = vmatprep.mubr.bf16.mxu1 %v36329_v22 }
 0x9cc   : > { %27298 = vmatmul.mubr.bf16.gmra.mrb[60].mxu1 %v36399_v38 }
 0x9cd   : > { %27317 = vmatprep.mubr.bf16.mxu1 %v32264_v15  ;;  %v29905_v15 = vld [vmem:[%s34628_s3 + $0x4d8] sm:$0xff]  }
 0x9d4   : > { %27318 = vmatmul.mubr.bf16.vlgmr.msra.gmra.mrb[0].mxu1 %v32275_v51  ;;  %v29906_v51 = vld [vmem:[%s34628_s3 + $0x4e0] sm:$0xff]  }
 0x9d5   : > { %27382 = vmatpush3.bf16.msra.mxu1 %v29902_v55  ;;  %27321 = vmatprep.mubr.bf16.mxu1 %v32305_v30  ;;  %v29907_v30 = vld [vmem:[%s34628_s3 + $0x4e8] sm:$0xff]   ;;  %v36401_v55 = vld [vmem:[#allocation276_spill] sm:$0xff] }
 0x9d6   : > { %27383 = vmatprep.subr.bf16.mxu1 %v29903_v47 }
 0x9d9   : > { %27384 = vmatpush3.bf16.msra.mxu1 %v29903_v47  ;;  %v29908_v47 = vld [vmem:[%s34628_s3 + $0x4f0] sm:$0xff]  }
 0x9da   : > { %27385 = vmatprep.subr.bf16.mxu1 %v29904_v18 }
 0x9dc   : > { %27322 = vmatmul.mubr.bf16.gmra.mrb[4].mxu1 %v36400_v43  ;;  %v29910_v43 = vld [vmem:[%s34628_s3 + $0x500] sm:$0xff]  }
 0x9dd   : > { %27325 = vmatprep.mubr.bf16.mxu1 %v36253_v11  ;;  %27386 = vmatpush3.bf16.msra.mxu1 %v29904_v18  ;;  %v29909_v18 = vld [vmem:[%s34628_s3 + $0x4f8] sm:$0xff]  }
 0x9de   : > { %27387 = vmatprep.subr.bf16.mxu1 %v29905_v15 }
 0x9e1   : > { %27388 = vmatpush3.bf16.msra.mxu1 %v29905_v15  ;;  %v36402_v15 = vld [vmem:[#allocation21_spill] sm:$0xff] }
 0x9e2   : > { %27389 = vmatprep.subr.bf16.mxu1 %v29906_v51 }
 0x9e4   : > { %27326 = vmatmul.mubr.bf16.gmra.mrb[8].mxu1 %v36254_v60 }
 0x9e5   : > { %27329 = vmatprep.mubr.bf16.mxu1 %v36255_v10  ;;  %27390 = vmatpush3.bf16.msra.mxu1 %v29906_v51  ;;  %v36403_v51 = vld [vmem:[#allocation162_spill] sm:$0xff] }
 0x9e6   : > { %27391 = vmatprep.subr.bf16.mxu1 %v29907_v30 }
 0x9e9   : > { %27392 = vmatpush3.bf16.msra.mxu1 %v29907_v30  ;;  %v36404_v30 = vld [vmem:[#allocation165_spill] sm:$0xff] }
 0x9ea   : > { %27393 = vmatprep.subr.bf16.mxu1 %v29908_v47 }
 0x9ec   : > { %27330 = vmatmul.mubr.bf16.gmra.mrb[12].mxu1 %v36401_v55 }
 0x9ed   : > { %27333 = vmatprep.mubr.bf16.mxu1 %v36199_v58  ;;  %27394 = vmatpush3.bf16.msra.mxu1 %v29908_v47  ;;  %v36405_v47 = vld [vmem:[#allocation33_spill] sm:$0xff] }
 0x9ee   : > { %27395 = vmatprep.subr.bf16.mxu1 %v29909_v18 }
 0x9f1   : > { %27396 = vmatpush3.bf16.msra.mxu1 %v29909_v18  ;;  %v36406_v18 = vld [vmem:[#allocation293_spill] sm:$0xff] }
 0x9f2   : > { %27461 = vmatprep.subr.bf16.mxu1 %v29910_v43 }
 0x9f4   : > { %27334 = vmatmul.mubr.bf16.gmra.mrb[16].mxu1 %v36203_v61 }
 0x9f5   : > { %27337 = vmatprep.mubr.bf16.mxu1 %v36209_v56 }
 0x9fc   : > { %27338 = vmatmul.mubr.bf16.gmra.mrb[20].mxu1 %v36402_v15 }
 0x9fd   : > { %27341 = vmatprep.mubr.bf16.mxu1 %v36213_v3 }
 0xa04   : > { %27342 = vmatmul.mubr.bf16.gmra.mrb[24].mxu1 %v36214_v28 }
 0xa05   : > { %27345 = vmatprep.mubr.bf16.mxu1 %v36217_v63 }
 0xa0c   : > { %27346 = vmatmul.mubr.bf16.gmra.mrb[28].mxu1 %v36403_v51 }
 0xa0d   : > { %27349 = vmatprep.mubr.bf16.mxu1 %v36288_v14 }
 0xa14   : > { %27350 = vmatmul.mubr.bf16.gmra.mrb[32].mxu1 %v36290_v41 }
 0xa15   : > { %27353 = vmatprep.mubr.bf16.mxu1 %v36291_v7 }
 0xa1c   : > { %27354 = vmatmul.mubr.bf16.gmra.mrb[36].mxu1 %v36404_v30 }
 0xa1d   : > { %27357 = vmatprep.mubr.bf16.mxu1 %v36262_v62 }
 0xa24   : > { %27358 = vmatmul.mubr.bf16.gmra.mrb[40].mxu1 %v36293_v6 }
 0xa25   : > { %27361 = vmatprep.mubr.bf16.mxu1 %v36264_v42 }
 0xa2c   : > { %27362 = vmatmul.mubr.bf16.gmra.mrb[44].mxu1 %v36296_v57 }
 0xa2d   : > { %27365 = vmatprep.mubr.bf16.mxu1 %v36267_v33 }
 0xa34   : > { %27366 = vmatmul.mubr.bf16.gmra.mrb[48].mxu1 %v36268_v24 }
 0xa35   : > { %27369 = vmatprep.mubr.bf16.mxu1 %v36405_v47 }
 0xa3c   : > { %27370 = vmatmul.mubr.bf16.gmra.mrb[52].mxu1 %v36406_v18 }
 0xa3d   : > { %27373 = vmatprep.mubr.bf16.mxu1 %v36360_v27 }
 0xa44   : > { %27374 = vmatmul.mubr.bf16.gmra.mrb[56].mxu1 %v36361_v35 }
 0xa45   : > { %27377 = vmatprep.mubr.bf16.mxu1 %v36366_v29 }
 0xa4c   : > { %27378 = vmatmul.mubr.bf16.gmra.mrb[60].mxu1 %v36407_v8  ;;  %v36436_v8 = vld [vmem:[#allocation299_spill] sm:$0xff] }
 0xa4d   : > { %27397 = vmatprep.mubr.bf16.mxu1 %v32273_v48  ;;  %v29913_v48 = vld [vmem:[%s34628_s3 + $0x518] sm:$0xff]  }
 0xa54   : > { %27398 = vmatmul.mubr.bf16.vlgmr.msra.gmra.mrb[0].mxu1 %v32267_v53  ;;  %v29914_v53 = vld [vmem:[%s34628_s3 + $0x520] sm:$0xff]  }
 0xa55   : > { %27462 = vmatpush3.bf16.msra.mxu1 %v29910_v43  ;;  %27401 = vmatprep.mubr.bf16.mxu1 %v32314_v21  ;;  %v29915_v21 = vld [vmem:[%s34628_s3 + $0x528] sm:$0xff]   ;;  %v29918_v43 = vld [vmem:[%s34628_s3 + $0x540] sm:$0xff]  }
 0xa56   : > { %27463 = vmatprep.subr.bf16.mxu1 %v29911_v2 }
 0xa59   : > { %27464 = vmatpush3.bf16.msra.mxu1 %v29911_v2  ;;  %v29916_v2 = vld [vmem:[%s34628_s3 + $0x530] sm:$0xff]  }
 0xa5a   : > { %27465 = vmatprep.subr.bf16.mxu1 %v29912_v49 }
 0xa5c   : > { %27402 = vmatmul.mubr.bf16.gmra.mrb[4].mxu1 %v36408_v25  ;;  %v29917_v25 = vld [vmem:[%s34628_s3 + $0x538] sm:$0xff]  }
 0xa5d   : > { %27405 = vmatprep.mubr.bf16.mxu1 %v32383_v37  ;;  %27466 = vmatpush3.bf16.msra.mxu1 %v29912_v49  ;;  %v36409_v49 = vld [vmem:[#allocation17_spill] sm:$0xff] }
 0xa5e   : > { %27467 = vmatprep.subr.bf16.mxu1 %v29913_v48 }
 0xa61   : > { %27468 = vmatpush3.bf16.msra.mxu1 %v29913_v48  ;;  %v36410_v48 = vld [vmem:[#allocation20_spill] sm:$0xff] }
 0xa62   : > { %27469 = vmatprep.subr.bf16.mxu1 %v29914_v53 }
 0xa64   : > { %27406 = vmatmul.mubr.bf16.gmra.mrb[8].mxu1 %v36180_v36 }
 0xa65   : > { %27409 = vmatprep.mubr.bf16.mxu1 %v36181_v50  ;;  %27470 = vmatpush3.bf16.msra.mxu1 %v29914_v53  ;;  %v36411_v53 = vld [vmem:[#allocation283_spill] sm:$0xff] }
 0xa66   : > { %27471 = vmatprep.subr.bf16.mxu1 %v29915_v21 }
 0xa69   : > { %27472 = vmatpush3.bf16.msra.mxu1 %v29915_v21  ;;  %v36412_v21 = vld [vmem:[#allocation27_spill] sm:$0xff] }
 0xa6a   : > { %27473 = vmatprep.subr.bf16.mxu1 %v29916_v2 }
 0xa6c   : > { %27410 = vmatmul.mubr.bf16.gmra.mrb[12].mxu1 %v36409_v49  ;;  %v36428_v49 = vld [vmem:[#allocation156_spill] sm:$0xff] }
 0xa6d   : > { %27413 = vmatprep.mubr.bf16.mxu1 %v32475_v19  ;;  %27474 = vmatpush3.bf16.msra.mxu1 %v29916_v2  ;;  %v36413_v2 = vld [vmem:[#allocation30_spill] sm:$0xff] }
 0xa6e   : > { %27475 = vmatprep.subr.bf16.mxu1 %v29917_v25 }
 0xa71   : > { %27476 = vmatpush3.bf16.msra.mxu1 %v29917_v25  ;;  %v36414_v25 = vld [vmem:[#allocation171_spill] sm:$0xff] }
 0xa72   : > { %27541 = vmatprep.subr.bf16.mxu1 %v29918_v43 }
 0xa74   : > { %27414 = vmatmul.mubr.bf16.gmra.mrb[16].mxu1 %v36211_v26 }
 0xa75   : > { %27417 = vmatprep.mubr.bf16.mxu1 %v36305_v45 }
 0xa7c   : > { %27418 = vmatmul.mubr.bf16.gmra.mrb[20].mxu1 %v36410_v48  ;;  %v36427_v48 = vld [vmem:[#allocation15_spill] sm:$0xff] }
 0xa7d   : > { %27421 = vmatprep.mubr.bf16.mxu1 %v36216_v20 }
 0xa84   : > { %27422 = vmatmul.mubr.bf16.gmra.mrb[24].mxu1 %v36218_v54 }
 0xa85   : > { %27425 = vmatprep.mubr.bf16.mxu1 %v36308_v59 }
 0xa8c   : > { %27426 = vmatmul.mubr.bf16.gmra.mrb[28].mxu1 %v36411_v53  ;;  %v36425_v53 = vld [vmem:[#allocation177_spill] sm:$0xff] }
 0xa8d   : > { %27429 = vmatprep.mubr.bf16.mxu1 %v36274_v9 }
 0xa94   : > { %27430 = vmatmul.mubr.bf16.gmra.mrb[32].mxu1 %v32664_v46 }
 0xa95   : > { %27433 = vmatprep.mubr.bf16.mxu1 %v32702_v13 }
 0xa9c   : > { %27434 = vmatmul.mubr.bf16.gmra.mrb[36].mxu1 %v36412_v21  ;;  %v36416_v21 = vld [vmem:[#allocation274_spill] sm:$0xff] }
 0xa9d   : > { %27437 = vmatprep.mubr.bf16.mxu1 %v36277_v0 }
 0xaa4   : > { %27438 = vmatmul.mubr.bf16.gmra.mrb[40].mxu1 %v32763_v16 }
 0xaa5   : > { %27441 = vmatprep.mubr.bf16.mxu1 %v36279_v31 }
 0xaac   : > { %27442 = vmatmul.mubr.bf16.gmra.mrb[44].mxu1 %v36413_v2  ;;  %v29919_v2 = vld [vmem:[%s34628_s3 + $0x548] sm:$0xff]  }
 0xaad   : > { %27445 = vmatprep.mubr.bf16.mxu1 %v32886_v34 }
 0xab4   : > { %27446 = vmatmul.mubr.bf16.gmra.mrb[48].mxu1 %v32880_v44 }
 0xab5   : > { %27449 = vmatprep.mubr.bf16.mxu1 %v36315_v52 }
 0xabc   : > { %27450 = vmatmul.mubr.bf16.gmra.mrb[52].mxu1 %v36414_v25  ;;  %v29920_v25 = vld [vmem:[%s34628_s3 + $0x550] sm:$0xff]  }
 0xabd   : > { %27453 = vmatprep.mubr.bf16.mxu1 %v36328_v17 }
 0xac4   : > { %27454 = vmatmul.mubr.bf16.gmra.mrb[56].mxu1 %v36329_v22 }
 0xac5   : > { %27457 = vmatprep.mubr.bf16.mxu1 %v36399_v38 }
 0xacc   : > { %27458 = vmatmul.mubr.bf16.gmra.mrb[60].mxu1 %v36415_v1  ;;  %v36417_v1 = vld [vmem:[#allocation18_spill] sm:$0xff] }
 0xacd   : > { %27477 = vmatprep.mubr.bf16.mxu1 %v36416_v21  ;;  %v29921_v21 = vld [vmem:[%s34628_s3 + $0x558] sm:$0xff]  }
 0xad4   : > { %27478 = vmatmul.mubr.bf16.vlgmr.msra.gmra.mrb[0].mxu1 %v36233_v39 }
 0xad5   : > { %27542 = vmatpush3.bf16.msra.mxu1 %v29918_v43  ;;  %27481 = vmatprep.mubr.bf16.mxu1 %v32383_v37  ;;  %v29922_v43 = vld [vmem:[%s34628_s3 + $0x560] sm:$0xff]  }
 0xad6   : > { %27543 = vmatprep.subr.bf16.mxu1 %v29919_v2 }
 0xad9   : > { %27544 = vmatpush3.bf16.msra.mxu1 %v29919_v2  ;;  %v29923_v2 = vld [vmem:[%s34628_s3 + $0x568] sm:$0xff]  }
 0xada   : > { %27545 = vmatprep.subr.bf16.mxu1 %v29920_v25 }
 0xadc   : > { %27482 = vmatmul.mubr.bf16.gmra.mrb[4].mxu1 %v36180_v36 }
 0xadd   : > { %27485 = vmatprep.mubr.bf16.mxu1 %v36417_v1  ;;  %27546 = vmatpush3.bf16.msra.mxu1 %v29920_v25  ;;  %v29924_v1 = vld [vmem:[%s34628_s3 + $0x570] sm:$0xff]   ;;  %v29925_v25 = vld [vmem:[%s34628_s3 + $0x578] sm:$0xff]  }
 0xade   : > { %27547 = vmatprep.subr.bf16.mxu1 %v29921_v21 }
 0xae1   : > { %27548 = vmatpush3.bf16.msra.mxu1 %v29921_v21  ;;  %v36418_v21 = vld [vmem:[#allocation280_spill] sm:$0xff] }
 0xae2   : > { %27549 = vmatprep.subr.bf16.mxu1 %v29922_v43 }
 0xae4   : > { %27486 = vmatmul.mubr.bf16.gmra.mrb[8].mxu1 %v36317_v32 }
 0xae5   : > { %27489 = vmatprep.mubr.bf16.mxu1 %v32475_v19  ;;  %27550 = vmatpush3.bf16.msra.mxu1 %v29922_v43  ;;  %v29926_v43 = vld [vmem:[%s34628_s3 + $0x580] sm:$0xff]  }
 0xae6   : > { %27551 = vmatprep.subr.bf16.mxu1 %v29923_v2 }
 0xae9   : > { %27552 = vmatpush3.bf16.msra.mxu1 %v29923_v2  ;;  %v36419_v2 = vld [vmem:[#allocation163_spill] sm:$0xff] }
 0xaea   : > { %27553 = vmatprep.subr.bf16.mxu1 %v29924_v1 }
 0xaec   : > { %27490 = vmatmul.mubr.bf16.gmra.mrb[12].mxu1 %v36211_v26 }
 0xaed   : > { %27493 = vmatprep.mubr.bf16.mxu1 %v36418_v21  ;;  %27554 = vmatpush3.bf16.msra.mxu1 %v29924_v1  ;;  %v36420_v1 = vld [vmem:[#allocation28_spill] sm:$0xff] }
 0xaee   : > { %27555 = vmatprep.subr.bf16.mxu1 %v29925_v25  ;;  %v36422_v21 = vld [vmem:[#allocation172_spill] sm:$0xff] }
 0xaf1   : > { %27556 = vmatpush3.bf16.msra.mxu1 %v29925_v25  ;;  %v36421_v25 = vld [vmem:[#allocation169_spill] sm:$0xff] }
 0xaf2   : > { %27621 = vmatprep.subr.bf16.mxu1 %v29926_v43 }
 0xaf4   : > { %27494 = vmatmul.mubr.bf16.gmra.mrb[16].mxu1 %v36319_v23 }
 0xaf5   : > { %27497 = vmatprep.mubr.bf16.mxu1 %v36216_v20 }
 0xafc   : > { %27498 = vmatmul.mubr.bf16.gmra.mrb[20].mxu1 %v36218_v54 }
 0xafd   : > { %27501 = vmatprep.mubr.bf16.mxu1 %v36419_v2  ;;  %v36423_v2 = vld [vmem:[#allocation38_spill] sm:$0xff] }
 0xb04   : > { %27502 = vmatmul.mubr.bf16.gmra.mrb[24].mxu1 %v36321_v12 }
 0xb05   : > { %27505 = vmatprep.mubr.bf16.mxu1 %v36274_v9 }
 0xb0c   : > { %27506 = vmatmul.mubr.bf16.gmra.mrb[28].mxu1 %v32664_v46 }
 0xb0d   : > { %27509 = vmatprep.mubr.bf16.mxu1 %v36420_v1  ;;  %v36424_v1 = vld [vmem:[#allocation297_spill] sm:$0xff] }
 0xb14   : > { %27510 = vmatmul.mubr.bf16.gmra.mrb[32].mxu1 %v36323_v40 }
 0xb15   : > { %27513 = vmatprep.mubr.bf16.mxu1 %v36277_v0 }
 0xb1c   : > { %27514 = vmatmul.mubr.bf16.gmra.mrb[36].mxu1 %v32763_v16 }
 0xb1d   : > { %27517 = vmatprep.mubr.bf16.mxu1 %v36421_v25  ;;  %v36426_v25 = vld [vmem:[#allocation39_spill] sm:$0xff] }
 0xb24   : > { %27518 = vmatmul.mubr.bf16.gmra.mrb[40].mxu1 %v36325_v5 }
 0xb25   : > { %27521 = vmatprep.mubr.bf16.mxu1 %v32886_v34 }
 0xb2c   : > { %27522 = vmatmul.mubr.bf16.gmra.mrb[44].mxu1 %v32880_v44 }
 0xb2d   : > { %27525 = vmatprep.mubr.bf16.mxu1 %v36422_v21  ;;  %v29927_v21 = vld [vmem:[%s34628_s3 + $0x588] sm:$0xff]  }
 0xb34   : > { %27526 = vmatmul.mubr.bf16.gmra.mrb[48].mxu1 %v36327_v4 }
 0xb35   : > { %27529 = vmatprep.mubr.bf16.mxu1 %v36328_v17 }
 0xb3c   : > { %27530 = vmatmul.mubr.bf16.gmra.mrb[52].mxu1 %v36329_v22 }
 0xb3d   : > { %27533 = vmatprep.mubr.bf16.mxu1 %v36423_v2  ;;  %v29928_v2 = vld [vmem:[%s34628_s3 + $0x590] sm:$0xff]  }
 0xb44   : > { %27534 = vmatmul.mubr.bf16.gmra.mrb[56].mxu1 %v36424_v1 }
 0xb45   : > { %27537 = vmatprep.mubr.bf16.mxu1 %v36425_v53 }
 0xb4c   : > { %27538 = vmatmul.mubr.bf16.gmra.mrb[60].mxu1 %v36426_v25 }
 0xb4d   : > { %27557 = vmatprep.mubr.bf16.mxu1 %v36427_v48  ;;  %v29929_v48 = vld [vmem:[%s34628_s3 + $0x598] sm:$0xff]  }
 0xb54   : > { %27558 = vmatmul.mubr.bf16.vlgmr.msra.gmra.mrb[0].mxu1 %v36253_v11 }
 0xb55   : > { %27622 = vmatpush3.bf16.msra.mxu1 %v29926_v43  ;;  %27561 = vmatprep.mubr.bf16.mxu1 %v36254_v60  ;;  %v29930_v43 = vld [vmem:[%s34628_s3 + $0x5a0] sm:$0xff]  }
 0xb56   : > { %27623 = vmatprep.subr.bf16.mxu1 %v29927_v21 }
 0xb59   : > { %27624 = vmatpush3.bf16.msra.mxu1 %v29927_v21  ;;  %v29931_v21 = vld [vmem:[%s34628_s3 + $0x5a8] sm:$0xff]  }
 0xb5a   : > { %27625 = vmatprep.subr.bf16.mxu1 %v29928_v2 }
 0xb5c   : > { %27562 = vmatmul.mubr.bf16.gmra.mrb[4].mxu1 %v36255_v10 }
 0xb5d   : > { %27565 = vmatprep.mubr.bf16.mxu1 %v36428_v49  ;;  %27626 = vmatpush3.bf16.msra.mxu1 %v29928_v2  ;;  %v29932_v49 = vld [vmem:[%s34628_s3 + $0x5b0] sm:$0xff]   ;;  %v29933_v2 = vld [vmem:[%s34628_s3 + $0x5b8] sm:$0xff]  }
 0xb5e   : > { %27627 = vmatprep.subr.bf16.mxu1 %v29929_v48 }
 0xb61   : > { %27628 = vmatpush3.bf16.msra.mxu1 %v29929_v48  ;;  %v36429_v48 = vld [vmem:[#allocation281_spill] sm:$0xff] }
 0xb62   : > { %27629 = vmatprep.subr.bf16.mxu1 %v29930_v43 }
 0xb64   : > { %27566 = vmatmul.mubr.bf16.gmra.mrb[8].mxu1 %v36199_v58 }
 0xb65   : > { %27569 = vmatprep.mubr.bf16.mxu1 %v36203_v61  ;;  %27630 = vmatpush3.bf16.msra.mxu1 %v29930_v43  ;;  %v29934_v43 = vld [vmem:[%s34628_s3 + $0x5c0] sm:$0xff]  }
 0xb66   : > { %27631 = vmatprep.subr.bf16.mxu1 %v29931_v21 }
 0xb69   : > { %27632 = vmatpush3.bf16.msra.mxu1 %v29931_v21  ;;  %v36430_v21 = vld [vmem:[#allocation284_spill] sm:$0xff] }
 0xb6a   : > { %27633 = vmatprep.subr.bf16.mxu1 %v29932_v49 }
 0xb6c   : > { %27570 = vmatmul.mubr.bf16.gmra.mrb[12].mxu1 %v36209_v56 }
 0xb6d   : > { %27573 = vmatprep.mubr.bf16.mxu1 %v36429_v48  ;;  %27634 = vmatpush3.bf16.msra.mxu1 %v29932_v49  ;;  %v36431_v49 = vld [vmem:[#allocation166_spill] sm:$0xff] }
 0xb6e   : > { %27635 = vmatprep.subr.bf16.mxu1 %v29933_v2  ;;  %v36433_v48 = vld [vmem:[#allocation294_spill] sm:$0xff] }
 0xb71   : > { %27636 = vmatpush3.bf16.msra.mxu1 %v29933_v2  ;;  %v36432_v2 = vld [vmem:[#allocation291_spill] sm:$0xff] }
 0xb72   : > { %27701 = vmatprep.subr.bf16.mxu1 %v29934_v43 }
 0xb74   : > { %27574 = vmatmul.mubr.bf16.gmra.mrb[16].mxu1 %v36213_v3 }
 0xb75   : > { %27577 = vmatprep.mubr.bf16.mxu1 %v36214_v28 }
 0xb7c   : > { %27578 = vmatmul.mubr.bf16.gmra.mrb[20].mxu1 %v36217_v63 }
 0xb7d   : > { %27581 = vmatprep.mubr.bf16.mxu1 %v36430_v21  ;;  %v36434_v21 = vld [vmem:[#allocation176_spill] sm:$0xff] }
 0xb84   : > { %27582 = vmatmul.mubr.bf16.gmra.mrb[24].mxu1 %v36288_v14 }
 0xb85   : > { %27585 = vmatprep.mubr.bf16.mxu1 %v36290_v41 }
 0xb8c   : > { %27586 = vmatmul.mubr.bf16.gmra.mrb[28].mxu1 %v36291_v7 }
 0xb8d   : > { %27589 = vmatprep.mubr.bf16.mxu1 %v36431_v49  ;;  %v36435_v49 = vld [vmem:[#allocation298_spill] sm:$0xff] }
 0xb94   : > { %27590 = vmatmul.mubr.bf16.gmra.mrb[32].mxu1 %v36262_v62 }
 0xb95   : > { %27593 = vmatprep.mubr.bf16.mxu1 %v36293_v6 }
 0xb9c   : > { %27594 = vmatmul.mubr.bf16.gmra.mrb[36].mxu1 %v36264_v42 }
 0xb9d   : > { %27597 = vmatprep.mubr.bf16.mxu1 %v36432_v2  ;;  %v36437_v2 = vld [vmem:[#allocation40_spill] sm:$0xff] }
 0xba4   : > { %27598 = vmatmul.mubr.bf16.gmra.mrb[40].mxu1 %v36267_v33 }
 0xba5   : > { %27601 = vmatprep.mubr.bf16.mxu1 %v36268_v24 }
 0xbac   : > { %27602 = vmatmul.mubr.bf16.gmra.mrb[44].mxu1 %v36405_v47 }
 0xbad   : > { %27605 = vmatprep.mubr.bf16.mxu1 %v36433_v48  ;;  %v29935_v48 = vld [vmem:[%s34628_s3 + $0x5c8] sm:$0xff]  }
 0xbb4   : > { %27606 = vmatmul.mubr.bf16.gmra.mrb[48].mxu1 %v36360_v27 }
 0xbb5   : > { %27609 = vmatprep.mubr.bf16.mxu1 %v36361_v35 }
 0xbbc   : > { %27610 = vmatmul.mubr.bf16.gmra.mrb[52].mxu1 %v36366_v29 }
 0xbbd   : > { %27613 = vmatprep.mubr.bf16.mxu1 %v36434_v21  ;;  %v29936_v21 = vld [vmem:[%s34628_s3 + $0x5d0] sm:$0xff]  }
 0xbc4   : > { %27614 = vmatmul.mubr.bf16.gmra.mrb[56].mxu1 %v36435_v49 }
 0xbc5   : > { %27617 = vmatprep.mubr.bf16.mxu1 %v36436_v8 }
 0xbcc   : > { %27618 = vmatmul.mubr.bf16.gmra.mrb[60].mxu1 %v36437_v2 }
 0xbcd   : > { %27637 = vmatprep.mubr.bf16.mxu1 %v36233_v39  ;;  %v29937_v39 = vld [vmem:[%s34628_s3 + $0x5d8] sm:$0xff]  }
 0xbd4   : > { %27638 = vmatmul.mubr.bf16.vlgmr.msra.gmra.mrb[0].mxu1 %v32383_v37 }
 0xbd5   : > { %27702 = vmatpush3.bf16.msra.mxu1 %v29934_v43  ;;  %27641 = vmatprep.mubr.bf16.mxu1 %v36180_v36  ;;  %v29938_v43 = vld [vmem:[%s34628_s3 + $0x5e0] sm:$0xff]  }
 0xbd6   : > { %27703 = vmatprep.subr.bf16.mxu1 %v29935_v48 }
 0xbd9   : > { %27704 = vmatpush3.bf16.msra.mxu1 %v29935_v48  ;;  %v29939_v48 = vld [vmem:[%s34628_s3 + $0x5e8] sm:$0xff]  }
 0xbda   : > { %27705 = vmatprep.subr.bf16.mxu1 %v29936_v21 }
 0xbdc   : > { %27642 = vmatmul.mubr.bf16.gmra.mrb[4].mxu1 %v36181_v50 }
 0xbdd   : > { %27645 = vmatprep.mubr.bf16.mxu1 %v36317_v32  ;;  %27706 = vmatpush3.bf16.msra.mxu1 %v29936_v21  ;;  %v29940_v32 = vld [vmem:[%s34628_s3 + $0x5f0] sm:$0xff]   ;;  %v29941_v21 = vld [vmem:[%s34628_s3 + $0x5f8] sm:$0xff]  }
 0xbde   : > { %27707 = vmatprep.subr.bf16.mxu1 %v29937_v39 }
 0xbe1   : > { %27708 = vmatpush3.bf16.msra.mxu1 %v29937_v39  ;;  %v29942_v39 = vld [vmem:[%s34628_s3 + $0x600] sm:$0xff]  }
 0xbe2   : > { %27709 = vmatprep.subr.bf16.mxu1 %v29938_v43 }
 0xbe4   : > { %27646 = vmatmul.mubr.bf16.gmra.mrb[8].mxu1 %v32475_v19 }
 0xbe5   : > { %27649 = vmatprep.mubr.bf16.mxu1 %v36211_v26  ;;  %27710 = vmatpush3.bf16.msra.mxu1 %v29938_v43 }
 0xbe6   : > { %27711 = vmatprep.subr.bf16.mxu1 %v29939_v48 }
 0xbe9   : > { %27712 = vmatpush3.bf16.msra.mxu1 %v29939_v48 }
 0xbea   : > { %27713 = vmatprep.subr.bf16.mxu1 %v29940_v32 }
 0xbec   : > { %27650 = vmatmul.mubr.bf16.gmra.mrb[12].mxu1 %v36305_v45 }
 0xbed   : > { %27653 = vmatprep.mubr.bf16.mxu1 %v36319_v23  ;;  %27714 = vmatpush3.bf16.msra.mxu1 %v29940_v32  ;;  %v36438_v23 = vld [vmem:[#allocation41_spill] sm:$0xff] }
 0xbee   : > { %27715 = vmatprep.subr.bf16.mxu1 %v29941_v21 }
 0xbf1   : > { %27716 = vmatpush3.bf16.msra.mxu1 %v29941_v21 }
 0xbf2   : > { %27781 = vmatprep.subr.bf16.mxu1 %v29942_v39 }
 0xbf4   : > { %27654 = vmatmul.mubr.bf16.gmra.mrb[16].mxu1 %v36216_v20 }
 0xbf5   : > { %27657 = vmatprep.mubr.bf16.mxu1 %v36218_v54 }
 0xbfc   : > { %27658 = vmatmul.mubr.bf16.gmra.mrb[20].mxu1 %v36308_v59 }
 0xbfd   : > { %27661 = vmatprep.mubr.bf16.mxu1 %v36321_v12  ;;  %v29949_v12 = vld [vmem:[%s34628_s3 + $0x638] sm:$0xff]  }
 0xc04   : > { %27662 = vmatmul.mubr.bf16.gmra.mrb[24].mxu1 %v36274_v9 }
 0xc05   : > { %27665 = vmatprep.mubr.bf16.mxu1 %v32664_v46 }
 0xc0c   : > { %27666 = vmatmul.mubr.bf16.gmra.mrb[28].mxu1 %v32702_v13 }
 0xc0d   : > { %27669 = vmatprep.mubr.bf16.mxu1 %v36323_v40 }
 0xc14   : > { %27670 = vmatmul.mubr.bf16.gmra.mrb[32].mxu1 %v36277_v0 }
 0xc15   : > { %27673 = vmatprep.mubr.bf16.mxu1 %v32763_v16 }
 0xc1c   : > { %27674 = vmatmul.mubr.bf16.gmra.mrb[36].mxu1 %v36279_v31 }
 0xc1d   : > { %27677 = vmatprep.mubr.bf16.mxu1 %v36325_v5  ;;  %v29944_v5 = vld [vmem:[%s34628_s3 + $0x610] sm:$0xff]  }
 0xc24   : > { %27678 = vmatmul.mubr.bf16.gmra.mrb[40].mxu1 %v32886_v34 }
 0xc25   : > { %27681 = vmatprep.mubr.bf16.mxu1 %v32880_v44 }
 0xc2c   : > { %27682 = vmatmul.mubr.bf16.gmra.mrb[44].mxu1 %v36315_v52 }
 0xc2d   : > { %27685 = vmatprep.mubr.bf16.mxu1 %v36327_v4  ;;  %v29943_v4 = vld [vmem:[%s34628_s3 + $0x608] sm:$0xff]  }
 0xc34   : > { %27686 = vmatmul.mubr.bf16.gmra.mrb[48].mxu1 %v36328_v17 }
 0xc35   : > { %27689 = vmatprep.mubr.bf16.mxu1 %v36329_v22 }
 0xc3c   : > { %27690 = vmatmul.mubr.bf16.gmra.mrb[52].mxu1 %v36399_v38 }
 0xc3d   : > { %27693 = vmatprep.mubr.bf16.mxu1 %v36424_v1 }
 0xc44   : > { %27694 = vmatmul.mubr.bf16.gmra.mrb[56].mxu1 %v36425_v53 }
 0xc45   : > { %27697 = vmatprep.mubr.bf16.mxu1 %v36426_v25 }
 0xc4c   : > { %27698 = vmatmul.mubr.bf16.gmra.mrb[60].mxu1 %v36438_v23 }
 0xc4d   : > { %27717 = vmatprep.mubr.bf16.mxu1 %v36253_v11  ;;  %v29945_v11 = vld [vmem:[%s34628_s3 + $0x618] sm:$0xff]  }
 0xc54   : > { %27718 = vmatmul.mubr.bf16.vlgmr.msra.gmra.mrb[0].mxu1 %v36254_v60  ;;  %v29946_v60 = vld [vmem:[%s34628_s3 + $0x620] sm:$0xff]  }
 0xc55   : > { %27782 = vmatpush3.bf16.msra.mxu1 %v29942_v39  ;;  %27721 = vmatprep.mubr.bf16.mxu1 %v36255_v10  ;;  %v29947_v10 = vld [vmem:[%s34628_s3 + $0x628] sm:$0xff]   ;;  %v36459_v39 = vld [vmem:[#allocation45_spill] sm:$0xff] }
 0xc56   : > { %27783 = vmatprep.subr.bf16.mxu1 %v29943_v4 }
 0xc59   : > { %27784 = vmatpush3.bf16.msra.mxu1 %v29943_v4 }
 0xc5a   : > { %27785 = vmatprep.subr.bf16.mxu1 %v29944_v5 }
 0xc5c   : > { %27722 = vmatmul.mubr.bf16.gmra.mrb[4].mxu1 %v36401_v55 }
 0xc5d   : > { %27725 = vmatprep.mubr.bf16.mxu1 %v36199_v58  ;;  %27786 = vmatpush3.bf16.msra.mxu1 %v29944_v5  ;;  %v29948_v58 = vld [vmem:[%s34628_s3 + $0x630] sm:$0xff]  }
 0xc5e   : > { %27787 = vmatprep.subr.bf16.mxu1 %v29945_v11 }
 0xc61   : > { %27788 = vmatpush3.bf16.msra.mxu1 %v29945_v11 }
 0xc62   : > { %27789 = vmatprep.subr.bf16.mxu1 %v29946_v60 }
 0xc64   : > { %27726 = vmatmul.mubr.bf16.gmra.mrb[8].mxu1 %v36203_v61  ;;  %v36440_v61 = vld [vmem:[#allocation179_spill] sm:$0xff] }
 0xc65   : > { %27729 = vmatprep.mubr.bf16.mxu1 %v36209_v56  ;;  %27790 = vmatpush3.bf16.msra.mxu1 %v29946_v60  ;;  %v36442_v56 = vld [vmem:[#allocation20_spill] sm:$0xff]  ;;  %v36460_v60 = vld [vmem:[#allocation183_spill] sm:$0xff] }
 0xc66   : > { %27791 = vmatprep.subr.bf16.mxu1 %v29947_v10 }
 0xc69   : > { %27792 = vmatpush3.bf16.msra.mxu1 %v29947_v10 }
 0xc6a   : > { %27793 = vmatprep.subr.bf16.mxu1 %v29948_v58 }
 0xc6c   : > { %27730 = vmatmul.mubr.bf16.gmra.mrb[12].mxu1 %v36402_v15  ;;  %v36456_v15 = vld [vmem:[#allocation303_spill] sm:$0xff] }
 0xc6d   : > { %27733 = vmatprep.mubr.bf16.mxu1 %v36213_v3  ;;  %27794 = vmatpush3.bf16.msra.mxu1 %v29948_v58  ;;  %v29954_v3 = vld [vmem:[%s34630_s5 + $0x20] sm:$0xff]  }
 0xc6e   : > { %27795 = vmatprep.subr.bf16.mxu1 %v29949_v12 }
 0xc71   : > { %27796 = vmatpush3.bf16.msra.mxu1 %v29949_v12 }
 0xc74   : > { %27734 = vmatmul.mubr.bf16.gmra.mrb[16].mxu1 %v36214_v28  ;;  %v29955_v28 = vld [vmem:[%s34630_s5 + $0x28] sm:$0xff]  }
 0xc75   : > { %27737 = vmatprep.mubr.bf16.mxu1 %v36217_v63  ;;  %v36449_v63 = vld [vmem:[#allocation300_spill] sm:$0xff] }
 0xc7c   : > { %27738 = vmatmul.mubr.bf16.gmra.mrb[20].mxu1 %v36403_v51 }
 0xc7d   : > { %27741 = vmatprep.mubr.bf16.mxu1 %v36288_v14 }
 0xc84   : > { %27742 = vmatmul.mubr.bf16.gmra.mrb[24].mxu1 %v36290_v41  ;;  %v36450_v41 = vld [vmem:[#allocation301_spill] sm:$0xff] }
 0xc85   : > { %27745 = vmatprep.mubr.bf16.mxu1 %v36291_v7 }
 0xc8c   : > { %27746 = vmatmul.mubr.bf16.gmra.mrb[28].mxu1 %v36404_v30  ;;  %v34453_v30 = vld [vmem:[%s34629_s4] ss:$0 sm:$0xff] }
 0xc8d   : > { %27749 = vmatprep.mubr.bf16.mxu1 %v36262_v62  ;;  %v36439_v62 = vld [vmem:[#allocation296_spill] sm:$0xff] }
 0xc94   : > { %27750 = vmatmul.mubr.bf16.gmra.mrb[32].mxu1 %v36293_v6  ;;  %v36441_v6 = vld [vmem:[#allocation17_spill] sm:$0xff] }
 0xc95   : > { %27753 = vmatprep.mubr.bf16.mxu1 %v36264_v42 }
 0xc9c   : > { %27754 = vmatmul.mubr.bf16.gmra.mrb[36].mxu1 %v36296_v57 }
 0xc9d   : > { %27757 = vmatprep.mubr.bf16.mxu1 %v36267_v33 }
 0xca4   : > { %27758 = vmatmul.mubr.bf16.gmra.mrb[40].mxu1 %v36268_v24  ;;  %v36451_v24 = vld [vmem:[#allocation42_spill] sm:$0xff] }
 0xca5   : > { %27761 = vmatprep.mubr.bf16.mxu1 %v36405_v47 }
 0xcac   : > { %27762 = vmatmul.mubr.bf16.gmra.mrb[44].mxu1 %v36406_v18 }
 0xcad   : > { %27765 = vmatprep.mubr.bf16.mxu1 %v36360_v27 }
 0xcb4   : > { %27766 = vmatmul.mubr.bf16.gmra.mrb[48].mxu1 %v36361_v35  ;;  %v36454_v35 = vld [vmem:[#allocation43_spill] sm:$0xff] }
 0xcb5   : > { %27769 = vmatprep.mubr.bf16.mxu1 %v36366_v29  ;;  %v36455_v29 = vld [vmem:[#allocation181_spill] sm:$0xff] }
 0xcbc   : > { %27770 = vmatmul.mubr.bf16.gmra.mrb[52].mxu1 %v36439_v62 }
 0xcbd   : > { %27773 = vmatprep.mubr.bf16.mxu1 %v36435_v49 }
 0xcc4   : > { %27774 = vmatmul.mubr.bf16.gmra.mrb[56].mxu1 %v36436_v8 }
 0xcc5   : > { %27777 = vmatprep.mubr.bf16.mxu1 %v36437_v2  ;;  %v36458_v2 = vld [vmem:[#allocation182_spill] sm:$0xff] }
 0xccc   : > { %27778 = vmatmul.mubr.bf16.gmra.mrb[60].mxu1 %v36440_v61 }
 0xccd   : > { %27797 = vmatprep.mubr.bf16.mxu1 %v32383_v37  ;;  %v36443_v37 = vld [vmem:[#allocation283_spill] sm:$0xff] }
 0xcd4   : > { %27798 = vmatmul.mubr.bf16.vlgmr.msra.gmra.mrb[0].mxu1 %v36180_v36  ;;  %v36445_v36 = vld [vmem:[#allocation30_spill] sm:$0xff] }
 0xcd5   : > { %27801 = vmatprep.mubr.bf16.mxu1 %v36181_v50  ;;  %v36446_v50 = vld [vmem:[#allocation171_spill] sm:$0xff] }
 0xcdc   : > { %27802 = vmatmul.mubr.bf16.gmra.mrb[4].mxu1 %v36441_v6 }
 0xcdd   : > { %27805 = vmatprep.mubr.bf16.mxu1 %v32475_v19  ;;  %v36444_v19 = vld [vmem:[#allocation27_spill] sm:$0xff] }
 0xce4   : > { %27806 = vmatmul.mubr.bf16.gmra.mrb[8].mxu1 %v36211_v26  ;;  %v29953_v26 = vld [vmem:[%s34630_s5 + $0x18] sm:$0xff]  }
 0xce5   : > { %27809 = vmatprep.mubr.bf16.mxu1 %v36305_v45 }
 0xcec   : > { %27810 = vmatmul.mubr.bf16.gmra.mrb[12].mxu1 %v36442_v56 }
 0xced   : > { %27813 = vmatprep.mubr.bf16.mxu1 %v36216_v20 }
 0xcf4   : > { %27814 = vmatmul.mubr.bf16.gmra.mrb[16].mxu1 %v36218_v54 }
 0xcf5   : > { %27817 = vmatprep.mubr.bf16.mxu1 %v36308_v59  ;;  %v29957_v59 = vld [vmem:[%s34630_s5 + $0x38] sm:$0xff]  }
 0xcfc   : > { %27818 = vmatmul.mubr.bf16.gmra.mrb[20].mxu1 %v36443_v37 }
 0xcfd   : > { %27821 = vmatprep.mubr.bf16.mxu1 %v36274_v9 }
 0xd04   : > { %27822 = vmatmul.mubr.bf16.gmra.mrb[24].mxu1 %v32664_v46  ;;  %v29950_v46 = vld [vmem:[%s34630_s5] sm:$0xff]  }
 0xd05   : > { %27825 = vmatprep.mubr.bf16.mxu1 %v32702_v13  ;;  %v30029_v13 = vmov 0.0  }
 0xd06   : > { %27861 = vmatprep.subr.bf16.mxu0 %v30029_v13  ;;  %27877 = vmatprep.mubr.msk.bf16.mxu0 %vm30030_vm3, %v30029_v13 }
 0xd07   : > { %27862 = vmatpush3.bf16.msra.mxu0 %v29950_v46 }
 0xd08   : > { %27863 = vmatprep.subr.bf16.mxu0 %v30029_v13 }
 0xd0c   : > { %27826 = vmatmul.mubr.bf16.gmra.mrb[28].mxu1 %v36444_v19 }
 0xd0d   : > { %27829 = vmatprep.mubr.bf16.mxu1 %v36277_v0  ;;  %v29956_v0 = vld [vmem:[%s34630_s5 + $0x30] sm:$0xff]  }
 0xd14   : > { %27830 = vmatmul.mubr.bf16.gmra.mrb[32].mxu1 %v32763_v16  ;;  %v36447_v16 = vld [vmem:[#allocation37_spill] sm:$0xff] }
 0xd15   : > { %27833 = vmatprep.mubr.bf16.mxu1 %v36279_v31  ;;  %v29952_v31 = vld [vmem:[%s34630_s5 + $0x10] sm:$0xff]  }
 0xd1c   : > { %27834 = vmatmul.mubr.bf16.gmra.mrb[36].mxu1 %v36445_v36 }
 0xd1d   : > { %27837 = vmatprep.mubr.bf16.mxu1 %v32886_v34  ;;  %v29951_v34 = vld [vmem:[%s34630_s5 + $0x8] sm:$0xff]  }
 0xd1e   : > { %27864 = vmatpush3.bf16.msra.mxu0 %v29951_v34 }
 0xd1f   : > { %27865 = vmatprep.subr.bf16.mxu0 %v30029_v13 }
 0xd22   : > { %27866 = vmatpush3.bf16.msra.mxu0 %v29952_v31  ;;  %v36461_v31 = vld [vmem:[#allocation304_spill] sm:$0xff] }
 0xd23   : > { %27867 = vmatprep.subr.bf16.mxu0 %v30029_v13 }
 0xd24   : > { %27838 = vmatmul.mubr.bf16.gmra.mrb[40].mxu1 %v32880_v44  ;;  %v36448_v44 = vld [vmem:[#allocation178_spill] sm:$0xff] }
 0xd25   : > { %27841 = vmatprep.mubr.bf16.mxu1 %v36315_v52  ;;  %v36453_v52 = vld [vmem:[#allocation302_spill] sm:$0xff] }
 0xd26   : > { %27868 = vmatpush3.bf16.msra.mxu0 %v29953_v26 }
 0xd27   : > { %27869 = vmatprep.subr.bf16.mxu0 %v30029_v13 }
 0xd2a   : > { %27870 = vmatpush3.bf16.msra.mxu0 %v29954_v3 }
 0xd2b   : > { %27871 = vmatprep.subr.bf16.mxu0 %v30029_v13 }
 0xd2c   : > { %27842 = vmatmul.mubr.bf16.gmra.mrb[44].mxu1 %v36446_v50 }
 0xd2d   : > { %27845 = vmatprep.mubr.bf16.mxu1 %v36328_v17  ;;  %v36452_v17 = vld [vmem:[#allocation180_spill] sm:$0xff] }
 0xd2e   : > { %27872 = vmatpush3.bf16.msra.mxu0 %v29955_v28 }
 0xd2f   : > { %27873 = vmatprep.subr.bf16.mxu0 %v30029_v13 }
 0xd32   : > { %27874 = vmatpush3.bf16.msra.mxu0 %v29956_v0 }
 0xd33   : > { %27875 = vmatprep.subr.bf16.mxu0 %v30029_v13 }
 0xd34   : > { %27846 = vmatmul.mubr.bf16.gmra.mrb[48].mxu1 %v36329_v22 }
 0xd35   : > { %27849 = vmatprep.mubr.bf16.mxu1 %v36399_v38 }
 0xd36   : > { %27876 = vmatpush3.bf16.msra.mxu0 %v29957_v59 }
 0xd3c   : > { %27850 = vmatmul.mubr.bf16.gmra.mrb[52].mxu1 %v36447_v16 }
 0xd3d   : > { %27853 = vmatprep.mubr.bf16.mxu1 %v36425_v53  ;;  %v36457_v53 = vld [vmem:[#allocation44_spill] sm:$0xff] }
 0xd44   : > { %27854 = vmatmul.mubr.bf16.gmra.mrb[56].mxu1 %v36426_v25 }
 0xd45   : > { %27857 = vmatprep.mubr.bf16.mxu1 %v36438_v23 }
 0xd4c   : > { %27858 = vmatmul.mubr.bf16.gmra.mrb[60].mxu1 %v36448_v44 }
 0xda7   : > { %v27799_v20 = vpop.f32.mrb[0].mxu1 }
 0xda8   : > { %v27881_v54 = vadd.f32 %v27799_v20, %v36449_v63  ;;  %v21887_v42 = vpop.f32.mrb[1].mxu1  ;;  %v36462_v20 = vld [vmem:[#allocation305_spill] sm:$0xff] }
 0xda9   : > { %v27882_v14 = vadd.f32 %v21887_v42, %v36450_v41  ;;  %v27800_v33 = vpop.f32.mrb[2].mxu1 }
 0xdaa   : > { %v27883_v9 = vadd.f32 %v27800_v33, %v36451_v24  ;;  %v21890_v22 = vpop.f32.mrb[3].mxu1  ;;  %v22407_v18 = vadd.f32 %v27881_v54, %v34453_v30  ;;  %v36463_v33 = vld [vmem:[#allocation46_spill] sm:$0xff] }
 0xdab   : > { %v27884_v57 = vadd.f32 %v21890_v22, %v36452_v17  ;;  %v22405_v49 = vadd.f32 %v27882_v14, %v34453_v30 }
 0xdac   : > { %v22408_v32 = vadd.f32 %v27883_v9, %v34453_v30  ;;  %v22471_v58 = vmax.f32 %v22407_v18, 0.0 }
 0xdad   : > { %v22406_v5 = vadd.f32 %v27884_v57, %v34453_v30  ;;  %v22469_v61 = vmax.f32 %v22405_v49, 0.0 }
 0xdae   : > { %v22472_v37 = vmax.f32 %v22408_v32, 0.0 }
 0xdaf   : > { %v27803_v7 = vpop.f32.mrb[4].mxu1  ;;  %v22470_v50 = vmax.f32 %v22406_v5, 0.0 }
 0xdb0   : > { %v27885_v45 = vadd.f32 %v27803_v7, %v36453_v52  ;;  %v21903_v27 = vpop.f32.mrb[5].mxu1  ;;  %v36464_v7 = vld [vmem:[#allocation184_spill] sm:$0xff] }
 0xdb1   : > { %v27886_v40 = vadd.f32 %v21903_v27, %v36454_v35  ;;  %v27804_v8 = vpop.f32.mrb[6].mxu1 }
 0xdb2   : > { %v27887_v38 = vadd.f32 %v27804_v8, %v36455_v29  ;;  %v21906_v55 = vpop.f32.mrb[7].mxu1  ;;  %v22411_v44 = vadd.f32 %v27885_v45, %v34453_v30 }
 0xdb3   : > { %v27888_v51 = vadd.f32 %v21906_v55, %v36456_v15  ;;  %v22409_v28 = vadd.f32 %v27886_v40, %v34453_v30 }
 0xdb4   : > { %v22412_v42 = vadd.f32 %v27887_v38, %v34453_v30  ;;  %v22475_v45 = vmax.f32 %v22411_v44, 0.0 }
 0xdb5   : > { %v22410_v22 = vadd.f32 %v27888_v51, %v34453_v30  ;;  %v22473_v35 = vmax.f32 %v22409_v28, 0.0 }
 0xdb6   : > { %v22476_v38 = vmax.f32 %v22412_v42, 0.0 }
 0xdb7   : > { %v27807_v47 = vpop.f32.mrb[8].mxu1 }
 0xdb8   : > { %v27889_v1 = vadd.f32 %v27807_v47, %v36457_v53  ;;  %v21919_v25 = vpop.f32.mrb[9].mxu1  ;;  %v22474_v47 = vmax.f32 %v22410_v22, 0.0 }
 0xdb9   : > { %v27890_v43 = vadd.f32 %v21919_v25, %v36458_v2  ;;  %v27808_v48 = vpop.f32.mrb[10].mxu1  ;;  %v36465_v25 = vld [vmem:[#allocation306_spill] sm:$0xff] }
 0xdba   : > { %v22415_v21 = vadd.f32 %v27889_v1, %v34453_v30  ;;  %v27891_v23 = vadd.f32 %v27808_v48, %v36459_v39  ;;  %v21922_v4 = vpop.f32.mrb[11].mxu1  ;;  %v36466_v48 = vld [vmem:[#allocation47_spill] sm:$0xff] }
 0xdbb   : > { %v22413_v11 = vadd.f32 %v27890_v43, %v34453_v30  ;;  %v27892_v10 = vadd.f32 %v21922_v4, %v36460_v60  ;;  %v36468_v60 = vld [vmem:[#allocation307_spill] sm:$0xff] }
 0xdbc   : > { %v22479_v12 = vmax.f32 %v22415_v21, 0.0  ;;  %v22416_v62 = vadd.f32 %v27891_v23, %v34453_v30  ;;  %v36467_v23 = vld [vmem:[#allocation185_spill] sm:$0xff] }
 0xdbd   : > { %v22477_v6 = vmax.f32 %v22413_v11, 0.0  ;;  %v22414_v56 = vadd.f32 %v27892_v10, %v34453_v30 }
 0xdbe   : > { %v22535_v19 = vmax.f32 %v22471_v58, %v22479_v12  ;;  %v22480_v36 = vmax.f32 %v22416_v62, 0.0 }
 0xdbf   : > { %v22533_v46 = vmax.f32 %v22469_v61, %v22477_v6  ;;  %v22478_v13 = vmax.f32 %v22414_v56, 0.0  ;;  %v27811_v16 = vpop.f32.mrb[12].mxu1  ;;  %v36469_v61 = vld [vmem:[#allocation48_spill] sm:$0xff] }
 0xdc0   : > { %v22536_v34 = vmax.f32 %v22472_v37, %v22480_v36  ;;  %v27893_v26 = vadd.f32 %v27811_v16, %v36461_v31  ;;  %v21935_v3 = vpop.f32.mrb[13].mxu1  ;;  %v36470_v37 = vld [vmem:[#allocation186_spill] sm:$0xff]  ;;  %v36472_v16 = vld [vmem:[#allocation187_spill] sm:$0xff] }
 0xdc1   : > { %v22534_v0 = vmax.f32 %v22470_v50, %v22478_v13  ;;  %v27894_v63 = vadd.f32 %v21935_v3, %v36462_v20  ;;  %v27812_v54 = vpop.f32.mrb[14].mxu1  ;;  %v36471_v50 = vld [vmem:[#allocation49_spill] sm:$0xff] }
 0xdc2   : > { %v22566_v41 = vmax.f32 %v22535_v19, %v22536_v34  ;;  %v22419_v14 = vadd.f32 %v27893_v26, %v34453_v30  ;;  %v27895_v24 = vadd.f32 %v27812_v54, %v36463_v33  ;;  %v21938_v9 = vpop.f32.mrb[15].mxu1  ;;  %v36473_v26 = vld [vmem:[#allocation308_spill] sm:$0xff]  ;;  %v36474_v20 = vld [vmem:[#allocation309_spill] sm:$0xff] }
 0xdc3   : > { %v22565_v17 = vmax.f32 %v22533_v46, %v22534_v0  ;;  %v22417_v57 = vadd.f32 %v27894_v63, %v34453_v30  ;;  %v27896_v52 = vadd.f32 %v21938_v9, %v36464_v7 }
 0xdc4   : > { %v22483_v27 = vmax.f32 %v22419_v14, 0.0  ;;  %v22420_v59 = vadd.f32 %v27895_v24, %v34453_v30  ;;  %v36475_v14 = vld [vmem:[#allocation50_spill] sm:$0xff] }
 0xdc5   : > { %v22581_v40 = vadd.f32 %v22566_v41, %v22565_v17  ;;  %v22481_v8 = vmax.f32 %v22417_v57, 0.0  ;;  %v22418_v29 = vadd.f32 %v27896_v52, %v34453_v30  ;;  %v36476_v17 = vld [vmem:[#allocation188_spill] sm:$0xff] }
 0xdc6   : > { %v22539_v55 = vmax.f32 %v22475_v45, %v22483_v27  ;;  %v22484_v15 = vmax.f32 %v22420_v59, 0.0 }
 0xdc7   : > { %v22537_v18 = vmax.f32 %v22473_v35, %v22481_v8  ;;  %v22482_v51 = vmax.f32 %v22418_v29, 0.0  ;;  %v27815_v53 = vpop.f32.mrb[16].mxu1 }
 0xdc8   : > { %v22540_v1 = vmax.f32 %v22476_v38, %v22484_v15  ;;  %v27897_v49 = vadd.f32 %v27815_v53, %v36465_v25  ;;  %v21951_v2 = vpop.f32.mrb[17].mxu1  ;;  %v36477_v53 = vld [vmem:[#allocation310_spill] sm:$0xff] }
 0xdc9   : > { %v22538_v43 = vmax.f32 %v22474_v47, %v22482_v51  ;;  %v27898_v32 = vadd.f32 %v21951_v2, %v36466_v48  ;;  %v27816_v21 = vpop.f32.mrb[18].mxu1 }
 0xdca   : > { %v22568_v39 = vmax.f32 %v22539_v55, %v22540_v1  ;;  %v27899_v4 = vadd.f32 %v27816_v21, %v36467_v23  ;;  %v21954_v5 = vpop.f32.mrb[19].mxu1  ;;  %v22423_v31 = vadd.f32 %v27897_v49, %v34453_v30 }
 0xdcb   : > { %v22567_v11 = vmax.f32 %v22537_v18, %v22538_v43  ;;  %v27900_v10 = vadd.f32 %v21954_v5, %v36468_v60  ;;  %v22421_v0 = vadd.f32 %v27898_v32, %v34453_v30  ;;  %v36478_v43 = vld [vmem:[#allocation51_spill] sm:$0xff] }
 0xdcc   : > { %v22424_v42 = vadd.f32 %v27899_v4, %v34453_v30  ;;  %v22487_v7 = vmax.f32 %v22423_v31, 0.0  ;;  %v36479_v4 = vld [vmem:[#allocation189_spill] sm:$0xff] }
 0xdcd   : > { %v22582_v58 = vadd.f32 %v22581_v40, %v22567_v11  ;;  %v22422_v9 = vadd.f32 %v27900_v10, %v34453_v30  ;;  %v22485_v27 = vmax.f32 %v22421_v0, 0.0 }
 0xdce   : > { %v22488_v40 = vmax.f32 %v22424_v42, 0.0 }
 0xdcf   : > { %v27819_v12 = vpop.f32.mrb[20].mxu1  ;;  %v22583_v62 = vadd.f32 %v22582_v58, %v22568_v39  ;;  %v22486_v38 = vmax.f32 %v22422_v9, 0.0 }
 0xdd0   : > { %v27901_v6 = vadd.f32 %v27819_v12, %v36469_v61  ;;  %v21967_v56 = vpop.f32.mrb[21].mxu1  ;;  %v36480_v12 = vld [vmem:[#allocation311_spill] sm:$0xff] }
 0xdd1   : > { %v27902_v19 = vadd.f32 %v21967_v56, %v36470_v37  ;;  %v27820_v36 = vpop.f32.mrb[22].mxu1 }
 0xdd2   : > { %v27903_v46 = vadd.f32 %v27820_v36, %v36471_v50  ;;  %v21970_v13 = vpop.f32.mrb[23].mxu1  ;;  %v22427_v18 = vadd.f32 %v27901_v6, %v34453_v30 }
 0xdd3   : > { %v27904_v44 = vadd.f32 %v21970_v13, %v36472_v16  ;;  %v22425_v49 = vadd.f32 %v27902_v19, %v34453_v30 }
 0xdd4   : > { %v22428_v21 = vadd.f32 %v27903_v46, %v34453_v30  ;;  %v22491_v6 = vmax.f32 %v22427_v18, 0.0  ;;  %v36488_v18 = vld [vmem:[#allocation192_spill] sm:$0xff] }
 0xdd5   : > { %v22426_v60 = vadd.f32 %v27904_v44, %v34453_v30  ;;  %v22489_v19 = vmax.f32 %v22425_v49, 0.0 }
 0xdd6   : > { %v22492_v13 = vmax.f32 %v22428_v21, 0.0 }
 0xdd7   : > { %v27823_v34 = vpop.f32.mrb[24].mxu1  ;;  %v22490_v31 = vmax.f32 %v22426_v60, 0.0 }
 0xdd8   : > { %v27905_v3 = vadd.f32 %v27823_v34, %v36473_v26  ;;  %v21983_v28 = vpop.f32.mrb[25].mxu1 }
 0xdd9   : > { %v27906_v63 = vadd.f32 %v21983_v28, %v36474_v20  ;;  %v27824_v54 = vpop.f32.mrb[26].mxu1  ;;  %v36481_v20 = vld [vmem:[#allocation52_spill] sm:$0xff] }
 0xdda   : > { %v22431_v41 = vadd.f32 %v27905_v3, %v34453_v30  ;;  %v27907_v33 = vadd.f32 %v27824_v54, %v36475_v14  ;;  %v21986_v24 = vpop.f32.mrb[27].mxu1 }
 0xddb   : > { %v22429_v22 = vadd.f32 %v27906_v63, %v34453_v30  ;;  %v27908_v57 = vadd.f32 %v21986_v24, %v36476_v17  ;;  %v36483_v24 = vld [vmem:[#allocation53_spill] sm:$0xff] }
 0xddc   : > { %v22495_v52 = vmax.f32 %v22431_v41, 0.0  ;;  %v22432_v45 = vadd.f32 %v27907_v33, %v34453_v30  ;;  %v36482_v41 = vld [vmem:[#allocation190_spill] sm:$0xff] }
 0xddd   : > { %v22493_v59 = vmax.f32 %v22429_v22, 0.0  ;;  %v22430_v35 = vadd.f32 %v27908_v57, %v34453_v30  ;;  %v36484_v57 = vld [vmem:[#allocation191_spill] sm:$0xff] }
 0xdde   : > { %v22543_v8 = vmax.f32 %v22487_v7, %v22495_v52  ;;  %v22496_v29 = vmax.f32 %v22432_v45, 0.0 }
 0xddf   : > { %v22541_v55 = vmax.f32 %v22485_v27, %v22493_v59  ;;  %v22494_v15 = vmax.f32 %v22430_v35, 0.0  ;;  %v27827_v47 = vpop.f32.mrb[28].mxu1  ;;  %v36485_v59 = vld [vmem:[#allocation312_spill] sm:$0xff] }
 0xde0   : > { %v22544_v51 = vmax.f32 %v22488_v40, %v22496_v29  ;;  %v27909_v1 = vadd.f32 %v27827_v47, %v36477_v53  ;;  %v21999_v25 = vpop.f32.mrb[29].mxu1 }
 0xde1   : > { %v22542_v2 = vmax.f32 %v22486_v38, %v22494_v15  ;;  %v27910_v48 = vadd.f32 %v21999_v25, %v36478_v43  ;;  %v27828_v32 = vpop.f32.mrb[30].mxu1  ;;  %v36489_v25 = vld [vmem:[#allocation314_spill] sm:$0xff] }
 0xde2   : > { %v22570_v39 = vmax.f32 %v22543_v8, %v22544_v51  ;;  %v22435_v23 = vadd.f32 %v27909_v1, %v34453_v30  ;;  %v27911_v5 = vadd.f32 %v27828_v32, %v36479_v4  ;;  %v22002_v11 = vpop.f32.mrb[31].mxu1  ;;  %v36486_v8 = vld [vmem:[#allocation313_spill] sm:$0xff] }
 0xde3   : > { %v22569_v10 = vmax.f32 %v22541_v55, %v22542_v2  ;;  %v22433_v58 = vadd.f32 %v27910_v48, %v34453_v30  ;;  %v27912_v61 = vadd.f32 %v22002_v11, %v36480_v12  ;;  %v36487_v55 = vld [vmem:[#allocation54_spill] sm:$0xff]  ;;  %v36490_v48 = vld [vmem:[#allocation55_spill] sm:$0xff]  ;;  %v36491_v4 = vld [vmem:[#allocation193_spill] sm:$0xff] }
 0xde4   : > { %v22499_v56 = vmax.f32 %v22435_v23, 0.0  ;;  %v22436_v37 = vadd.f32 %v27911_v5, %v34453_v30 }
 0xde5   : > { %v22584_v36 = vadd.f32 %v22583_v62, %v22569_v10  ;;  %v22497_v50 = vmax.f32 %v22433_v58, 0.0  ;;  %v22434_v46 = vadd.f32 %v27912_v61, %v34453_v30  ;;  %v36492_v58 = vld [vmem:[#allocation315_spill] sm:$0xff] }
 0xde6   : > { %v22547_v16 = vmax.f32 %v22491_v6, %v22499_v56  ;;  %v22500_v34 = vmax.f32 %v22436_v37, 0.0 }
 0xde7   : > { %v22545_v26 = vmax.f32 %v22489_v19, %v22497_v50  ;;  %v22498_v44 = vmax.f32 %v22434_v46, 0.0  ;;  %v22585_v3 = vadd.f32 %v22584_v36, %v22570_v39  ;;  %v27831_v28 = vpop.f32.mrb[32].mxu1 }
 0xde8   : > { %v22548_v0 = vmax.f32 %v22492_v13, %v22500_v34  ;;  %v27913_v63 = vadd.f32 %v27831_v28, %v36481_v20  ;;  %v22015_v54 = vpop.f32.mrb[33].mxu1  ;;  %v36493_v28 = vld [vmem:[#allocation56_spill] sm:$0xff] }
 0xde9   : > { %v22546_v42 = vmax.f32 %v22490_v31, %v22498_v44  ;;  %v27914_v14 = vadd.f32 %v22015_v54, %v36482_v41  ;;  %v27832_v33 = vpop.f32.mrb[34].mxu1 }
 0xdea   : > { %v22572_v62 = vmax.f32 %v22547_v16, %v22548_v0  ;;  %v27915_v9 = vadd.f32 %v27832_v33, %v36483_v24  ;;  %v22018_v22 = vpop.f32.mrb[35].mxu1  ;;  %v22439_v1 = vadd.f32 %v27913_v63, %v34453_v30 }
 0xdeb   : > { %v22571_v17 = vmax.f32 %v22545_v26, %v22546_v42  ;;  %v27916_v7 = vadd.f32 %v22018_v22, %v36484_v57  ;;  %v22437_v43 = vadd.f32 %v27914_v14, %v34453_v30  ;;  %v36494_v42 = vld [vmem:[#allocation194_spill] sm:$0xff] }
 0xdec   : > { %v22440_v39 = vadd.f32 %v27915_v9, %v34453_v30  ;;  %v22503_v61 = vmax.f32 %v22439_v1, 0.0  ;;  %v36495_v9 = vld [vmem:[#allocation57_spill] sm:$0xff] }
 0xded   : > { %v22586_v52 = vadd.f32 %v22585_v3, %v22571_v17  ;;  %v22438_v60 = vadd.f32 %v27916_v7, %v34453_v30  ;;  %v22501_v37 = vmax.f32 %v22437_v43, 0.0 }
 0xdee   : > { %v22504_v50 = vmax.f32 %v22440_v39, 0.0 }
 0xdef   : > { %v27835_v45 = vpop.f32.mrb[36].mxu1  ;;  %v22587_v27 = vadd.f32 %v22586_v52, %v22572_v62  ;;  %v22502_v16 = vmax.f32 %v22438_v60, 0.0 }
 0xdf0   : > { %v27917_v35 = vadd.f32 %v27835_v45, %v36485_v59  ;;  %v22031_v40 = vpop.f32.mrb[37].mxu1  ;;  %v36496_v45 = vld [vmem:[#allocation195_spill] sm:$0xff] }
 0xdf1   : > { %v27918_v29 = vadd.f32 %v22031_v40, %v36486_v8  ;;  %v27836_v38 = vpop.f32.mrb[38].mxu1 }
 0xdf2   : > { %v27919_v15 = vadd.f32 %v27836_v38, %v36487_v55  ;;  %v22034_v47 = vpop.f32.mrb[39].mxu1  ;;  %v22443_v44 = vadd.f32 %v27917_v35, %v34453_v30 }
 0xdf3   : > { %v27920_v51 = vadd.f32 %v22034_v47, %v36488_v18  ;;  %v22441_v63 = vadd.f32 %v27918_v29, %v34453_v30 }
 0xdf4   : > { %v22444_v33 = vadd.f32 %v27919_v15, %v34453_v30  ;;  %v22507_v35 = vmax.f32 %v22443_v44, 0.0  ;;  %v36504_v44 = vld [vmem:[#allocation319_spill] sm:$0xff] }
 0xdf5   : > { %v22442_v57 = vadd.f32 %v27920_v51, %v34453_v30  ;;  %v22505_v29 = vmax.f32 %v22441_v63, 0.0 }
 0xdf6   : > { %v22508_v47 = vmax.f32 %v22444_v33, 0.0 }
 0xdf7   : > { %v27839_v53 = vpop.f32.mrb[40].mxu1  ;;  %v22506_v1 = vmax.f32 %v22442_v57, 0.0 }
 0xdf8   : > { %v27921_v49 = vadd.f32 %v27839_v53, %v36489_v25  ;;  %v22047_v2 = vpop.f32.mrb[41].mxu1 }
 0xdf9   : > { %v27922_v32 = vadd.f32 %v22047_v2, %v36490_v48  ;;  %v27840_v21 = vpop.f32.mrb[42].mxu1  ;;  %v36497_v48 = vld [vmem:[#allocation316_spill] sm:$0xff] }
 0xdfa   : > { %v22447_v23 = vadd.f32 %v27921_v49, %v34453_v30  ;;  %v27923_v5 = vadd.f32 %v27840_v21, %v36491_v4  ;;  %v22050_v11 = vpop.f32.mrb[43].mxu1 }
 0xdfb   : > { %v22445_v10 = vadd.f32 %v27922_v32, %v34453_v30  ;;  %v27924_v12 = vadd.f32 %v22050_v11, %v36492_v58  ;;  %v36499_v11 = vld [vmem:[#allocation58_spill] sm:$0xff] }
 0xdfc   : > { %v22511_v6 = vmax.f32 %v22447_v23, 0.0  ;;  %v22448_v56 = vadd.f32 %v27923_v5, %v34453_v30  ;;  %v36498_v23 = vld [vmem:[#allocation317_spill] sm:$0xff] }
 0xdfd   : > { %v22509_v19 = vmax.f32 %v22445_v10, 0.0  ;;  %v22446_v36 = vadd.f32 %v27924_v12, %v34453_v30  ;;  %v36500_v12 = vld [vmem:[#allocation196_spill] sm:$0xff] }
 0xdfe   : > { %v22551_v46 = vmax.f32 %v22503_v61, %v22511_v6  ;;  %v22512_v13 = vmax.f32 %v22448_v56, 0.0 }
 0xdff   : > { %v22549_v34 = vmax.f32 %v22501_v37, %v22509_v19  ;;  %v22510_v31 = vmax.f32 %v22446_v36, 0.0  ;;  %v27843_v26 = vpop.f32.mrb[44].mxu1  ;;  %v36501_v19 = vld [vmem:[#allocation318_spill] sm:$0xff] }
 0xe00   : > { %v22552_v3 = vmax.f32 %v22504_v50, %v22512_v13  ;;  %v27925_v0 = vadd.f32 %v27843_v26, %v36493_v28  ;;  %v22063_v20 = vpop.f32.mrb[45].mxu1 }
 0xe01   : > { %v22550_v54 = vmax.f32 %v22502_v16, %v22510_v31  ;;  %v27926_v41 = vadd.f32 %v22063_v20, %v36494_v42  ;;  %v27844_v14 = vpop.f32.mrb[46].mxu1  ;;  %v36505_v20 = vld [vmem:[#allocation60_spill] sm:$0xff] }
 0xe02   : > { %v22574_v62 = vmax.f32 %v22551_v46, %v22552_v3  ;;  %v22451_v24 = vadd.f32 %v27925_v0, %v34453_v30  ;;  %v27927_v22 = vadd.f32 %v27844_v14, %v36495_v9  ;;  %v22066_v17 = vpop.f32.mrb[47].mxu1  ;;  %v36502_v46 = vld [vmem:[#allocation59_spill] sm:$0xff]  ;;  %v36507_v9 = vld [vmem:[#allocation61_spill] sm:$0xff] }
 0xe03   : > { %v22573_v7 = vmax.f32 %v22549_v34, %v22550_v54  ;;  %v22449_v52 = vadd.f32 %v27926_v41, %v34453_v30  ;;  %v27928_v59 = vadd.f32 %v22066_v17, %v36496_v45  ;;  %v36503_v34 = vld [vmem:[#allocation197_spill] sm:$0xff]  ;;  %v36506_v41 = vld [vmem:[#allocation198_spill] sm:$0xff] }
 0xe04   : > { %v22515_v40 = vmax.f32 %v22451_v24, 0.0  ;;  %v22452_v8 = vadd.f32 %v27927_v22, %v34453_v30 }
 0xe05   : > { %v22588_v38 = vadd.f32 %v22587_v27, %v22573_v7  ;;  %v22513_v55 = vmax.f32 %v22449_v52, 0.0  ;;  %v22450_v15 = vadd.f32 %v27928_v59, %v34453_v30  ;;  %v36508_v52 = vld [vmem:[#allocation199_spill] sm:$0xff] }
 0xe06   : > { %v22555_v18 = vmax.f32 %v22507_v35, %v22515_v40  ;;  %v22516_v53 = vmax.f32 %v22452_v8, 0.0 }
 0xe07   : > { %v22553_v25 = vmax.f32 %v22505_v29, %v22513_v55  ;;  %v22514_v51 = vmax.f32 %v22450_v15, 0.0  ;;  %v22589_v49 = vadd.f32 %v22588_v38, %v22574_v62  ;;  %v27847_v2 = vpop.f32.mrb[48].mxu1 }
 0xe08   : > { %v22556_v43 = vmax.f32 %v22508_v47, %v22516_v53  ;;  %v27929_v32 = vadd.f32 %v27847_v2, %v36497_v48  ;;  %v22079_v21 = vpop.f32.mrb[49].mxu1  ;;  %v36509_v2 = vld [vmem:[#allocation320_spill] sm:$0xff] }
 0xe09   : > { %v22554_v39 = vmax.f32 %v22506_v1, %v22514_v51  ;;  %v27930_v4 = vadd.f32 %v22079_v21, %v36498_v23  ;;  %v27848_v5 = vpop.f32.mrb[50].mxu1 }
 0xe0a   : > { %v22576_v27 = vmax.f32 %v22555_v18, %v22556_v43  ;;  %v27931_v60 = vadd.f32 %v27848_v5, %v36499_v11  ;;  %v22082_v10 = vpop.f32.mrb[51].mxu1  ;;  %v22455_v0 = vadd.f32 %v27929_v32, %v34453_v30 }
 0xe0b   : > { %v22575_v58 = vmax.f32 %v22553_v25, %v22554_v39  ;;  %v27932_v61 = vadd.f32 %v22082_v10, %v36500_v12  ;;  %v22453_v42 = vadd.f32 %v27930_v4, %v34453_v30  ;;  %v36510_v39 = vld [vmem:[#allocation321_spill] sm:$0xff] }
 0xe0c   : > { %v22456_v62 = vadd.f32 %v27931_v60, %v34453_v30  ;;  %v22519_v59 = vmax.f32 %v22455_v0, 0.0  ;;  %v36511_v60 = vld [vmem:[#allocation62_spill] sm:$0xff] }
 0xe0d   : > { %v22590_v6 = vadd.f32 %v22589_v49, %v22575_v58  ;;  %v22454_v57 = vadd.f32 %v27932_v61, %v34453_v30  ;;  %v22517_v8 = vmax.f32 %v22453_v42, 0.0 }
 0xe0e   : > { %v22520_v55 = vmax.f32 %v22456_v62, 0.0 }
 0xe0f   : > { %v27851_v56 = vpop.f32.mrb[52].mxu1  ;;  %v22591_v37 = vadd.f32 %v22590_v6, %v22576_v27  ;;  %v22518_v18 = vmax.f32 %v22454_v57, 0.0 }
 0xe10   : > { %v27933_v36 = vadd.f32 %v27851_v56, %v36501_v19  ;;  %v22095_v50 = vpop.f32.mrb[53].mxu1  ;;  %v36512_v56 = vld [vmem:[#allocation200_spill] sm:$0xff] }
 0xe11   : > { %v27934_v13 = vadd.f32 %v22095_v50, %v36502_v46  ;;  %v27852_v16 = vpop.f32.mrb[54].mxu1 }
 0xe12   : > { %v27935_v31 = vadd.f32 %v27852_v16, %v36503_v34  ;;  %v22098_v26 = vpop.f32.mrb[55].mxu1  ;;  %v22459_v51 = vadd.f32 %v27933_v36, %v34453_v30 }
 0xe13   : > { %v27936_v3 = vadd.f32 %v22098_v26, %v36504_v44  ;;  %v22457_v32 = vadd.f32 %v27934_v13, %v34453_v30 }
 0xe14   : > { %v22460_v5 = vadd.f32 %v27935_v31, %v34453_v30  ;;  %v22523_v36 = vmax.f32 %v22459_v51, 0.0 }
 0xe15   : > { %v22458_v12 = vadd.f32 %v27936_v3, %v34453_v30  ;;  %v22521_v13 = vmax.f32 %v22457_v32, 0.0 }
 0xe16   : > { %v22524_v26 = vmax.f32 %v22460_v5, 0.0 }
 0xe17   : > { %v27855_v28 = vpop.f32.mrb[56].mxu1  ;;  %v22522_v0 = vmax.f32 %v22458_v12, 0.0 }
 0xe18   : > { %v27937_v63 = vadd.f32 %v27855_v28, %v36505_v20  ;;  %v22111_v54 = vpop.f32.mrb[57].mxu1 }
 0xe19   : > { %v27938_v14 = vadd.f32 %v22111_v54, %v36506_v41  ;;  %v27856_v33 = vpop.f32.mrb[58].mxu1 }
 0xe1a   : > { %v22463_v24 = vadd.f32 %v27937_v63, %v34453_v30  ;;  %v27939_v22 = vadd.f32 %v27856_v33, %v36507_v9  ;;  %v22114_v17 = vpop.f32.mrb[59].mxu1 }
 0xe1b   : > { %v22461_v7 = vadd.f32 %v27938_v14, %v34453_v30  ;;  %v27940_v45 = vadd.f32 %v22114_v17, %v36508_v52 }
 0xe1c   : > { %v22527_v35 = vmax.f32 %v22463_v24, 0.0  ;;  %v22464_v40 = vadd.f32 %v27939_v22, %v34453_v30 }
 0xe1d   : > { %v22525_v29 = vmax.f32 %v22461_v7, 0.0  ;;  %v22462_v38 = vadd.f32 %v27940_v45, %v34453_v30 }
 0xe1e   : > { %v22559_v15 = vmax.f32 %v22519_v59, %v22527_v35  ;;  %v22528_v47 = vmax.f32 %v22464_v40, 0.0 }
 0xe1f   : > { %v22557_v53 = vmax.f32 %v22517_v8, %v22525_v29  ;;  %v22526_v1 = vmax.f32 %v22462_v38, 0.0  ;;  %v27859_v25 = vpop.f32.mrb[60].mxu1 }
 0xe20   : > { %v22560_v49 = vmax.f32 %v22520_v55, %v22528_v47  ;;  %v27941_v43 = vadd.f32 %v27859_v25, %v36509_v2  ;;  %v22127_v48 = vpop.f32.mrb[61].mxu1 }
 0xe21   : > { %v22558_v21 = vmax.f32 %v22518_v18, %v22526_v1  ;;  %v27942_v23 = vadd.f32 %v22127_v48, %v36510_v39  ;;  %v27860_v4 = vpop.f32.mrb[62].mxu1 }
 0xe22   : > { %v22578_v27 = vmax.f32 %v22559_v15, %v22560_v49  ;;  %v22467_v11 = vadd.f32 %v27941_v43, %v34453_v30  ;;  %v27943_v10 = vadd.f32 %v27860_v4, %v36511_v60  ;;  %v22130_v58 = vpop.f32.mrb[63].mxu1 }
 0xe23   : > { %v22577_v61 = vmax.f32 %v22557_v53, %v22558_v21  ;;  %v22465_v6 = vadd.f32 %v27942_v23, %v34453_v30  ;;  %v27944_v19 = vadd.f32 %v22130_v58, %v36512_v56 }
 0xe24   : > { %v22531_v50 = vmax.f32 %v22467_v11, 0.0  ;;  %v22468_v46 = vadd.f32 %v27943_v10, %v34453_v30 }
 0xe25   : > { %v22592_v16 = vadd.f32 %v22591_v37, %v22577_v61  ;;  %v22529_v34 = vmax.f32 %v22465_v6, 0.0  ;;  %v22466_v31 = vadd.f32 %v27944_v19, %v34453_v30  ;;  %v22709_v37 = vlaneseq  ;;  %v23969_v30 = vld [vmem:[%s34631_s6] ss:$0 sm:$0xff] }
 0xe26   : > { %v22563_v44 = vmax.f32 %v22523_v36, %v22531_v50  ;;  %v22532_v28 = vmax.f32 %v22468_v46, 0.0 }
 0xe27   : > { %v22561_v20 = vmax.f32 %v22521_v13, %v22529_v34  ;;  %v22530_v3 = vmax.f32 %v22466_v31, 0.0  ;;  %v22593_v63 = vadd.f32 %v22592_v16, %v22578_v27  ;;  %v22710_v22 = vand.u32 127, %v22709_v37 }
 0xe28   : > { %v22564_v54 = vmax.f32 %v22524_v26, %v22532_v28 }
 0xe29   : > { %v22562_v42 = vmax.f32 %v22522_v0, %v22530_v3  ;;  %vm22711_vm4 = vcmp.lt.s32.totalorder %v22710_v22, 10 }
 0xe2a   : > { %v22580_v41 = vmax.f32 %v22563_v44, %v22564_v54 }
 0xe2b   : > { %v22579_v14 = vmax.f32 %v22561_v20, %v22562_v42 }
 0xe2d   : > { %v22594_v33 = vadd.f32 %v22593_v63, %v22579_v14 }
 0xe2f   : > { %v22595_v62 = vadd.f32 %v22594_v33, %v22580_v41 }
 0xe31   : > { %v22596_v24 = vmul.f32 0.0625, %v22595_v62 }
 0xe33   : > { %v22597_v9 = vpack.c.bf16 %v22596_v24, %v22596_v24 }
 0xe35   : > { %27878 = vmatmul.mubr.bf16.vlgmr.msra.gmra.mrb[128].mxu0 %v22597_v9 }
 0xf08   : > { %v22703_v17 = vpop.f32.mrb[128].mxu0 }
 0xf09   : > { %v22704_v57 = vadd.f32 %v23969_v30, %v22703_v17  ;;  %v27879_v7 = vpop.f32.mrb[129].mxu0 }
 0xf0a   : > { %v22706_v52 = vpop.f32.mrb[130].mxu0 }
 0xf0b   : > { %v27880_v45 = vpop.f32.mrb[131].mxu0  ;;  %v22714_v59 = vsel %vm22711_vm4, %v22704_v57, -1e+30 }
 0xf0c   : > { %22715 = vmax.xlane.f32.xlu0 %v22714_v59 }
 0xf99   : > { %v22716_v35 = vpop.xlane.xlu0 %22715 }
 0xf9a   : > { %v22717_v40 = vsub.f32 %v22714_v59, %v22716_v35 }
 0xf9c   : > { %v22718_v8 = vmul.f32 1.442695, %v22717_v40 }
 0xf9e   : > { %29958 = vpow2.f32 %v22718_v8 }
 0xfa8   : > { %v29959_v29 = vpop.eup %29958 }
 0xfa9   : > { %v22720_v38 = vsel %vm22711_vm4, %v29959_v29, 0.0 }
 0xfaa   : > { %22721 = vadd.xlane.f32.xlu0 %v22720_v38 }
0x1037   : > { %v22722_v55 = vpop.xlane.xlu0 %22721 }
0x1038   : > { %29960 = vrcp.f32 %v22722_v55 }
0x1042   : > { %v29961_v15 = vpop.eup %29960 }
0x1043   : > { %v22724_v47 = vmul.f32 %v29961_v15, %v22720_v38 }
0x1045   : > { %22725 = vst [vmem:[%s271_s19] sm:$0xff] %v22724_v47 }
0x1046   : > { %29977 = shalt.err (!%p29974_p3)
}
0x1047   : > { %s29978_s15 = scalar_lea.hbm %s34583_s29, 128  ;;  %s29982_s17 = scalar_lea.hbm %s34632_s7, 256 }
0x1048   : > { %p29979_p4 = scmp.ne.s32.totalorder %s34583_s29, %s29978_s15  ;;  %p29983_p9 = scmp.lt.u32.totalorder %s34583_s29, %s34632_s7 }
0x1049   : > { %p29984_p10 = scmp.lt.u32.totalorder %s29982_s17, %s29978_s15  ;;  %p29986_p12 = scmp.lt.u32.totalorder %s29978_s15, %s34583_s29 }
0x104a   : > { %p29980_p7 = pnand %p29979_p4, %p30110_p5 }
0x104b   : > { %p29985_p11 = por %p29984_p10, %p29983_p9 }
0x104c   : > { %p29981_p8 = pneg %p29980_p7 }
0x104d   : > { %p29987_p13 = por %p29986_p12, %p29985_p11 }
0x104f   : > { %p29988_p0 = pnand %p29987_p13, %p29981_p8 }
0x1051   : > { %29991 = shalt.err (!%p29988_p0)
}
0x1052   : > { %29418 = dma.vmem_to_hbm [thread:$0]  (%p30110_p5), %s34585_s20, 128, %s34583_s29, %s22727_s8  }
0x1053 PF: > { %p29424_p1 = scmp.ge.s32.totalorder %s30026_s27, 2  ;;  %s22752_s22 = sand.u32 1, %s30014_s24  }
0x1054   : > { %s22753_s23 = scalar_lea.sflag [#allocation5], %s22752_s22 }
0x1055   : > { %p29421_p2 = pnand %p29424_p1, %p30114_p6 }
0x1057   : > { %30009 = dma.done.wait (!%p29421_p2), %s22753_s23, 128  }
0x1058   : > { %30011 = vsyncadd (!%p29421_p2), %s22753_s23, 4294967168  ;;  %p17_p3 = scmp.ge.s32.totalorder %s30097_s30, 4   ;;  %s36513_s24 = smov %s30018_s25 }
0x1059   : > { %s36514_s25 = smov %s30022_s26  ;;  %s36515_s26 = smov %s30108_s10 }
0x105a   : > { %s36516_s27 = smov %s30097_s30  ;;  %19 = sbr.rel (!%p17_p3) target bundleno = 3 (0x3), region = 131 }
0x1061   :  { %22758 = vsyncpa [#allocation5], 1 }
0x1062   :  { %22760 = vsyncpa [#allocation5 + $0x1], 1 }

</bundles_post_ra>
